<compile_context>
chip_gen: v7x
topology: tpu7x:2x2x1
jax: 0.10.0
libtpu: 0.0.40
codegen_flags: <defaults>
</compile_context>

<pallas_src>
import jax
import jax.numpy as jnp
from jax.experimental import pallas as pl
from jax.experimental.pallas import tpu as pltpu


# ----------------------------------------------------------------------------
# Tiled Pallas matmul, single K block, fused bias (+ optional tanh)
# bf16 MXU operands, f32 accumulate, f32 epilogue, configurable output dtype.
# ----------------------------------------------------------------------------
def _pick_tile(dim, candidates):
    for t in candidates:
        if dim % t == 0 and dim // t >= 2:
            return t
    return dim


def _mm_kernel_factory(activation):
    def kernel(a_ref, b_ref, bias_ref, o_ref):
        acc = jnp.dot(a_ref[...].astype(jnp.bfloat16), b_ref[...],
                      preferred_element_type=jnp.float32)
        r = acc + bias_ref[...]
        if activation == "tanh":
            r = jnp.tanh(r)
        o_ref[...] = r.astype(o_ref.dtype)
    return kernel


def matmul_bias_act(a, b_bf16, bias_row, activation=None, out_dtype=jnp.bfloat16):
    """(M,K) @ (K,N) + bias[1,N] (+tanh). Single K block; no accumulator scratch."""
    M, K = a.shape
    K2, N = b_bf16.shape
    assert K == K2 and bias_row.shape == (1, N)
    tm = _pick_tile(M, (128,))            # split M only when it stays aligned
    tn = _pick_tile(N, (512, 256, 128))   # >=2 parallel N tiles when N allows (v7x)
    grid = (M // tm, N // tn)
    return pl.pallas_call(
        _mm_kernel_factory(activation),
        out_shape=jax.ShapeDtypeStruct((M, N), out_dtype),
        grid_spec=pltpu.PrefetchScalarGridSpec(
            num_scalar_prefetch=0,
            grid=grid,
            in_specs=[
                pl.BlockSpec((tm, K), lambda i, j: (i, 0)),
                pl.BlockSpec((K, tn), lambda i, j: (0, j)),
                pl.BlockSpec((1, tn), lambda i, j: (0, j)),
            ],
            out_specs=pl.BlockSpec((tm, tn), lambda i, j: (i, j)),
        ),
        compiler_params=pltpu.CompilerParams(
            dimension_semantics=("parallel", "parallel")),
    )(a, b_bf16, bias_row)


# ----------------------------------------------------------------------------
# Fused ConvLSTM recurrence: one pallas_call per layer, grid (B, T).
# h/c in VMEM scratch, dense unrolled hidden->gates weight resident in VMEM,
# xpart streamed per (b, t), per-step h written via out BlockSpec indexed by (b, t).
# ----------------------------------------------------------------------------
def _lstm_kernel(P):
    def kernel(xp_ref, wh_ref, out_ref, h_scr, c_scr):
        t = pl.program_id(1)

        @pl.when(t == 0)
        def _init():
            h_scr[...] = jnp.zeros_like(h_scr)
            c_scr[...] = jnp.zeros_like(c_scr)

        gates = xp_ref[0, 0] + jnp.dot(h_scr[...], wh_ref[...],
                                       preferred_element_type=jnp.float32)
        # gate order matches torch.chunk(conv_output, 4, dim=1): [i | f | o | g]
        i = jax.nn.sigmoid(gates[:, 0 * P:1 * P])
        f = jax.nn.sigmoid(gates[:, 1 * P:2 * P])
        o = jax.nn.sigmoid(gates[:, 2 * P:3 * P])
        g = jnp.tanh(gates[:, 3 * P:4 * P])
        c_new = f * c_scr[...] + i * g
        h_new = o * jnp.tanh(c_new)
        c_scr[...] = c_new
        h_scr[...] = h_new.astype(h_scr.dtype)
        out_ref[0, 0] = h_new.astype(out_ref.dtype)
    return kernel


def convlstm_fused(x_flat, ux_bf16, uh_bf16, bias_u, B, T):
    """x_flat: (B*T, HW*cin) bf16, rows ordered (b, t).  Returns (B*T, HW*hd) bf16."""
    P = uh_bf16.shape[0]                     # HW * hd
    # Hoisted input->gates conv (+ bias) for all T frames, gate-major columns.
    xpart = matmul_bias_act(x_flat, ux_bf16, bias_u, None, jnp.float32)   # (B*T, 4P)
    xpart = xpart.reshape(B, T, 1, 4 * P)
    h_seq = pl.pallas_call(
        _lstm_kernel(P),
        out_shape=jax.ShapeDtypeStruct((B, T, 1, P), jnp.bfloat16),
        grid_spec=pltpu.PrefetchScalarGridSpec(
            num_scalar_prefetch=0,
            grid=(B, T),
            in_specs=[
                pl.BlockSpec((1, 1, 1, 4 * P), lambda b, t: (b, t, 0, 0)),
                pl.BlockSpec((P, 4 * P), lambda b, t: (0, 0)),   # resident across grid
            ],
            out_specs=pl.BlockSpec((1, 1, 1, P), lambda b, t: (b, t, 0, 0)),
            scratch_shapes=[pltpu.VMEM((1, P), jnp.bfloat16),    # h
                            pltpu.VMEM((1, P), jnp.float32)],    # c
        ),
        compiler_params=pltpu.CompilerParams(
            dimension_semantics=("parallel", "arbitrary")),
    )(xpart, uh_bf16)
    # nn.Dropout is eval-identity.
    return h_seq.reshape(B * T, P)


# ----------------------------------------------------------------------------
# Host-side glue: lean two-stage im2col (kh + kw slices instead of kh*kw)
# ----------------------------------------------------------------------------
def _im2col(x, kh, kw, stride=1):
    B, H, W, C = x.shape
    oh = (H - kh) // stride + 1
    ow = (W - kw) // stride + 1
    rows = jnp.stack([x[:, i:i + (oh - 1) * stride + 1:stride, :, :]
                      for i in range(kh)], axis=2)                 # (B, oh, kh, W, C)
    cols = jnp.stack([rows[:, :, :, j:j + (ow - 1) * stride + 1:stride, :]
                      for j in range(kw)], axis=4)                 # (B, oh, kh, ow, kw, C)
    cols = jnp.transpose(cols, (0, 1, 3, 2, 4, 5))                 # (B, oh, ow, kh, kw, C)
    return cols.reshape(B * oh * ow, kh * kw * C), oh, ow


def _conv2d_im2col(x, w_mat_bf16, bias_row, k, stride, activation):
    B = x.shape[0]
    cols, oh, ow = _im2col(x, k, k, stride)
    out = matmul_bias_act(cols, w_mat_bf16, bias_row, activation, jnp.bfloat16)
    return out.reshape(B, oh, ow, w_mat_bf16.shape[1])


def _conv_transpose_phase(x, w_r_bf16, bias_row, k, s, activation, out_dtype):
    """ConvTranspose2d (padding=0) via sub-pixel phase decomposition (no zero upsampling)."""
    N, H, W, _ = x.shape
    M = -(-k // s)                          # taps per phase
    Qh, Qw = H - 1 + M, W - 1 + M
    Hout, Wout = (H - 1) * s + k, (W - 1) * s + k
    cout = w_r_bf16.shape[1] // (s * s)
    x_pad = jnp.pad(x, ((0, 0), (M - 1, M - 1), (M - 1, M - 1), (0, 0)))
    cols, _, _ = _im2col(x_pad, M, M, 1)                       # (N*Qh*Qw, M*M*cin)
    out = matmul_bias_act(cols, w_r_bf16, bias_row, activation, out_dtype)
    out = out.reshape(N, Qh, Qw, s, s, cout)
    out = jnp.transpose(out, (0, 1, 3, 2, 4, 5)).reshape(N, Qh * s, Qw * s, cout)
    return out[:, :Hout, :Wout, :]


# ----------------------------------------------------------------------------
# One-time weight preparation (reshape / phase decomposition / unrolled conv / bf16)
# ----------------------------------------------------------------------------
def _unroll_conv3x3(w_hwio, H, W):
    """Dense 'unrolled conv' matrix for a 3x3 / pad-1 conv over a tiny HxW map.
    Rows: (input pixel, input channel). Columns: gate-major (gate, output pixel,
    channel), so every gate slice is 128-lane aligned. Zeros implement padding.
    Exact (no wasted MACs) for 2x2 maps; only sensible for tiny H*W."""
    kh, kw, cin, cout_tot = w_hwio.shape
    hd = cout_tot // 4
    HW = H * W
    w5 = w_hwio.reshape(kh, kw, cin, 4, hd)
    u = jnp.zeros((HW, cin, 4, HW, hd), w_hwio.dtype)
    for q in range(HW):
        yo, xo = divmod(q, W)
        for ky in range(kh):
            for kx in range(kw):
                yi, xi = yo + ky - kh // 2, xo + kx - kw // 2
                if 0 <= yi < H and 0 <= xi < W:
                    p = yi * W + xi
                    u = u.at[p, :, :, q, :].set(w5[ky, kx])
    return u.reshape(HW * cin, 4 * HW * hd)


def _prep_deconv(w_iohw, bias, s):
    """Phase-decomposed ConvTranspose2d weight: rows (tap_h, tap_w, cin),
    cols (phase_h, phase_w, cout)."""
    cin, cout, k, _ = w_iohw.shape
    M = -(-k // s)
    w_t = jnp.transpose(w_iohw, (2, 3, 0, 1))                     # (k,k,cin,cout)
    d = jnp.arange(M)
    p = jnp.arange(s)
    kidx = s * (M - 1 - d)[:, None] + p[None, :]                  # (M, s)
    valid = kidx < k
    ksafe = jnp.where(valid, kidx, 0)
    g = jnp.take(w_t, ksafe.reshape(-1), axis=0).reshape(M, s, k, cin, cout)
    g = jnp.take(g, ksafe.reshape(-1), axis=2).reshape(M, s, M, s, cin, cout)
    mask = valid[:, :, None, None] & valid[None, None, :, :]
    g = g * mask[:, :, :, :, None, None].astype(g.dtype)
    w_r = jnp.transpose(g, (0, 2, 4, 1, 3, 5)).reshape(M * M * cin, s * s * cout)
    bias_r = jnp.tile(bias, s * s).reshape(1, s * s * cout).astype(jnp.float32)
    return w_r.astype(jnp.bfloat16), bias_r


def prepare_params(params, H_in, W_in):
    prep = {}
    prep["enc1_wm"] = params["enc1_w"].reshape(11 * 11 * 1, 128).astype(jnp.bfloat16)
    prep["enc1_b"] = params["enc1_b"].reshape(1, -1).astype(jnp.float32)
    prep["enc2_wm"] = params["enc2_w"].reshape(5 * 5 * 128, 64).astype(jnp.bfloat16)
    prep["enc2_b"] = params["enc2_b"].reshape(1, -1).astype(jnp.float32)

    H1, W1 = (H_in - 11) // 4 + 1, (W_in - 11) // 4 + 1
    H2, W2 = (H1 - 5) // 2 + 1, (W1 - 5) // 2 + 1
    HW = H2 * W2
    for l in (1, 2, 3):
        w = params[f"lstm{l}_w"]
        b = params[f"lstm{l}_b"]
        hd = w.shape[3] // 4
        in_dim = w.shape[2] - hd
        wx, wh = w[:, :, :in_dim, :], w[:, :, in_dim:, :]   # cat([x, h], dim=1) split
        prep[f"lstm{l}_ux"] = _unroll_conv3x3(wx, H2, W2).astype(jnp.bfloat16)
        prep[f"lstm{l}_uh"] = _unroll_conv3x3(wh, H2, W2).astype(jnp.bfloat16)
        prep[f"lstm{l}_bu"] = jnp.broadcast_to(
            b.reshape(4, 1, hd), (4, HW, hd)).reshape(1, 4 * HW * hd).astype(jnp.float32)

    prep["dec1_wr"], prep["dec1_br"] = _prep_deconv(params["dec1_w"], params["dec1_b"], 2)
    prep["dec2_wr"], prep["dec2_br"] = _prep_deconv(params["dec2_w"], params["dec2_b"], 4)
    return prep


# ----------------------------------------------------------------------------
# Full model forward (Pallas path)
# ----------------------------------------------------------------------------
def deep_eye_forward(x, prep):
    # x: (B, 1, H, W, T) -- PyTorch NCDHW with the kernel-size-1 axis last (= time).
    B, C, H, W, T = x.shape
    frames = jnp.transpose(x, (0, 4, 2, 3, 1)).reshape(B * T, H, W, C)
    frames = frames.astype(jnp.bfloat16)

    # ---- encoder: all T frames batched along M ----
    e1 = _conv2d_im2col(frames, prep["enc1_wm"], prep["enc1_b"], 11, 4, "tanh")
    e2 = _conv2d_im2col(e1, prep["enc2_wm"], prep["enc2_b"], 5, 2, "tanh")
    BT, H2, W2, C2 = e2.shape

    # ---- ConvLSTM stack: (pixel, channel)-flat frames, fused recurrences ----
    x_flat = e2.reshape(BT, H2 * W2 * C2)
    for l in (1, 2, 3):
        x_flat = convlstm_fused(x_flat, prep[f"lstm{l}_ux"], prep[f"lstm{l}_uh"],
                                prep[f"lstm{l}_bu"], B, T)
    hd3 = x_flat.shape[1] // (H2 * W2)
    h3 = x_flat.reshape(BT, H2, W2, hd3)

    # ---- decoder: phase-decomposed transposed convs, all T frames batched ----
    d1 = _conv_transpose_phase(h3, prep["dec1_wr"], prep["dec1_br"], 5, 2, "tanh",
                               jnp.bfloat16)
    d2 = _conv_transpose_phase(d1, prep["dec2_wr"], prep["dec2_br"], 11, 4, "tanh",
                               jnp.float32)

    Ho, Wo = d2.shape[1], d2.shape[2]
    out = d2.reshape(B, T, Ho, Wo, 1)
    return jnp.transpose(out, (0, 4, 2, 3, 1))          # (B, 1, Ho, Wo, T)


# ----------------------------------------------------------------------------
# Pure-JAX f32 reference (PyTorch semantics) for the value check
# ----------------------------------------------------------------------------
def _conv_ref(x, w_hwio, b, stride, padding):
    y = jax.lax.conv_general_dilated(
        x, w_hwio, (stride, stride),
        [(padding, padding), (padding, padding)],
        dimension_numbers=("NHWC", "HWIO", "NHWC"))
    return y + b


def _deconv_ref(x, w_iohw, b, s):
    k = w_iohw.shape[2]
    w_hwio = jnp.transpose(w_iohw[:, :, ::-1, ::-1], (2, 3, 0, 1))
    y = jax.lax.conv_general_dilated(
        x, w_hwio, (1, 1), [(k - 1, k - 1), (k - 1, k - 1)],
        lhs_dilation=(s, s), dimension_numbers=("NHWC", "HWIO", "NHWC"))
    return y + b


def _convlstm_ref(seq, w_hwio, b, hd):
    B, T, H, W, _ = seq.shape
    h = jnp.zeros((B, H, W, hd), jnp.float32)
    c = jnp.zeros((B, H, W, hd), jnp.float32)
    outs = []
    for t in range(T):
        comb = jnp.concatenate([seq[:, t], h], axis=-1)
        g = _conv_ref(comb, w_hwio, b, 1, 1)
        i = jax.nn.sigmoid(g[..., 0:hd])
        f = jax.nn.sigmoid(g[..., hd:2 * hd])
        o = jax.nn.sigmoid(g[..., 2 * hd:3 * hd])
        gg = jnp.tanh(g[..., 3 * hd:4 * hd])
        c = f * c + i * gg
        h = o * jnp.tanh(c)
        outs.append(h)
    return jnp.stack(outs, axis=1)


def reference_forward(x, params):
    B, C, H, W, T = x.shape
    frames = jnp.transpose(x, (0, 4, 2, 3, 1)).reshape(B * T, H, W, C)
    e1 = jnp.tanh(_conv_ref(frames, params["enc1_w"], params["enc1_b"], 4, 0))
    e2 = jnp.tanh(_conv_ref(e1, params["enc2_w"], params["enc2_b"], 2, 0))
    H2, W2 = e2.shape[1], e2.shape[2]
    seq = e2.reshape(B, T, H2, W2, 64)
    s1 = _convlstm_ref(seq, params["lstm1_w"], params["lstm1_b"], 64)
    s2 = _convlstm_ref(s1, params["lstm2_w"], params["lstm2_b"], 32)
    s3 = _convlstm_ref(s2, params["lstm3_w"], params["lstm3_b"], 64)
    xd = s3.reshape(B * T, H2, W2, 64)
    d1 = jnp.tanh(_deconv_ref(xd, params["dec1_w"], params["dec1_b"], 2))
    d2 = jnp.tanh(_deconv_ref(d1, params["dec2_w"], params["dec2_b"], 4))
    Ho, Wo = d2.shape[1], d2.shape[2]
    out = d2.reshape(B, T, Ho, Wo, 1)
    return jnp.transpose(out, (0, 4, 2, 3, 1))


# ----------------------------------------------------------------------------
# Deterministic parameter init (PyTorch-like uniform(-1/sqrt(fan_in), ...))
# ----------------------------------------------------------------------------
def _uinit(key, shape, fan_in):
    bound = 1.0 / (fan_in ** 0.5)
    return jax.random.uniform(key, shape, jnp.float32, -bound, bound)


def init_params(key):
    ks = jax.random.split(key, 14)
    p = {}
    # encoder: Conv3d(1,128,(11,11,1),s=(4,4,1)) / Conv3d(128,64,(5,5,1),s=(2,2,1))
    p["enc1_w"] = _uinit(ks[0], (11, 11, 1, 128), 1 * 11 * 11)
    p["enc1_b"] = _uinit(ks[1], (128,), 1 * 11 * 11)
    p["enc2_w"] = _uinit(ks[2], (5, 5, 128, 64), 128 * 5 * 5)
    p["enc2_b"] = _uinit(ks[3], (64,), 128 * 5 * 5)
    # ConvLSTM cells: Conv2d(in+hid, 4*hid, 3, pad=1); input channels are [x ; h]
    p["lstm1_w"] = _uinit(ks[4], (3, 3, 64 + 64, 4 * 64), 128 * 9)
    p["lstm1_b"] = _uinit(ks[5], (4 * 64,), 128 * 9)
    p["lstm2_w"] = _uinit(ks[6], (3, 3, 64 + 32, 4 * 32), 96 * 9)
    p["lstm2_b"] = _uinit(ks[7], (4 * 32,), 96 * 9)
    p["lstm3_w"] = _uinit(ks[8], (3, 3, 32 + 64, 4 * 64), 96 * 9)
    p["lstm3_b"] = _uinit(ks[9], (4 * 64,), 96 * 9)
    # decoder: ConvTranspose3d(64,128,(5,5,1),s=(2,2,1)) / (128,1,(11,11,1),s=(4,4,1))
    p["dec1_w"] = _uinit(ks[10], (64, 128, 5, 5), 64 * 5 * 5)
    p["dec1_b"] = _uinit(ks[11], (128,), 64 * 5 * 5)
    p["dec2_w"] = _uinit(ks[12], (128, 1, 11, 11), 128 * 11 * 11)
    p["dec2_b"] = _uinit(ks[13], (1,), 128 * 11 * 11)
    return p


if __name__ == "__main__":
    root = jax.random.PRNGKey(0)
    pkey, xkey = jax.random.split(root)
    params = init_params(pkey)

    # Small input: B=2, 1 channel, 39x39 spatial, T=2 time slices.
    x = jax.random.normal(xkey, (2, 1, 39, 39, 2), jnp.float32)

    prep = prepare_params(params, 39, 39)           # one-time weight prep (off hot path)
    fwd = jax.jit(deep_eye_forward)
    out = jax.block_until_ready(fwd(x, prep))

    # encoder: 39 -> 8 -> 2 ; decoder: 2 -> 7 -> 35 ; time preserved.
    assert out.shape == (2, 1, 35, 35, 2), out.shape
    assert bool(jnp.all(jnp.isfinite(out)))

    # Value check against a pure-JAX f32 reference (bf16 MXU operands -> loose tolerance).
    ref = jax.block_until_ready(jax.jit(reference_forward)(x, params))
    err = float(jnp.max(jnp.abs(out.astype(jnp.float32) - ref)))
    assert err < 5e-2, f"max abs err vs reference: {err}"

    print("KERNEL_OK")
</pallas_src>

<mosaic_0001>
module attributes {stable_mosaic.version = 11 : i64} {
  func.func @kernel(%arg0: i32, %arg1: i32, %arg2: memref<128x121xbf16, #tpu.memory_space<vmem>>, %arg3: memref<121x128xbf16, #tpu.memory_space<vmem>>, %arg4: memref<1x128xf32, #tpu.memory_space<vmem>>, %arg5: memref<128x128xbf16, #tpu.memory_space<vmem>>) attributes {dimension_semantics = [#tpu.dimension_semantics<parallel>, #tpu.dimension_semantics<parallel>], iteration_bounds = array<i64: 2, 1>, scalar_prefetch = 0 : i64, scratch_operands = 0 : i64, tpu.core_type = #tpu.core_type<tc>, window_params = [{transform_indices = @transform_0, window_bounds = array<i64: 128, 121>}, {transform_indices = @transform_1, window_bounds = array<i64: 121, 128>}, {transform_indices = @transform_2, window_bounds = array<i64: 1, 128>}, {transform_indices = @transform_3, window_bounds = array<i64: 128, 128>}]} {
    %c0 = arith.constant 0 : index
    %c0_0 = arith.constant 0 : index
    %0 = vector.load %arg2[%c0, %c0_0] : memref<128x121xbf16, #tpu.memory_space<vmem>>, vector<128x121xbf16>
    %c0_1 = arith.constant 0 : index
    %c0_2 = arith.constant 0 : index
    %1 = vector.load %arg3[%c0_1, %c0_2] : memref<121x128xbf16, #tpu.memory_space<vmem>>, vector<121x128xbf16>
    %cst = arith.constant dense<0.000000e+00> : vector<128x128xf32>
    %2 = tpu.matmul %0, %1, %cst {dimension_numbers = #tpu.dot_dimension_numbers<[1], [0], [0], [1], [0, 0, 1, 1], [], []>} : vector<128x121xbf16>, vector<121x128xbf16>, vector<128x128xf32> -> vector<128x128xf32>
    %c0_3 = arith.constant 0 : index
    %c0_4 = arith.constant 0 : index
    %3 = vector.load %arg4[%c0_3, %c0_4] : memref<1x128xf32, #tpu.memory_space<vmem>>, vector<1x128xf32>
    %4 = vector.broadcast %3 : vector<1x128xf32> to vector<128x128xf32>
    %5 = arith.addf %2, %4 : vector<128x128xf32>
    %6 = math.tanh %5 : vector<128x128xf32>
    %7 = arith.truncf %6 : vector<128x128xf32> to vector<128x128xbf16>
    %c0_5 = arith.constant 0 : index
    %c0_6 = arith.constant 0 : index
    %8 = vector.load %arg5[%c0_5, %c0_6] : memref<128x128xbf16, #tpu.memory_space<vmem>>, vector<128x128xbf16>
    tpu.vector_store %arg5[%c0_5, %c0_6], %7 {strides = array<i32>} : memref<128x128xbf16, #tpu.memory_space<vmem>>, vector<128x128xbf16>,
    return
  }
  func.func @transform_0(%arg0: i32, %arg1: i32) -> (i32, i32) {
    %c0_i32 = arith.constant 0 : i32
    %c0_i32_0 = arith.constant 0 : i32
    return %arg0, %c0_i32 : i32, i32
  }
  func.func @transform_1(%arg0: i32, %arg1: i32) -> (i32, i32) {
    %c0_i32 = arith.constant 0 : i32
    %c0_i32_0 = arith.constant 0 : i32
    return %c0_i32, %arg1 : i32, i32
  }
  func.func @transform_2(%arg0: i32, %arg1: i32) -> (i32, i32) {
    %c0_i32 = arith.constant 0 : i32
    %c0_i32_0 = arith.constant 0 : i32
    return %c0_i32, %arg1 : i32, i32
  }
  func.func @transform_3(%arg0: i32, %arg1: i32) -> (i32, i32) {
    %c0_i32 = arith.constant 0 : i32
    return %arg0, %arg1 : i32, i32
  }
}

module attributes {stable_mosaic.version = 11 : i64} {
  func.func @kernel(%arg0: i32, %arg1: i32, %arg2: memref<16x3200xbf16, #tpu.memory_space<vmem>>, %arg3: memref<3200x64xbf16, #tpu.memory_space<vmem>>, %arg4: memref<1x64xf32, #tpu.memory_space<vmem>>, %arg5: memref<16x64xbf16, #tpu.memory_space<vmem>>) attributes {dimension_semantics = [#tpu.dimension_semantics<parallel>, #tpu.dimension_semantics<parallel>], iteration_bounds = array<i64: 1, 1>, scalar_prefetch = 0 : i64, scratch_operands = 0 : i64, tpu.core_type = #tpu.core_type<tc>, window_params = [{transform_indices = @transform_0, window_bounds = array<i64: 16, 3200>}, {transform_indices = @transform_1, window_bounds = array<i64: 3200, 64>}, {transform_indices = @transform_2, window_bounds = array<i64: 1, 64>}, {transform_indices = @transform_3, window_bounds = array<i64: 16, 64>}]} {
    %c0 = arith.constant 0 : index
    %c0_0 = arith.constant 0 : index
    %0 = vector.load %arg2[%c0, %c0_0] : memref<16x3200xbf16, #tpu.memory_space<vmem>>, vector<16x3200xbf16>
    %c0_1 = arith.constant 0 : index
    %c0_2 = arith.constant 0 : index
    %1 = vector.load %arg3[%c0_1, %c0_2] : memref<3200x64xbf16, #tpu.memory_space<vmem>>, vector<3200x64xbf16>
    %cst = arith.constant dense<0.000000e+00> : vector<16x64xf32>
    %2 = tpu.matmul %0, %1, %cst {dimension_numbers = #tpu.dot_dimension_numbers<[1], [0], [0], [1], [0, 0, 1, 1], [], []>} : vector<16x3200xbf16>, vector<3200x64xbf16>, vector<16x64xf32> -> vector<16x64xf32>
    %c0_3 = arith.constant 0 : index
    %c0_4 = arith.constant 0 : index
    %3 = vector.load %arg4[%c0_3, %c0_4] : memref<1x64xf32, #tpu.memory_space<vmem>>, vector<1x64xf32>
    %4 = vector.broadcast %3 : vector<1x64xf32> to vector<16x64xf32>
    %5 = arith.addf %2, %4 : vector<16x64xf32>
    %6 = math.tanh %5 : vector<16x64xf32>
    %7 = arith.truncf %6 : vector<16x64xf32> to vector<16x64xbf16>
    %c0_5 = arith.constant 0 : index
    %c0_6 = arith.constant 0 : index
    %8 = vector.load %arg5[%c0_5, %c0_6] : memref<16x64xbf16, #tpu.memory_space<vmem>>, vector<16x64xbf16>
    tpu.vector_store %arg5[%c0_5, %c0_6], %7 {strides = array<i32>} : memref<16x64xbf16, #tpu.memory_space<vmem>>, vector<16x64xbf16>,
    return
  }
  func.func @transform_0(%arg0: i32, %arg1: i32) -> (i32, i32) {
    %c0_i32 = arith.constant 0 : i32
    %c0_i32_0 = arith.constant 0 : i32
    return %arg0, %c0_i32 : i32, i32
  }
  func.func @transform_1(%arg0: i32, %arg1: i32) -> (i32, i32) {
    %c0_i32 = arith.constant 0 : i32
    %c0_i32_0 = arith.constant 0 : i32
    return %c0_i32, %arg1 : i32, i32
  }
  func.func @transform_2(%arg0: i32, %arg1: i32) -> (i32, i32) {
    %c0_i32 = arith.constant 0 : i32
    %c0_i32_0 = arith.constant 0 : i32
    return %c0_i32, %arg1 : i32, i32
  }
  func.func @transform_3(%arg0: i32, %arg1: i32) -> (i32, i32) {
    %c0_i32 = arith.constant 0 : i32
    return %arg0, %arg1 : i32, i32
  }
}

module attributes {stable_mosaic.version = 11 : i64} {
  func.func @kernel(%arg0: i32, %arg1: i32, %arg2: memref<4x256xbf16, #tpu.memory_space<vmem>>, %arg3: memref<256x512xbf16, #tpu.memory_space<vmem>>, %arg4: memref<1x512xf32, #tpu.memory_space<vmem>>, %arg5: memref<4x512xf32, #tpu.memory_space<vmem>>) attributes {dimension_semantics = [#tpu.dimension_semantics<parallel>, #tpu.dimension_semantics<parallel>], iteration_bounds = array<i64: 1, 2>, scalar_prefetch = 0 : i64, scratch_operands = 0 : i64, tpu.core_type = #tpu.core_type<tc>, window_params = [{transform_indices = @transform_0, window_bounds = array<i64: 4, 256>}, {transform_indices = @transform_1, window_bounds = array<i64: 256, 512>}, {transform_indices = @transform_2, window_bounds = array<i64: 1, 512>}, {transform_indices = @transform_3, window_bounds = array<i64: 4, 512>}]} {
    %c0 = arith.constant 0 : index
    %c0_0 = arith.constant 0 : index
    %0 = vector.load %arg2[%c0, %c0_0] : memref<4x256xbf16, #tpu.memory_space<vmem>>, vector<4x256xbf16>
    %c0_1 = arith.constant 0 : index
    %c0_2 = arith.constant 0 : index
    %1 = vector.load %arg3[%c0_1, %c0_2] : memref<256x512xbf16, #tpu.memory_space<vmem>>, vector<256x512xbf16>
    %cst = arith.constant dense<0.000000e+00> : vector<4x512xf32>
    %2 = tpu.matmul %0, %1, %cst {dimension_numbers = #tpu.dot_dimension_numbers<[1], [0], [0], [1], [0, 0, 1, 1], [], []>} : vector<4x256xbf16>, vector<256x512xbf16>, vector<4x512xf32> -> vector<4x512xf32>
    %c0_3 = arith.constant 0 : index
    %c0_4 = arith.constant 0 : index
    %3 = vector.load %arg4[%c0_3, %c0_4] : memref<1x512xf32, #tpu.memory_space<vmem>>, vector<1x512xf32>
    %4 = vector.broadcast %3 : vector<1x512xf32> to vector<4x512xf32>
    %5 = arith.addf %2, %4 : vector<4x512xf32>
    %c0_5 = arith.constant 0 : index
    %c0_6 = arith.constant 0 : index
    %6 = vector.load %arg5[%c0_5, %c0_6] : memref<4x512xf32, #tpu.memory_space<vmem>>, vector<4x512xf32>
    tpu.vector_store %arg5[%c0_5, %c0_6], %5 {strides = array<i32>} : memref<4x512xf32, #tpu.memory_space<vmem>>, vector<4x512xf32>,
    return
  }
  func.func @transform_0(%arg0: i32, %arg1: i32) -> (i32, i32) {
    %c0_i32 = arith.constant 0 : i32
    %c0_i32_0 = arith.constant 0 : i32
    return %arg0, %c0_i32 : i32, i32
  }
  func.func @transform_1(%arg0: i32, %arg1: i32) -> (i32, i32) {
    %c0_i32 = arith.constant 0 : i32
    %c0_i32_0 = arith.constant 0 : i32
    return %c0_i32, %arg1 : i32, i32
  }
  func.func @transform_2(%arg0: i32, %arg1: i32) -> (i32, i32) {
    %c0_i32 = arith.constant 0 : i32
    %c0_i32_0 = arith.constant 0 : i32
    return %c0_i32, %arg1 : i32, i32
  }
  func.func @transform_3(%arg0: i32, %arg1: i32) -> (i32, i32) {
    %c0_i32 = arith.constant 0 : i32
    return %arg0, %arg1 : i32, i32
  }
}

module attributes {stable_mosaic.version = 11 : i64} {
  func.func @kernel(%arg0: i32, %arg1: i32, %arg2: memref<4x256xbf16, #tpu.memory_space<vmem>>, %arg3: memref<256x256xbf16, #tpu.memory_space<vmem>>, %arg4: memref<1x256xf32, #tpu.memory_space<vmem>>, %arg5: memref<4x256xf32, #tpu.memory_space<vmem>>) attributes {dimension_semantics = [#tpu.dimension_semantics<parallel>, #tpu.dimension_semantics<parallel>], iteration_bounds = array<i64: 1, 2>, scalar_prefetch = 0 : i64, scratch_operands = 0 : i64, tpu.core_type = #tpu.core_type<tc>, window_params = [{transform_indices = @transform_0, window_bounds = array<i64: 4, 256>}, {transform_indices = @transform_1, window_bounds = array<i64: 256, 256>}, {transform_indices = @transform_2, window_bounds = array<i64: 1, 256>}, {transform_indices = @transform_3, window_bounds = array<i64: 4, 256>}]} {
    %c0 = arith.constant 0 : index
    %c0_0 = arith.constant 0 : index
    %0 = vector.load %arg2[%c0, %c0_0] : memref<4x256xbf16, #tpu.memory_space<vmem>>, vector<4x256xbf16>
    %c0_1 = arith.constant 0 : index
    %c0_2 = arith.constant 0 : index
    %1 = vector.load %arg3[%c0_1, %c0_2] : memref<256x256xbf16, #tpu.memory_space<vmem>>, vector<256x256xbf16>
    %cst = arith.constant dense<0.000000e+00> : vector<4x256xf32>
    %2 = tpu.matmul %0, %1, %cst {dimension_numbers = #tpu.dot_dimension_numbers<[1], [0], [0], [1], [0, 0, 1, 1], [], []>} : vector<4x256xbf16>, vector<256x256xbf16>, vector<4x256xf32> -> vector<4x256xf32>
    %c0_3 = arith.constant 0 : index
    %c0_4 = arith.constant 0 : index
    %3 = vector.load %arg4[%c0_3, %c0_4] : memref<1x256xf32, #tpu.memory_space<vmem>>, vector<1x256xf32>
    %4 = vector.broadcast %3 : vector<1x256xf32> to vector<4x256xf32>
    %5 = arith.addf %2, %4 : vector<4x256xf32>
    %c0_5 = arith.constant 0 : index
    %c0_6 = arith.constant 0 : index
    %6 = vector.load %arg5[%c0_5, %c0_6] : memref<4x256xf32, #tpu.memory_space<vmem>>, vector<4x256xf32>
    tpu.vector_store %arg5[%c0_5, %c0_6], %5 {strides = array<i32>} : memref<4x256xf32, #tpu.memory_space<vmem>>, vector<4x256xf32>,
    return
  }
  func.func @transform_0(%arg0: i32, %arg1: i32) -> (i32, i32) {
    %c0_i32 = arith.constant 0 : i32
    %c0_i32_0 = arith.constant 0 : i32
    return %arg0, %c0_i32 : i32, i32
  }
  func.func @transform_1(%arg0: i32, %arg1: i32) -> (i32, i32) {
    %c0_i32 = arith.constant 0 : i32
    %c0_i32_0 = arith.constant 0 : i32
    return %c0_i32, %arg1 : i32, i32
  }
  func.func @transform_2(%arg0: i32, %arg1: i32) -> (i32, i32) {
    %c0_i32 = arith.constant 0 : i32
    %c0_i32_0 = arith.constant 0 : i32
    return %c0_i32, %arg1 : i32, i32
  }
  func.func @transform_3(%arg0: i32, %arg1: i32) -> (i32, i32) {
    %c0_i32 = arith.constant 0 : i32
    return %arg0, %arg1 : i32, i32
  }
}

module attributes {stable_mosaic.version = 11 : i64} {
  func.func @kernel(%arg0: i32, %arg1: i32, %arg2: memref<1x1x1x1024xf32, #tpu.memory_space<vmem>>, %arg3: memref<256x1024xbf16, #tpu.memory_space<vmem>>, %arg4: memref<1x1x1x256xbf16, #tpu.memory_space<vmem>>, %arg5: memref<1x256xbf16, #tpu.memory_space<vmem>>, %arg6: memref<1x256xf32, #tpu.memory_space<vmem>>) attributes {dimension_semantics = [#tpu.dimension_semantics<parallel>, #tpu.dimension_semantics<arbitrary>], iteration_bounds = array<i64: 2, 2>, scalar_prefetch = 0 : i64, scratch_operands = 2 : i64, tpu.core_type = #tpu.core_type<tc>, window_params = [{transform_indices = @transform_0, window_bounds = array<i64: 1, 1, 1, 1024>}, {pipeline_mode = #tpu.pipeline_mode<synchronous>, transform_indices = @transform_1, window_bounds = array<i64: 256, 1024>}, {transform_indices = @transform_2, window_bounds = array<i64: 1, 1, 1, 256>}]} {
    %c0_i32 = arith.constant 0 : i32
    %0 = arith.cmpi eq, %arg1, %c0_i32 : i32
    %1 = arith.extui %0 : i1 to i32
    %c0_i32_0 = arith.constant 0 : i32
    %2 = arith.cmpi ne, %1, %c0_i32_0 : i32
    scf.if %2 {
      %cst_21 = arith.constant 0.000000e+00 : bf16
      %42 = vector.broadcast %cst_21 : bf16 to vector<1x256xbf16>
      %c0_22 = arith.constant 0 : index
      %c0_23 = arith.constant 0 : index
      %43 = vector.load %arg5[%c0_22, %c0_23] : memref<1x256xbf16, #tpu.memory_space<vmem>>, vector<1x256xbf16>
      tpu.vector_store %arg5[%c0_22, %c0_23], %42 {strides = array<i32>} : memref<1x256xbf16, #tpu.memory_space<vmem>>, vector<1x256xbf16>,
      %cst_24 = arith.constant 0.000000e+00 : f32
      %44 = vector.broadcast %cst_24 : f32 to vector<1x256xf32>
      %c0_25 = arith.constant 0 : index
      %c0_26 = arith.constant 0 : index
      %45 = vector.load %arg6[%c0_25, %c0_26] : memref<1x256xf32, #tpu.memory_space<vmem>>, vector<1x256xf32>
      tpu.vector_store %arg6[%c0_25, %c0_26], %44 {strides = array<i32>} : memref<1x256xf32, #tpu.memory_space<vmem>>, vector<1x256xf32>,
    } else {
    }
    %c0 = arith.constant 0 : index
    %c0_1 = arith.constant 0 : index
    %c0_2 = arith.constant 0 : index
    %c0_3 = arith.constant 0 : index
    %3 = vector.load %arg2[%c0, %c0_1, %c0_2, %c0_3] : memref<1x1x1x1024xf32, #tpu.memory_space<vmem>>, vector<1x1x1x1024xf32>
    %4 = vector.shape_cast %3 : vector<1x1x1x1024xf32> to vector<1x1024xf32>
    %c0_4 = arith.constant 0 : index
    %c0_5 = arith.constant 0 : index
    %5 = vector.load %arg5[%c0_4, %c0_5] : memref<1x256xbf16, #tpu.memory_space<vmem>>, vector<1x256xbf16>
    %c0_6 = arith.constant 0 : index
    %c0_7 = arith.constant 0 : index
    %6 = vector.load %arg3[%c0_6, %c0_7] : memref<256x1024xbf16, #tpu.memory_space<vmem>>, vector<256x1024xbf16>
    %cst = arith.constant dense<0.000000e+00> : vector<1x1024xf32>
    %7 = tpu.matmul %5, %6, %cst {dimension_numbers = #tpu.dot_dimension_numbers<[1], [0], [0], [1], [0, 0, 1, 1], [], []>} : vector<1x256xbf16>, vector<256x1024xbf16>, vector<1x1024xf32> -> vector<1x1024xf32>
    %8 = arith.addf %4, %7 : vector<1x1024xf32>
    %9 = vector.extract_strided_slice %8 {offsets = [0, 0], sizes = [1, 256], strides = [1, 1]} : vector<1x1024xf32> to vector<1x256xf32>
    %10 = arith.negf %9 : vector<1x256xf32>
    %11 = math.exp %10 : vector<1x256xf32>
    %cst_8 = arith.constant 1.000000e+00 : f32
    %12 = vector.broadcast %cst_8 : f32 to vector<1x256xf32>
    %13 = arith.addf %12, %11 : vector<1x256xf32>
    %14 = arith.divf %12, %13 : vector<1x256xf32>
    %15 = vector.extract_strided_slice %8 {offsets = [0, 256], sizes = [1, 256], strides = [1, 1]} : vector<1x1024xf32> to vector<1x256xf32>
    %16 = arith.negf %15 : vector<1x256xf32>
    %17 = math.exp %16 : vector<1x256xf32>
    %cst_9 = arith.constant 1.000000e+00 : f32
    %18 = vector.broadcast %cst_9 : f32 to vector<1x256xf32>
    %19 = arith.addf %18, %17 : vector<1x256xf32>
    %20 = arith.divf %18, %19 : vector<1x256xf32>
    %21 = vector.extract_strided_slice %8 {offsets = [0, 512], sizes = [1, 256], strides = [1, 1]} : vector<1x1024xf32> to vector<1x256xf32>
    %22 = arith.negf %21 : vector<1x256xf32>
    %23 = math.exp %22 : vector<1x256xf32>
    %cst_10 = arith.constant 1.000000e+00 : f32
    %24 = vector.broadcast %cst_10 : f32 to vector<1x256xf32>
    %25 = arith.addf %24, %23 : vector<1x256xf32>
    %26 = arith.divf %24, %25 : vector<1x256xf32>
    %27 = vector.extract_strided_slice %8 {offsets = [0, 768], sizes = [1, 256], strides = [1, 1]} : vector<1x1024xf32> to vector<1x256xf32>
    %28 = math.tanh %27 : vector<1x256xf32>
    %c0_11 = arith.constant 0 : index
    %c0_12 = arith.constant 0 : index
    %29 = vector.load %arg6[%c0_11, %c0_12] : memref<1x256xf32, #tpu.memory_space<vmem>>, vector<1x256xf32>
    %30 = arith.mulf %20, %29 : vector<1x256xf32>
    %31 = arith.mulf %14, %28 : vector<1x256xf32>
    %32 = arith.addf %30, %31 : vector<1x256xf32>
    %33 = math.tanh %32 : vector<1x256xf32>
    %34 = arith.mulf %26, %33 : vector<1x256xf32>
    %c0_13 = arith.constant 0 : index
    %c0_14 = arith.constant 0 : index
    %35 = vector.load %arg6[%c0_13, %c0_14] : memref<1x256xf32, #tpu.memory_space<vmem>>, vector<1x256xf32>
    tpu.vector_store %arg6[%c0_13, %c0_14], %32 {strides = array<i32>} : memref<1x256xf32, #tpu.memory_space<vmem>>, vector<1x256xf32>,
    %36 = arith.truncf %34 : vector<1x256xf32> to vector<1x256xbf16>
    %c0_15 = arith.constant 0 : index
    %c0_16 = arith.constant 0 : index
    %37 = vector.load %arg5[%c0_15, %c0_16] : memref<1x256xbf16, #tpu.memory_space<vmem>>, vector<1x256xbf16>
    tpu.vector_store %arg5[%c0_15, %c0_16], %36 {strides = array<i32>} : memref<1x256xbf16, #tpu.memory_space<vmem>>, vector<1x256xbf16>,
    %38 = arith.truncf %34 : vector<1x256xf32> to vector<1x256xbf16>
    %c0_17 = arith.constant 0 : index
    %c0_18 = arith.constant 0 : index
    %c0_19 = arith.constant 0 : index
    %c0_20 = arith.constant 0 : index
    %39 = vector.load %arg4[%c0_17, %c0_18, %c0_19, %c0_20] : memref<1x1x1x256xbf16, #tpu.memory_space<vmem>>, vector<1x1x1x256xbf16>
    %40 = vector.shape_cast %39 : vector<1x1x1x256xbf16> to vector<1x256xbf16>
    %41 = vector.shape_cast %38 : vector<1x256xbf16> to vector<1x1x1x256xbf16>
    tpu.vector_store %arg4[%c0_17, %c0_18, %c0_19, %c0_20], %41 {strides = array<i32>} : memref<1x1x1x256xbf16, #tpu.memory_space<vmem>>, vector<1x1x1x256xbf16>,
    return
  }
  func.func @transform_0(%arg0: i32, %arg1: i32) -> (i32, i32, i32, i32) {
    %c0_i32 = arith.constant 0 : i32
    %c0_i32_0 = arith.constant 0 : i32
    %c0_i32_1 = arith.constant 0 : i32
    return %arg0, %arg1, %c0_i32, %c0_i32_0 : i32, i32, i32, i32
  }
  func.func @transform_1(%arg0: i32, %arg1: i32) -> (i32, i32) {
    %c0_i32 = arith.constant 0 : i32
    %c0_i32_0 = arith.constant 0 : i32
    %c0_i32_1 = arith.constant 0 : i32
    return %c0_i32, %c0_i32_0 : i32, i32
  }
  func.func @transform_2(%arg0: i32, %arg1: i32) -> (i32, i32, i32, i32) {
    %c0_i32 = arith.constant 0 : i32
    %c0_i32_0 = arith.constant 0 : i32
    %c0_i32_1 = arith.constant 0 : i32
    return %arg0, %arg1, %c0_i32, %c0_i32_0 : i32, i32, i32, i32
  }
}

module attributes {stable_mosaic.version = 11 : i64} {
  func.func @kernel(%arg0: i32, %arg1: i32, %arg2: memref<1x1x1x512xf32, #tpu.memory_space<vmem>>, %arg3: memref<128x512xbf16, #tpu.memory_space<vmem>>, %arg4: memref<1x1x1x128xbf16, #tpu.memory_space<vmem>>, %arg5: memref<1x128xbf16, #tpu.memory_space<vmem>>, %arg6: memref<1x128xf32, #tpu.memory_space<vmem>>) attributes {dimension_semantics = [#tpu.dimension_semantics<parallel>, #tpu.dimension_semantics<arbitrary>], iteration_bounds = array<i64: 2, 2>, scalar_prefetch = 0 : i64, scratch_operands = 2 : i64, tpu.core_type = #tpu.core_type<tc>, window_params = [{transform_indices = @transform_0, window_bounds = array<i64: 1, 1, 1, 512>}, {pipeline_mode = #tpu.pipeline_mode<synchronous>, transform_indices = @transform_1, window_bounds = array<i64: 128, 512>}, {transform_indices = @transform_2, window_bounds = array<i64: 1, 1, 1, 128>}]} {
    %c0_i32 = arith.constant 0 : i32
    %0 = arith.cmpi eq, %arg1, %c0_i32 : i32
    %1 = arith.extui %0 : i1 to i32
    %c0_i32_0 = arith.constant 0 : i32
    %2 = arith.cmpi ne, %1, %c0_i32_0 : i32
    scf.if %2 {
      %cst_21 = arith.constant 0.000000e+00 : bf16
      %42 = vector.broadcast %cst_21 : bf16 to vector<1x128xbf16>
      %c0_22 = arith.constant 0 : index
      %c0_23 = arith.constant 0 : index
      %43 = vector.load %arg5[%c0_22, %c0_23] : memref<1x128xbf16, #tpu.memory_space<vmem>>, vector<1x128xbf16>
      tpu.vector_store %arg5[%c0_22, %c0_23], %42 {strides = array<i32>} : memref<1x128xbf16, #tpu.memory_space<vmem>>, vector<1x128xbf16>,
      %cst_24 = arith.constant 0.000000e+00 : f32
      %44 = vector.broadcast %cst_24 : f32 to vector<1x128xf32>
      %c0_25 = arith.constant 0 : index
      %c0_26 = arith.constant 0 : index
      %45 = vector.load %arg6[%c0_25, %c0_26] : memref<1x128xf32, #tpu.memory_space<vmem>>, vector<1x128xf32>
      tpu.vector_store %arg6[%c0_25, %c0_26], %44 {strides = array<i32>} : memref<1x128xf32, #tpu.memory_space<vmem>>, vector<1x128xf32>,
    } else {
    }
    %c0 = arith.constant 0 : index
    %c0_1 = arith.constant 0 : index
    %c0_2 = arith.constant 0 : index
    %c0_3 = arith.constant 0 : index
    %3 = vector.load %arg2[%c0, %c0_1, %c0_2, %c0_3] : memref<1x1x1x512xf32, #tpu.memory_space<vmem>>, vector<1x1x1x512xf32>
    %4 = vector.shape_cast %3 : vector<1x1x1x512xf32> to vector<1x512xf32>
    %c0_4 = arith.constant 0 : index
    %c0_5 = arith.constant 0 : index
    %5 = vector.load %arg5[%c0_4, %c0_5] : memref<1x128xbf16, #tpu.memory_space<vmem>>, vector<1x128xbf16>
    %c0_6 = arith.constant 0 : index
    %c0_7 = arith.constant 0 : index
    %6 = vector.load %arg3[%c0_6, %c0_7] : memref<128x512xbf16, #tpu.memory_space<vmem>>, vector<128x512xbf16>
    %cst = arith.constant dense<0.000000e+00> : vector<1x512xf32>
    %7 = tpu.matmul %5, %6, %cst {dimension_numbers = #tpu.dot_dimension_numbers<[1], [0], [0], [1], [0, 0, 1, 1], [], []>} : vector<1x128xbf16>, vector<128x512xbf16>, vector<1x512xf32> -> vector<1x512xf32>
    %8 = arith.addf %4, %7 : vector<1x512xf32>
    %9 = vector.extract_strided_slice %8 {offsets = [0, 0], sizes = [1, 128], strides = [1, 1]} : vector<1x512xf32> to vector<1x128xf32>
    %10 = arith.negf %9 : vector<1x128xf32>
    %11 = math.exp %10 : vector<1x128xf32>
    %cst_8 = arith.constant 1.000000e+00 : f32
    %12 = vector.broadcast %cst_8 : f32 to vector<1x128xf32>
    %13 = arith.addf %12, %11 : vector<1x128xf32>
    %14 = arith.divf %12, %13 : vector<1x128xf32>
    %15 = vector.extract_strided_slice %8 {offsets = [0, 128], sizes = [1, 128], strides = [1, 1]} : vector<1x512xf32> to vector<1x128xf32>
    %16 = arith.negf %15 : vector<1x128xf32>
    %17 = math.exp %16 : vector<1x128xf32>
    %cst_9 = arith.constant 1.000000e+00 : f32
    %18 = vector.broadcast %cst_9 : f32 to vector<1x128xf32>
    %19 = arith.addf %18, %17 : vector<1x128xf32>
    %20 = arith.divf %18, %19 : vector<1x128xf32>
    %21 = vector.extract_strided_slice %8 {offsets = [0, 256], sizes = [1, 128], strides = [1, 1]} : vector<1x512xf32> to vector<1x128xf32>
    %22 = arith.negf %21 : vector<1x128xf32>
    %23 = math.exp %22 : vector<1x128xf32>
    %cst_10 = arith.constant 1.000000e+00 : f32
    %24 = vector.broadcast %cst_10 : f32 to vector<1x128xf32>
    %25 = arith.addf %24, %23 : vector<1x128xf32>
    %26 = arith.divf %24, %25 : vector<1x128xf32>
    %27 = vector.extract_strided_slice %8 {offsets = [0, 384], sizes = [1, 128], strides = [1, 1]} : vector<1x512xf32> to vector<1x128xf32>
    %28 = math.tanh %27 : vector<1x128xf32>
    %c0_11 = arith.constant 0 : index
    %c0_12 = arith.constant 0 : index
    %29 = vector.load %arg6[%c0_11, %c0_12] : memref<1x128xf32, #tpu.memory_space<vmem>>, vector<1x128xf32>
    %30 = arith.mulf %20, %29 : vector<1x128xf32>
    %31 = arith.mulf %14, %28 : vector<1x128xf32>
    %32 = arith.addf %30, %31 : vector<1x128xf32>
    %33 = math.tanh %32 : vector<1x128xf32>
    %34 = arith.mulf %26, %33 : vector<1x128xf32>
    %c0_13 = arith.constant 0 : index
    %c0_14 = arith.constant 0 : index
    %35 = vector.load %arg6[%c0_13, %c0_14] : memref<1x128xf32, #tpu.memory_space<vmem>>, vector<1x128xf32>
    tpu.vector_store %arg6[%c0_13, %c0_14], %32 {strides = array<i32>} : memref<1x128xf32, #tpu.memory_space<vmem>>, vector<1x128xf32>,
    %36 = arith.truncf %34 : vector<1x128xf32> to vector<1x128xbf16>
    %c0_15 = arith.constant 0 : index
    %c0_16 = arith.constant 0 : index
    %37 = vector.load %arg5[%c0_15, %c0_16] : memref<1x128xbf16, #tpu.memory_space<vmem>>, vector<1x128xbf16>
    tpu.vector_store %arg5[%c0_15, %c0_16], %36 {strides = array<i32>} : memref<1x128xbf16, #tpu.memory_space<vmem>>, vector<1x128xbf16>,
    %38 = arith.truncf %34 : vector<1x128xf32> to vector<1x128xbf16>
    %c0_17 = arith.constant 0 : index
    %c0_18 = arith.constant 0 : index
    %c0_19 = arith.constant 0 : index
    %c0_20 = arith.constant 0 : index
    %39 = vector.load %arg4[%c0_17, %c0_18, %c0_19, %c0_20] : memref<1x1x1x128xbf16, #tpu.memory_space<vmem>>, vector<1x1x1x128xbf16>
    %40 = vector.shape_cast %39 : vector<1x1x1x128xbf16> to vector<1x128xbf16>
    %41 = vector.shape_cast %38 : vector<1x128xbf16> to vector<1x1x1x128xbf16>
    tpu.vector_store %arg4[%c0_17, %c0_18, %c0_19, %c0_20], %41 {strides = array<i32>} : memref<1x1x1x128xbf16, #tpu.memory_space<vmem>>, vector<1x1x1x128xbf16>,
    return
  }
  func.func @transform_0(%arg0: i32, %arg1: i32) -> (i32, i32, i32, i32) {
    %c0_i32 = arith.constant 0 : i32
    %c0_i32_0 = arith.constant 0 : i32
    %c0_i32_1 = arith.constant 0 : i32
    return %arg0, %arg1, %c0_i32, %c0_i32_0 : i32, i32, i32, i32
  }
  func.func @transform_1(%arg0: i32, %arg1: i32) -> (i32, i32) {
    %c0_i32 = arith.constant 0 : i32
    %c0_i32_0 = arith.constant 0 : i32
    %c0_i32_1 = arith.constant 0 : i32
    return %c0_i32, %c0_i32_0 : i32, i32
  }
  func.func @transform_2(%arg0: i32, %arg1: i32) -> (i32, i32, i32, i32) {
    %c0_i32 = arith.constant 0 : i32
    %c0_i32_0 = arith.constant 0 : i32
    %c0_i32_1 = arith.constant 0 : i32
    return %arg0, %arg1, %c0_i32, %c0_i32_0 : i32, i32, i32, i32
  }
}

module attributes {stable_mosaic.version = 11 : i64} {
  func.func @kernel(%arg0: i32, %arg1: i32, %arg2: memref<4x128xbf16, #tpu.memory_space<vmem>>, %arg3: memref<128x512xbf16, #tpu.memory_space<vmem>>, %arg4: memref<1x512xf32, #tpu.memory_space<vmem>>, %arg5: memref<4x512xf32, #tpu.memory_space<vmem>>) attributes {dimension_semantics = [#tpu.dimension_semantics<parallel>, #tpu.dimension_semantics<parallel>], iteration_bounds = array<i64: 1, 2>, scalar_prefetch = 0 : i64, scratch_operands = 0 : i64, tpu.core_type = #tpu.core_type<tc>, window_params = [{transform_indices = @transform_0, window_bounds = array<i64: 4, 128>}, {transform_indices = @transform_1, window_bounds = array<i64: 128, 512>}, {transform_indices = @transform_2, window_bounds = array<i64: 1, 512>}, {transform_indices = @transform_3, window_bounds = array<i64: 4, 512>}]} {
    %c0 = arith.constant 0 : index
    %c0_0 = arith.constant 0 : index
    %0 = vector.load %arg2[%c0, %c0_0] : memref<4x128xbf16, #tpu.memory_space<vmem>>, vector<4x128xbf16>
    %c0_1 = arith.constant 0 : index
    %c0_2 = arith.constant 0 : index
    %1 = vector.load %arg3[%c0_1, %c0_2] : memref<128x512xbf16, #tpu.memory_space<vmem>>, vector<128x512xbf16>
    %cst = arith.constant dense<0.000000e+00> : vector<4x512xf32>
    %2 = tpu.matmul %0, %1, %cst {dimension_numbers = #tpu.dot_dimension_numbers<[1], [0], [0], [1], [0, 0, 1, 1], [], []>} : vector<4x128xbf16>, vector<128x512xbf16>, vector<4x512xf32> -> vector<4x512xf32>
    %c0_3 = arith.constant 0 : index
    %c0_4 = arith.constant 0 : index
    %3 = vector.load %arg4[%c0_3, %c0_4] : memref<1x512xf32, #tpu.memory_space<vmem>>, vector<1x512xf32>
    %4 = vector.broadcast %3 : vector<1x512xf32> to vector<4x512xf32>
    %5 = arith.addf %2, %4 : vector<4x512xf32>
    %c0_5 = arith.constant 0 : index
    %c0_6 = arith.constant 0 : index
    %6 = vector.load %arg5[%c0_5, %c0_6] : memref<4x512xf32, #tpu.memory_space<vmem>>, vector<4x512xf32>
    tpu.vector_store %arg5[%c0_5, %c0_6], %5 {strides = array<i32>} : memref<4x512xf32, #tpu.memory_space<vmem>>, vector<4x512xf32>,
    return
  }
  func.func @transform_0(%arg0: i32, %arg1: i32) -> (i32, i32) {
    %c0_i32 = arith.constant 0 : i32
    %c0_i32_0 = arith.constant 0 : i32
    return %arg0, %c0_i32 : i32, i32
  }
  func.func @transform_1(%arg0: i32, %arg1: i32) -> (i32, i32) {
    %c0_i32 = arith.constant 0 : i32
    %c0_i32_0 = arith.constant 0 : i32
    return %c0_i32, %arg1 : i32, i32
  }
  func.func @transform_2(%arg0: i32, %arg1: i32) -> (i32, i32) {
    %c0_i32 = arith.constant 0 : i32
    %c0_i32_0 = arith.constant 0 : i32
    return %c0_i32, %arg1 : i32, i32
  }
  func.func @transform_3(%arg0: i32, %arg1: i32) -> (i32, i32) {
    %c0_i32 = arith.constant 0 : i32
    return %arg0, %arg1 : i32, i32
  }
}

module attributes {stable_mosaic.version = 11 : i64} {
  func.func @kernel(%arg0: i32, %arg1: i32, %arg2: memref<64x576xbf16, #tpu.memory_space<vmem>>, %arg3: memref<576x256xbf16, #tpu.memory_space<vmem>>, %arg4: memref<1x256xf32, #tpu.memory_space<vmem>>, %arg5: memref<64x256xbf16, #tpu.memory_space<vmem>>) attributes {dimension_semantics = [#tpu.dimension_semantics<parallel>, #tpu.dimension_semantics<parallel>], iteration_bounds = array<i64: 1, 2>, scalar_prefetch = 0 : i64, scratch_operands = 0 : i64, tpu.core_type = #tpu.core_type<tc>, window_params = [{transform_indices = @transform_0, window_bounds = array<i64: 64, 576>}, {transform_indices = @transform_1, window_bounds = array<i64: 576, 256>}, {transform_indices = @transform_2, window_bounds = array<i64: 1, 256>}, {transform_indices = @transform_3, window_bounds = array<i64: 64, 256>}]} {
    %c0 = arith.constant 0 : index
    %c0_0 = arith.constant 0 : index
    %0 = vector.load %arg2[%c0, %c0_0] : memref<64x576xbf16, #tpu.memory_space<vmem>>, vector<64x576xbf16>
    %c0_1 = arith.constant 0 : index
    %c0_2 = arith.constant 0 : index
    %1 = vector.load %arg3[%c0_1, %c0_2] : memref<576x256xbf16, #tpu.memory_space<vmem>>, vector<576x256xbf16>
    %cst = arith.constant dense<0.000000e+00> : vector<64x256xf32>
    %2 = tpu.matmul %0, %1, %cst {dimension_numbers = #tpu.dot_dimension_numbers<[1], [0], [0], [1], [0, 0, 1, 1], [], []>} : vector<64x576xbf16>, vector<576x256xbf16>, vector<64x256xf32> -> vector<64x256xf32>
    %c0_3 = arith.constant 0 : index
    %c0_4 = arith.constant 0 : index
    %3 = vector.load %arg4[%c0_3, %c0_4] : memref<1x256xf32, #tpu.memory_space<vmem>>, vector<1x256xf32>
    %4 = vector.broadcast %3 : vector<1x256xf32> to vector<64x256xf32>
    %5 = arith.addf %2, %4 : vector<64x256xf32>
    %6 = math.tanh %5 : vector<64x256xf32>
    %7 = arith.truncf %6 : vector<64x256xf32> to vector<64x256xbf16>
    %c0_5 = arith.constant 0 : index
    %c0_6 = arith.constant 0 : index
    %8 = vector.load %arg5[%c0_5, %c0_6] : memref<64x256xbf16, #tpu.memory_space<vmem>>, vector<64x256xbf16>
    tpu.vector_store %arg5[%c0_5, %c0_6], %7 {strides = array<i32>} : memref<64x256xbf16, #tpu.memory_space<vmem>>, vector<64x256xbf16>,
    return
  }
  func.func @transform_0(%arg0: i32, %arg1: i32) -> (i32, i32) {
    %c0_i32 = arith.constant 0 : i32
    %c0_i32_0 = arith.constant 0 : i32
    return %arg0, %c0_i32 : i32, i32
  }
  func.func @transform_1(%arg0: i32, %arg1: i32) -> (i32, i32) {
    %c0_i32 = arith.constant 0 : i32
    %c0_i32_0 = arith.constant 0 : i32
    return %c0_i32, %arg1 : i32, i32
  }
  func.func @transform_2(%arg0: i32, %arg1: i32) -> (i32, i32) {
    %c0_i32 = arith.constant 0 : i32
    %c0_i32_0 = arith.constant 0 : i32
    return %c0_i32, %arg1 : i32, i32
  }
  func.func @transform_3(%arg0: i32, %arg1: i32) -> (i32, i32) {
    %c0_i32 = arith.constant 0 : i32
    return %arg0, %arg1 : i32, i32
  }
}

module attributes {stable_mosaic.version = 11 : i64} {
  func.func @kernel(%arg0: i32, %arg1: i32, %arg2: memref<324x1152xbf16, #tpu.memory_space<vmem>>, %arg3: memref<1152x16xbf16, #tpu.memory_space<vmem>>, %arg4: memref<1x16xf32, #tpu.memory_space<vmem>>, %arg5: memref<324x16xf32, #tpu.memory_space<vmem>>) attributes {dimension_semantics = [#tpu.dimension_semantics<parallel>, #tpu.dimension_semantics<parallel>], iteration_bounds = array<i64: 1, 1>, scalar_prefetch = 0 : i64, scratch_operands = 0 : i64, tpu.core_type = #tpu.core_type<tc>, window_params = [{transform_indices = @transform_0, window_bounds = array<i64: 324, 1152>}, {transform_indices = @transform_1, window_bounds = array<i64: 1152, 16>}, {transform_indices = @transform_2, window_bounds = array<i64: 1, 16>}, {transform_indices = @transform_3, window_bounds = array<i64: 324, 16>}]} {
    %c0 = arith.constant 0 : index
    %c0_0 = arith.constant 0 : index
    %0 = vector.load %arg2[%c0, %c0_0] : memref<324x1152xbf16, #tpu.memory_space<vmem>>, vector<324x1152xbf16>
    %c0_1 = arith.constant 0 : index
    %c0_2 = arith.constant 0 : index
    %1 = vector.load %arg3[%c0_1, %c0_2] : memref<1152x16xbf16, #tpu.memory_space<vmem>>, vector<1152x16xbf16>
    %cst = arith.constant dense<0.000000e+00> : vector<324x16xf32>
    %2 = tpu.matmul %0, %1, %cst {dimension_numbers = #tpu.dot_dimension_numbers<[1], [0], [0], [1], [0, 0, 1, 1], [], []>} : vector<324x1152xbf16>, vector<1152x16xbf16>, vector<324x16xf32> -> vector<324x16xf32>
    %c0_3 = arith.constant 0 : index
    %c0_4 = arith.constant 0 : index
    %3 = vector.load %arg4[%c0_3, %c0_4] : memref<1x16xf32, #tpu.memory_space<vmem>>, vector<1x16xf32>
    %4 = vector.broadcast %3 : vector<1x16xf32> to vector<324x16xf32>
    %5 = arith.addf %2, %4 : vector<324x16xf32>
    %6 = math.tanh %5 : vector<324x16xf32>
    %c0_5 = arith.constant 0 : index
    %c0_6 = arith.constant 0 : index
    %7 = vector.load %arg5[%c0_5, %c0_6] : memref<324x16xf32, #tpu.memory_space<vmem>>, vector<324x16xf32>
    tpu.vector_store %arg5[%c0_5, %c0_6], %6 {strides = array<i32>} : memref<324x16xf32, #tpu.memory_space<vmem>>, vector<324x16xf32>,
    return
  }
  func.func @transform_0(%arg0: i32, %arg1: i32) -> (i32, i32) {
    %c0_i32 = arith.constant 0 : i32
    %c0_i32_0 = arith.constant 0 : i32
    return %arg0, %c0_i32 : i32, i32
  }
  func.func @transform_1(%arg0: i32, %arg1: i32) -> (i32, i32) {
    %c0_i32 = arith.constant 0 : i32
    %c0_i32_0 = arith.constant 0 : i32
    return %c0_i32, %arg1 : i32, i32
  }
  func.func @transform_2(%arg0: i32, %arg1: i32) -> (i32, i32) {
    %c0_i32 = arith.constant 0 : i32
    %c0_i32_0 = arith.constant 0 : i32
    return %c0_i32, %arg1 : i32, i32
  }
  func.func @transform_3(%arg0: i32, %arg1: i32) -> (i32, i32) {
    %c0_i32 = arith.constant 0 : i32
    return %arg0, %arg1 : i32, i32
  }
}

</mosaic_0001>

<bundles_post_ra>
// kernel: deep_eye_forward.10
= control target key start
LH: loop header
LB: loop body
LE: loop exit
PB: predicated region body
PF: predicated region fallthrough
CT: control target
= control target key end

     0   :  { %s978_s12 = smov 0   ;;  %s980_s13 = smov 0   ;;  %s1063_s0 = inlined_call_operand.vmem [shape: bf16[256,121], index: 0, kind: input, shape index: {}]   ;;  %s1064_s1 = inlined_call_operand.vmem [shape: bf16[121,128], index: 1, kind: input, shape index: {}]   ;;  %s1065_s2 = inlined_call_operand.vmem [shape: f32[1,128], index: 2, kind: input, shape index: {}]   ;;  %s1066_s3 = inlined_call_operand.vmem [shape: bf16[256,128], index: 3, kind: output, shape index: {}]  }
   0x1   :  { %s982_s14 = smov 0  }
   0x2 LB: > { %s25_s15 = sadd.s32 1, %s951_s13  ;;  %p685_p0 = scmp.ge.s32.totalorder %s955_s14, 1  ;;  %s955_s14 = sphi %s982_s14, %s13_s14   ;;  %s951_s13 = sphi %s980_s13, %s1068_s13   ;;  %s947_s12 = sphi %s978_s12, %s1067_s12  }
   0x3   : > { %p27_p1 = scmp.ge.s32.totalorder %s25_s15, 2  ;;  %p169_p2 = scmp.lt.s32.totalorder %s955_s14, 3 }
   0x5   : > { %s1070_s15 = smov (%p27_p1, %s25_s15), 0  ;;  %p170_p3 = pnand %p685_p0, %p169_p2 }
   0x6   : > { %v885_v0 = vld [vmem:[%s1064_s1] sm:$0xff] (!%p170_p3)   ;;  %v886_v1 = vld [vmem:[%s1064_s1 + $0x8] sm:$0xff] (!%p170_p3)   ;;  %v887_v2 = vld [vmem:[%s1064_s1 + $0x10] sm:$0xff] (!%p170_p3)   ;;  %s686_s22 = sshll.u32 (!%p170_p3), %s947_s12, 4  ;;  %vm352_vm0 = vcmask (!%p170_p3), 990208   ;;  %vm377_vm1 = vcmask (!%p170_p3), 1043456  }
   0x7   : > { %173 = sbr.rel (%p170_p3) target bundleno = 282 (0x11a), region = 32  ;;  %812 = vmatprep.subr.bf16.mxu0 (!%p170_p3), %v885_v0  ;;  %844 = vmatprep.subr.bf16.mxu1 (!%p170_p3), %v885_v0  ;;  %p204_p4 = scmp.lt.s32.totalorder (!%p170_p3), %s686_s22, 31  ;;  %v888_v3 = vld [vmem:[%s1064_s1 + $0x18] sm:$0xff] (!%p170_p3)   ;;  %v889_v4 = vld [vmem:[%s1064_s1 + $0x20] sm:$0xff] (!%p170_p3)   ;;  %v890_v7 = vld [vmem:[%s1064_s1 + $0x28] sm:$0xff] (!%p170_p3)   ;;  %vm378_vm2 = vcmask (!%p170_p3), 1044480  }
   0x8   : > { %813 = vmatpush3.bf16.msra.mxu0 (!%p170_p3), %v885_v0  ;;  %852 = vmatpush3.bf16.msra.mxu1 (!%p170_p3), %v885_v0  ;;  %v957_v8 = vmov (!%p170_p3), 65535   ;;  %v891_v10 = vld [vmem:[%s1064_s1 + $0x30] sm:$0xff] (!%p170_p3)   ;;  %v892_v11 = vld [vmem:[%s1064_s1 + $0x38] sm:$0x1f] (!%p170_p3)   ;;  %v690_v20 = vld [vmem:[%s1065_s2] ss:$0 sm:$0xff] (!%p170_p3) }
   0x9   : > { %814 = vmatprep.subr.bf16.mxu0 (!%p170_p3), %v886_v1  ;;  %845 = vmatprep.subr.bf16.mxu1 (!%p170_p3), %v886_v1  ;;  %v379_v9 = vsel (!%p170_p3), %vm377_vm1, 4294967295, %v957_v8 }
   0xa   : > { %v380_v12 = vsel (!%p170_p3), %vm378_vm2, %v379_v9, 0 }
   0xb   : > { %v382_v13 = vand.u32 (!%p170_p3), %v892_v11, %v380_v12 }
   0xc   : > { %815 = vmatpush3.bf16.msra.mxu0 (!%p170_p3), %v886_v1  ;;  %853 = vmatpush3.bf16.msra.mxu1 (!%p170_p3), %v886_v1 }
   0xd   : > { %816 = vmatprep.subr.bf16.mxu0 (!%p170_p3), %v887_v2  ;;  %846 = vmatprep.subr.bf16.mxu1 (!%p170_p3), %v887_v2 }
   0xe   : > { %s1072_s22 = smov (!%p204_p4, %s686_s22), 31 }
   0xf   : > { %s687_s25 = sshll.u32 %s1072_s22, 2 }
  0x10   : > { %817 = vmatpush3.bf16.msra.mxu0 %v887_v2  ;;  %854 = vmatpush3.bf16.msra.mxu1 %v887_v2  ;;  %s1019_s30 = scalar_lea.vmem %s1063_s0, %s687_s25  ;;  %s223_s17 = scalar_lea.vmem %s1066_s3, %s687_s25 }
  0x11   : > { %818 = vmatprep.subr.bf16.mxu0 %v888_v3  ;;  %847 = vmatprep.subr.bf16.mxu1 %v888_v3  ;;  %v893_v5 = vld [vmem:[%s1019_s30] sm:$0xff]   ;;  %v895_v14 = vld [vmem:[%s1019_s30 + $0x8] sm:$0xff]   ;;  %v897_v16 = vld [vmem:[%s1019_s30 + $0x10] sm:$0xff]  }
  0x12   : > { %v894_v6 = vld [vmem:[%s1019_s30 + $0x20] sm:$0xff]   ;;  %828 = vmatprep.mubr.msk.bf16.mxu0 %vm352_vm0, %v893_v5  ;;  %v896_v15 = vld [vmem:[%s1019_s30 + $0x28] sm:$0xff]   ;;  %v898_v17 = vld [vmem:[%s1019_s30 + $0x30] sm:$0xff]  }
  0x13   : > { %836 = vmatprep.mubr.msk.bf16.mxu1 %vm352_vm0, %v894_v6  ;;  %v899_v18 = vld [vmem:[%s1019_s30 + $0x18] sm:$0xff]  }
  0x14   : > { %819 = vmatpush3.bf16.msra.mxu0 %v888_v3  ;;  %855 = vmatpush3.bf16.msra.mxu1 %v888_v3  ;;  %v900_v19 = vld [vmem:[%s1019_s30 + $0x38] sm:$0xff]  }
  0x15   : > { %820 = vmatprep.subr.bf16.mxu0 %v889_v4  ;;  %848 = vmatprep.subr.bf16.mxu1 %v889_v4 }
  0x18   : > { %821 = vmatpush3.bf16.msra.mxu0 %v889_v4  ;;  %856 = vmatpush3.bf16.msra.mxu1 %v889_v4 }
  0x19   : > { %822 = vmatprep.subr.bf16.mxu0 %v890_v7  ;;  %849 = vmatprep.subr.bf16.mxu1 %v890_v7 }
  0x1c   : > { %823 = vmatpush3.bf16.msra.mxu0 %v890_v7  ;;  %857 = vmatpush3.bf16.msra.mxu1 %v890_v7 }
  0x1d   : > { %824 = vmatprep.subr.bf16.mxu0 %v891_v10  ;;  %850 = vmatprep.subr.bf16.mxu1 %v891_v10 }
  0x20   : > { %825 = vmatpush3.bf16.msra.mxu0 %v891_v10  ;;  %858 = vmatpush3.bf16.msra.mxu1 %v891_v10 }
  0x21   : > { %826 = vmatprep.subr.bf16.mxu0 %v382_v13  ;;  %851 = vmatprep.subr.bf16.mxu1 %v382_v13 }
  0x24   : > { %827 = vmatpush3.bf16.msra.mxu0 %v382_v13  ;;  %859 = vmatpush3.bf16.msra.mxu1 %v382_v13 }
  0x27   : > { %829 = vmatmul.mubr.msk.bf16.vlgmr.msra.gmra.mrb[0].mxu0 %vm352_vm0, %v895_v14  ;;  %837 = vmatmul.mubr.msk.bf16.vlgmr.msra.gmra.mrb[0].mxu1 %vm352_vm0, %v896_v15 }
  0x28   : > { %832 = vmatprep.mubr.msk.bf16.mxu0 %vm352_vm0, %v897_v16  ;;  %840 = vmatprep.mubr.msk.bf16.mxu1 %vm352_vm0, %v898_v17 }
  0x2f   : > { %833 = vmatmul.mubr.msk.bf16.gmra.mrb[4].mxu0 %vm352_vm0, %v899_v18  ;;  %841 = vmatmul.mubr.msk.bf16.gmra.mrb[4].mxu1 %vm352_vm0, %v900_v19 }
  0xfa   : > { %v830_v21 = vpop.f32.mrb[0].mxu0  ;;  %v838_v22 = vpop.f32.mrb[0].mxu1 }
  0xfb   : > { %v427_v23 = vadd.f32 %v830_v21, %v690_v20  ;;  %v459_v24 = vadd.f32 %v838_v22, %v690_v20  ;;  %v418_v25 = vpop.f32.mrb[1].mxu0  ;;  %v450_v26 = vpop.f32.mrb[1].mxu1 }
  0xfc   : > { %v419_v27 = vadd.f32 %v690_v20, %v418_v25  ;;  %v451_v28 = vadd.f32 %v690_v20, %v450_v26  ;;  %v831_v29 = vpop.f32.mrb[2].mxu0  ;;  %v839_v30 = vpop.f32.mrb[2].mxu1 }
  0xfd   : > { %901 = vtanh.f32 %v427_v23  ;;  %v430_v31 = vadd.f32 %v831_v29, %v690_v20  ;;  %v421_v32 = vpop.f32.mrb[3].mxu0  ;;  %v453_v33 = vpop.f32.mrb[3].mxu1  ;;  %v462_v34 = vadd.f32 %v839_v30, %v690_v20 }
  0xfe   : > { %903 = vtanh.f32 %v459_v24  ;;  %v422_v35 = vadd.f32 %v690_v20, %v421_v32  ;;  %v454_v36 = vadd.f32 %v690_v20, %v453_v33 }
  0xff   : > { %905 = vtanh.f32 %v419_v27 }
 0x100   : > { %907 = vtanh.f32 %v451_v28 }
 0x101   : > { %909 = vtanh.f32 %v430_v31 }
 0x102   : > { %911 = vtanh.f32 %v462_v34  ;;  %v834_v37 = vpop.f32.mrb[4].mxu0  ;;  %v842_v38 = vpop.f32.mrb[4].mxu1 }
 0x103   : > { %913 = vtanh.f32 %v422_v35  ;;  %v443_v39 = vadd.f32 %v834_v37, %v690_v20  ;;  %v475_v40 = vadd.f32 %v842_v38, %v690_v20  ;;  %v434_v41 = vpop.f32.mrb[5].mxu0  ;;  %v466_v42 = vpop.f32.mrb[5].mxu1 }
 0x104   : > { %915 = vtanh.f32 %v454_v36  ;;  %v435_v43 = vadd.f32 %v690_v20, %v434_v41  ;;  %v467_v44 = vadd.f32 %v690_v20, %v466_v42  ;;  %v835_v45 = vpop.f32.mrb[6].mxu0  ;;  %v843_v46 = vpop.f32.mrb[6].mxu1 }
 0x105   : > { %917 = vtanh.f32 %v443_v39  ;;  %v446_v47 = vadd.f32 %v835_v45, %v690_v20  ;;  %v437_v48 = vpop.f32.mrb[7].mxu0  ;;  %v469_v49 = vpop.f32.mrb[7].mxu1  ;;  %v478_v50 = vadd.f32 %v843_v46, %v690_v20 }
 0x106   : > { %919 = vtanh.f32 %v475_v40  ;;  %v438_v52 = vadd.f32 %v690_v20, %v437_v48  ;;  %v470_v54 = vadd.f32 %v690_v20, %v469_v49 }
 0x107   : > { %v902_v51 = vpop.eup %901  ;;  %921 = vtanh.f32 %v435_v43 }
 0x108   : > { %v904_v53 = vpop.eup %903  ;;  %923 = vtanh.f32 %v467_v44 }
 0x109   : > { %v906_v55 = vpop.eup %905  ;;  %925 = vtanh.f32 %v446_v47 }
 0x10a   : > { %v908_v56 = vpop.eup %907  ;;  %927 = vtanh.f32 %v478_v50 }
 0x10b   : > { %v910_v57 = vpop.eup %909  ;;  %929 = vtanh.f32 %v438_v52 }
 0x10c   : > { %v912_v58 = vpop.eup %911  ;;  %v757_v59 = vpack.c.bf16 %v910_v57, %v902_v51  ;;  %931 = vtanh.f32 %v470_v54 }
 0x10d   : > { %v914_v60 = vpop.eup %913  ;;  %v777_v61 = vpack.c.bf16 %v912_v58, %v904_v53 }
 0x10e   : > { %v916_v62 = vpop.eup %915  ;;  %789 = vst [vmem:[%s223_s17 + $0x8] sm:$0xff] %v757_v59   ;;  %v752_v63 = vpack.c.bf16 %v914_v60, %v906_v55 }
 0x10f   : > { %v918_v0 = vpop.eup %917  ;;  %793 = vst [vmem:[%s223_s17 + $0x28] sm:$0xff] %v777_v61   ;;  %v772_v1 = vpack.c.bf16 %v916_v62, %v908_v56 }
 0x110   : > { %v920_v2 = vpop.eup %919  ;;  %753 = vst [vmem:[%s223_s17] sm:$0xff] %v752_v63  }
 0x111   : > { %v922_v3 = vpop.eup %921  ;;  %792 = vst [vmem:[%s223_s17 + $0x20] sm:$0xff] %v772_v1  }
 0x112   : > { %v924_v4 = vpop.eup %923 }
 0x113   : > { %v926_v5 = vpop.eup %925 }
 0x114   : > { %v928_v6 = vpop.eup %927  ;;  %v767_v7 = vpack.c.bf16 %v926_v5, %v918_v0 }
 0x115   : > { %v930_v8 = vpop.eup %929  ;;  %v787_v9 = vpack.c.bf16 %v928_v6, %v920_v2 }
 0x116   : > { %v932_v10 = vpop.eup %931  ;;  %791 = vst [vmem:[%s223_s17 + $0x18] sm:$0xff] %v767_v7   ;;  %v762_v11 = vpack.c.bf16 %v930_v8, %v922_v3 }
 0x117   : > { %795 = vst [vmem:[%s223_s17 + $0x38] sm:$0xff] %v787_v9   ;;  %v782_v12 = vpack.c.bf16 %v932_v10, %v924_v4 }
 0x118   : > { %790 = vst [vmem:[%s223_s17 + $0x10] sm:$0xff] %v762_v11  }
 0x119   : > { %794 = vst [vmem:[%s223_s17 + $0x30] sm:$0xff] %v782_v12  }
 0x11a PF: > { %s13_s14 = sadd.s32 1, %s955_s14   ;;  %s1067_s12 = smov %s951_s13 }
 0x11b   : > { %p10_p5 = scmp.ge.s32.totalorder %s13_s14, 4   ;;  %s1068_s13 = smov %s1070_s15 }
 0x11d   :  { %12 = sbr.rel (!%p10_p5) target bundleno = 2 (0x2), region = 68 }

// kernel: deep_eye_forward.12
= control target key start
LH: loop header
LB: loop body
LE: loop exit
PB: predicated region body
PF: predicated region fallthrough
CT: control target
= control target key end

     0   :  { %s1278_s12 = smov 0   ;;  %s1280_s13 = smov 0   ;;  %s1553_s0 = inlined_call_operand.vmem [shape: bf16[4,256], index: 0, kind: input, shape index: {}]   ;;  %s1554_s1 = inlined_call_operand.vmem [shape: bf16[256,1024], index: 1, kind: input, shape index: {}]   ;;  %s1555_s2 = inlined_call_operand.vmem [shape: f32[1,1024], index: 2, kind: input, shape index: {}]   ;;  %s1556_s3 = inlined_call_operand.vmem [shape: f32[4,1024], index: 3, kind: output, shape index: {}]  }
   0x1   :  { %s1282_s14 = smov 0   ;;  %s1284_s15 = smov 0  }
   0x2   :  { %s1286_s16 = smov 0  }
   0x3 LB: > { %s22_s17 = sadd.s32 1, %s1252_s15  ;;  %p65_p1 = scmp.ne.s32.totalorder %s1244_s13, %s1240_s12  ;;  %s1256_s16 = sphi %s1286_s16, %s13_s16   ;;  %s1252_s15 = sphi %s1284_s15, %s1560_s15   ;;  %s1248_s14 = sphi %s1282_s14, %s1559_s14   ;;  %s1244_s13 = sphi %s1280_s13, %s1558_s13   ;;  %s1240_s12 = sphi %s1278_s12, %s1557_s12  }
   0x4   : > { %p23_p0 = scmp.ge.s32.totalorder %s22_s17, 2  ;;  %p66_p2 = scmp.eq.s32.totalorder %s1256_s16, 0 }
   0x5   : > { %s58_s19 = sadd.s32 1, %s1244_s13  ;;  %p1005_p5 = scmp.ge.s32.totalorder %s1256_s16, 2 }
   0x6   : > { %s1562_s17 = smov (%p23_p0, %s22_s17), 0  ;;  %p67_p3 = por %p66_p2, %p65_p1 }
   0x7   : > { %s55_s18 = ssub.s32 %s1252_s15, %s1562_s17  ;;  %153 = sbr.rel (%p1005_p5) target bundleno = 50 (0x32), region = 20 }
   0x8   : > { %p56_p4 = scmp.eq.s32.totalorder %s55_s18, 0 }
   0xa   : > { %s1313_s20 = scalar_select %p56_p4, %s1244_s13, %s58_s19  }
   0xe   : > { %156 = sbr.rel (!%p67_p3) target bundleno = 50 (0x32), region = 24  ;;  %s158_s21 = sand.u32 (%p67_p3), 1, %s1244_s13  }
   0xf   : > { %s1081_s22 = sshll.u32 (%p67_p3), %s1252_s15, 4  ;;  %s1006_s23 = sshll.u32 (%p67_p3), %s158_s21, 9 }
  0x10   : > { %s1321_s26 = scalar_lea.vmem (%p67_p3), %s1554_s1, %s1081_s22  ;;  %s1326_s27 = scalar_lea.vmem (%p67_p3), [#allocation2], %s1006_s23 }
  0x11   : > { %v176_v0 = vld [vmem:[%s1321_s26] sm:$0xff] (%p67_p3)  ;;  %v178_v1 = vld [vmem:[%s1321_s26 + $0x8] sm:$0xff] (%p67_p3) }
  0x12   : > { %v180_v2 = vld [vmem:[%s1321_s26 + $0x20] sm:$0xff] (%p67_p3)  ;;  %177 = vst [vmem:[%s1326_s27] sm:$0xff] (%p67_p3), %v176_v0  ;;  %179 = vst [vmem:[%s1326_s27 + $0x8] sm:$0xff] (%p67_p3), %v178_v1  ;;  %v182_v3 = vld [vmem:[%s1321_s26 + $0x28] sm:$0xff] (%p67_p3) }
  0x13   : > { %181 = vst [vmem:[%s1326_s27 + $0x10] sm:$0xff] (%p67_p3), %v180_v2  ;;  %v184_v4 = vld [vmem:[%s1321_s26 + $0x40] sm:$0xff] (%p67_p3)  ;;  %v186_v5 = vld [vmem:[%s1321_s26 + $0x48] sm:$0xff] (%p67_p3)  ;;  %183 = vst [vmem:[%s1326_s27 + $0x18] sm:$0xff] (%p67_p3), %v182_v3 }
  0x14   : > { %185 = vst [vmem:[%s1326_s27 + $0x20] sm:$0xff] (%p67_p3), %v184_v4  ;;  %187 = vst [vmem:[%s1326_s27 + $0x28] sm:$0xff] (%p67_p3), %v186_v5  ;;  %v188_v6 = vld [vmem:[%s1321_s26 + $0x60] sm:$0xff] (%p67_p3)  ;;  %v190_v7 = vld [vmem:[%s1321_s26 + $0x68] sm:$0xff] (%p67_p3) }
  0x15   : > { %v192_v8 = vld [vmem:[%s1321_s26 + $0x80] sm:$0xff]  ;;  %189 = vst [vmem:[%s1326_s27 + $0x30] sm:$0xff] %v188_v6  ;;  %191 = vst [vmem:[%s1326_s27 + $0x38] sm:$0xff] %v190_v7  ;;  %v194_v9 = vld [vmem:[%s1321_s26 + $0x88] sm:$0xff] }
  0x16   : > { %193 = vst [vmem:[%s1326_s27 + $0x40] sm:$0xff] %v192_v8  ;;  %v196_v10 = vld [vmem:[%s1321_s26 + $0xa0] sm:$0xff]  ;;  %v198_v11 = vld [vmem:[%s1321_s26 + $0xa8] sm:$0xff]  ;;  %195 = vst [vmem:[%s1326_s27 + $0x48] sm:$0xff] %v194_v9 }
  0x17   : > { %197 = vst [vmem:[%s1326_s27 + $0x50] sm:$0xff] %v196_v10  ;;  %199 = vst [vmem:[%s1326_s27 + $0x58] sm:$0xff] %v198_v11  ;;  %v200_v12 = vld [vmem:[%s1321_s26 + $0xc0] sm:$0xff]  ;;  %v202_v13 = vld [vmem:[%s1321_s26 + $0xc8] sm:$0xff] }
  0x18   : > { %v204_v14 = vld [vmem:[%s1321_s26 + $0xe0] sm:$0xff]  ;;  %201 = vst [vmem:[%s1326_s27 + $0x60] sm:$0xff] %v200_v12  ;;  %203 = vst [vmem:[%s1326_s27 + $0x68] sm:$0xff] %v202_v13  ;;  %v206_v15 = vld [vmem:[%s1321_s26 + $0xe8] sm:$0xff] }
  0x19   : > { %205 = vst [vmem:[%s1326_s27 + $0x70] sm:$0xff] %v204_v14  ;;  %v208_v16 = vld [vmem:[%s1321_s26 + $0x100] sm:$0xff]  ;;  %v210_v17 = vld [vmem:[%s1321_s26 + $0x108] sm:$0xff]  ;;  %207 = vst [vmem:[%s1326_s27 + $0x78] sm:$0xff] %v206_v15 }
  0x1a   : > { %209 = vst [vmem:[%s1326_s27 + $0x80] sm:$0xff] %v208_v16  ;;  %211 = vst [vmem:[%s1326_s27 + $0x88] sm:$0xff] %v210_v17  ;;  %v212_v18 = vld [vmem:[%s1321_s26 + $0x120] sm:$0xff]  ;;  %v214_v19 = vld [vmem:[%s1321_s26 + $0x128] sm:$0xff] }
  0x1b   : > { %v216_v20 = vld [vmem:[%s1321_s26 + $0x140] sm:$0xff]  ;;  %213 = vst [vmem:[%s1326_s27 + $0x90] sm:$0xff] %v212_v18  ;;  %215 = vst [vmem:[%s1326_s27 + $0x98] sm:$0xff] %v214_v19  ;;  %v218_v21 = vld [vmem:[%s1321_s26 + $0x148] sm:$0xff] }
  0x1c   : > { %217 = vst [vmem:[%s1326_s27 + $0xa0] sm:$0xff] %v216_v20  ;;  %v220_v22 = vld [vmem:[%s1321_s26 + $0x160] sm:$0xff]  ;;  %v222_v23 = vld [vmem:[%s1321_s26 + $0x168] sm:$0xff]  ;;  %219 = vst [vmem:[%s1326_s27 + $0xa8] sm:$0xff] %v218_v21 }
  0x1d   : > { %221 = vst [vmem:[%s1326_s27 + $0xb0] sm:$0xff] %v220_v22  ;;  %223 = vst [vmem:[%s1326_s27 + $0xb8] sm:$0xff] %v222_v23  ;;  %v224_v24 = vld [vmem:[%s1321_s26 + $0x180] sm:$0xff]  ;;  %v226_v25 = vld [vmem:[%s1321_s26 + $0x188] sm:$0xff] }
  0x1e   : > { %v228_v26 = vld [vmem:[%s1321_s26 + $0x1a0] sm:$0xff]  ;;  %225 = vst [vmem:[%s1326_s27 + $0xc0] sm:$0xff] %v224_v24  ;;  %227 = vst [vmem:[%s1326_s27 + $0xc8] sm:$0xff] %v226_v25  ;;  %v230_v27 = vld [vmem:[%s1321_s26 + $0x1a8] sm:$0xff] }
  0x1f   : > { %229 = vst [vmem:[%s1326_s27 + $0xd0] sm:$0xff] %v228_v26  ;;  %v232_v28 = vld [vmem:[%s1321_s26 + $0x1c0] sm:$0xff]  ;;  %v234_v29 = vld [vmem:[%s1321_s26 + $0x1c8] sm:$0xff]  ;;  %231 = vst [vmem:[%s1326_s27 + $0xd8] sm:$0xff] %v230_v27 }
  0x20   : > { %233 = vst [vmem:[%s1326_s27 + $0xe0] sm:$0xff] %v232_v28  ;;  %235 = vst [vmem:[%s1326_s27 + $0xe8] sm:$0xff] %v234_v29  ;;  %v236_v30 = vld [vmem:[%s1321_s26 + $0x1e0] sm:$0xff]  ;;  %v238_v31 = vld [vmem:[%s1321_s26 + $0x1e8] sm:$0xff] }
  0x21   : > { %v240_v32 = vld [vmem:[%s1321_s26 + $0x200] sm:$0xff]  ;;  %237 = vst [vmem:[%s1326_s27 + $0xf0] sm:$0xff] %v236_v30  ;;  %239 = vst [vmem:[%s1326_s27 + $0xf8] sm:$0xff] %v238_v31  ;;  %v242_v33 = vld [vmem:[%s1321_s26 + $0x208] sm:$0xff] }
  0x22   : > { %241 = vst [vmem:[%s1326_s27 + $0x100] sm:$0xff] %v240_v32  ;;  %v244_v34 = vld [vmem:[%s1321_s26 + $0x220] sm:$0xff]  ;;  %v246_v35 = vld [vmem:[%s1321_s26 + $0x228] sm:$0xff]  ;;  %243 = vst [vmem:[%s1326_s27 + $0x108] sm:$0xff] %v242_v33 }
  0x23   : > { %245 = vst [vmem:[%s1326_s27 + $0x110] sm:$0xff] %v244_v34  ;;  %247 = vst [vmem:[%s1326_s27 + $0x118] sm:$0xff] %v246_v35  ;;  %v248_v36 = vld [vmem:[%s1321_s26 + $0x240] sm:$0xff]  ;;  %v250_v37 = vld [vmem:[%s1321_s26 + $0x248] sm:$0xff] }
  0x24   : > { %v252_v38 = vld [vmem:[%s1321_s26 + $0x260] sm:$0xff]  ;;  %249 = vst [vmem:[%s1326_s27 + $0x120] sm:$0xff] %v248_v36  ;;  %251 = vst [vmem:[%s1326_s27 + $0x128] sm:$0xff] %v250_v37  ;;  %v254_v39 = vld [vmem:[%s1321_s26 + $0x268] sm:$0xff] }
  0x25   : > { %253 = vst [vmem:[%s1326_s27 + $0x130] sm:$0xff] %v252_v38  ;;  %v256_v40 = vld [vmem:[%s1321_s26 + $0x280] sm:$0xff]  ;;  %v258_v41 = vld [vmem:[%s1321_s26 + $0x288] sm:$0xff]  ;;  %255 = vst [vmem:[%s1326_s27 + $0x138] sm:$0xff] %v254_v39 }
  0x26   : > { %257 = vst [vmem:[%s1326_s27 + $0x140] sm:$0xff] %v256_v40  ;;  %259 = vst [vmem:[%s1326_s27 + $0x148] sm:$0xff] %v258_v41  ;;  %v260_v42 = vld [vmem:[%s1321_s26 + $0x2a0] sm:$0xff]  ;;  %v262_v43 = vld [vmem:[%s1321_s26 + $0x2a8] sm:$0xff] }
  0x27   : > { %v264_v44 = vld [vmem:[%s1321_s26 + $0x2c0] sm:$0xff]  ;;  %261 = vst [vmem:[%s1326_s27 + $0x150] sm:$0xff] %v260_v42  ;;  %263 = vst [vmem:[%s1326_s27 + $0x158] sm:$0xff] %v262_v43  ;;  %v266_v45 = vld [vmem:[%s1321_s26 + $0x2c8] sm:$0xff] }
  0x28   : > { %265 = vst [vmem:[%s1326_s27 + $0x160] sm:$0xff] %v264_v44  ;;  %v268_v46 = vld [vmem:[%s1321_s26 + $0x2e0] sm:$0xff]  ;;  %v270_v47 = vld [vmem:[%s1321_s26 + $0x2e8] sm:$0xff]  ;;  %267 = vst [vmem:[%s1326_s27 + $0x168] sm:$0xff] %v266_v45 }
  0x29   : > { %269 = vst [vmem:[%s1326_s27 + $0x170] sm:$0xff] %v268_v46  ;;  %271 = vst [vmem:[%s1326_s27 + $0x178] sm:$0xff] %v270_v47  ;;  %v272_v48 = vld [vmem:[%s1321_s26 + $0x300] sm:$0xff]  ;;  %v274_v49 = vld [vmem:[%s1321_s26 + $0x308] sm:$0xff] }
  0x2a   : > { %v276_v50 = vld [vmem:[%s1321_s26 + $0x320] sm:$0xff]  ;;  %273 = vst [vmem:[%s1326_s27 + $0x180] sm:$0xff] %v272_v48  ;;  %275 = vst [vmem:[%s1326_s27 + $0x188] sm:$0xff] %v274_v49  ;;  %v278_v51 = vld [vmem:[%s1321_s26 + $0x328] sm:$0xff] }
  0x2b   : > { %277 = vst [vmem:[%s1326_s27 + $0x190] sm:$0xff] %v276_v50  ;;  %v280_v52 = vld [vmem:[%s1321_s26 + $0x340] sm:$0xff]  ;;  %v282_v53 = vld [vmem:[%s1321_s26 + $0x348] sm:$0xff]  ;;  %279 = vst [vmem:[%s1326_s27 + $0x198] sm:$0xff] %v278_v51 }
  0x2c   : > { %281 = vst [vmem:[%s1326_s27 + $0x1a0] sm:$0xff] %v280_v52  ;;  %283 = vst [vmem:[%s1326_s27 + $0x1a8] sm:$0xff] %v282_v53  ;;  %v284_v54 = vld [vmem:[%s1321_s26 + $0x360] sm:$0xff]  ;;  %v286_v55 = vld [vmem:[%s1321_s26 + $0x368] sm:$0xff] }
  0x2d   : > { %v288_v56 = vld [vmem:[%s1321_s26 + $0x380] sm:$0xff]  ;;  %285 = vst [vmem:[%s1326_s27 + $0x1b0] sm:$0xff] %v284_v54  ;;  %287 = vst [vmem:[%s1326_s27 + $0x1b8] sm:$0xff] %v286_v55  ;;  %v290_v57 = vld [vmem:[%s1321_s26 + $0x388] sm:$0xff] }
  0x2e   : > { %289 = vst [vmem:[%s1326_s27 + $0x1c0] sm:$0xff] %v288_v56  ;;  %v292_v58 = vld [vmem:[%s1321_s26 + $0x3a0] sm:$0xff]  ;;  %v294_v59 = vld [vmem:[%s1321_s26 + $0x3a8] sm:$0xff]  ;;  %291 = vst [vmem:[%s1326_s27 + $0x1c8] sm:$0xff] %v290_v57 }
  0x2f   : > { %293 = vst [vmem:[%s1326_s27 + $0x1d0] sm:$0xff] %v292_v58  ;;  %295 = vst [vmem:[%s1326_s27 + $0x1d8] sm:$0xff] %v294_v59  ;;  %v296_v60 = vld [vmem:[%s1321_s26 + $0x3c0] sm:$0xff]  ;;  %v298_v61 = vld [vmem:[%s1321_s26 + $0x3c8] sm:$0xff] }
  0x30   : > { %v300_v62 = vld [vmem:[%s1321_s26 + $0x3e0] sm:$0xff]  ;;  %297 = vst [vmem:[%s1326_s27 + $0x1e0] sm:$0xff] %v296_v60  ;;  %299 = vst [vmem:[%s1326_s27 + $0x1e8] sm:$0xff] %v298_v61  ;;  %v302_v63 = vld [vmem:[%s1321_s26 + $0x3e8] sm:$0xff] }
  0x31   : > { %301 = vst [vmem:[%s1326_s27 + $0x1f0] sm:$0xff] %v300_v62  ;;  %303 = vst [vmem:[%s1326_s27 + $0x1f8] sm:$0xff] %v302_v63 }
  0x32 PF: > { %p1009_p6 = scmp.ge.s32.totalorder %s1256_s16, 1  ;;  %p316_p7 = scmp.lt.s32.totalorder %s1256_s16, 3 }
  0x34   : > { %p317_p8 = pnand %p1009_p6, %p316_p7 }
  0x35   : > { %s323_s28 = sand.u32 (!%p317_p8), 1, %s1240_s12   ;;  %v1459_v0 = vld.sshfl [vmem:[%s1553_s0] sm:$0x33 pattern:$0x76325410] (!%p317_p8)  ;;  %s1011_s6 = sshll.u32 (!%p317_p8), %s1248_s14, 2 }
  0x36   : > { %320 = sbr.rel (%p317_p8) target bundleno = 339 (0x153), region = 51  ;;  %s1010_s4 = sshll.u32 (!%p317_p8), %s323_s28, 9  ;;  %v475_v1 = vcombine.high (!%p317_p8), %v1459_v0, %v1459_v0 }
  0x37   : > { %s1463_s5 = scalar_lea.vmem (!%p317_p8), [#allocation2], %s1010_s4  ;;  %p366_p9 = scmp.lt.s32.totalorder (!%p317_p8), %s1011_s6, 7 }
  0x38   : > { %v1122_v2 = vld [vmem:[%s1463_s5 + $0x4] ss:$16 sps:$4 sm:$0xff] (!%p317_p8)   ;;  %830 = vmatprep.mubr.bf16.mxu0 (!%p317_p8), %v475_v1  ;;  %871 = vmatprep.mubr.bf16.mxu1 (!%p317_p8), %v475_v1  ;;  %v1124_v3 = vld [vmem:[%s1463_s5 + $0xc] ss:$16 sps:$4 sm:$0xff] (!%p317_p8)   ;;  %v1126_v4 = vld [vmem:[%s1463_s5] ss:$16 sps:$4 sm:$0xff] (!%p317_p8)  }
  0x39   : > { %798 = vmatprep.subr.bf16.mxu0 (!%p317_p8), %v1122_v2  ;;  %v1127_v5 = vld [vmem:[%s1463_s5 + $0x8] ss:$16 sps:$4 sm:$0xff] (!%p317_p8)   ;;  %839 = vmatprep.subr.bf16.mxu1 (!%p317_p8), %v1124_v3  ;;  %v1128_v6 = vld [vmem:[%s1463_s5 + $0x24] ss:$16 sps:$4 sm:$0xff] (!%p317_p8)   ;;  %v1130_v7 = vld [vmem:[%s1463_s5 + $0x2c] ss:$16 sps:$4 sm:$0xff] (!%p317_p8)   ;;  %v447_v3 = vlaneseq (!%p317_p8) }
  0x3a   : > { %799 = vmatpush1.bf16.msra.mxu0 (!%p317_p8), %v1126_v4  ;;  %840 = vmatpush1.bf16.msra.mxu1 (!%p317_p8), %v1127_v5  ;;  %v1132_v8 = vld [vmem:[%s1463_s5 + $0x20] ss:$16 sps:$4 sm:$0xff] (!%p317_p8)   ;;  %v1133_v9 = vld [vmem:[%s1463_s5 + $0x28] ss:$16 sps:$4 sm:$0xff] (!%p317_p8)   ;;  %v1134_v10 = vld [vmem:[%s1463_s5 + $0x44] ss:$16 sps:$4 sm:$0xff] (!%p317_p8)  }
  0x3b   : > { %800 = vmatprep.subr.bf16.mxu0 (!%p317_p8), %v1128_v6  ;;  %841 = vmatprep.subr.bf16.mxu1 (!%p317_p8), %v1130_v7  ;;  %v1136_v11 = vld [vmem:[%s1463_s5 + $0x4c] ss:$16 sps:$4 sm:$0xff] (!%p317_p8)   ;;  %v1138_v12 = vld [vmem:[%s1463_s5 + $0x40] ss:$16 sps:$4 sm:$0xff] (!%p317_p8)   ;;  %v1139_v13 = vld [vmem:[%s1463_s5 + $0x48] ss:$16 sps:$4 sm:$0xff] (!%p317_p8)  }
  0x3c   : > { %v1140_v14 = vld [vmem:[%s1463_s5 + $0x64] ss:$16 sps:$4 sm:$0xff] (!%p317_p8)   ;;  %v1142_v15 = vld [vmem:[%s1463_s5 + $0x6c] ss:$16 sps:$4 sm:$0xff] (!%p317_p8)   ;;  %v1144_v16 = vld [vmem:[%s1463_s5 + $0x60] ss:$16 sps:$4 sm:$0xff] (!%p317_p8)  }
  0x3d   : > { %v1145_v17 = vld [vmem:[%s1463_s5 + $0x68] ss:$16 sps:$4 sm:$0xff]   ;;  %v1146_v18 = vld [vmem:[%s1463_s5 + $0x84] ss:$16 sps:$4 sm:$0xff]   ;;  %v1148_v19 = vld [vmem:[%s1463_s5 + $0x8c] ss:$16 sps:$4 sm:$0xff]  }
  0x3e   : > { %801 = vmatpush1.bf16.msra.mxu0 %v1132_v8  ;;  %842 = vmatpush1.bf16.msra.mxu1 %v1133_v9  ;;  %v1150_v20 = vld [vmem:[%s1463_s5 + $0x80] ss:$16 sps:$4 sm:$0xff]   ;;  %v1151_v21 = vld [vmem:[%s1463_s5 + $0x88] ss:$16 sps:$4 sm:$0xff]   ;;  %v1152_v22 = vld [vmem:[%s1463_s5 + $0xa4] ss:$16 sps:$4 sm:$0xff]  }
  0x3f   : > { %802 = vmatprep.subr.bf16.mxu0 %v1134_v10  ;;  %843 = vmatprep.subr.bf16.mxu1 %v1136_v11  ;;  %v1154_v23 = vld [vmem:[%s1463_s5 + $0xac] ss:$16 sps:$4 sm:$0xff]   ;;  %v1156_v24 = vld [vmem:[%s1463_s5 + $0xa0] ss:$16 sps:$4 sm:$0xff]   ;;  %v1157_v25 = vld [vmem:[%s1463_s5 + $0xa8] ss:$16 sps:$4 sm:$0xff]  }
  0x40   : > { %v1158_v26 = vld [vmem:[%s1463_s5 + $0xc4] ss:$16 sps:$4 sm:$0xff]   ;;  %v1160_v27 = vld [vmem:[%s1463_s5 + $0xcc] ss:$16 sps:$4 sm:$0xff]   ;;  %v1162_v28 = vld [vmem:[%s1463_s5 + $0xc0] ss:$16 sps:$4 sm:$0xff]  }
  0x41   : > { %v1163_v29 = vld [vmem:[%s1463_s5 + $0xc8] ss:$16 sps:$4 sm:$0xff]   ;;  %v1164_v30 = vld [vmem:[%s1463_s5 + $0xe4] ss:$16 sps:$4 sm:$0xff]   ;;  %v1166_v31 = vld [vmem:[%s1463_s5 + $0xec] ss:$16 sps:$4 sm:$0xff]  }
  0x42   : > { %803 = vmatpush1.bf16.msra.mxu0 %v1138_v12  ;;  %844 = vmatpush1.bf16.msra.mxu1 %v1139_v13  ;;  %v1168_v32 = vld [vmem:[%s1463_s5 + $0xe0] ss:$16 sps:$4 sm:$0xff]   ;;  %v1169_v33 = vld [vmem:[%s1463_s5 + $0xe8] ss:$16 sps:$4 sm:$0xff]   ;;  %v1170_v34 = vld [vmem:[%s1463_s5 + $0x104] ss:$16 sps:$4 sm:$0xff]  }
  0x43   : > { %804 = vmatprep.subr.bf16.mxu0 %v1140_v14  ;;  %845 = vmatprep.subr.bf16.mxu1 %v1142_v15  ;;  %v1172_v35 = vld [vmem:[%s1463_s5 + $0x10c] ss:$16 sps:$4 sm:$0xff]   ;;  %v1174_v36 = vld [vmem:[%s1463_s5 + $0x100] ss:$16 sps:$4 sm:$0xff]   ;;  %v1175_v37 = vld [vmem:[%s1463_s5 + $0x108] ss:$16 sps:$4 sm:$0xff]  }
  0x44   : > { %v1176_v38 = vld [vmem:[%s1463_s5 + $0x124] ss:$16 sps:$4 sm:$0xff]   ;;  %v1178_v39 = vld [vmem:[%s1463_s5 + $0x12c] ss:$16 sps:$4 sm:$0xff]   ;;  %v1180_v40 = vld [vmem:[%s1463_s5 + $0x120] ss:$16 sps:$4 sm:$0xff]  }
  0x45   : > { %v1181_v41 = vld [vmem:[%s1463_s5 + $0x128] ss:$16 sps:$4 sm:$0xff]   ;;  %v1182_v42 = vld [vmem:[%s1463_s5 + $0x144] ss:$16 sps:$4 sm:$0xff]   ;;  %v1184_v43 = vld [vmem:[%s1463_s5 + $0x14c] ss:$16 sps:$4 sm:$0xff]  }
  0x46   : > { %805 = vmatpush1.bf16.msra.mxu0 %v1144_v16  ;;  %846 = vmatpush1.bf16.msra.mxu1 %v1145_v17  ;;  %v1186_v44 = vld [vmem:[%s1463_s5 + $0x140] ss:$16 sps:$4 sm:$0xff]   ;;  %v1187_v45 = vld [vmem:[%s1463_s5 + $0x148] ss:$16 sps:$4 sm:$0xff]   ;;  %v1188_v46 = vld [vmem:[%s1463_s5 + $0x164] ss:$16 sps:$4 sm:$0xff]  }
  0x47   : > { %806 = vmatprep.subr.bf16.mxu0 %v1146_v18  ;;  %847 = vmatprep.subr.bf16.mxu1 %v1148_v19  ;;  %v1190_v47 = vld [vmem:[%s1463_s5 + $0x16c] ss:$16 sps:$4 sm:$0xff]   ;;  %v1192_v48 = vld [vmem:[%s1463_s5 + $0x160] ss:$16 sps:$4 sm:$0xff]   ;;  %v1193_v49 = vld [vmem:[%s1463_s5 + $0x168] ss:$16 sps:$4 sm:$0xff]  }
  0x48   : > { %v1194_v50 = vld [vmem:[%s1463_s5 + $0x184] ss:$16 sps:$4 sm:$0xff]   ;;  %v1196_v51 = vld [vmem:[%s1463_s5 + $0x18c] ss:$16 sps:$4 sm:$0xff]   ;;  %v1198_v52 = vld [vmem:[%s1463_s5 + $0x180] ss:$16 sps:$4 sm:$0xff]  }
  0x49   : > { %v1199_v53 = vld [vmem:[%s1463_s5 + $0x188] ss:$16 sps:$4 sm:$0xff]   ;;  %v1200_v54 = vld [vmem:[%s1463_s5 + $0x1a4] ss:$16 sps:$4 sm:$0xff]   ;;  %v1202_v55 = vld [vmem:[%s1463_s5 + $0x1ac] ss:$16 sps:$4 sm:$0xff]  }
  0x4a   : > { %807 = vmatpush1.bf16.msra.mxu0 %v1150_v20  ;;  %848 = vmatpush1.bf16.msra.mxu1 %v1151_v21  ;;  %v1204_v56 = vld [vmem:[%s1463_s5 + $0x1a0] ss:$16 sps:$4 sm:$0xff]   ;;  %v1205_v57 = vld [vmem:[%s1463_s5 + $0x1a8] ss:$16 sps:$4 sm:$0xff]   ;;  %v1206_v58 = vld [vmem:[%s1463_s5 + $0x1c4] ss:$16 sps:$4 sm:$0xff]  }
  0x4b   : > { %808 = vmatprep.subr.bf16.mxu0 %v1152_v22  ;;  %849 = vmatprep.subr.bf16.mxu1 %v1154_v23  ;;  %v1208_v59 = vld [vmem:[%s1463_s5 + $0x1cc] ss:$16 sps:$4 sm:$0xff]   ;;  %v1210_v60 = vld [vmem:[%s1463_s5 + $0x1c0] ss:$16 sps:$4 sm:$0xff]   ;;  %v1211_v61 = vld [vmem:[%s1463_s5 + $0x1c8] ss:$16 sps:$4 sm:$0xff]  }
  0x4c   : > { %v1212_v62 = vld [vmem:[%s1463_s5 + $0x1e4] ss:$16 sps:$4 sm:$0xff]   ;;  %v1214_v63 = vld [vmem:[%s1463_s5 + $0x1ec] ss:$16 sps:$4 sm:$0xff]   ;;  %v1216_v1 = vld [vmem:[%s1463_s5 + $0x1e0] ss:$16 sps:$4 sm:$0xff]  }
  0x4d   : > { %v1217_v2 = vld [vmem:[%s1463_s5 + $0x1e8] ss:$16 sps:$4 sm:$0xff]   ;;  %s1564_s6 = smov (!%p366_p9, %s1011_s6), 7  ;;  %v448_v4 = vshrl.u32 %v447_v3, 7 }
  0x4e   : > { %809 = vmatpush1.bf16.msra.mxu0 %v1156_v24  ;;  %850 = vmatpush1.bf16.msra.mxu1 %v1157_v25  ;;  %s368_s9 = scalar_lea.vmem %s1555_s2, %s1564_s6  ;;  %s1013_s10 = sshll.u32 %s1564_s6, 2 }
  0x4f   : > { %810 = vmatprep.subr.bf16.mxu0 %v1158_v26  ;;  %851 = vmatprep.subr.bf16.mxu1 %v1160_v27  ;;  %v449_v5 = vsub.s32 0, %v448_v4  ;;  %v457_v6 = vsub.s32 2, %v448_v4  ;;  %v445_v7 = vld [vmem:[%s368_s9] sm:$0xf]  ;;  %v453_v8 = vsub.s32 1, %v448_v4  ;;  %v461_v9 = vsub.s32 3, %v448_v4  ;;  %s378_s14 = scalar_lea.vmem %s1556_s3, %s1013_s10 }
  0x51   : > { %v450_v10 = vrot.slane %v445_v7, %v449_v5  ;;  %v458_v11 = vrot.slane %v445_v7, %v457_v6  ;;  %v454_v12 = vrot.slane %v445_v7, %v453_v8  ;;  %v462_v13 = vrot.slane %v445_v7, %v461_v9 }
  0x52   : > { %811 = vmatpush1.bf16.msra.mxu0 %v1162_v28  ;;  %852 = vmatpush1.bf16.msra.mxu1 %v1163_v29 }
  0x53   : > { %812 = vmatprep.subr.bf16.mxu0 %v1164_v30  ;;  %853 = vmatprep.subr.bf16.mxu1 %v1166_v31 }
  0x56   : > { %813 = vmatpush1.bf16.msra.mxu0 %v1168_v32  ;;  %854 = vmatpush1.bf16.msra.mxu1 %v1169_v33 }
  0x57   : > { %814 = vmatprep.subr.bf16.mxu0 %v1170_v34  ;;  %855 = vmatprep.subr.bf16.mxu1 %v1172_v35 }
  0x5a   : > { %815 = vmatpush1.bf16.msra.mxu0 %v1174_v36  ;;  %856 = vmatpush1.bf16.msra.mxu1 %v1175_v37 }
  0x5b   : > { %816 = vmatprep.subr.bf16.mxu0 %v1176_v38  ;;  %857 = vmatprep.subr.bf16.mxu1 %v1178_v39 }
  0x5e   : > { %817 = vmatpush1.bf16.msra.mxu0 %v1180_v40  ;;  %858 = vmatpush1.bf16.msra.mxu1 %v1181_v41 }
  0x5f   : > { %818 = vmatprep.subr.bf16.mxu0 %v1182_v42  ;;  %859 = vmatprep.subr.bf16.mxu1 %v1184_v43 }
  0x62   : > { %819 = vmatpush1.bf16.msra.mxu0 %v1186_v44  ;;  %860 = vmatpush1.bf16.msra.mxu1 %v1187_v45 }
  0x63   : > { %820 = vmatprep.subr.bf16.mxu0 %v1188_v46  ;;  %861 = vmatprep.subr.bf16.mxu1 %v1190_v47 }
  0x66   : > { %821 = vmatpush1.bf16.msra.mxu0 %v1192_v48  ;;  %862 = vmatpush1.bf16.msra.mxu1 %v1193_v49 }
  0x67   : > { %822 = vmatprep.subr.bf16.mxu0 %v1194_v50  ;;  %863 = vmatprep.subr.bf16.mxu1 %v1196_v51 }
  0x6a   : > { %823 = vmatpush1.bf16.msra.mxu0 %v1198_v52  ;;  %864 = vmatpush1.bf16.msra.mxu1 %v1199_v53 }
  0x6b   : > { %824 = vmatprep.subr.bf16.mxu0 %v1200_v54  ;;  %865 = vmatprep.subr.bf16.mxu1 %v1202_v55 }
  0x6e   : > { %825 = vmatpush1.bf16.msra.mxu0 %v1204_v56  ;;  %866 = vmatpush1.bf16.msra.mxu1 %v1205_v57 }
  0x6f   : > { %826 = vmatprep.subr.bf16.mxu0 %v1206_v58  ;;  %867 = vmatprep.subr.bf16.mxu1 %v1208_v59 }
  0x72   : > { %827 = vmatpush1.bf16.msra.mxu0 %v1210_v60  ;;  %868 = vmatpush1.bf16.msra.mxu1 %v1211_v61 }
  0x73   : > { %828 = vmatprep.subr.bf16.mxu0 %v1212_v62  ;;  %869 = vmatprep.subr.bf16.mxu1 %v1214_v63 }
  0x76   : > { %829 = vmatpush1.bf16.msra.mxu0 %v1216_v1  ;;  %870 = vmatpush1.bf16.msra.mxu1 %v1217_v2 }
  0x79   : > { %831 = vmatmul.mubr.bf16.vlgmr.msra.gmra.mrb[0].mxu0 %v1459_v0  ;;  %872 = vmatmul.mubr.bf16.vlgmr.msra.gmra.mrb[0].mxu1 %v1459_v0 }
 0x14c   : > { %v832_v14 = vpop.f32.mrb[0].mxu0  ;;  %v873_v0 = vpop.f32.mrb[0].mxu1 }
 0x14d   : > { %v833_v15 = vadd.f32 %v832_v14, %v450_v10  ;;  %v874_v16 = vadd.f32 %v873_v0, %v458_v11  ;;  %v834_v17 = vpop.f32.mrb[1].mxu0  ;;  %v875_v18 = vpop.f32.mrb[1].mxu1 }
 0x14e   : > { %v835_v19 = vadd.f32 %v834_v17, %v454_v12  ;;  %v876_v20 = vadd.f32 %v875_v18, %v462_v13  ;;  %v836_v21 = vpop.f32.mrb[2].mxu0  ;;  %v877_v22 = vpop.f32.mrb[2].mxu1 }
 0x14f   : > { %v837_v23 = vpop.f32.mrb[3].mxu0  ;;  %v878_v24 = vpop.f32.mrb[3].mxu1 }
 0x150   : > { %v884_v25 = vcombine.low %v833_v15, %v835_v19  ;;  %v885_v26 = vcombine.low %v874_v16, %v876_v20 }
 0x152   : > { %888 = vst [vmem:[%s378_s14] sm:$0xff] %v884_v25  ;;  %889 = vst [vmem:[%s378_s14 + $0x8] sm:$0xff] %v885_v26 }
 0x153 PF: > { %s13_s16 = sadd.s32 1, %s1256_s16   ;;  %s1557_s12 = smov %s1244_s13 }
 0x154   : > { %p10_p10 = scmp.ge.s32.totalorder %s13_s16, 4   ;;  %s1558_s13 = smov %s1313_s20 }
 0x155   : > { %s1559_s14 = smov %s1252_s15  ;;  %s1560_s15 = smov %s1562_s17 }
 0x156   :  { %12 = sbr.rel (!%p10_p10) target bundleno = 3 (0x3), region = 96 }

// kernel: deep_eye_forward.11
= control target key start
LH: loop header
LB: loop body
LE: loop exit
PB: predicated region body
PF: predicated region fallthrough
CT: control target
= control target key end

     0   :  { %vm3091_vm0 = vmmov 0   ;;  %vm2317_vm1 = vcmask 519168   ;;  %s3796_s1 = inlined_call_operand.vmem [shape: bf16[3200,64], index: 1, kind: input, shape index: {}]   ;;  %s3797_s0 = inlined_call_operand.vmem [shape: bf16[16,3200], index: 0, kind: input, shape index: {}]   ;;  %s3798_s2 = inlined_call_operand.vmem [shape: f32[1,64], index: 2, kind: input, shape index: {}]   ;;  %s3799_s3 = inlined_call_operand.vmem [shape: bf16[16,64], index: 3, kind: output, shape index: {}]  }
   0x1   :  { %v2849_v0 = vld [vmem:[%s3796_s1 + $0x40] sm:$0xff]   ;;  %v2853_v4 = vld [vmem:[%s3796_s1 + $0x48] sm:$0xff]   ;;  %v2857_v8 = vld [vmem:[%s3796_s1 + $0x50] sm:$0xff]  }
   0x2   :  { %v2850_v1 = vld [vmem:[%s3796_s1] sm:$0xff]   ;;  %2554 = vmatprep.subr.bf16.mxu0 %v2849_v0  ;;  %v2854_v5 = vld [vmem:[%s3796_s1 + $0x8] sm:$0xff]   ;;  %v2858_v9 = vld [vmem:[%s3796_s1 + $0x10] sm:$0xff]  }
   0x3   :  { %v2851_v2 = vld [vmem:[%s3796_s1 + $0xc0] sm:$0xff]   ;;  %2555 = vmatpush3.bf16.msra.mxu0 %v2850_v1  ;;  %v2855_v6 = vld [vmem:[%s3796_s1 + $0xc8] sm:$0xff]   ;;  %v2859_v10 = vld [vmem:[%s3796_s1 + $0xd0] sm:$0xff]  }
   0x4   :  { %v2852_v3 = vld [vmem:[%s3796_s1 + $0x80] sm:$0xff]   ;;  %2576 = vmatprep.subr.bf16.mxu1 %v2851_v2  ;;  %2556 = vmatprep.subr.bf16.mxu0 %v2853_v4  ;;  %v2856_v7 = vld [vmem:[%s3796_s1 + $0x88] sm:$0xff]   ;;  %v2860_v11 = vld [vmem:[%s3796_s1 + $0x90] sm:$0xff]  }
   0x5   :  { %2577 = vmatpush3.bf16.msra.mxu1 %v2852_v3  ;;  %v2861_v12 = vld [vmem:[%s3796_s1 + $0x58] sm:$0xff]   ;;  %v2865_v16 = vld [vmem:[%s3796_s1 + $0x60] sm:$0xff]   ;;  %v2869_v20 = vld [vmem:[%s3796_s1 + $0x68] sm:$0xff]  }
   0x6   :  { %2578 = vmatprep.subr.bf16.mxu1 %v2855_v6  ;;  %v2862_v13 = vld [vmem:[%s3796_s1 + $0x18] sm:$0xff]   ;;  %v2866_v17 = vld [vmem:[%s3796_s1 + $0x20] sm:$0xff]   ;;  %v2870_v21 = vld [vmem:[%s3796_s1 + $0x28] sm:$0xff]  }
   0x7   :  { %2557 = vmatpush3.bf16.msra.mxu0 %v2854_v5  ;;  %v2863_v14 = vld [vmem:[%s3796_s1 + $0xd8] sm:$0xff]   ;;  %v2867_v18 = vld [vmem:[%s3796_s1 + $0xe0] sm:$0xff]   ;;  %v2871_v22 = vld [vmem:[%s3796_s1 + $0xe8] sm:$0xff]  }
   0x8   :  { %2558 = vmatprep.subr.bf16.mxu0 %v2857_v8  ;;  %v2864_v15 = vld [vmem:[%s3796_s1 + $0x98] sm:$0xff]   ;;  %v2868_v19 = vld [vmem:[%s3796_s1 + $0xa0] sm:$0xff]   ;;  %v2872_v23 = vld [vmem:[%s3796_s1 + $0xa8] sm:$0xff]  }
   0x9   :  { %2579 = vmatpush3.bf16.msra.mxu1 %v2856_v7  ;;  %v2873_v24 = vld [vmem:[%s3796_s1 + $0x70] sm:$0xff]   ;;  %v2877_v28 = vld [vmem:[%s3796_s1 + $0x78] sm:$0xff]   ;;  %v2880_v31 = vld [vmem:[%s3797_s0] ss:$100 sps:$4 sm:$0xff]  }
   0xa   :  { %2580 = vmatprep.subr.bf16.mxu1 %v2859_v10  ;;  %v2874_v25 = vld [vmem:[%s3796_s1 + $0x30] sm:$0xff]   ;;  %v2878_v29 = vld [vmem:[%s3796_s1 + $0x38] sm:$0xff]   ;;  %v2882_v32 = vld [vmem:[%s3797_s0 + $0x4] ss:$100 sps:$4 sm:$0xff]  }
   0xb   :  { %2559 = vmatpush3.bf16.msra.mxu0 %v2858_v9  ;;  %v2875_v26 = vld [vmem:[%s3796_s1 + $0xf0] sm:$0xff]   ;;  %v2879_v30 = vld [vmem:[%s3796_s1 + $0xf8] sm:$0xff]   ;;  %1806 = vmatprep.mubr.bf16.mxu0 %v2882_v32  ;;  %v2884_v34 = vld [vmem:[%s3796_s1 + $0x140] sm:$0xff]  }
   0xc   :  { %2560 = vmatprep.subr.bf16.mxu0 %v2861_v12  ;;  %v2876_v27 = vld [vmem:[%s3796_s1 + $0xb0] sm:$0xff]   ;;  %v2883_v33 = vld [vmem:[%s3796_s1 + $0xb8] sm:$0xff]   ;;  %v2885_v35 = vld [vmem:[%s3797_s0 + $0x8] ss:$100 sps:$4 sm:$0xff]  }
   0xd   :  { %2581 = vmatpush3.bf16.msra.mxu1 %v2860_v11  ;;  %v2887_v36 = vld [vmem:[%s3797_s0 + $0xc] ss:$100 sps:$4 sm:$0xff]   ;;  %v2888_v37 = vld [vmem:[%s3796_s1 + $0x100] sm:$0xff]   ;;  %v2899_v48 = vld [vmem:[%s3796_s1 + $0x158] sm:$0xff]  }
   0xe   :  { %2582 = vmatprep.subr.bf16.mxu1 %v2863_v14  ;;  %1847 = vmatprep.mubr.bf16.mxu1 %v2887_v36  ;;  %v2889_v38 = vld [vmem:[%s3796_s1 + $0x1c0] sm:$0xff]   ;;  %v2891_v40 = vld [vmem:[%s3796_s1 + $0x148] sm:$0xff]   ;;  %v2895_v44 = vld [vmem:[%s3796_s1 + $0x150] sm:$0xff]  }
   0xf   :  { %2561 = vmatpush3.bf16.msra.mxu0 %v2862_v13  ;;  %v2890_v39 = vld [vmem:[%s3796_s1 + $0x180] sm:$0xff]   ;;  %v2892_v41 = vld [vmem:[%s3796_s1 + $0x108] sm:$0xff]   ;;  %v2896_v45 = vld [vmem:[%s3796_s1 + $0x110] sm:$0xff]  }
  0x10   :  { %2562 = vmatprep.subr.bf16.mxu0 %v2865_v16  ;;  %v2893_v42 = vld [vmem:[%s3796_s1 + $0x1c8] sm:$0xff]   ;;  %v2897_v46 = vld [vmem:[%s3796_s1 + $0x1d0] sm:$0xff]   ;;  %v2900_v49 = vld [vmem:[%s3796_s1 + $0x118] sm:$0xff]  }
  0x11   :  { %2583 = vmatpush3.bf16.msra.mxu1 %v2864_v15  ;;  %v2894_v43 = vld [vmem:[%s3796_s1 + $0x188] sm:$0xff]   ;;  %v2898_v47 = vld [vmem:[%s3796_s1 + $0x190] sm:$0xff]   ;;  %v2901_v50 = vld [vmem:[%s3796_s1 + $0x1d8] sm:$0xff]  }
  0x12   :  { %2584 = vmatprep.subr.bf16.mxu1 %v2867_v18  ;;  %v2902_v51 = vld [vmem:[%s3796_s1 + $0x198] sm:$0xff]   ;;  %v2903_v52 = vld [vmem:[%s3796_s1 + $0x160] sm:$0xff]   ;;  %v2907_v56 = vld [vmem:[%s3796_s1 + $0x168] sm:$0xff]  }
  0x13   :  { %2563 = vmatpush3.bf16.msra.mxu0 %v2866_v17  ;;  %v2904_v53 = vld [vmem:[%s3796_s1 + $0x120] sm:$0xff]   ;;  %v2908_v57 = vld [vmem:[%s3796_s1 + $0x128] sm:$0xff]   ;;  %v2911_v60 = vld [vmem:[%s3796_s1 + $0x170] sm:$0xff]  }
  0x14   :  { %2564 = vmatprep.subr.bf16.mxu0 %v2869_v20  ;;  %v2905_v54 = vld [vmem:[%s3796_s1 + $0x1e0] sm:$0xff]   ;;  %v2909_v58 = vld [vmem:[%s3796_s1 + $0x1e8] sm:$0xff]   ;;  %v2912_v61 = vld [vmem:[%s3796_s1 + $0x130] sm:$0xff]  }
  0x15   :  { %2585 = vmatpush3.bf16.msra.mxu1 %v2868_v19  ;;  %v2906_v55 = vld [vmem:[%s3796_s1 + $0x1a0] sm:$0xff]   ;;  %v2910_v59 = vld [vmem:[%s3796_s1 + $0x1a8] sm:$0xff]   ;;  %v2913_v62 = vld [vmem:[%s3796_s1 + $0x1f0] sm:$0xff]  }
  0x16   :  { %2586 = vmatprep.subr.bf16.mxu1 %v2871_v22  ;;  %v2914_v63 = vld [vmem:[%s3796_s1 + $0x1b0] sm:$0xff]   ;;  %v2915_v0 = vld [vmem:[%s3796_s1 + $0x178] sm:$0xff]   ;;  %v2922_v6 = vld [vmem:[%s3796_s1 + $0x240] sm:$0xff]  }
  0x17   :  { %2565 = vmatpush3.bf16.msra.mxu0 %v2870_v21  ;;  %v2916_v1 = vld [vmem:[%s3796_s1 + $0x138] sm:$0xff]   ;;  %v2918_v3 = vld [vmem:[%s3797_s0 + $0x10] ss:$100 sps:$4 sm:$0xff]   ;;  %v2926_v9 = vld [vmem:[%s3796_s1 + $0x200] sm:$0xff]  }
  0x18   :  { %2566 = vmatprep.subr.bf16.mxu0 %v2873_v24  ;;  %v2917_v2 = vld [vmem:[%s3796_s1 + $0x1f8] sm:$0xff]   ;;  %v2927_v10 = vld [vmem:[%s3796_s1 + $0x2c0] sm:$0xff]   ;;  %v2929_v12 = vld [vmem:[%s3796_s1 + $0x248] sm:$0xff]  }
  0x19   :  { %2587 = vmatpush3.bf16.msra.mxu1 %v2872_v23  ;;  %v2920_v4 = vld [vmem:[%s3797_s0 + $0x14] ss:$100 sps:$4 sm:$0xff]   ;;  %v2925_v8 = vld [vmem:[%s3797_s0 + $0x1c] ss:$100 sps:$4 sm:$0xff]   ;;  %v2930_v13 = vld [vmem:[%s3796_s1 + $0x208] sm:$0xff]  }
  0x1a   :  { %2588 = vmatprep.subr.bf16.mxu1 %v2875_v26  ;;  %v2921_v5 = vld [vmem:[%s3796_s1 + $0x1b8] sm:$0xff]   ;;  %v2928_v11 = vld [vmem:[%s3796_s1 + $0x280] sm:$0xff]   ;;  %v2931_v14 = vld [vmem:[%s3796_s1 + $0x2c8] sm:$0xff]  }
  0x1b   :  { %2567 = vmatpush3.bf16.msra.mxu0 %v2874_v25  ;;  %v2923_v7 = vld [vmem:[%s3797_s0 + $0x18] ss:$100 sps:$4 sm:$0xff]   ;;  %v2932_v15 = vld [vmem:[%s3796_s1 + $0x288] sm:$0xff]   ;;  %v2933_v16 = vld [vmem:[%s3796_s1 + $0x250] sm:$0xff]  }
  0x1c   :  { %2568 = vmatprep.subr.bf16.mxu0 %v2877_v28  ;;  %v2934_v17 = vld [vmem:[%s3796_s1 + $0x210] sm:$0xff]   ;;  %v2937_v20 = vld [vmem:[%s3796_s1 + $0x258] sm:$0xff]   ;;  %v2941_v24 = vld [vmem:[%s3796_s1 + $0x260] sm:$0xff]  }
  0x1d   :  { %2589 = vmatpush3.bf16.msra.mxu1 %v2876_v27  ;;  %v2935_v18 = vld [vmem:[%s3796_s1 + $0x2d0] sm:$0xff]   ;;  %v2938_v21 = vld [vmem:[%s3796_s1 + $0x218] sm:$0xff]   ;;  %v2942_v25 = vld [vmem:[%s3796_s1 + $0x220] sm:$0xff]  }
  0x1e   :  { %2590 = vmatprep.subr.bf16.mxu1 %v2879_v30  ;;  %v2936_v19 = vld [vmem:[%s3796_s1 + $0x290] sm:$0xff]   ;;  %v2939_v22 = vld [vmem:[%s3796_s1 + $0x2d8] sm:$0xff]   ;;  %v2943_v26 = vld [vmem:[%s3796_s1 + $0x2e0] sm:$0xff]  }
  0x1f   :  { %2569 = vmatpush3.bf16.msra.mxu0 %v2878_v29  ;;  %v2940_v23 = vld [vmem:[%s3796_s1 + $0x298] sm:$0xff]   ;;  %v2944_v27 = vld [vmem:[%s3796_s1 + $0x2a0] sm:$0xff]   ;;  %v2945_v28 = vld [vmem:[%s3796_s1 + $0x268] sm:$0xff]  }
  0x20   :  { %2598 = vmatprep.subr.bf16.mxu0 %v2884_v34  ;;  %v2946_v29 = vld [vmem:[%s3796_s1 + $0x228] sm:$0xff]   ;;  %v2949_v32 = vld [vmem:[%s3796_s1 + $0x270] sm:$0xff]   ;;  %v2953_v36 = vld [vmem:[%s3796_s1 + $0x278] sm:$0xff]  }
  0x21   :  { %2591 = vmatpush3.bf16.msra.mxu1 %v2883_v33  ;;  %v2947_v30 = vld [vmem:[%s3796_s1 + $0x2e8] sm:$0xff]   ;;  %v2950_v33 = vld [vmem:[%s3796_s1 + $0x230] sm:$0xff]  }
  0x22   :  { %1807 = vmatmul.mubr.bf16.vlgmr.msra.gmra.mrb[0].mxu0 %v2880_v31  ;;  %2620 = vmatprep.subr.bf16.mxu1 %v2889_v38  ;;  %v2948_v31 = vld [vmem:[%s3796_s1 + $0x2a8] sm:$0xff]   ;;  %v2951_v34 = vld [vmem:[%s3796_s1 + $0x2f0] sm:$0xff]   ;;  %v2955_v38 = vld [vmem:[%s3796_s1 + $0x2f8] sm:$0xff]  }
  0x23   :  { %2599 = vmatpush3.bf16.msra.mxu0 %v2888_v37  ;;  %1888 = vmatprep.mubr.bf16.mxu0 %v2920_v4  ;;  %v2954_v37 = vld [vmem:[%s3796_s1 + $0x238] sm:$0xff]   ;;  %v2987_v4 = vld [vmem:[%s3796_s1 + $0x370] sm:$0xff]  }
  0x24   :  { %1848 = vmatmul.mubr.bf16.vlgmr.msra.gmra.mrb[0].mxu1 %v2885_v35  ;;  %2600 = vmatprep.subr.bf16.mxu0 %v2891_v40  ;;  %v2952_v35 = vld [vmem:[%s3796_s1 + $0x2b0] sm:$0xff]   ;;  %v2958_v40 = vld [vmem:[%s3797_s0 + $0x24] ss:$100 sps:$4 sm:$0xff]  }
  0x25   :  { %2621 = vmatpush3.bf16.msra.mxu1 %v2890_v39  ;;  %1929 = vmatprep.mubr.bf16.mxu1 %v2925_v8  ;;  %v2956_v39 = vld [vmem:[%s3797_s0 + $0x20] ss:$100 sps:$4 sm:$0xff]   ;;  %v2991_v8 = vld [vmem:[%s3796_s1 + $0x378] sm:$0xff]  }
  0x26   :  { %2622 = vmatprep.subr.bf16.mxu1 %v2893_v42  ;;  %v2960_v42 = vld [vmem:[%s3796_s1 + $0x340] sm:$0xff]  }
  0x27   :  { %2601 = vmatpush3.bf16.msra.mxu0 %v2892_v41  ;;  %v2959_v41 = vld [vmem:[%s3796_s1 + $0x2b8] sm:$0xff]  }
  0x28   :  { %2602 = vmatprep.subr.bf16.mxu0 %v2895_v44  ;;  %v2963_v44 = vld [vmem:[%s3797_s0 + $0x2c] ss:$100 sps:$4 sm:$0xff]  }
  0x29   :  { %2623 = vmatpush3.bf16.msra.mxu1 %v2894_v43  ;;  %v2961_v43 = vld [vmem:[%s3797_s0 + $0x28] ss:$100 sps:$4 sm:$0xff]  }
  0x2a   :  { %2624 = vmatprep.subr.bf16.mxu1 %v2897_v46  ;;  %v2965_v46 = vld [vmem:[%s3796_s1 + $0x3c0] sm:$0xff]  }
  0x2b   :  { %2603 = vmatpush3.bf16.msra.mxu0 %v2896_v45  ;;  %v2964_v45 = vld [vmem:[%s3796_s1 + $0x300] sm:$0xff]  }
  0x2c   :  { %2604 = vmatprep.subr.bf16.mxu0 %v2899_v48  ;;  %v2967_v48 = vld [vmem:[%s3796_s1 + $0x348] sm:$0xff]  }
  0x2d   :  { %2625 = vmatpush3.bf16.msra.mxu1 %v2898_v47  ;;  %v2966_v47 = vld [vmem:[%s3796_s1 + $0x380] sm:$0xff]  }
  0x2e   :  { %2626 = vmatprep.subr.bf16.mxu1 %v2901_v50  ;;  %v2969_v50 = vld [vmem:[%s3796_s1 + $0x3c8] sm:$0xff]  }
  0x2f   :  { %2605 = vmatpush3.bf16.msra.mxu0 %v2900_v49  ;;  %v2968_v49 = vld [vmem:[%s3796_s1 + $0x308] sm:$0xff]  }
  0x30   :  { %2606 = vmatprep.subr.bf16.mxu0 %v2903_v52  ;;  %v2971_v52 = vld [vmem:[%s3796_s1 + $0x350] sm:$0xff]  }
  0x31   :  { %2627 = vmatpush3.bf16.msra.mxu1 %v2902_v51  ;;  %v2970_v51 = vld [vmem:[%s3796_s1 + $0x388] sm:$0xff]  }
  0x32   :  { %2628 = vmatprep.subr.bf16.mxu1 %v2905_v54  ;;  %v2973_v54 = vld [vmem:[%s3796_s1 + $0x3d0] sm:$0xff]  }
  0x33   :  { %2607 = vmatpush3.bf16.msra.mxu0 %v2904_v53  ;;  %v2972_v53 = vld [vmem:[%s3796_s1 + $0x310] sm:$0xff]  }
  0x34   :  { %2608 = vmatprep.subr.bf16.mxu0 %v2907_v56  ;;  %v2975_v56 = vld [vmem:[%s3796_s1 + $0x358] sm:$0xff]  }
  0x35   :  { %2629 = vmatpush3.bf16.msra.mxu1 %v2906_v55  ;;  %v2974_v55 = vld [vmem:[%s3796_s1 + $0x390] sm:$0xff]  }
  0x36   :  { %2630 = vmatprep.subr.bf16.mxu1 %v2909_v58  ;;  %v2977_v58 = vld [vmem:[%s3796_s1 + $0x3d8] sm:$0xff]  }
  0x37   :  { %2609 = vmatpush3.bf16.msra.mxu0 %v2908_v57  ;;  %v2976_v57 = vld [vmem:[%s3796_s1 + $0x318] sm:$0xff]  }
  0x38   :  { %2610 = vmatprep.subr.bf16.mxu0 %v2911_v60  ;;  %v2979_v60 = vld [vmem:[%s3796_s1 + $0x360] sm:$0xff]  }
  0x39   :  { %2631 = vmatpush3.bf16.msra.mxu1 %v2910_v59  ;;  %v2978_v59 = vld [vmem:[%s3796_s1 + $0x398] sm:$0xff]  }
  0x3a   :  { %2632 = vmatprep.subr.bf16.mxu1 %v2913_v62  ;;  %v2981_v62 = vld [vmem:[%s3796_s1 + $0x3e0] sm:$0xff]  }
  0x3b   :  { %2611 = vmatpush3.bf16.msra.mxu0 %v2912_v61  ;;  %v2980_v61 = vld [vmem:[%s3796_s1 + $0x320] sm:$0xff]  }
  0x3c   :  { %2612 = vmatprep.subr.bf16.mxu0 %v2915_v0  ;;  %v2983_v0 = vld [vmem:[%s3796_s1 + $0x368] sm:$0xff]  }
  0x3d   :  { %2633 = vmatpush3.bf16.msra.mxu1 %v2914_v63  ;;  %v2982_v63 = vld [vmem:[%s3796_s1 + $0x3a0] sm:$0xff]  }
  0x3e   :  { %2634 = vmatprep.subr.bf16.mxu1 %v2917_v2  ;;  %v2985_v2 = vld [vmem:[%s3796_s1 + $0x3e8] sm:$0xff]  }
  0x3f   :  { %2613 = vmatpush3.bf16.msra.mxu0 %v2916_v1  ;;  %v2984_v1 = vld [vmem:[%s3796_s1 + $0x328] sm:$0xff]  }
  0x40   :  { %2642 = vmatprep.subr.bf16.mxu0 %v2922_v6  ;;  %v2989_v6 = vld [vmem:[%s3796_s1 + $0x3f0] sm:$0xff]  }
  0x41   :  { %2635 = vmatpush3.bf16.msra.mxu1 %v2921_v5  ;;  %v2988_v5 = vld [vmem:[%s3796_s1 + $0x330] sm:$0xff]  }
  0x42   :  { %1889 = vmatmul.mubr.bf16.vlgmr.msra.gmra.mrb[4].mxu0 %v2918_v3  ;;  %2664 = vmatprep.subr.bf16.mxu1 %v2927_v10  ;;  %v2986_v3 = vld [vmem:[%s3796_s1 + $0x3a8] sm:$0xff]   ;;  %v2993_v10 = vld [vmem:[%s3796_s1 + $0x3f8] sm:$0xff]  }
  0x43   :  { %2643 = vmatpush3.bf16.msra.mxu0 %v2926_v9  ;;  %1970 = vmatprep.mubr.bf16.mxu0 %v2958_v40  ;;  %v2992_v9 = vld [vmem:[%s3796_s1 + $0x338] sm:$0xff]   ;;  %v3025_v40 = vld [vmem:[%s3796_s1 + $0x470] sm:$0xff]  }
  0x44   :  { %1930 = vmatmul.mubr.bf16.vlgmr.msra.gmra.mrb[4].mxu1 %v2923_v7  ;;  %2644 = vmatprep.subr.bf16.mxu0 %v2929_v12  ;;  %v2990_v7 = vld [vmem:[%s3796_s1 + $0x3b0] sm:$0xff]  }
  0x45   :  { %2665 = vmatpush3.bf16.msra.mxu1 %v2928_v11  ;;  %2011 = vmatprep.mubr.bf16.mxu1 %v2963_v44  ;;  %v2994_v11 = vld [vmem:[%s3797_s0 + $0x30] ss:$100 sps:$4 sm:$0xff]   ;;  %v3029_v44 = vld [vmem:[%s3796_s1 + $0x478] sm:$0xff]  }
  0x46   :  { %2666 = vmatprep.subr.bf16.mxu1 %v2931_v14  ;;  %v2996_v12 = vld [vmem:[%s3797_s0 + $0x34] ss:$100 sps:$4 sm:$0xff]   ;;  %v2998_v14 = vld [vmem:[%s3796_s1 + $0x440] sm:$0xff]  }
  0x47   :  { %2645 = vmatpush3.bf16.msra.mxu0 %v2930_v13  ;;  %v2997_v13 = vld [vmem:[%s3796_s1 + $0x3b8] sm:$0xff]  }
  0x48   :  { %2646 = vmatprep.subr.bf16.mxu0 %v2933_v16  ;;  %v3001_v16 = vld [vmem:[%s3797_s0 + $0x3c] ss:$100 sps:$4 sm:$0xff]  }
  0x49   :  { %2667 = vmatpush3.bf16.msra.mxu1 %v2932_v15  ;;  %v2999_v15 = vld [vmem:[%s3797_s0 + $0x38] ss:$100 sps:$4 sm:$0xff]  }
  0x4a   :  { %2668 = vmatprep.subr.bf16.mxu1 %v2935_v18  ;;  %v3003_v18 = vld [vmem:[%s3796_s1 + $0x4c0] sm:$0xff]  }
  0x4b   :  { %2647 = vmatpush3.bf16.msra.mxu0 %v2934_v17  ;;  %v3002_v17 = vld [vmem:[%s3796_s1 + $0x400] sm:$0xff]  }
  0x4c   :  { %2648 = vmatprep.subr.bf16.mxu0 %v2937_v20  ;;  %v3005_v20 = vld [vmem:[%s3796_s1 + $0x448] sm:$0xff]  }
  0x4d   :  { %2669 = vmatpush3.bf16.msra.mxu1 %v2936_v19  ;;  %v3004_v19 = vld [vmem:[%s3796_s1 + $0x480] sm:$0xff]  }
  0x4e   :  { %2670 = vmatprep.subr.bf16.mxu1 %v2939_v22  ;;  %v3007_v22 = vld [vmem:[%s3796_s1 + $0x4c8] sm:$0xff]  }
  0x4f   :  { %2649 = vmatpush3.bf16.msra.mxu0 %v2938_v21  ;;  %v3006_v21 = vld [vmem:[%s3796_s1 + $0x408] sm:$0xff]  }
  0x50   :  { %2650 = vmatprep.subr.bf16.mxu0 %v2941_v24  ;;  %v3009_v24 = vld [vmem:[%s3796_s1 + $0x450] sm:$0xff]  }
  0x51   :  { %2671 = vmatpush3.bf16.msra.mxu1 %v2940_v23  ;;  %v3008_v23 = vld [vmem:[%s3796_s1 + $0x488] sm:$0xff]  }
  0x52   :  { %2672 = vmatprep.subr.bf16.mxu1 %v2943_v26  ;;  %v3011_v26 = vld [vmem:[%s3796_s1 + $0x4d0] sm:$0xff]  }
  0x53   :  { %2651 = vmatpush3.bf16.msra.mxu0 %v2942_v25  ;;  %v3010_v25 = vld [vmem:[%s3796_s1 + $0x410] sm:$0xff]  }
  0x54   :  { %2652 = vmatprep.subr.bf16.mxu0 %v2945_v28  ;;  %v3013_v28 = vld [vmem:[%s3796_s1 + $0x458] sm:$0xff]  }
  0x55   :  { %2673 = vmatpush3.bf16.msra.mxu1 %v2944_v27  ;;  %v3012_v27 = vld [vmem:[%s3796_s1 + $0x490] sm:$0xff]  }
  0x56   :  { %2674 = vmatprep.subr.bf16.mxu1 %v2947_v30  ;;  %v3015_v30 = vld [vmem:[%s3796_s1 + $0x4d8] sm:$0xff]  }
  0x57   :  { %2653 = vmatpush3.bf16.msra.mxu0 %v2946_v29  ;;  %v3014_v29 = vld [vmem:[%s3796_s1 + $0x418] sm:$0xff]  }
  0x58   :  { %2654 = vmatprep.subr.bf16.mxu0 %v2949_v32  ;;  %v3017_v32 = vld [vmem:[%s3796_s1 + $0x460] sm:$0xff]  }
  0x59   :  { %2675 = vmatpush3.bf16.msra.mxu1 %v2948_v31  ;;  %v3016_v31 = vld [vmem:[%s3796_s1 + $0x498] sm:$0xff]  }
  0x5a   :  { %2676 = vmatprep.subr.bf16.mxu1 %v2951_v34  ;;  %v3019_v34 = vld [vmem:[%s3796_s1 + $0x4e0] sm:$0xff]  }
  0x5b   :  { %2655 = vmatpush3.bf16.msra.mxu0 %v2950_v33  ;;  %v3018_v33 = vld [vmem:[%s3796_s1 + $0x420] sm:$0xff]  }
  0x5c   :  { %2656 = vmatprep.subr.bf16.mxu0 %v2953_v36  ;;  %v3021_v36 = vld [vmem:[%s3796_s1 + $0x468] sm:$0xff]  }
  0x5d   :  { %2677 = vmatpush3.bf16.msra.mxu1 %v2952_v35  ;;  %v3020_v35 = vld [vmem:[%s3796_s1 + $0x4a0] sm:$0xff]  }
  0x5e   :  { %2678 = vmatprep.subr.bf16.mxu1 %v2955_v38  ;;  %v3023_v38 = vld [vmem:[%s3796_s1 + $0x4e8] sm:$0xff]  }
  0x5f   :  { %2657 = vmatpush3.bf16.msra.mxu0 %v2954_v37  ;;  %v3022_v37 = vld [vmem:[%s3796_s1 + $0x428] sm:$0xff]  }
  0x60   :  { %2686 = vmatprep.subr.bf16.mxu0 %v2960_v42  ;;  %v3027_v42 = vld [vmem:[%s3796_s1 + $0x4f0] sm:$0xff]  }
  0x61   :  { %2679 = vmatpush3.bf16.msra.mxu1 %v2959_v41  ;;  %v3026_v41 = vld [vmem:[%s3796_s1 + $0x430] sm:$0xff]  }
  0x62   :  { %1971 = vmatmul.mubr.bf16.vlgmr.msra.gmra.mrb[8].mxu0 %v2956_v39  ;;  %2708 = vmatprep.subr.bf16.mxu1 %v2965_v46  ;;  %v3024_v39 = vld [vmem:[%s3796_s1 + $0x4a8] sm:$0xff]   ;;  %v3031_v46 = vld [vmem:[%s3796_s1 + $0x4f8] sm:$0xff]  }
  0x63   :  { %2687 = vmatpush3.bf16.msra.mxu0 %v2964_v45  ;;  %2052 = vmatprep.mubr.bf16.mxu0 %v2996_v12  ;;  %v3030_v45 = vld [vmem:[%s3796_s1 + $0x438] sm:$0xff]   ;;  %v3063_v12 = vld [vmem:[%s3796_s1 + $0x570] sm:$0xff]  }
  0x64   :  { %2012 = vmatmul.mubr.bf16.vlgmr.msra.gmra.mrb[8].mxu1 %v2961_v43  ;;  %2688 = vmatprep.subr.bf16.mxu0 %v2967_v48  ;;  %v3028_v43 = vld [vmem:[%s3796_s1 + $0x4b0] sm:$0xff]   ;;  %v3034_v48 = vld [vmem:[%s3797_s0 + $0x44] ss:$100 sps:$4 sm:$0xff]  }
  0x65   :  { %2709 = vmatpush3.bf16.msra.mxu1 %v2966_v47  ;;  %2093 = vmatprep.mubr.bf16.mxu1 %v3001_v16  ;;  %v3032_v47 = vld [vmem:[%s3797_s0 + $0x40] ss:$100 sps:$4 sm:$0xff]   ;;  %v3067_v16 = vld [vmem:[%s3796_s1 + $0x578] sm:$0xff]  }
  0x66   :  { %2710 = vmatprep.subr.bf16.mxu1 %v2969_v50  ;;  %v3036_v50 = vld [vmem:[%s3796_s1 + $0x540] sm:$0xff]  }
  0x67   :  { %2689 = vmatpush3.bf16.msra.mxu0 %v2968_v49  ;;  %v3035_v49 = vld [vmem:[%s3796_s1 + $0x4b8] sm:$0xff]  }
  0x68   :  { %2690 = vmatprep.subr.bf16.mxu0 %v2971_v52  ;;  %v3039_v52 = vld [vmem:[%s3797_s0 + $0x4c] ss:$100 sps:$4 sm:$0xff]  }
  0x69   :  { %2711 = vmatpush3.bf16.msra.mxu1 %v2970_v51  ;;  %v3037_v51 = vld [vmem:[%s3797_s0 + $0x48] ss:$100 sps:$4 sm:$0xff]  }
  0x6a   :  { %2712 = vmatprep.subr.bf16.mxu1 %v2973_v54  ;;  %v3041_v54 = vld [vmem:[%s3796_s1 + $0x5c0] sm:$0xff]  }
  0x6b   :  { %2691 = vmatpush3.bf16.msra.mxu0 %v2972_v53  ;;  %v3040_v53 = vld [vmem:[%s3796_s1 + $0x500] sm:$0xff]  }
  0x6c   :  { %2692 = vmatprep.subr.bf16.mxu0 %v2975_v56  ;;  %v3043_v56 = vld [vmem:[%s3796_s1 + $0x548] sm:$0xff]  }
  0x6d   :  { %2713 = vmatpush3.bf16.msra.mxu1 %v2974_v55  ;;  %v3042_v55 = vld [vmem:[%s3796_s1 + $0x580] sm:$0xff]  }
  0x6e   :  { %2714 = vmatprep.subr.bf16.mxu1 %v2977_v58  ;;  %v3045_v58 = vld [vmem:[%s3796_s1 + $0x5c8] sm:$0xff]  }
  0x6f   :  { %2693 = vmatpush3.bf16.msra.mxu0 %v2976_v57  ;;  %v3044_v57 = vld [vmem:[%s3796_s1 + $0x508] sm:$0xff]  }
  0x70   :  { %2694 = vmatprep.subr.bf16.mxu0 %v2979_v60  ;;  %v3047_v60 = vld [vmem:[%s3796_s1 + $0x550] sm:$0xff]  }
  0x71   :  { %2715 = vmatpush3.bf16.msra.mxu1 %v2978_v59  ;;  %v3046_v59 = vld [vmem:[%s3796_s1 + $0x588] sm:$0xff]  }
  0x72   :  { %2716 = vmatprep.subr.bf16.mxu1 %v2981_v62  ;;  %v3049_v62 = vld [vmem:[%s3796_s1 + $0x5d0] sm:$0xff]  }
  0x73   :  { %2695 = vmatpush3.bf16.msra.mxu0 %v2980_v61  ;;  %v3048_v61 = vld [vmem:[%s3796_s1 + $0x510] sm:$0xff]  }
  0x74   :  { %2696 = vmatprep.subr.bf16.mxu0 %v2983_v0  ;;  %v3051_v0 = vld [vmem:[%s3796_s1 + $0x558] sm:$0xff]  }
  0x75   :  { %2717 = vmatpush3.bf16.msra.mxu1 %v2982_v63  ;;  %v3050_v63 = vld [vmem:[%s3796_s1 + $0x590] sm:$0xff]  }
  0x76   :  { %2718 = vmatprep.subr.bf16.mxu1 %v2985_v2  ;;  %v3053_v2 = vld [vmem:[%s3796_s1 + $0x5d8] sm:$0xff]  }
  0x77   :  { %2697 = vmatpush3.bf16.msra.mxu0 %v2984_v1  ;;  %v3052_v1 = vld [vmem:[%s3796_s1 + $0x518] sm:$0xff]  }
  0x78   :  { %2698 = vmatprep.subr.bf16.mxu0 %v2987_v4  ;;  %v3055_v4 = vld [vmem:[%s3796_s1 + $0x560] sm:$0xff]  }
  0x79   :  { %2719 = vmatpush3.bf16.msra.mxu1 %v2986_v3  ;;  %v3054_v3 = vld [vmem:[%s3796_s1 + $0x598] sm:$0xff]  }
  0x7a   :  { %2720 = vmatprep.subr.bf16.mxu1 %v2989_v6  ;;  %v3057_v6 = vld [vmem:[%s3796_s1 + $0x5e0] sm:$0xff]  }
  0x7b   :  { %2699 = vmatpush3.bf16.msra.mxu0 %v2988_v5  ;;  %v3056_v5 = vld [vmem:[%s3796_s1 + $0x520] sm:$0xff]  }
  0x7c   :  { %2700 = vmatprep.subr.bf16.mxu0 %v2991_v8  ;;  %v3059_v8 = vld [vmem:[%s3796_s1 + $0x568] sm:$0xff]  }
  0x7d   :  { %2721 = vmatpush3.bf16.msra.mxu1 %v2990_v7  ;;  %v3058_v7 = vld [vmem:[%s3796_s1 + $0x5a0] sm:$0xff]  }
  0x7e   :  { %2722 = vmatprep.subr.bf16.mxu1 %v2993_v10  ;;  %v3061_v10 = vld [vmem:[%s3796_s1 + $0x5e8] sm:$0xff]  }
  0x7f   :  { %2701 = vmatpush3.bf16.msra.mxu0 %v2992_v9  ;;  %v3060_v9 = vld [vmem:[%s3796_s1 + $0x528] sm:$0xff]  }
  0x80   :  { %2730 = vmatprep.subr.bf16.mxu0 %v2998_v14  ;;  %v3065_v14 = vld [vmem:[%s3796_s1 + $0x5f0] sm:$0xff]  }
  0x81   :  { %2723 = vmatpush3.bf16.msra.mxu1 %v2997_v13  ;;  %v3064_v13 = vld [vmem:[%s3796_s1 + $0x530] sm:$0xff]  }
  0x82   :  { %2053 = vmatmul.mubr.bf16.vlgmr.msra.gmra.mrb[12].mxu0 %v2994_v11  ;;  %2752 = vmatprep.subr.bf16.mxu1 %v3003_v18  ;;  %v3062_v11 = vld [vmem:[%s3796_s1 + $0x5a8] sm:$0xff]   ;;  %v3069_v18 = vld [vmem:[%s3796_s1 + $0x5f8] sm:$0xff]  }
  0x83   :  { %2731 = vmatpush3.bf16.msra.mxu0 %v3002_v17  ;;  %2134 = vmatprep.mubr.bf16.mxu0 %v3034_v48  ;;  %v3068_v17 = vld [vmem:[%s3796_s1 + $0x538] sm:$0xff]  }
  0x84   :  { %2094 = vmatmul.mubr.bf16.vlgmr.msra.gmra.mrb[12].mxu1 %v2999_v15  ;;  %2732 = vmatprep.subr.bf16.mxu0 %v3005_v20  ;;  %v3066_v15 = vld [vmem:[%s3796_s1 + $0x5b0] sm:$0xff]  }
  0x85   :  { %2753 = vmatpush3.bf16.msra.mxu1 %v3004_v19  ;;  %2175 = vmatprep.mubr.bf16.mxu1 %v3039_v52  ;;  %v3070_v19 = vld [vmem:[%s3797_s0 + $0x50] ss:$100 sps:$4 sm:$0xff]  }
  0x86   :  { %2754 = vmatprep.subr.bf16.mxu1 %v3007_v22  ;;  %v3072_v20 = vld [vmem:[%s3797_s0 + $0x54] ss:$100 sps:$4 sm:$0xff]   ;;  %v3090_v22 = vmov 0.0  }
  0x87   :  { %2733 = vmatpush3.bf16.msra.mxu0 %v3006_v21  ;;  %v3073_v21 = vld [vmem:[%s3796_s1 + $0x5b8] sm:$0xff]  }
  0x88   :  { %2734 = vmatprep.subr.bf16.mxu0 %v3009_v24  ;;  %v3076_v24 = vld [vmem:[%s3797_s0 + $0x5c] ss:$100 sps:$4 sm:$0xff]  }
  0x89   :  { %2755 = vmatpush3.bf16.msra.mxu1 %v3008_v23  ;;  %v3074_v23 = vld [vmem:[%s3797_s0 + $0x58] ss:$100 sps:$4 sm:$0xff]  }
  0x8a   :  { %2756 = vmatprep.subr.bf16.mxu1 %v3011_v26  ;;  %v3078_v26 = vld [vmem:[%s3796_s1 + $0x608] sm:$0xff]  }
  0x8b   :  { %2735 = vmatpush3.bf16.msra.mxu0 %v3010_v25  ;;  %v3077_v25 = vld [vmem:[%s3796_s1 + $0x600] sm:$0xff]  }
  0x8c   :  { %2736 = vmatprep.subr.bf16.mxu0 %v3013_v28  ;;  %v3080_v28 = vld [vmem:[%s3796_s1 + $0x618] sm:$0xff]  }
  0x8d   :  { %2757 = vmatpush3.bf16.msra.mxu1 %v3012_v27  ;;  %v3079_v27 = vld [vmem:[%s3796_s1 + $0x610] sm:$0xff]  }
  0x8e   :  { %2758 = vmatprep.subr.bf16.mxu1 %v3015_v30  ;;  %v3082_v30 = vld [vmem:[%s3796_s1 + $0x628] sm:$0xff]  }
  0x8f   :  { %2737 = vmatpush3.bf16.msra.mxu0 %v3014_v29  ;;  %v3081_v29 = vld [vmem:[%s3796_s1 + $0x620] sm:$0xff]  }
  0x90   :  { %2738 = vmatprep.subr.bf16.mxu0 %v3017_v32  ;;  %v3084_v32 = vld [vmem:[%s3796_s1 + $0x638] sm:$0xff]  }
  0x91   :  { %2759 = vmatpush3.bf16.msra.mxu1 %v3016_v31  ;;  %v3083_v31 = vld [vmem:[%s3796_s1 + $0x630] sm:$0xff]  }
  0x92   :  { %2760 = vmatprep.subr.bf16.mxu1 %v3019_v34 }
  0x93   :  { %2739 = vmatpush3.bf16.msra.mxu0 %v3018_v33  ;;  %v3085_v33 = vld [vmem:[%s3797_s0 + $0x60] ss:$100 sps:$4 sm:$0xff]  }
  0x94   :  { %2740 = vmatprep.subr.bf16.mxu0 %v3021_v36 }
  0x95   :  { %2761 = vmatpush3.bf16.msra.mxu1 %v3020_v35  ;;  %v2324_v35 = vld [vmem:[%s3798_s2] ss:$0 sm:$0xff] }
  0x96   :  { %2762 = vmatprep.subr.bf16.mxu1 %v3023_v38 }
  0x97   :  { %2741 = vmatpush3.bf16.msra.mxu0 %v3022_v37 }
  0x98   :  { %2742 = vmatprep.subr.bf16.mxu0 %v3025_v40 }
  0x99   :  { %2763 = vmatpush3.bf16.msra.mxu1 %v3024_v39 }
  0x9a   :  { %2764 = vmatprep.subr.bf16.mxu1 %v3027_v42 }
  0x9b   :  { %2743 = vmatpush3.bf16.msra.mxu0 %v3026_v41 }
  0x9c   :  { %2744 = vmatprep.subr.bf16.mxu0 %v3029_v44 }
  0x9d   :  { %2765 = vmatpush3.bf16.msra.mxu1 %v3028_v43 }
  0x9e   :  { %2766 = vmatprep.subr.bf16.mxu1 %v3031_v46 }
  0x9f   :  { %2745 = vmatpush3.bf16.msra.mxu0 %v3030_v45 }
  0xa0   :  { %2774 = vmatprep.subr.bf16.mxu0 %v3036_v50 }
  0xa1   :  { %2767 = vmatpush3.bf16.msra.mxu1 %v3035_v49 }
  0xa2   :  { %2135 = vmatmul.mubr.bf16.vlgmr.msra.gmra.mrb[16].mxu0 %v3032_v47  ;;  %2796 = vmatprep.subr.bf16.mxu1 %v3041_v54 }
  0xa3   :  { %2775 = vmatpush3.bf16.msra.mxu0 %v3040_v53  ;;  %2216 = vmatprep.mubr.bf16.mxu0 %v3072_v20 }
  0xa4   :  { %2176 = vmatmul.mubr.bf16.vlgmr.msra.gmra.mrb[16].mxu1 %v3037_v51  ;;  %2776 = vmatprep.subr.bf16.mxu0 %v3043_v56 }
  0xa5   :  { %2797 = vmatpush3.bf16.msra.mxu1 %v3042_v55  ;;  %2257 = vmatprep.mubr.bf16.mxu1 %v3076_v24 }
  0xa6   :  { %2798 = vmatprep.subr.bf16.mxu1 %v3045_v58 }
  0xa7   :  { %2777 = vmatpush3.bf16.msra.mxu0 %v3044_v57 }
  0xa8   :  { %2778 = vmatprep.subr.bf16.mxu0 %v3047_v60 }
  0xa9   :  { %2799 = vmatpush3.bf16.msra.mxu1 %v3046_v59 }
  0xaa   :  { %2800 = vmatprep.subr.bf16.mxu1 %v3049_v62 }
  0xab   :  { %2779 = vmatpush3.bf16.msra.mxu0 %v3048_v61 }
  0xac   :  { %2780 = vmatprep.subr.bf16.mxu0 %v3051_v0 }
  0xad   :  { %2801 = vmatpush3.bf16.msra.mxu1 %v3050_v63 }
  0xae   :  { %2802 = vmatprep.subr.bf16.mxu1 %v3053_v2 }
  0xaf   :  { %2781 = vmatpush3.bf16.msra.mxu0 %v3052_v1 }
  0xb0   :  { %2782 = vmatprep.subr.bf16.mxu0 %v3055_v4 }
  0xb1   :  { %2803 = vmatpush3.bf16.msra.mxu1 %v3054_v3 }
  0xb2   :  { %2804 = vmatprep.subr.bf16.mxu1 %v3057_v6 }
  0xb3   :  { %2783 = vmatpush3.bf16.msra.mxu0 %v3056_v5 }
  0xb4   :  { %2784 = vmatprep.subr.bf16.mxu0 %v3059_v8 }
  0xb5   :  { %2805 = vmatpush3.bf16.msra.mxu1 %v3058_v7 }
  0xb6   :  { %2806 = vmatprep.subr.bf16.mxu1 %v3061_v10 }
  0xb7   :  { %2785 = vmatpush3.bf16.msra.mxu0 %v3060_v9 }
  0xb8   :  { %2786 = vmatprep.subr.bf16.mxu0 %v3063_v12 }
  0xb9   :  { %2807 = vmatpush3.bf16.msra.mxu1 %v3062_v11 }
  0xba   :  { %2808 = vmatprep.subr.bf16.mxu1 %v3065_v14 }
  0xbb   :  { %2787 = vmatpush3.bf16.msra.mxu0 %v3064_v13 }
  0xbc   :  { %2788 = vmatprep.subr.bf16.mxu0 %v3067_v16 }
  0xbd   :  { %2809 = vmatpush3.bf16.msra.mxu1 %v3066_v15 }
  0xbe   :  { %2810 = vmatprep.subr.bf16.mxu1 %v3069_v18 }
  0xbf   :  { %2789 = vmatpush3.bf16.msra.mxu0 %v3068_v17 }
  0xc0   :  { %2827 = vmatprep.subr.bf16.mxu0 %v3090_v22 }
  0xc1   :  { %2811 = vmatpush3.bf16.msra.mxu1 %v3073_v21 }
  0xc2   :  { %2217 = vmatmul.mubr.bf16.vlgmr.msra.gmra.mrb[20].mxu0 %v3070_v19 }
  0xc3   :  { %2843 = vmatprep.mubr.msk.bf16.mxu0 %vm3091_vm0, %v3090_v22  ;;  %2828 = vmatpush3.bf16.msra.mxu0 %v3077_v25 }
  0xc4   :  { %2258 = vmatmul.mubr.bf16.vlgmr.msra.gmra.mrb[20].mxu1 %v3074_v23  ;;  %2829 = vmatprep.subr.bf16.mxu0 %v3090_v22 }
  0xc7   :  { %2830 = vmatpush3.bf16.msra.mxu0 %v3078_v26 }
  0xc8   :  { %2831 = vmatprep.subr.bf16.mxu0 %v3090_v22 }
  0xcb   :  { %2832 = vmatpush3.bf16.msra.mxu0 %v3079_v27 }
  0xcc   :  { %2833 = vmatprep.subr.bf16.mxu0 %v3090_v22 }
  0xcf   :  { %2834 = vmatpush3.bf16.msra.mxu0 %v3080_v28 }
  0xd0   :  { %2835 = vmatprep.subr.bf16.mxu0 %v3090_v22 }
  0xd3   :  { %2836 = vmatpush3.bf16.msra.mxu0 %v3081_v29 }
  0xd4   :  { %2837 = vmatprep.subr.bf16.mxu0 %v3090_v22 }
  0xd7   :  { %2838 = vmatpush3.bf16.msra.mxu0 %v3082_v30 }
  0xd8   :  { %2839 = vmatprep.subr.bf16.mxu0 %v3090_v22 }
  0xdb   :  { %2840 = vmatpush3.bf16.msra.mxu0 %v3083_v31 }
  0xdc   :  { %2841 = vmatprep.subr.bf16.mxu0 %v3090_v22 }
  0xdf   :  { %2842 = vmatpush3.bf16.msra.mxu0 %v3084_v32 }
  0xe2   :  { %2844 = vmatmul.mubr.bf16.vlgmr.msra.gmra.mrb[24].mxu0 %v3085_v33 }
  0xf5   :  { %v2570_v34 = vpop.f32.mrb[0].mxu0 }
  0xf6   :  { %v2571_v36 = vpop.f32.mrb[1].mxu0 }
  0xf7   :  { %v2572_v37 = vadd.f32 %v2571_v36, %v2570_v34  ;;  %v2573_v38 = vpop.f32.mrb[2].mxu0  ;;  %v2592_v39 = vpop.f32.mrb[0].mxu1 }
  0xf8   :  { %v2574_v40 = vpop.f32.mrb[3].mxu0  ;;  %v2593_v43 = vpop.f32.mrb[1].mxu1 }
  0xf9   :  { %v1809_v41 = vadd.f32 %v2572_v37, %v2324_v35  ;;  %v2575_v42 = vadd.f32 %v2574_v40, %v2573_v38  ;;  %v2594_v44 = vadd.f32 %v2593_v43, %v2592_v39  ;;  %v2595_v45 = vpop.f32.mrb[2].mxu1 }
  0xfa   :  { %v2596_v47 = vpop.f32.mrb[3].mxu1 }
  0xfb   :  { %v1812_v46 = vadd.f32 %v2575_v42, %v2324_v35  ;;  %v1850_v48 = vadd.f32 %v2594_v44, %v1809_v41  ;;  %v2597_v49 = vadd.f32 %v2596_v47, %v2595_v45 }
  0xfd   :  { %v1853_v50 = vadd.f32 %v2597_v49, %v1812_v46 }
 0x115   :  { %v2614_v51 = vpop.f32.mrb[4].mxu0 }
 0x116   :  { %v2615_v52 = vpop.f32.mrb[5].mxu0 }
 0x117   :  { %v2616_v53 = vadd.f32 %v2615_v52, %v2614_v51  ;;  %v2617_v54 = vpop.f32.mrb[6].mxu0  ;;  %v2636_v57 = vpop.f32.mrb[4].mxu1 }
 0x118   :  { %v2618_v55 = vpop.f32.mrb[7].mxu0  ;;  %v2637_v59 = vpop.f32.mrb[5].mxu1 }
 0x119   :  { %v1891_v56 = vadd.f32 %v2616_v53, %v1850_v48  ;;  %v2619_v58 = vadd.f32 %v2618_v55, %v2617_v54  ;;  %v2638_v61 = vadd.f32 %v2637_v59, %v2636_v57  ;;  %v2639_v62 = vpop.f32.mrb[6].mxu1 }
 0x11a   :  { %v2640_v63 = vpop.f32.mrb[7].mxu1 }
 0x11b   :  { %v1894_v60 = vadd.f32 %v2619_v58, %v1853_v50  ;;  %v1932_v0 = vadd.f32 %v2638_v61, %v1891_v56  ;;  %v2641_v1 = vadd.f32 %v2640_v63, %v2639_v62 }
 0x11d   :  { %v1935_v2 = vadd.f32 %v2641_v1, %v1894_v60 }
 0x135   :  { %v2658_v3 = vpop.f32.mrb[8].mxu0 }
 0x136   :  { %v2659_v4 = vpop.f32.mrb[9].mxu0 }
 0x137   :  { %v2660_v5 = vadd.f32 %v2659_v4, %v2658_v3  ;;  %v2661_v6 = vpop.f32.mrb[10].mxu0  ;;  %v2680_v7 = vpop.f32.mrb[8].mxu1 }
 0x138   :  { %v2662_v8 = vpop.f32.mrb[11].mxu0  ;;  %v2681_v11 = vpop.f32.mrb[9].mxu1 }
 0x139   :  { %v1973_v9 = vadd.f32 %v2660_v5, %v1932_v0  ;;  %v2663_v10 = vadd.f32 %v2662_v8, %v2661_v6  ;;  %v2682_v12 = vadd.f32 %v2681_v11, %v2680_v7  ;;  %v2683_v13 = vpop.f32.mrb[10].mxu1 }
 0x13a   :  { %v2684_v15 = vpop.f32.mrb[11].mxu1 }
 0x13b   :  { %v1976_v14 = vadd.f32 %v2663_v10, %v1935_v2  ;;  %v2014_v16 = vadd.f32 %v2682_v12, %v1973_v9  ;;  %v2685_v17 = vadd.f32 %v2684_v15, %v2683_v13 }
 0x13d   :  { %v2017_v18 = vadd.f32 %v2685_v17, %v1976_v14 }
 0x155   :  { %v2702_v19 = vpop.f32.mrb[12].mxu0 }
 0x156   :  { %v2703_v20 = vpop.f32.mrb[13].mxu0 }
 0x157   :  { %v2704_v21 = vadd.f32 %v2703_v20, %v2702_v19  ;;  %v2705_v22 = vpop.f32.mrb[14].mxu0  ;;  %v2724_v23 = vpop.f32.mrb[12].mxu1 }
 0x158   :  { %v2706_v24 = vpop.f32.mrb[15].mxu0  ;;  %v2725_v27 = vpop.f32.mrb[13].mxu1 }
 0x159   :  { %v2055_v25 = vadd.f32 %v2704_v21, %v2014_v16  ;;  %v2707_v26 = vadd.f32 %v2706_v24, %v2705_v22  ;;  %v2726_v28 = vadd.f32 %v2725_v27, %v2724_v23  ;;  %v2727_v29 = vpop.f32.mrb[14].mxu1 }
 0x15a   :  { %v2728_v31 = vpop.f32.mrb[15].mxu1 }
 0x15b   :  { %v2058_v30 = vadd.f32 %v2707_v26, %v2017_v18  ;;  %v2096_v32 = vadd.f32 %v2726_v28, %v2055_v25  ;;  %v2729_v33 = vadd.f32 %v2728_v31, %v2727_v29 }
 0x15d   :  { %v2099_v34 = vadd.f32 %v2729_v33, %v2058_v30 }
 0x175   :  { %v2746_v35 = vpop.f32.mrb[16].mxu0 }
 0x176   :  { %v2747_v36 = vpop.f32.mrb[17].mxu0 }
 0x177   :  { %v2748_v37 = vadd.f32 %v2747_v36, %v2746_v35  ;;  %v2749_v38 = vpop.f32.mrb[18].mxu0  ;;  %v2768_v41 = vpop.f32.mrb[16].mxu1 }
 0x178   :  { %v2750_v39 = vpop.f32.mrb[19].mxu0  ;;  %v2769_v43 = vpop.f32.mrb[17].mxu1 }
 0x179   :  { %v2137_v40 = vadd.f32 %v2748_v37, %v2096_v32  ;;  %v2751_v42 = vadd.f32 %v2750_v39, %v2749_v38  ;;  %v2770_v45 = vadd.f32 %v2769_v43, %v2768_v41  ;;  %v2771_v46 = vpop.f32.mrb[18].mxu1 }
 0x17a   :  { %v2772_v47 = vpop.f32.mrb[19].mxu1 }
 0x17b   :  { %v2140_v44 = vadd.f32 %v2751_v42, %v2099_v34  ;;  %v2178_v48 = vadd.f32 %v2770_v45, %v2137_v40  ;;  %v2773_v49 = vadd.f32 %v2772_v47, %v2771_v46 }
 0x17d   :  { %v2181_v50 = vadd.f32 %v2773_v49, %v2140_v44 }
 0x195   :  { %v2790_v51 = vpop.f32.mrb[20].mxu0 }
 0x196   :  { %v2791_v52 = vpop.f32.mrb[21].mxu0 }
 0x197   :  { %v2792_v53 = vadd.f32 %v2791_v52, %v2790_v51  ;;  %v2793_v54 = vpop.f32.mrb[22].mxu0  ;;  %v2812_v55 = vpop.f32.mrb[20].mxu1 }
 0x198   :  { %v2794_v56 = vpop.f32.mrb[23].mxu0  ;;  %v2813_v59 = vpop.f32.mrb[21].mxu1 }
 0x199   :  { %v2219_v57 = vadd.f32 %v2792_v53, %v2178_v48  ;;  %v2795_v58 = vadd.f32 %v2794_v56, %v2793_v54  ;;  %v2814_v60 = vadd.f32 %v2813_v59, %v2812_v55  ;;  %v2815_v61 = vpop.f32.mrb[22].mxu1 }
 0x19a   :  { %v2816_v63 = vpop.f32.mrb[23].mxu1 }
 0x19b   :  { %v2222_v62 = vadd.f32 %v2795_v58, %v2181_v50  ;;  %v2817_v0 = vadd.f32 %v2816_v63, %v2815_v61  ;;  %v2260_v1 = vadd.f32 %v2814_v60, %v2219_v57 }
 0x19d   :  { %v2263_v2 = vadd.f32 %v2817_v0, %v2222_v62 }
 0x1b5   :  { %v2300_v3 = vpop.f32.mrb[24].mxu0 }
 0x1b6   :  { %v2301_v4 = vadd.f32 %v2300_v3, %v2260_v1  ;;  %v2845_v5 = vpop.f32.mrb[25].mxu0 }
 0x1b7   :  { %v2303_v6 = vpop.f32.mrb[26].mxu0 }
 0x1b8   :  { %3086 = vtanh.f32 %v2301_v4  ;;  %v2304_v7 = vadd.f32 %v2303_v6, %v2263_v2  ;;  %v2846_v8 = vpop.f32.mrb[27].mxu0 }
 0x1ba   :  { %3088 = vtanh.f32 %v2304_v7 }
 0x1c2   :  { %v3087_v9 = vpop.eup %3086 }
 0x1c3   :  { %v2552_v10 = vpack.c.bf16 %v3087_v9, %v3087_v9 }
 0x1c4   :  { %v3089_v11 = vpop.eup %3088 }
 0x1c5   :  { %2318 = vst.msk [vmem:[%s3799_s3] sm:$0xf] %vm2317_vm1, %v2552_v10  ;;  %v2553_v12 = vpack.c.bf16 %v3089_v11, %v3089_v11 }
 0x1c7   :  { %2319 = vst.msk [vmem:[%s3799_s3 + $0x4] sm:$0xf] %vm2317_vm1, %v2553_v12 }

// kernel: deep_eye_forward.14
= control target key start
LH: loop header
LB: loop body
LE: loop exit
PB: predicated region body
PF: predicated region fallthrough
CT: control target
= control target key end

     0   :  { %s963_s12 = smov 0   ;;  %s965_s13 = smov 0   ;;  %s1141_s0 = inlined_call_operand.vmem [shape: bf16[4,256], index: 0, kind: input, shape index: {}]   ;;  %s1142_s1 = inlined_call_operand.vmem [shape: bf16[256,512], index: 1, kind: input, shape index: {}]   ;;  %s1143_s2 = inlined_call_operand.vmem [shape: f32[1,512], index: 2, kind: input, shape index: {}]   ;;  %s1144_s3 = inlined_call_operand.vmem [shape: f32[4,512], index: 3, kind: output, shape index: {}]  }
   0x1   :  { %s967_s14 = smov 0   ;;  %s969_s15 = smov 0  }
   0x2   :  { %s971_s16 = smov 0  }
   0x3 LB: > { %s22_s17 = sadd.s32 1, %s937_s15  ;;  %p65_p1 = scmp.ne.s32.totalorder %s929_s13, %s925_s12  ;;  %s941_s16 = sphi %s971_s16, %s13_s16   ;;  %s937_s15 = sphi %s969_s15, %s1148_s15   ;;  %s933_s14 = sphi %s967_s14, %s1147_s14   ;;  %s929_s13 = sphi %s965_s13, %s1146_s13   ;;  %s925_s12 = sphi %s963_s12, %s1145_s12  }
   0x4   : > { %p23_p0 = scmp.ge.s32.totalorder %s22_s17, 2  ;;  %p66_p2 = scmp.eq.s32.totalorder %s941_s16, 0 }
   0x5   : > { %s58_s19 = sadd.s32 1, %s929_s13  ;;  %p770_p5 = scmp.ge.s32.totalorder %s941_s16, 2 }
   0x6   : > { %s1150_s17 = smov (%p23_p0, %s22_s17), 0  ;;  %p67_p3 = por %p66_p2, %p65_p1 }
   0x7   : > { %s55_s18 = ssub.s32 %s937_s15, %s1150_s17  ;;  %153 = sbr.rel (%p770_p5) target bundleno = 34 (0x22), region = 20 }
   0x8   : > { %p56_p4 = scmp.eq.s32.totalorder %s55_s18, 0 }
   0xa   : > { %s998_s20 = scalar_select %p56_p4, %s929_s13, %s58_s19  }
   0xe   : > { %156 = sbr.rel (!%p67_p3) target bundleno = 34 (0x22), region = 24  ;;  %s158_s21 = sand.u32 (%p67_p3), 1, %s929_s13  }
   0xf   : > { %s814_s22 = sshll.u32 (%p67_p3), %s937_s15, 3  ;;  %s771_s23 = sshll.u32 (%p67_p3), %s158_s21, 8 }
  0x10   : > { %s1006_s26 = scalar_lea.vmem (%p67_p3), %s1142_s1, %s814_s22  ;;  %s1011_s27 = scalar_lea.vmem (%p67_p3), [#allocation2], %s771_s23 }
  0x11   : > { %v253_v0 = vld [vmem:[%s1006_s26] sm:$0xff] (%p67_p3)  ;;  %v255_v1 = vld [vmem:[%s1006_s26 + $0x10] sm:$0xff] (%p67_p3) }
  0x12   : > { %v257_v2 = vld [vmem:[%s1006_s26 + $0x20] sm:$0xff] (%p67_p3)  ;;  %254 = vst [vmem:[%s1011_s27] sm:$0xff] (%p67_p3), %v253_v0  ;;  %256 = vst [vmem:[%s1011_s27 + $0x8] sm:$0xff] (%p67_p3), %v255_v1  ;;  %v259_v3 = vld [vmem:[%s1006_s26 + $0x30] sm:$0xff] (%p67_p3) }
  0x13   : > { %258 = vst [vmem:[%s1011_s27 + $0x10] sm:$0xff] (%p67_p3), %v257_v2  ;;  %v261_v4 = vld [vmem:[%s1006_s26 + $0x40] sm:$0xff] (%p67_p3)  ;;  %v263_v5 = vld [vmem:[%s1006_s26 + $0x50] sm:$0xff] (%p67_p3)  ;;  %260 = vst [vmem:[%s1011_s27 + $0x18] sm:$0xff] (%p67_p3), %v259_v3 }
  0x14   : > { %262 = vst [vmem:[%s1011_s27 + $0x20] sm:$0xff] (%p67_p3), %v261_v4  ;;  %264 = vst [vmem:[%s1011_s27 + $0x28] sm:$0xff] (%p67_p3), %v263_v5  ;;  %v265_v6 = vld [vmem:[%s1006_s26 + $0x60] sm:$0xff] (%p67_p3)  ;;  %v267_v7 = vld [vmem:[%s1006_s26 + $0x70] sm:$0xff] (%p67_p3) }
  0x15   : > { %v269_v8 = vld [vmem:[%s1006_s26 + $0x80] sm:$0xff]  ;;  %266 = vst [vmem:[%s1011_s27 + $0x30] sm:$0xff] %v265_v6  ;;  %268 = vst [vmem:[%s1011_s27 + $0x38] sm:$0xff] %v267_v7  ;;  %v271_v9 = vld [vmem:[%s1006_s26 + $0x90] sm:$0xff] }
  0x16   : > { %270 = vst [vmem:[%s1011_s27 + $0x40] sm:$0xff] %v269_v8  ;;  %v273_v10 = vld [vmem:[%s1006_s26 + $0xa0] sm:$0xff]  ;;  %v275_v11 = vld [vmem:[%s1006_s26 + $0xb0] sm:$0xff]  ;;  %272 = vst [vmem:[%s1011_s27 + $0x48] sm:$0xff] %v271_v9 }
  0x17   : > { %274 = vst [vmem:[%s1011_s27 + $0x50] sm:$0xff] %v273_v10  ;;  %276 = vst [vmem:[%s1011_s27 + $0x58] sm:$0xff] %v275_v11  ;;  %v277_v12 = vld [vmem:[%s1006_s26 + $0xc0] sm:$0xff]  ;;  %v279_v13 = vld [vmem:[%s1006_s26 + $0xd0] sm:$0xff] }
  0x18   : > { %v281_v14 = vld [vmem:[%s1006_s26 + $0xe0] sm:$0xff]  ;;  %278 = vst [vmem:[%s1011_s27 + $0x60] sm:$0xff] %v277_v12  ;;  %280 = vst [vmem:[%s1011_s27 + $0x68] sm:$0xff] %v279_v13  ;;  %v283_v15 = vld [vmem:[%s1006_s26 + $0xf0] sm:$0xff] }
  0x19   : > { %282 = vst [vmem:[%s1011_s27 + $0x70] sm:$0xff] %v281_v14  ;;  %v285_v16 = vld [vmem:[%s1006_s26 + $0x100] sm:$0xff]  ;;  %v287_v17 = vld [vmem:[%s1006_s26 + $0x110] sm:$0xff]  ;;  %284 = vst [vmem:[%s1011_s27 + $0x78] sm:$0xff] %v283_v15 }
  0x1a   : > { %286 = vst [vmem:[%s1011_s27 + $0x80] sm:$0xff] %v285_v16  ;;  %288 = vst [vmem:[%s1011_s27 + $0x88] sm:$0xff] %v287_v17  ;;  %v289_v18 = vld [vmem:[%s1006_s26 + $0x120] sm:$0xff]  ;;  %v291_v19 = vld [vmem:[%s1006_s26 + $0x130] sm:$0xff] }
  0x1b   : > { %v293_v20 = vld [vmem:[%s1006_s26 + $0x140] sm:$0xff]  ;;  %290 = vst [vmem:[%s1011_s27 + $0x90] sm:$0xff] %v289_v18  ;;  %292 = vst [vmem:[%s1011_s27 + $0x98] sm:$0xff] %v291_v19  ;;  %v295_v21 = vld [vmem:[%s1006_s26 + $0x150] sm:$0xff] }
  0x1c   : > { %294 = vst [vmem:[%s1011_s27 + $0xa0] sm:$0xff] %v293_v20  ;;  %v297_v22 = vld [vmem:[%s1006_s26 + $0x160] sm:$0xff]  ;;  %v299_v23 = vld [vmem:[%s1006_s26 + $0x170] sm:$0xff]  ;;  %296 = vst [vmem:[%s1011_s27 + $0xa8] sm:$0xff] %v295_v21 }
  0x1d   : > { %298 = vst [vmem:[%s1011_s27 + $0xb0] sm:$0xff] %v297_v22  ;;  %300 = vst [vmem:[%s1011_s27 + $0xb8] sm:$0xff] %v299_v23  ;;  %v301_v24 = vld [vmem:[%s1006_s26 + $0x180] sm:$0xff]  ;;  %v303_v25 = vld [vmem:[%s1006_s26 + $0x190] sm:$0xff] }
  0x1e   : > { %v305_v26 = vld [vmem:[%s1006_s26 + $0x1a0] sm:$0xff]  ;;  %302 = vst [vmem:[%s1011_s27 + $0xc0] sm:$0xff] %v301_v24  ;;  %304 = vst [vmem:[%s1011_s27 + $0xc8] sm:$0xff] %v303_v25  ;;  %v307_v27 = vld [vmem:[%s1006_s26 + $0x1b0] sm:$0xff] }
  0x1f   : > { %306 = vst [vmem:[%s1011_s27 + $0xd0] sm:$0xff] %v305_v26  ;;  %v309_v28 = vld [vmem:[%s1006_s26 + $0x1c0] sm:$0xff]  ;;  %v311_v29 = vld [vmem:[%s1006_s26 + $0x1d0] sm:$0xff]  ;;  %308 = vst [vmem:[%s1011_s27 + $0xd8] sm:$0xff] %v307_v27 }
  0x20   : > { %310 = vst [vmem:[%s1011_s27 + $0xe0] sm:$0xff] %v309_v28  ;;  %312 = vst [vmem:[%s1011_s27 + $0xe8] sm:$0xff] %v311_v29  ;;  %v313_v30 = vld [vmem:[%s1006_s26 + $0x1e0] sm:$0xff]  ;;  %v315_v31 = vld [vmem:[%s1006_s26 + $0x1f0] sm:$0xff] }
  0x21   : > { %314 = vst [vmem:[%s1011_s27 + $0xf0] sm:$0xff] %v313_v30  ;;  %316 = vst [vmem:[%s1011_s27 + $0xf8] sm:$0xff] %v315_v31 }
  0x22 PF: > { %p774_p6 = scmp.ge.s32.totalorder %s941_s16, 1  ;;  %p329_p7 = scmp.lt.s32.totalorder %s941_s16, 3 }
  0x24   : > { %p330_p8 = pnand %p774_p6, %p329_p7 }
  0x25   : > { %s336_s28 = sand.u32 (!%p330_p8), 1, %s925_s12   ;;  %v1080_v32 = vld.sshfl [vmem:[%s1141_s0] sm:$0x33 pattern:$0x76325410] (!%p330_p8)  ;;  %s776_s6 = sshll.u32 (!%p330_p8), %s933_s14, 1  ;;  %v428_v2 = vlaneseq (!%p330_p8) }
  0x26   : > { %333 = sbr.rel (%p330_p8) target bundleno = 323 (0x143), region = 66  ;;  %s775_s4 = sshll.u32 (!%p330_p8), %s336_s28, 8  ;;  %v446_v33 = vcombine.high (!%p330_p8), %v1080_v32, %v1080_v32 }
  0x27   : > { %s1084_s5 = scalar_lea.vmem (!%p330_p8), [#allocation2], %s775_s4  ;;  %p379_p9 = scmp.lt.s32.totalorder (!%p330_p8), %s776_s6, 3  ;;  %v429_v3 = vshrl.u32 (!%p330_p8), %v428_v2, 7 }
  0x28   : > { %v855_v34 = vld [vmem:[%s1084_s5 + $0x4] ss:$8 sps:$4 sm:$0xff] (!%p330_p8)   ;;  %641 = vmatprep.mubr.bf16.mxu0 (!%p330_p8), %v446_v33  ;;  %v857_v35 = vld [vmem:[%s1084_s5] ss:$8 sps:$4 sm:$0xff] (!%p330_p8)   ;;  %v858_v36 = vld [vmem:[%s1084_s5 + $0x14] ss:$8 sps:$4 sm:$0xff] (!%p330_p8)  }
  0x29   : > { %609 = vmatprep.subr.bf16.mxu0 (!%p330_p8), %v855_v34  ;;  %v860_v37 = vld [vmem:[%s1084_s5 + $0x10] ss:$8 sps:$4 sm:$0xff] (!%p330_p8)   ;;  %v861_v38 = vld [vmem:[%s1084_s5 + $0x24] ss:$8 sps:$4 sm:$0xff] (!%p330_p8)   ;;  %v863_v39 = vld [vmem:[%s1084_s5 + $0x20] ss:$8 sps:$4 sm:$0xff] (!%p330_p8)  }
  0x2a   : > { %610 = vmatpush1.bf16.msra.mxu0 (!%p330_p8), %v857_v35  ;;  %v864_v40 = vld [vmem:[%s1084_s5 + $0x34] ss:$8 sps:$4 sm:$0xff] (!%p330_p8)   ;;  %v866_v41 = vld [vmem:[%s1084_s5 + $0x30] ss:$8 sps:$4 sm:$0xff] (!%p330_p8)   ;;  %v867_v42 = vld [vmem:[%s1084_s5 + $0x44] ss:$8 sps:$4 sm:$0xff] (!%p330_p8)  }
  0x2b   : > { %611 = vmatprep.subr.bf16.mxu0 (!%p330_p8), %v858_v36  ;;  %v869_v43 = vld [vmem:[%s1084_s5 + $0x40] ss:$8 sps:$4 sm:$0xff] (!%p330_p8)   ;;  %v870_v44 = vld [vmem:[%s1084_s5 + $0x54] ss:$8 sps:$4 sm:$0xff] (!%p330_p8)   ;;  %v872_v45 = vld [vmem:[%s1084_s5 + $0x50] ss:$8 sps:$4 sm:$0xff] (!%p330_p8)  }
  0x2c   : > { %v873_v46 = vld [vmem:[%s1084_s5 + $0x64] ss:$8 sps:$4 sm:$0xff] (!%p330_p8)   ;;  %v875_v47 = vld [vmem:[%s1084_s5 + $0x60] ss:$8 sps:$4 sm:$0xff] (!%p330_p8)   ;;  %v876_v48 = vld [vmem:[%s1084_s5 + $0x74] ss:$8 sps:$4 sm:$0xff] (!%p330_p8)  }
  0x2d   : > { %v878_v49 = vld [vmem:[%s1084_s5 + $0x70] ss:$8 sps:$4 sm:$0xff]   ;;  %v879_v50 = vld [vmem:[%s1084_s5 + $0x84] ss:$8 sps:$4 sm:$0xff]   ;;  %v881_v51 = vld [vmem:[%s1084_s5 + $0x80] ss:$8 sps:$4 sm:$0xff]  }
  0x2e   : > { %612 = vmatpush1.bf16.msra.mxu0 %v860_v37  ;;  %v882_v52 = vld [vmem:[%s1084_s5 + $0x94] ss:$8 sps:$4 sm:$0xff]   ;;  %v884_v53 = vld [vmem:[%s1084_s5 + $0x90] ss:$8 sps:$4 sm:$0xff]   ;;  %v885_v54 = vld [vmem:[%s1084_s5 + $0xa4] ss:$8 sps:$4 sm:$0xff]  }
  0x2f   : > { %613 = vmatprep.subr.bf16.mxu0 %v861_v38  ;;  %v887_v55 = vld [vmem:[%s1084_s5 + $0xa0] ss:$8 sps:$4 sm:$0xff]   ;;  %v888_v56 = vld [vmem:[%s1084_s5 + $0xb4] ss:$8 sps:$4 sm:$0xff]   ;;  %v890_v57 = vld [vmem:[%s1084_s5 + $0xb0] ss:$8 sps:$4 sm:$0xff]  }
  0x30   : > { %v891_v58 = vld [vmem:[%s1084_s5 + $0xc4] ss:$8 sps:$4 sm:$0xff]   ;;  %v893_v59 = vld [vmem:[%s1084_s5 + $0xc0] ss:$8 sps:$4 sm:$0xff]   ;;  %v894_v60 = vld [vmem:[%s1084_s5 + $0xd4] ss:$8 sps:$4 sm:$0xff]  }
  0x31   : > { %v896_v61 = vld [vmem:[%s1084_s5 + $0xd0] ss:$8 sps:$4 sm:$0xff]   ;;  %v897_v62 = vld [vmem:[%s1084_s5 + $0xe4] ss:$8 sps:$4 sm:$0xff]   ;;  %v899_v63 = vld [vmem:[%s1084_s5 + $0xe0] ss:$8 sps:$4 sm:$0xff]  }
  0x32   : > { %614 = vmatpush1.bf16.msra.mxu0 %v863_v39  ;;  %v900_v0 = vld [vmem:[%s1084_s5 + $0xf4] ss:$8 sps:$4 sm:$0xff]   ;;  %v902_v1 = vld [vmem:[%s1084_s5 + $0xf0] ss:$8 sps:$4 sm:$0xff]   ;;  %s1152_s6 = smov (!%p379_p9, %s776_s6), 3  ;;  %v430_v4 = vsub.s32 0, %v429_v3 }
  0x33   : > { %615 = vmatprep.subr.bf16.mxu0 %v864_v40  ;;  %s381_s9 = scalar_lea.vmem %s1143_s2, %s1152_s6  ;;  %v434_v6 = vsub.s32 1, %v429_v3  ;;  %s778_s10 = sshll.u32 %s1152_s6, 2 }
  0x34   : > { %v426_v5 = vld [vmem:[%s381_s9] sm:$0x3]  ;;  %s391_s14 = scalar_lea.vmem %s1144_s3, %s778_s10 }
  0x35   : > { %v431_v7 = vrot.slane %v426_v5, %v430_v4  ;;  %v435_v8 = vrot.slane %v426_v5, %v434_v6 }
  0x36   : > { %616 = vmatpush1.bf16.msra.mxu0 %v866_v41 }
  0x37   : > { %617 = vmatprep.subr.bf16.mxu0 %v867_v42 }
  0x3a   : > { %618 = vmatpush1.bf16.msra.mxu0 %v869_v43 }
  0x3b   : > { %619 = vmatprep.subr.bf16.mxu0 %v870_v44 }
  0x3e   : > { %620 = vmatpush1.bf16.msra.mxu0 %v872_v45 }
  0x3f   : > { %621 = vmatprep.subr.bf16.mxu0 %v873_v46 }
  0x42   : > { %622 = vmatpush1.bf16.msra.mxu0 %v875_v47 }
  0x43   : > { %623 = vmatprep.subr.bf16.mxu0 %v876_v48 }
  0x46   : > { %624 = vmatpush1.bf16.msra.mxu0 %v878_v49 }
  0x47   : > { %625 = vmatprep.subr.bf16.mxu0 %v879_v50 }
  0x4a   : > { %626 = vmatpush1.bf16.msra.mxu0 %v881_v51 }
  0x4b   : > { %627 = vmatprep.subr.bf16.mxu0 %v882_v52 }
  0x4e   : > { %628 = vmatpush1.bf16.msra.mxu0 %v884_v53 }
  0x4f   : > { %629 = vmatprep.subr.bf16.mxu0 %v885_v54 }
  0x52   : > { %630 = vmatpush1.bf16.msra.mxu0 %v887_v55 }
  0x53   : > { %631 = vmatprep.subr.bf16.mxu0 %v888_v56 }
  0x56   : > { %632 = vmatpush1.bf16.msra.mxu0 %v890_v57 }
  0x57   : > { %633 = vmatprep.subr.bf16.mxu0 %v891_v58 }
  0x5a   : > { %634 = vmatpush1.bf16.msra.mxu0 %v893_v59 }
  0x5b   : > { %635 = vmatprep.subr.bf16.mxu0 %v894_v60 }
  0x5e   : > { %636 = vmatpush1.bf16.msra.mxu0 %v896_v61 }
  0x5f   : > { %637 = vmatprep.subr.bf16.mxu0 %v897_v62 }
  0x62   : > { %638 = vmatpush1.bf16.msra.mxu0 %v899_v63 }
  0x63   : > { %639 = vmatprep.subr.bf16.mxu0 %v900_v0 }
  0x66   : > { %640 = vmatpush1.bf16.msra.mxu0 %v902_v1 }
  0x69   : > { %642 = vmatmul.mubr.bf16.vlgmr.msra.gmra.mrb[0].mxu0 %v1080_v32 }
 0x13c   : > { %v643_v9 = vpop.f32.mrb[0].mxu0 }
 0x13d   : > { %v644_v10 = vadd.f32 %v643_v9, %v431_v7  ;;  %v645_v11 = vpop.f32.mrb[1].mxu0 }
 0x13e   : > { %v646_v12 = vadd.f32 %v645_v11, %v435_v8  ;;  %v647_v13 = vpop.f32.mrb[2].mxu0 }
 0x13f   : > { %v648_v14 = vpop.f32.mrb[3].mxu0 }
 0x140   : > { %v652_v15 = vcombine.low %v644_v10, %v646_v12 }
 0x142   : > { %654 = vst [vmem:[%s391_s14] sm:$0xff] %v652_v15 }
 0x143 PF: > { %s13_s16 = sadd.s32 1, %s941_s16   ;;  %s1145_s12 = smov %s929_s13 }
 0x144   : > { %p10_p10 = scmp.ge.s32.totalorder %s13_s16, 4   ;;  %s1146_s13 = smov %s998_s20 }
 0x145   : > { %s1147_s14 = smov %s937_s15  ;;  %s1148_s15 = smov %s1150_s17 }
 0x146   :  { %12 = sbr.rel (!%p10_p10) target bundleno = 3 (0x3), region = 111 }

// kernel: deep_eye_forward.16
= control target key start
LH: loop header
LB: loop body
LE: loop exit
PB: predicated region body
PF: predicated region fallthrough
CT: control target
= control target key end

     0   :  { %s930_s12 = smov 0   ;;  %s932_s13 = smov 0   ;;  %s1103_s0 = inlined_call_operand.vmem [shape: bf16[4,128], index: 0, kind: input, shape index: {}]   ;;  %s1104_s1 = inlined_call_operand.vmem [shape: bf16[128,1024], index: 1, kind: input, shape index: {}]   ;;  %s1105_s2 = inlined_call_operand.vmem [shape: f32[1,1024], index: 2, kind: input, shape index: {}]   ;;  %s1106_s3 = inlined_call_operand.vmem [shape: f32[4,1024], index: 3, kind: output, shape index: {}]  }
   0x1   :  { %s934_s14 = smov 0   ;;  %s936_s15 = smov 0  }
   0x2   :  { %s938_s16 = smov 0  }
   0x3 LB: > { %s22_s17 = sadd.s32 1, %s903_s15  ;;  %p65_p1 = scmp.ne.s32.totalorder %s895_s13, %s891_s12  ;;  %s907_s16 = sphi %s938_s16, %s13_s16   ;;  %s903_s15 = sphi %s936_s15, %s1110_s15   ;;  %s899_s14 = sphi %s934_s14, %s1109_s14   ;;  %s895_s13 = sphi %s932_s13, %s1108_s13   ;;  %s891_s12 = sphi %s930_s12, %s1107_s12  }
   0x4   : > { %p23_p0 = scmp.ge.s32.totalorder %s22_s17, 2  ;;  %p66_p2 = scmp.eq.s32.totalorder %s907_s16, 0 }
   0x5   : > { %s58_s19 = sadd.s32 1, %s895_s13  ;;  %p736_p5 = scmp.ge.s32.totalorder %s907_s16, 2 }
   0x6   : > { %s1112_s17 = smov (%p23_p0, %s22_s17), 0  ;;  %p67_p3 = por %p66_p2, %p65_p1 }
   0x7   : > { %s55_s18 = ssub.s32 %s903_s15, %s1112_s17  ;;  %152 = sbr.rel (%p736_p5) target bundleno = 34 (0x22), region = 20 }
   0x8   : > { %p56_p4 = scmp.eq.s32.totalorder %s55_s18, 0 }
   0xa   : > { %s965_s20 = scalar_select %p56_p4, %s895_s13, %s58_s19  }
   0xe   : > { %155 = sbr.rel (!%p67_p3) target bundleno = 34 (0x22), region = 24  ;;  %s157_s21 = sand.u32 (%p67_p3), 1, %s895_s13  }
   0xf   : > { %s779_s22 = sshll.u32 (%p67_p3), %s903_s15, 4  ;;  %s737_s23 = sshll.u32 (%p67_p3), %s157_s21, 8 }
  0x10   : > { %s973_s26 = scalar_lea.vmem (%p67_p3), %s1104_s1, %s779_s22  ;;  %s978_s27 = scalar_lea.vmem (%p67_p3), [#allocation2], %s737_s23 }
  0x11   : > { %v175_v0 = vld [vmem:[%s973_s26] sm:$0xff] (%p67_p3)  ;;  %v177_v1 = vld [vmem:[%s973_s26 + $0x8] sm:$0xff] (%p67_p3) }
  0x12   : > { %v179_v2 = vld [vmem:[%s973_s26 + $0x20] sm:$0xff] (%p67_p3)  ;;  %176 = vst [vmem:[%s978_s27] sm:$0xff] (%p67_p3), %v175_v0  ;;  %178 = vst [vmem:[%s978_s27 + $0x8] sm:$0xff] (%p67_p3), %v177_v1  ;;  %v181_v3 = vld [vmem:[%s973_s26 + $0x28] sm:$0xff] (%p67_p3) }
  0x13   : > { %180 = vst [vmem:[%s978_s27 + $0x10] sm:$0xff] (%p67_p3), %v179_v2  ;;  %v183_v4 = vld [vmem:[%s973_s26 + $0x40] sm:$0xff] (%p67_p3)  ;;  %v185_v5 = vld [vmem:[%s973_s26 + $0x48] sm:$0xff] (%p67_p3)  ;;  %182 = vst [vmem:[%s978_s27 + $0x18] sm:$0xff] (%p67_p3), %v181_v3 }
  0x14   : > { %184 = vst [vmem:[%s978_s27 + $0x20] sm:$0xff] (%p67_p3), %v183_v4  ;;  %186 = vst [vmem:[%s978_s27 + $0x28] sm:$0xff] (%p67_p3), %v185_v5  ;;  %v187_v6 = vld [vmem:[%s973_s26 + $0x60] sm:$0xff] (%p67_p3)  ;;  %v189_v7 = vld [vmem:[%s973_s26 + $0x68] sm:$0xff] (%p67_p3) }
  0x15   : > { %v191_v8 = vld [vmem:[%s973_s26 + $0x80] sm:$0xff]  ;;  %188 = vst [vmem:[%s978_s27 + $0x30] sm:$0xff] %v187_v6  ;;  %190 = vst [vmem:[%s978_s27 + $0x38] sm:$0xff] %v189_v7  ;;  %v193_v9 = vld [vmem:[%s973_s26 + $0x88] sm:$0xff] }
  0x16   : > { %192 = vst [vmem:[%s978_s27 + $0x40] sm:$0xff] %v191_v8  ;;  %v195_v10 = vld [vmem:[%s973_s26 + $0xa0] sm:$0xff]  ;;  %v197_v11 = vld [vmem:[%s973_s26 + $0xa8] sm:$0xff]  ;;  %194 = vst [vmem:[%s978_s27 + $0x48] sm:$0xff] %v193_v9 }
  0x17   : > { %196 = vst [vmem:[%s978_s27 + $0x50] sm:$0xff] %v195_v10  ;;  %198 = vst [vmem:[%s978_s27 + $0x58] sm:$0xff] %v197_v11  ;;  %v199_v12 = vld [vmem:[%s973_s26 + $0xc0] sm:$0xff]  ;;  %v201_v13 = vld [vmem:[%s973_s26 + $0xc8] sm:$0xff] }
  0x18   : > { %v203_v14 = vld [vmem:[%s973_s26 + $0xe0] sm:$0xff]  ;;  %200 = vst [vmem:[%s978_s27 + $0x60] sm:$0xff] %v199_v12  ;;  %202 = vst [vmem:[%s978_s27 + $0x68] sm:$0xff] %v201_v13  ;;  %v205_v15 = vld [vmem:[%s973_s26 + $0xe8] sm:$0xff] }
  0x19   : > { %204 = vst [vmem:[%s978_s27 + $0x70] sm:$0xff] %v203_v14  ;;  %v207_v16 = vld [vmem:[%s973_s26 + $0x100] sm:$0xff]  ;;  %v209_v17 = vld [vmem:[%s973_s26 + $0x108] sm:$0xff]  ;;  %206 = vst [vmem:[%s978_s27 + $0x78] sm:$0xff] %v205_v15 }
  0x1a   : > { %208 = vst [vmem:[%s978_s27 + $0x80] sm:$0xff] %v207_v16  ;;  %210 = vst [vmem:[%s978_s27 + $0x88] sm:$0xff] %v209_v17  ;;  %v211_v18 = vld [vmem:[%s973_s26 + $0x120] sm:$0xff]  ;;  %v213_v19 = vld [vmem:[%s973_s26 + $0x128] sm:$0xff] }
  0x1b   : > { %v215_v20 = vld [vmem:[%s973_s26 + $0x140] sm:$0xff]  ;;  %212 = vst [vmem:[%s978_s27 + $0x90] sm:$0xff] %v211_v18  ;;  %214 = vst [vmem:[%s978_s27 + $0x98] sm:$0xff] %v213_v19  ;;  %v217_v21 = vld [vmem:[%s973_s26 + $0x148] sm:$0xff] }
  0x1c   : > { %216 = vst [vmem:[%s978_s27 + $0xa0] sm:$0xff] %v215_v20  ;;  %v219_v22 = vld [vmem:[%s973_s26 + $0x160] sm:$0xff]  ;;  %v221_v23 = vld [vmem:[%s973_s26 + $0x168] sm:$0xff]  ;;  %218 = vst [vmem:[%s978_s27 + $0xa8] sm:$0xff] %v217_v21 }
  0x1d   : > { %220 = vst [vmem:[%s978_s27 + $0xb0] sm:$0xff] %v219_v22  ;;  %222 = vst [vmem:[%s978_s27 + $0xb8] sm:$0xff] %v221_v23  ;;  %v223_v24 = vld [vmem:[%s973_s26 + $0x180] sm:$0xff]  ;;  %v225_v25 = vld [vmem:[%s973_s26 + $0x188] sm:$0xff] }
  0x1e   : > { %v227_v26 = vld [vmem:[%s973_s26 + $0x1a0] sm:$0xff]  ;;  %224 = vst [vmem:[%s978_s27 + $0xc0] sm:$0xff] %v223_v24  ;;  %226 = vst [vmem:[%s978_s27 + $0xc8] sm:$0xff] %v225_v25  ;;  %v229_v27 = vld [vmem:[%s973_s26 + $0x1a8] sm:$0xff] }
  0x1f   : > { %228 = vst [vmem:[%s978_s27 + $0xd0] sm:$0xff] %v227_v26  ;;  %v231_v28 = vld [vmem:[%s973_s26 + $0x1c0] sm:$0xff]  ;;  %v233_v29 = vld [vmem:[%s973_s26 + $0x1c8] sm:$0xff]  ;;  %230 = vst [vmem:[%s978_s27 + $0xd8] sm:$0xff] %v229_v27 }
  0x20   : > { %232 = vst [vmem:[%s978_s27 + $0xe0] sm:$0xff] %v231_v28  ;;  %234 = vst [vmem:[%s978_s27 + $0xe8] sm:$0xff] %v233_v29  ;;  %v235_v30 = vld [vmem:[%s973_s26 + $0x1e0] sm:$0xff]  ;;  %v237_v31 = vld [vmem:[%s973_s26 + $0x1e8] sm:$0xff] }
  0x21   : > { %236 = vst [vmem:[%s978_s27 + $0xf0] sm:$0xff] %v235_v30  ;;  %238 = vst [vmem:[%s978_s27 + $0xf8] sm:$0xff] %v237_v31 }
  0x22 PF: > { %p740_p6 = scmp.ge.s32.totalorder %s907_s16, 1  ;;  %p251_p7 = scmp.lt.s32.totalorder %s907_s16, 3 }
  0x24   : > { %p252_p8 = pnand %p740_p6, %p251_p7 }
  0x25   : > { %s258_s28 = sand.u32 (!%p252_p8), 1, %s891_s12   ;;  %v909_v32 = vmov (!%p252_p8), 0   ;;  %v314_v1 = vld [vmem:[%s1103_s0] sm:$0x3] (!%p252_p8)  ;;  %s742_s6 = sshll.u32 (!%p252_p8), %s899_s14, 2  ;;  %v349_v2 = vlaneseq (!%p252_p8) }
  0x26   : > { %255 = sbr.rel (%p252_p8) target bundleno = 291 (0x123), region = 51  ;;  %s741_s29 = sshll.u32 (!%p252_p8), %s258_s28, 8  ;;  %561 = vmatprep.mubr.bf16.mxu0 (!%p252_p8), %v909_v32  ;;  %602 = vmatprep.mubr.bf16.mxu1 (!%p252_p8), %v909_v32 }
  0x27   : > { %s1044_s30 = scalar_lea.vmem (!%p252_p8), [#allocation2], %s741_s29  ;;  %p299_p9 = scmp.lt.s32.totalorder (!%p252_p8), %s742_s6, 7  ;;  %v350_v3 = vshrl.u32 (!%p252_p8), %v349_v2, 7 }
  0x28   : > { %v821_v33 = vld [vmem:[%s1044_s30 + $0x4] ss:$16 sps:$4 sm:$0xff] (!%p252_p8)   ;;  %v823_v34 = vld [vmem:[%s1044_s30 + $0xc] ss:$16 sps:$4 sm:$0xff] (!%p252_p8)   ;;  %v825_v35 = vld [vmem:[%s1044_s30] ss:$16 sps:$4 sm:$0xff] (!%p252_p8)  }
  0x29   : > { %529 = vmatprep.subr.bf16.mxu0 (!%p252_p8), %v821_v33  ;;  %v826_v36 = vld [vmem:[%s1044_s30 + $0x8] ss:$16 sps:$4 sm:$0xff] (!%p252_p8)   ;;  %570 = vmatprep.subr.bf16.mxu1 (!%p252_p8), %v823_v34  ;;  %v827_v37 = vld [vmem:[%s1044_s30 + $0x24] ss:$16 sps:$4 sm:$0xff] (!%p252_p8)   ;;  %v829_v38 = vld [vmem:[%s1044_s30 + $0x2c] ss:$16 sps:$4 sm:$0xff] (!%p252_p8)  }
  0x2a   : > { %530 = vmatpush1.bf16.msra.mxu0 (!%p252_p8), %v825_v35  ;;  %571 = vmatpush1.bf16.msra.mxu1 (!%p252_p8), %v826_v36  ;;  %v831_v39 = vld [vmem:[%s1044_s30 + $0x20] ss:$16 sps:$4 sm:$0xff] (!%p252_p8)   ;;  %v832_v40 = vld [vmem:[%s1044_s30 + $0x28] ss:$16 sps:$4 sm:$0xff] (!%p252_p8)   ;;  %v833_v41 = vld [vmem:[%s1044_s30 + $0x44] ss:$16 sps:$4 sm:$0xff] (!%p252_p8)  }
  0x2b   : > { %531 = vmatprep.subr.bf16.mxu0 (!%p252_p8), %v827_v37  ;;  %572 = vmatprep.subr.bf16.mxu1 (!%p252_p8), %v829_v38  ;;  %v835_v42 = vld [vmem:[%s1044_s30 + $0x4c] ss:$16 sps:$4 sm:$0xff] (!%p252_p8)   ;;  %v837_v43 = vld [vmem:[%s1044_s30 + $0x40] ss:$16 sps:$4 sm:$0xff] (!%p252_p8)   ;;  %v838_v44 = vld [vmem:[%s1044_s30 + $0x48] ss:$16 sps:$4 sm:$0xff] (!%p252_p8)  }
  0x2c   : > { %v839_v45 = vld [vmem:[%s1044_s30 + $0x64] ss:$16 sps:$4 sm:$0xff] (!%p252_p8)   ;;  %v841_v46 = vld [vmem:[%s1044_s30 + $0x6c] ss:$16 sps:$4 sm:$0xff] (!%p252_p8)   ;;  %v843_v47 = vld [vmem:[%s1044_s30 + $0x60] ss:$16 sps:$4 sm:$0xff] (!%p252_p8)  }
  0x2d   : > { %v844_v48 = vld [vmem:[%s1044_s30 + $0x68] ss:$16 sps:$4 sm:$0xff]   ;;  %v845_v49 = vld [vmem:[%s1044_s30 + $0x84] ss:$16 sps:$4 sm:$0xff]   ;;  %v847_v50 = vld [vmem:[%s1044_s30 + $0x8c] ss:$16 sps:$4 sm:$0xff]  }
  0x2e   : > { %532 = vmatpush1.bf16.msra.mxu0 %v831_v39  ;;  %573 = vmatpush1.bf16.msra.mxu1 %v832_v40  ;;  %v849_v51 = vld [vmem:[%s1044_s30 + $0x80] ss:$16 sps:$4 sm:$0xff]   ;;  %v850_v52 = vld [vmem:[%s1044_s30 + $0x88] ss:$16 sps:$4 sm:$0xff]   ;;  %v851_v53 = vld [vmem:[%s1044_s30 + $0xa4] ss:$16 sps:$4 sm:$0xff]  }
  0x2f   : > { %533 = vmatprep.subr.bf16.mxu0 %v833_v41  ;;  %574 = vmatprep.subr.bf16.mxu1 %v835_v42  ;;  %v853_v54 = vld [vmem:[%s1044_s30 + $0xac] ss:$16 sps:$4 sm:$0xff]   ;;  %v855_v55 = vld [vmem:[%s1044_s30 + $0xa0] ss:$16 sps:$4 sm:$0xff]   ;;  %v856_v56 = vld [vmem:[%s1044_s30 + $0xa8] ss:$16 sps:$4 sm:$0xff]  }
  0x30   : > { %v857_v57 = vld [vmem:[%s1044_s30 + $0xc4] ss:$16 sps:$4 sm:$0xff]   ;;  %v859_v58 = vld [vmem:[%s1044_s30 + $0xcc] ss:$16 sps:$4 sm:$0xff]   ;;  %v861_v59 = vld [vmem:[%s1044_s30 + $0xc0] ss:$16 sps:$4 sm:$0xff]  }
  0x31   : > { %v862_v60 = vld [vmem:[%s1044_s30 + $0xc8] ss:$16 sps:$4 sm:$0xff]   ;;  %v863_v61 = vld [vmem:[%s1044_s30 + $0xe4] ss:$16 sps:$4 sm:$0xff]   ;;  %v865_v62 = vld [vmem:[%s1044_s30 + $0xec] ss:$16 sps:$4 sm:$0xff]  }
  0x32   : > { %534 = vmatpush1.bf16.msra.mxu0 %v837_v43  ;;  %575 = vmatpush1.bf16.msra.mxu1 %v838_v44  ;;  %v867_v63 = vld [vmem:[%s1044_s30 + $0xe0] ss:$16 sps:$4 sm:$0xff]   ;;  %v868_v0 = vld [vmem:[%s1044_s30 + $0xe8] ss:$16 sps:$4 sm:$0xff]   ;;  %s1114_s6 = smov (!%p299_p9, %s742_s6), 7  ;;  %v351_v4 = vsub.s32 0, %v350_v3 }
  0x33   : > { %535 = vmatprep.subr.bf16.mxu0 %v839_v45  ;;  %576 = vmatprep.subr.bf16.mxu1 %v841_v46  ;;  %s301_s9 = scalar_lea.vmem %s1105_s2, %s1114_s6  ;;  %v359_v5 = vsub.s32 2, %v350_v3  ;;  %v355_v7 = vsub.s32 1, %v350_v3  ;;  %v363_v8 = vsub.s32 3, %v350_v3  ;;  %s744_s10 = sshll.u32 %s1114_s6, 2 }
  0x34   : > { %v347_v6 = vld [vmem:[%s301_s9] sm:$0xf]  ;;  %s311_s14 = scalar_lea.vmem %s1106_s3, %s744_s10 }
  0x35   : > { %v352_v9 = vrot.slane %v347_v6, %v351_v4  ;;  %v360_v10 = vrot.slane %v347_v6, %v359_v5  ;;  %v356_v11 = vrot.slane %v347_v6, %v355_v7  ;;  %v364_v12 = vrot.slane %v347_v6, %v363_v8 }
  0x36   : > { %536 = vmatpush1.bf16.msra.mxu0 %v843_v47  ;;  %577 = vmatpush1.bf16.msra.mxu1 %v844_v48 }
  0x37   : > { %537 = vmatprep.subr.bf16.mxu0 %v845_v49  ;;  %578 = vmatprep.subr.bf16.mxu1 %v847_v50 }
  0x3a   : > { %538 = vmatpush1.bf16.msra.mxu0 %v849_v51  ;;  %579 = vmatpush1.bf16.msra.mxu1 %v850_v52 }
  0x3b   : > { %539 = vmatprep.subr.bf16.mxu0 %v851_v53  ;;  %580 = vmatprep.subr.bf16.mxu1 %v853_v54 }
  0x3e   : > { %540 = vmatpush1.bf16.msra.mxu0 %v855_v55  ;;  %581 = vmatpush1.bf16.msra.mxu1 %v856_v56 }
  0x3f   : > { %541 = vmatprep.subr.bf16.mxu0 %v857_v57  ;;  %582 = vmatprep.subr.bf16.mxu1 %v859_v58 }
  0x42   : > { %542 = vmatpush1.bf16.msra.mxu0 %v861_v59  ;;  %583 = vmatpush1.bf16.msra.mxu1 %v862_v60 }
  0x43   : > { %543 = vmatprep.subr.bf16.mxu0 %v863_v61  ;;  %584 = vmatprep.subr.bf16.mxu1 %v865_v62 }
  0x46   : > { %544 = vmatpush1.bf16.msra.mxu0 %v867_v63  ;;  %585 = vmatpush1.bf16.msra.mxu1 %v868_v0 }
  0x49   : > { %562 = vmatmul.mubr.bf16.vlgmr.msra.gmra.mrb[0].mxu0 %v314_v1  ;;  %603 = vmatmul.mubr.bf16.vlgmr.msra.gmra.mrb[0].mxu1 %v314_v1 }
 0x11c   : > { %v563_v13 = vpop.f32.mrb[0].mxu0  ;;  %v604_v14 = vpop.f32.mrb[0].mxu1 }
 0x11d   : > { %v564_v15 = vadd.f32 %v563_v13, %v352_v9  ;;  %v605_v16 = vadd.f32 %v604_v14, %v360_v10  ;;  %v565_v17 = vpop.f32.mrb[1].mxu0  ;;  %v606_v18 = vpop.f32.mrb[1].mxu1 }
 0x11e   : > { %v566_v19 = vadd.f32 %v565_v17, %v356_v11  ;;  %v607_v20 = vadd.f32 %v606_v18, %v364_v12  ;;  %v567_v21 = vpop.f32.mrb[2].mxu0  ;;  %v608_v22 = vpop.f32.mrb[2].mxu1 }
 0x11f   : > { %v568_v23 = vpop.f32.mrb[3].mxu0  ;;  %v609_v24 = vpop.f32.mrb[3].mxu1 }
 0x120   : > { %v615_v25 = vcombine.low %v564_v15, %v566_v19  ;;  %v616_v26 = vcombine.low %v605_v16, %v607_v20 }
 0x122   : > { %619 = vst [vmem:[%s311_s14] sm:$0xff] %v615_v25  ;;  %620 = vst [vmem:[%s311_s14 + $0x8] sm:$0xff] %v616_v26 }
 0x123 PF: > { %s13_s16 = sadd.s32 1, %s907_s16   ;;  %s1107_s12 = smov %s895_s13 }
 0x124   : > { %p10_p10 = scmp.ge.s32.totalorder %s13_s16, 4   ;;  %s1108_s13 = smov %s965_s20 }
 0x125   : > { %s1109_s14 = smov %s903_s15  ;;  %s1110_s15 = smov %s1112_s17 }
 0x126   :  { %12 = sbr.rel (!%p10_p10) target bundleno = 3 (0x3), region = 96 }

// kernel: deep_eye_forward.15
= control target key start
LH: loop header
LB: loop body
LE: loop exit
PB: predicated region body
PF: predicated region fallthrough
CT: control target
= control target key end

     0   :  { %s825_s9 = smov 0   ;;  %s827_s10 = smov 0   ;;  %s984_s0 = inlined_call_operand.vmem [shape: f32[2,2,1,512], index: 0, kind: input, shape index: {}]   ;;  %s985_s1 = inlined_call_operand.vmem [shape: bf16[128,512], index: 1, kind: input, shape index: {}]   ;;  %s986_s2 = inlined_call_operand.vmem [shape: bf16[2,2,1,128], index: 2, kind: output, shape index: {}]  }
   0x1   :  { %s829_s11 = smov 0   ;;  %s831_s12 = smov 0  }
   0x2   :  { %s833_s13 = smov 0  }
   0x3 LB: > { %s21_s14 = sadd.s32 1, %s797_s11  ;;  %s24_s15 = sadd.s32 1, %s801_s12  ;;  %s805_s13 = sphi %s833_s13, %s12_s13   ;;  %s801_s12 = sphi %s831_s12, %s990_s12   ;;  %s797_s11 = sphi %s829_s11, %s989_s11   ;;  %s793_s10 = sphi %s827_s10, %s988_s10   ;;  %s789_s9 = sphi %s825_s9, %s987_s9  }
   0x4   : > { %p22_p0 = scmp.ge.s32.totalorder %s21_s14, 2  ;;  %p618_p1 = scmp.ge.s32.totalorder %s805_s13, 1 }
   0x5   : > { %p131_p2 = scmp.lt.s32.totalorder %s805_s13, 5 }
   0x6   : > { %s992_s14 = smov (%p22_p0, %s21_s14), 0  ;;  %s994_s15 = smov (!%p22_p0, %s24_s15), %s801_s12 }
   0x7   : > { %p132_p3 = pnand %p618_p1, %p131_p2  ;;  %p26_p4 = scmp.ge.s32.totalorder %s994_s15, 2 }
   0x8   : > { %p158_p5 = scmp.lt.s32.totalorder (!%p132_p3), %s793_s10, 1  ;;  %p160_p6 = scmp.lt.s32.totalorder (!%p132_p3), %s789_s9, 1 }
   0x9   : > { %s996_s15 = smov (%p26_p4, %s994_s15), 0  ;;  %135 = sbr.rel (%p132_p3) target bundleno = 329 (0x149), region = 28 }
   0xa   : > { %p622_p7 = scmp.ne.s32.totalorder (!%p132_p3), %s789_s9, 0 }
  0x10   : > { %s998_s10 = smov (!%p158_p5, %s793_s10), 1  ;;  %177 = sbr.rel (%p622_p7) target bundleno = 23 (0x17), region = 32 }
  0x11   : > { %s161_s16 = scalar_select %p160_p6, %s789_s9, 1 }
  0x12   : > { %s620_s17 = sshll.u32 %s998_s10, 3  ;;  %s621_s18 = sshll.u32 %s998_s10, 1  ;;  %vm178_vm0 = vcmask (!%p622_p7), 1040384   ;;  %vm179_vm1 = vsmask.f32 (!%p622_p7), 256  ;;  %v807_v1 = vmov (!%p622_p7), 0.0  }
  0x13   : > { %s619_s19 = sshll.u32 %s161_s16, 2  ;;  %s171_s20 = sadd.s32 %s621_s18, %s161_s16  ;;  %v181_v0 = vld [vmem:[#allocation2] sm:$0x1] (!%p622_p7)  ;;  %vm180_vm2 = vmand (!%p622_p7), %vm178_vm0, %vm179_vm1  ;;  %184 = vst [vmem:[#allocation3] sm:$0x1] (!%p622_p7), %v807_v1 }
  0x14   : > { %s855_s21 = sadd.s32 %s620_s17, %s619_s19  ;;  %s860_s24 = scalar_lea.vmem %s986_s2, %s171_s20  ;;  %v182_v2 = vsel (!%p622_p7), %vm180_vm2, 0, %v181_v0 }
  0x15   : > { %s165_s27 = scalar_lea.vmem %s984_s0, %s855_s21  ;;  %183 = vst [vmem:[#allocation2] sm:$0x1] (!%p622_p7), %v182_v2 }
  0x17 PF: > { %v703_v3 = vld [vmem:[%s985_s1 + $0x4] ss:$16 sps:$4 sm:$0xff]   ;;  %v705_v4 = vld [vmem:[%s985_s1 + $0xc] ss:$16 sps:$4 sm:$0xff]   ;;  %v808_v5 = vmov 0   ;;  %v470_v39 = vlaneseq  ;;  %vm525_vm3 = vcmask 1040384  }
  0x18   : > { %411 = vmatprep.mubr.bf16.mxu0 %v808_v5  ;;  %452 = vmatprep.mubr.bf16.mxu1 %v808_v5  ;;  %v707_v6 = vld [vmem:[%s985_s1] ss:$16 sps:$4 sm:$0xff]   ;;  %v708_v7 = vld [vmem:[%s985_s1 + $0x8] ss:$16 sps:$4 sm:$0xff]   ;;  %v709_v8 = vld [vmem:[%s985_s1 + $0x24] ss:$16 sps:$4 sm:$0xff]  }
  0x19   : > { %379 = vmatprep.subr.bf16.mxu0 %v703_v3  ;;  %420 = vmatprep.subr.bf16.mxu1 %v705_v4  ;;  %v711_v9 = vld [vmem:[%s985_s1 + $0x2c] ss:$16 sps:$4 sm:$0xff]   ;;  %v713_v10 = vld [vmem:[%s985_s1 + $0x20] ss:$16 sps:$4 sm:$0xff]   ;;  %v714_v11 = vld [vmem:[%s985_s1 + $0x28] ss:$16 sps:$4 sm:$0xff]  }
  0x1a   : > { %380 = vmatpush1.bf16.msra.mxu0 %v707_v6  ;;  %421 = vmatpush1.bf16.msra.mxu1 %v708_v7  ;;  %v715_v12 = vld [vmem:[%s985_s1 + $0x44] ss:$16 sps:$4 sm:$0xff]   ;;  %v717_v13 = vld [vmem:[%s985_s1 + $0x4c] ss:$16 sps:$4 sm:$0xff]   ;;  %v719_v14 = vld [vmem:[%s985_s1 + $0x40] ss:$16 sps:$4 sm:$0xff]  }
  0x1b   : > { %381 = vmatprep.subr.bf16.mxu0 %v709_v8  ;;  %422 = vmatprep.subr.bf16.mxu1 %v711_v9  ;;  %v720_v15 = vld [vmem:[%s985_s1 + $0x48] ss:$16 sps:$4 sm:$0xff]   ;;  %v721_v16 = vld [vmem:[%s985_s1 + $0x64] ss:$16 sps:$4 sm:$0xff]   ;;  %v723_v17 = vld [vmem:[%s985_s1 + $0x6c] ss:$16 sps:$4 sm:$0xff]  }
  0x1c   : > { %v725_v18 = vld [vmem:[%s985_s1 + $0x60] ss:$16 sps:$4 sm:$0xff]   ;;  %v726_v19 = vld [vmem:[%s985_s1 + $0x68] ss:$16 sps:$4 sm:$0xff]   ;;  %v727_v20 = vld [vmem:[%s985_s1 + $0x84] ss:$16 sps:$4 sm:$0xff]  }
  0x1d   : > { %v729_v21 = vld [vmem:[%s985_s1 + $0x8c] ss:$16 sps:$4 sm:$0xff]   ;;  %v731_v22 = vld [vmem:[%s985_s1 + $0x80] ss:$16 sps:$4 sm:$0xff]   ;;  %v732_v23 = vld [vmem:[%s985_s1 + $0x88] ss:$16 sps:$4 sm:$0xff]  }
  0x1e   : > { %382 = vmatpush1.bf16.msra.mxu0 %v713_v10  ;;  %423 = vmatpush1.bf16.msra.mxu1 %v714_v11  ;;  %v733_v24 = vld [vmem:[%s985_s1 + $0xa4] ss:$16 sps:$4 sm:$0xff]   ;;  %v735_v25 = vld [vmem:[%s985_s1 + $0xac] ss:$16 sps:$4 sm:$0xff]   ;;  %v737_v26 = vld [vmem:[%s985_s1 + $0xa0] ss:$16 sps:$4 sm:$0xff]  }
  0x1f   : > { %383 = vmatprep.subr.bf16.mxu0 %v715_v12  ;;  %424 = vmatprep.subr.bf16.mxu1 %v717_v13  ;;  %v738_v27 = vld [vmem:[%s985_s1 + $0xa8] ss:$16 sps:$4 sm:$0xff]   ;;  %v739_v28 = vld [vmem:[%s985_s1 + $0xc4] ss:$16 sps:$4 sm:$0xff]   ;;  %v741_v29 = vld [vmem:[%s985_s1 + $0xcc] ss:$16 sps:$4 sm:$0xff]  }
  0x20   : > { %v743_v30 = vld [vmem:[%s985_s1 + $0xc0] ss:$16 sps:$4 sm:$0xff]   ;;  %v744_v31 = vld [vmem:[%s985_s1 + $0xc8] ss:$16 sps:$4 sm:$0xff]   ;;  %v745_v32 = vld [vmem:[%s985_s1 + $0xe4] ss:$16 sps:$4 sm:$0xff]  }
  0x21   : > { %v747_v33 = vld [vmem:[%s985_s1 + $0xec] ss:$16 sps:$4 sm:$0xff]   ;;  %v749_v34 = vld [vmem:[%s985_s1 + $0xe0] ss:$16 sps:$4 sm:$0xff]   ;;  %v750_v35 = vld [vmem:[%s985_s1 + $0xe8] ss:$16 sps:$4 sm:$0xff]  }
  0x22   : > { %384 = vmatpush1.bf16.msra.mxu0 %v719_v14  ;;  %425 = vmatpush1.bf16.msra.mxu1 %v720_v15  ;;  %v186_v36 = vld [vmem:[#allocation2] sm:$0x1]  ;;  %v809_v37 = vmov 1966171168   ;;  %v471_v41 = vshrl.u32 %v470_v39, 7 }
  0x23   : > { %385 = vmatprep.subr.bf16.mxu0 %v721_v16  ;;  %426 = vmatprep.subr.bf16.mxu1 %v723_v17  ;;  %v468_v38 = vunpack.c.l.s4 %v809_v37  ;;  %v185_v56 = vld [vmem:[%s165_s27] sm:$0xf]  ;;  %vm526_vm4 = vsmask.f32 256 }
  0x24   : > { %v517_v7 = vld [vmem:[#allocation3] sm:$0x1]  ;;  %vm527_vm5 = vmand %vm525_vm3, %vm526_vm4  ;;  %v528_v17 = vld [vmem:[#allocation2] sm:$0x1] }
  0x25   : > { %v469_v40 = vunpack.c.0.s8 %v468_v38 }
  0x26   : > { %386 = vmatpush1.bf16.msra.mxu0 %v725_v18  ;;  %427 = vmatpush1.bf16.msra.mxu1 %v726_v19  ;;  %v531_v18 = vld [vmem:[%s860_s24] sm:$0x1] }
  0x27   : > { %387 = vmatprep.subr.bf16.mxu0 %v727_v20  ;;  %428 = vmatprep.subr.bf16.mxu1 %v729_v21  ;;  %v472_v44 = vsub.s32 %v469_v40, %v471_v41 }
  0x2a   : > { %388 = vmatpush1.bf16.msra.mxu0 %v731_v22  ;;  %429 = vmatpush1.bf16.msra.mxu1 %v732_v23 }
  0x2b   : > { %389 = vmatprep.subr.bf16.mxu0 %v733_v24  ;;  %430 = vmatprep.subr.bf16.mxu1 %v735_v25 }
  0x2e   : > { %390 = vmatpush1.bf16.msra.mxu0 %v737_v26  ;;  %431 = vmatpush1.bf16.msra.mxu1 %v738_v27 }
  0x2f   : > { %391 = vmatprep.subr.bf16.mxu0 %v739_v28  ;;  %432 = vmatprep.subr.bf16.mxu1 %v741_v29 }
  0x32   : > { %392 = vmatpush1.bf16.msra.mxu0 %v743_v30  ;;  %433 = vmatpush1.bf16.msra.mxu1 %v744_v31 }
  0x33   : > { %393 = vmatprep.subr.bf16.mxu0 %v745_v32  ;;  %434 = vmatprep.subr.bf16.mxu1 %v747_v33 }
  0x36   : > { %394 = vmatpush1.bf16.msra.mxu0 %v749_v34  ;;  %435 = vmatpush1.bf16.msra.mxu1 %v750_v35 }
  0x39   : > { %412 = vmatmul.mubr.bf16.vlgmr.msra.gmra.mrb[0].mxu0 %v186_v36  ;;  %453 = vmatmul.mubr.bf16.vlgmr.msra.gmra.mrb[0].mxu1 %v186_v36 }
 0x10c   : > { %v413_v42 = vpop.f32.mrb[0].mxu0  ;;  %v454_v43 = vpop.f32.mrb[0].mxu1 }
 0x10d   : > { %v415_v45 = vpop.f32.mrb[1].mxu0  ;;  %v456_v46 = vpop.f32.mrb[1].mxu1 }
 0x10e   : > { %v465_v47 = vcombine.low %v413_v42, %v415_v45  ;;  %v466_v48 = vcombine.low %v454_v43, %v456_v46  ;;  %v417_v49 = vpop.f32.mrb[2].mxu0  ;;  %v458_v50 = vpop.f32.mrb[2].mxu1 }
 0x10f   : > { %v418_v51 = vpop.f32.mrb[3].mxu0  ;;  %v459_v52 = vpop.f32.mrb[3].mxu1 }
 0x110   : > { %v473_v53 = vrot.slane %v465_v47, %v472_v44  ;;  %v480_v54 = vrot.slane %v466_v48, %v472_v44 }
 0x112   : > { %v481_v55 = vcombine.low %v473_v53, %v480_v54 }
 0x114   : > { %v488_v57 = vrot.slane %v481_v55, %v472_v44 }
 0x116   : > { %v490_v58 = vadd.f32 %v488_v57, %v185_v56 }
 0x118   : > { %v655_v59 = vmul.f32 -1.442695, %v490_v58  ;;  %v498_v60 = vrot.slane %v490_v58, 1  ;;  %v506_v62 = vrot.slane %v490_v58, 2  ;;  %v514_v1 = vrot.slane %v490_v58, 3 }
 0x11a   : > { %751 = vpow2.f32 %v655_v59  ;;  %v656_v61 = vmul.f32 -1.442695, %v498_v60  ;;  %v657_v63 = vmul.f32 -1.442695, %v506_v62 }
 0x11c   : > { %753 = vpow2.f32 %v656_v61 }
 0x11d   : > { %755 = vpow2.f32 %v657_v63 }
 0x124   : > { %v752_v0 = vpop.eup %751 }
 0x125   : > { %v494_v2 = vadd.f32 1.0, %v752_v0 }
 0x126   : > { %v754_v3 = vpop.eup %753 }
 0x127   : > { %757 = vrcp.f32 %v494_v2  ;;  %v503_v4 = vadd.f32 1.0, %v754_v3  ;;  %v756_v5 = vpop.eup %755 }
 0x128   : > { %759 = vtanh.f32 %v514_v1  ;;  %v511_v10 = vadd.f32 1.0, %v756_v5 }
 0x129   : > { %761 = vrcp.f32 %v503_v4 }
 0x12a   : > { %763 = vrcp.f32 %v511_v10 }
 0x131   : > { %v758_v6 = vpop.eup %757 }
 0x132   : > { %v760_v8 = vpop.eup %759 }
 0x133   : > { %v762_v9 = vpop.eup %761  ;;  %v519_v12 = vmul.f32 %v760_v8, %v758_v6 }
 0x134   : > { %v518_v11 = vmul.f32 %v762_v9, %v517_v7  ;;  %v764_v14 = vpop.eup %763 }
 0x136   : > { %v520_v13 = vadd.f32 %v519_v12, %v518_v11 }
 0x138   : > { %765 = vtanh.f32 %v520_v13  ;;  %523 = vst [vmem:[#allocation3] sm:$0x1] %v520_v13 }
 0x142   : > { %v766_v15 = vpop.eup %765 }
 0x143   : > { %v522_v16 = vmul.f32 %v766_v15, %v764_v14 }
 0x145   : > { %v524_v19 = vpack.c.bf16 %v522_v16, %v522_v16 }
 0x147   : > { %v529_v20 = vsel %vm527_vm5, %v524_v19, %v528_v17  ;;  %v532_v21 = vsel %vm527_vm5, %v524_v19, %v531_v18 }
 0x148   : > { %530 = vst [vmem:[#allocation2] sm:$0x1] %v529_v20  ;;  %533 = vst [vmem:[%s860_s24] sm:$0x1] %v532_v21 }
 0x149 PF: > { %s12_s13 = sadd.s32 1, %s805_s13   ;;  %s987_s9 = smov %s797_s11 }
 0x14a   : > { %p9_p8 = scmp.ge.s32.totalorder %s12_s13, 6   ;;  %s988_s10 = smov %s801_s12 }
 0x14b   : > { %s989_s11 = smov %s992_s14  ;;  %s990_s12 = smov %s996_s15 }
 0x14c   :  { %11 = sbr.rel (!%p9_p8) target bundleno = 3 (0x3), region = 62 }

// kernel: deep_eye_forward.13
= control target key start
LH: loop header
LB: loop body
LE: loop exit
PB: predicated region body
PF: predicated region fallthrough
CT: control target
= control target key end

     0   :  { %s1640_s9 = smov 0   ;;  %s1642_s10 = smov 0   ;;  %s2123_s0 = inlined_call_operand.vmem [shape: f32[2,2,1,1024], index: 0, kind: input, shape index: {}]   ;;  %s2124_s1 = inlined_call_operand.vmem [shape: bf16[256,1024], index: 1, kind: input, shape index: {}]   ;;  %s2125_s2 = inlined_call_operand.vmem [shape: bf16[2,2,1,256], index: 2, kind: output, shape index: {}]  }
   0x1   :  { %s1644_s11 = smov 0   ;;  %s1646_s12 = smov 0  }
   0x2   :  { %s1648_s13 = smov 0  }
   0x3 LB: > { %s21_s14 = sadd.s32 1, %s1613_s11  ;;  %s24_s15 = sadd.s32 1, %s1617_s12  ;;  %s1621_s13 = sphi %s1648_s13, %s12_s13   ;;  %s1617_s12 = sphi %s1646_s12, %s2129_s12   ;;  %s1613_s11 = sphi %s1644_s11, %s2128_s11   ;;  %s1609_s10 = sphi %s1642_s10, %s2127_s10   ;;  %s1605_s9 = sphi %s1640_s9, %s2126_s9  }
   0x4   : > { %p22_p0 = scmp.ge.s32.totalorder %s21_s14, 2  ;;  %p1384_p1 = scmp.ge.s32.totalorder %s1621_s13, 1 }
   0x5   : > { %p131_p2 = scmp.lt.s32.totalorder %s1621_s13, 5 }
   0x6   : > { %s2131_s14 = smov (%p22_p0, %s21_s14), 0  ;;  %s2133_s15 = smov (!%p22_p0, %s24_s15), %s1617_s12 }
   0x7   : > { %p132_p3 = pnand %p1384_p1, %p131_p2  ;;  %p26_p4 = scmp.ge.s32.totalorder %s2133_s15, 2 }
   0x8   : > { %p159_p5 = scmp.lt.s32.totalorder (!%p132_p3), %s1609_s10, 1  ;;  %p161_p6 = scmp.lt.s32.totalorder (!%p132_p3), %s1605_s9, 1 }
   0x9   : > { %s2135_s15 = smov (%p26_p4, %s2133_s15), 0  ;;  %135 = sbr.rel (%p132_p3) target bundleno = 436 (0x1b4), region = 28 }
   0xa   : > { %p1389_p7 = scmp.ne.s32.totalorder (!%p132_p3), %s1605_s9, 0 }
  0x10   : > { %s2137_s10 = smov (!%p159_p5, %s1609_s10), 1  ;;  %179 = sbr.rel (%p1389_p7) target bundleno = 24 (0x18), region = 32 }
  0x11   : > { %s162_s16 = scalar_select %p161_p6, %s1605_s9, 1 }
  0x12   : > { %s1386_s17 = sshll.u32 %s2137_s10, 4  ;;  %s1388_s18 = sshll.u32 %s2137_s10, 2  ;;  %vm180_vm0 = vcmask (!%p1389_p7), 1040384   ;;  %vm181_vm1 = vsmask.f32 (!%p1389_p7), 256  ;;  %vm183_vm2 = vcmask (!%p1389_p7), 1041409   ;;  %v190_v1 = vlaneseq (!%p1389_p7) }
  0x13   : > { %s1385_s19 = sshll.u32 %s162_s16, 3  ;;  %s1387_s20 = sshll.u32 %s162_s16, 1  ;;  %vm184_vm3 = vsmask.f32 (!%p1389_p7), 1280  ;;  %vm182_vm4 = vmand (!%p1389_p7), %vm180_vm0, %vm181_vm1  ;;  %v187_v0 = vld [vmem:[#allocation2] sm:$0x3] (!%p1389_p7) }
  0x14   : > { %s1670_s21 = sadd.s32 %s1386_s17, %s1385_s19  ;;  %s173_s22 = sadd.s32 %s1388_s18, %s1387_s20  ;;  %vm185_vm5 = vmand (!%p1389_p7), %vm183_vm2, %vm184_vm3  ;;  %vm192_vm7 = vcmp.lt.s32.totalorder (!%p1389_p7), %v190_v1, 256  ;;  %v1623_v3 = vmov (!%p1389_p7), 0.0  }
  0x15   : > { %s166_s25 = scalar_lea.vmem %s2123_s0, %s1670_s21  ;;  %s1679_s28 = scalar_lea.vmem %s2125_s2, %s173_s22  ;;  %vm186_vm6 = vmor (!%p1389_p7), %vm185_vm5, %vm182_vm4  ;;  %194 = vst.msk [vmem:[#allocation3] sm:$0x3] (!%p1389_p7), %vm192_vm7, %v1623_v3 }
  0x16   : > { %v188_v2 = vsel (!%p1389_p7), %vm186_vm6, 0, %v187_v0 }
  0x17   : > { %189 = vst [vmem:[#allocation2] sm:$0x3] %v188_v2 }
  0x18 PF: > { %v197_v4 = vld [vmem:[%s2124_s1] sm:$0xff]  ;;  %v198_v6 = vld [vmem:[%s2124_s1 + $0x8] sm:$0xff]  ;;  %v1624_v39 = vmov 1966171168   ;;  %v337_v41 = vlaneseq  ;;  %vm1281_vm9 = vcmask 1040384   ;;  %vm1284_vm11 = vcmask 1041409  }
  0x19   : > { %v201_v5 = vld [vmem:[%s2124_s1 + $0x20] sm:$0xff]  ;;  %v202_v8 = vld [vmem:[%s2124_s1 + $0x28] sm:$0xff]  ;;  %v335_v40 = vunpack.c.l.s4 %v1624_v39  ;;  %vm1282_vm10 = vsmask.f32 256  ;;  %vm1285_vm12 = vsmask.f32 1280 }
  0x1a   : > { %v1392_v7 = vcombine.high %v197_v4, %v201_v5  ;;  %v1391_v9 = vcombine.low %v197_v4, %v201_v5  ;;  %v205_v10 = vld [vmem:[%s2124_s1 + $0x40] sm:$0xff]  ;;  %v1394_v12 = vcombine.high %v198_v6, %v202_v8  ;;  %v1393_v13 = vcombine.low %v198_v6, %v202_v8  ;;  %v206_v15 = vld [vmem:[%s2124_s1 + $0x48] sm:$0xff]  ;;  %vm1283_vm13 = vmand %vm1281_vm9, %vm1282_vm10 }
  0x1b   : > { %v209_v11 = vld [vmem:[%s2124_s1 + $0x60] sm:$0xff]  ;;  %v210_v16 = vld [vmem:[%s2124_s1 + $0x68] sm:$0xff]  ;;  %v336_v50 = vunpack.c.0.s8 %v335_v40  ;;  %v1754_v51 = vshrl.u32 %v337_v41, 7  ;;  %vm1247_vm8 = vcmp.lt.s32.totalorder %v337_v41, 256  ;;  %vm1286_vm14 = vmand %vm1284_vm11, %vm1285_vm12 }
  0x1c   : > { %v1400_v14 = vcombine.high %v205_v10, %v209_v11  ;;  %v213_v17 = vld [vmem:[%s2124_s1 + $0x80] sm:$0xff]  ;;  %990 = vmatprep.subr.bf16.mxu0 %v1392_v7  ;;  %v1402_v18 = vcombine.high %v206_v15, %v210_v16  ;;  %v214_v20 = vld [vmem:[%s2124_s1 + $0x88] sm:$0xff]  ;;  %1031 = vmatprep.subr.bf16.mxu1 %v1394_v12  ;;  %v1399_v22 = vcombine.low %v205_v10, %v209_v11  ;;  %vm1287_vm15 = vmor %vm1286_vm14, %vm1283_vm13 }
  0x1d   : > { %v217_v19 = vld [vmem:[%s2124_s1 + $0xa0] sm:$0xff]  ;;  %v218_v21 = vld [vmem:[%s2124_s1 + $0xa8] sm:$0xff]  ;;  %991 = vmatpush1.bf16.msra.mxu0 %v1391_v9  ;;  %1032 = vmatpush1.bf16.msra.mxu1 %v1393_v13  ;;  %v1401_v23 = vcombine.low %v206_v15, %v210_v16  ;;  %v1769_v60 = vsub.s32 %v336_v50, %v1754_v51 }
  0x1e   : > { %992 = vmatprep.subr.bf16.mxu0 %v1400_v14  ;;  %v1408_v24 = vcombine.high %v213_v17, %v217_v19  ;;  %1033 = vmatprep.subr.bf16.mxu1 %v1402_v18  ;;  %v1410_v25 = vcombine.high %v214_v20, %v218_v21  ;;  %v221_v26 = vld [vmem:[%s2124_s1 + $0xc0] sm:$0xff]  ;;  %v222_v28 = vld [vmem:[%s2124_s1 + $0xc8] sm:$0xff]  ;;  %v1407_v30 = vcombine.low %v213_v17, %v217_v19 }
  0x1f   : > { %v225_v27 = vld [vmem:[%s2124_s1 + $0xe0] sm:$0xff]  ;;  %v226_v29 = vld [vmem:[%s2124_s1 + $0xe8] sm:$0xff]  ;;  %v1409_v31 = vcombine.low %v214_v20, %v218_v21 }
  0x20   : > { %v1416_v32 = vcombine.high %v221_v26, %v225_v27  ;;  %v1418_v33 = vcombine.high %v222_v28, %v226_v29  ;;  %v229_v34 = vld [vmem:[%s2124_s1 + $0x100] sm:$0xff]  ;;  %v230_v36 = vld [vmem:[%s2124_s1 + $0x108] sm:$0xff]  ;;  %v1415_v38 = vcombine.low %v221_v26, %v225_v27  ;;  %v1417_v42 = vcombine.low %v222_v28, %v226_v29 }
  0x21   : > { %993 = vmatpush1.bf16.msra.mxu0 %v1399_v22  ;;  %1034 = vmatpush1.bf16.msra.mxu1 %v1401_v23  ;;  %v233_v35 = vld [vmem:[%s2124_s1 + $0x120] sm:$0xff]  ;;  %v234_v37 = vld [vmem:[%s2124_s1 + $0x128] sm:$0xff] }
  0x22   : > { %994 = vmatprep.subr.bf16.mxu0 %v1408_v24  ;;  %1035 = vmatprep.subr.bf16.mxu1 %v1410_v25  ;;  %v1424_v43 = vcombine.high %v229_v34, %v233_v35  ;;  %v1426_v44 = vcombine.high %v230_v36, %v234_v37  ;;  %v237_v45 = vld [vmem:[%s2124_s1 + $0x140] sm:$0xff]  ;;  %v238_v47 = vld [vmem:[%s2124_s1 + $0x148] sm:$0xff]  ;;  %v1423_v49 = vcombine.low %v229_v34, %v233_v35 }
  0x23   : > { %v241_v46 = vld [vmem:[%s2124_s1 + $0x160] sm:$0xff]  ;;  %v242_v48 = vld [vmem:[%s2124_s1 + $0x168] sm:$0xff]  ;;  %v1425_v52 = vcombine.low %v230_v36, %v234_v37 }
  0x24   : > { %v1432_v53 = vcombine.high %v237_v45, %v241_v46  ;;  %v1434_v54 = vcombine.high %v238_v47, %v242_v48  ;;  %v245_v55 = vld [vmem:[%s2124_s1 + $0x180] sm:$0xff]  ;;  %v246_v57 = vld [vmem:[%s2124_s1 + $0x188] sm:$0xff]  ;;  %v1431_v59 = vcombine.low %v237_v45, %v241_v46  ;;  %v1433_v61 = vcombine.low %v238_v47, %v242_v48 }
  0x25   : > { %995 = vmatpush1.bf16.msra.mxu0 %v1407_v30  ;;  %1036 = vmatpush1.bf16.msra.mxu1 %v1409_v31  ;;  %v249_v56 = vld [vmem:[%s2124_s1 + $0x1a0] sm:$0xff]  ;;  %v250_v58 = vld [vmem:[%s2124_s1 + $0x1a8] sm:$0xff] }
  0x26   : > { %996 = vmatprep.subr.bf16.mxu0 %v1416_v32  ;;  %1037 = vmatprep.subr.bf16.mxu1 %v1418_v33  ;;  %v1440_v62 = vcombine.high %v245_v55, %v249_v56  ;;  %v1771_v63 = vld.sshfl [vmem:[#allocation2] sm:$0x11 pattern:$0x75316420]  ;;  %v1442_v0 = vcombine.high %v246_v57, %v250_v58  ;;  %v254_v4 = vld [vmem:[%s2124_s1 + $0x1c8] sm:$0xff]  ;;  %v1439_v6 = vcombine.low %v245_v55, %v249_v56 }
  0x27   : > { %v253_v1 = vld [vmem:[%s2124_s1 + $0x1c0] sm:$0xff]  ;;  %v333_v3 = vcombine.high %v1771_v63, %v1771_v63  ;;  %v258_v5 = vld [vmem:[%s2124_s1 + $0x1e8] sm:$0xff]  ;;  %v1441_v8 = vcombine.low %v246_v57, %v250_v58 }
  0x28   : > { %v257_v2 = vld [vmem:[%s2124_s1 + $0x1e0] sm:$0xff]  ;;  %v1450_v10 = vcombine.high %v254_v4, %v258_v5  ;;  %v262_v13 = vld [vmem:[%s2124_s1 + $0x208] sm:$0xff]  ;;  %v1449_v16 = vcombine.low %v254_v4, %v258_v5 }
  0x29   : > { %997 = vmatpush1.bf16.msra.mxu0 %v1415_v38  ;;  %1038 = vmatpush1.bf16.msra.mxu1 %v1417_v42  ;;  %v1788_v7 = vrot.slane %v333_v3, %v1769_v60  ;;  %v1448_v9 = vcombine.high %v253_v1, %v257_v2  ;;  %v261_v11 = vld [vmem:[%s2124_s1 + $0x200] sm:$0xff]  ;;  %v266_v14 = vld [vmem:[%s2124_s1 + $0x228] sm:$0xff]  ;;  %v1447_v15 = vcombine.low %v253_v1, %v257_v2 }
  0x2a   : > { %998 = vmatprep.subr.bf16.mxu0 %v1424_v43  ;;  %1039 = vmatprep.subr.bf16.mxu1 %v1426_v44  ;;  %v265_v12 = vld [vmem:[%s2124_s1 + $0x220] sm:$0xff]  ;;  %v1458_v18 = vcombine.high %v262_v13, %v266_v14  ;;  %v270_v21 = vld [vmem:[%s2124_s1 + $0x248] sm:$0xff]  ;;  %v1457_v24 = vcombine.low %v262_v13, %v266_v14 }
  0x2b   : > { %1022 = vmatprep.mubr.bf16.mxu0 %v1788_v7  ;;  %1063 = vmatprep.mubr.bf16.mxu1 %v1788_v7  ;;  %v1456_v17 = vcombine.high %v261_v11, %v265_v12  ;;  %v269_v19 = vld [vmem:[%s2124_s1 + $0x240] sm:$0xff]  ;;  %v274_v22 = vld [vmem:[%s2124_s1 + $0x268] sm:$0xff]  ;;  %v1455_v23 = vcombine.low %v261_v11, %v265_v12 }
  0x2c   : > { %v273_v20 = vld [vmem:[%s2124_s1 + $0x260] sm:$0xff]  ;;  %v1466_v26 = vcombine.high %v270_v21, %v274_v22  ;;  %v278_v29 = vld [vmem:[%s2124_s1 + $0x288] sm:$0xff]  ;;  %v1465_v32 = vcombine.low %v270_v21, %v274_v22 }
  0x2d   : > { %999 = vmatpush1.bf16.msra.mxu0 %v1423_v49  ;;  %1040 = vmatpush1.bf16.msra.mxu1 %v1425_v52  ;;  %v1464_v25 = vcombine.high %v269_v19, %v273_v20  ;;  %v277_v27 = vld [vmem:[%s2124_s1 + $0x280] sm:$0xff]  ;;  %v282_v30 = vld [vmem:[%s2124_s1 + $0x2a8] sm:$0xff]  ;;  %v1463_v31 = vcombine.low %v269_v19, %v273_v20  ;;  %v204_v19 = vld [vmem:[%s2124_s1 + $0x38] sm:$0xff] }
  0x2e   : > { %1000 = vmatprep.subr.bf16.mxu0 %v1432_v53  ;;  %1041 = vmatprep.subr.bf16.mxu1 %v1434_v54  ;;  %v281_v28 = vld [vmem:[%s2124_s1 + $0x2a0] sm:$0xff]  ;;  %v1474_v34 = vcombine.high %v278_v29, %v282_v30  ;;  %v286_v37 = vld [vmem:[%s2124_s1 + $0x2c8] sm:$0xff]  ;;  %v1473_v40 = vcombine.low %v278_v29, %v282_v30 }
  0x2f   : > { %v1472_v33 = vcombine.high %v277_v27, %v281_v28  ;;  %v285_v35 = vld [vmem:[%s2124_s1 + $0x2c0] sm:$0xff]  ;;  %v290_v38 = vld [vmem:[%s2124_s1 + $0x2e8] sm:$0xff]  ;;  %v1471_v39 = vcombine.low %v277_v27, %v281_v28  ;;  %v208_v27 = vld [vmem:[%s2124_s1 + $0x58] sm:$0xff] }
  0x30   : > { %v289_v36 = vld [vmem:[%s2124_s1 + $0x2e0] sm:$0xff]  ;;  %v1482_v43 = vcombine.high %v286_v37, %v290_v38  ;;  %v294_v46 = vld [vmem:[%s2124_s1 + $0x308] sm:$0xff]  ;;  %v1481_v49 = vcombine.low %v286_v37, %v290_v38  ;;  %v212_v28 = vld [vmem:[%s2124_s1 + $0x78] sm:$0xff] }
  0x31   : > { %1001 = vmatpush1.bf16.msra.mxu0 %v1431_v59  ;;  %1042 = vmatpush1.bf16.msra.mxu1 %v1433_v61  ;;  %v1480_v42 = vcombine.high %v285_v35, %v289_v36  ;;  %v293_v44 = vld [vmem:[%s2124_s1 + $0x300] sm:$0xff]  ;;  %v298_v47 = vld [vmem:[%s2124_s1 + $0x328] sm:$0xff]  ;;  %v1479_v48 = vcombine.low %v285_v35, %v289_v36  ;;  %v220_v35 = vld [vmem:[%s2124_s1 + $0xb8] sm:$0xff]  ;;  %v1405_v37 = vcombine.low %v208_v27, %v212_v28 }
  0x32   : > { %1002 = vmatprep.subr.bf16.mxu0 %v1440_v62  ;;  %1043 = vmatprep.subr.bf16.mxu1 %v1442_v0  ;;  %v297_v45 = vld [vmem:[%s2124_s1 + $0x320] sm:$0xff]  ;;  %v1490_v52 = vcombine.high %v294_v46, %v298_v47  ;;  %v302_v55 = vld [vmem:[%s2124_s1 + $0x348] sm:$0xff]  ;;  %v1489_v58 = vcombine.low %v294_v46, %v298_v47 }
  0x33   : > { %v1488_v50 = vcombine.high %v293_v44, %v297_v45  ;;  %v301_v53 = vld [vmem:[%s2124_s1 + $0x340] sm:$0xff]  ;;  %v306_v56 = vld [vmem:[%s2124_s1 + $0x368] sm:$0xff]  ;;  %v1487_v57 = vcombine.low %v293_v44, %v297_v45  ;;  %v228_v44 = vld [vmem:[%s2124_s1 + $0xf8] sm:$0xff] }
  0x34   : > { %v305_v54 = vld [vmem:[%s2124_s1 + $0x360] sm:$0xff]  ;;  %v1498_v61 = vcombine.high %v302_v55, %v306_v56  ;;  %v310_v1 = vld [vmem:[%s2124_s1 + $0x388] sm:$0xff]  ;;  %v1497_v4 = vcombine.low %v302_v55, %v306_v56 }
  0x35   : > { %1003 = vmatpush1.bf16.msra.mxu0 %v1439_v6  ;;  %1044 = vmatpush1.bf16.msra.mxu1 %v1441_v8  ;;  %v1496_v59 = vcombine.high %v301_v53, %v305_v54  ;;  %v309_v62 = vld [vmem:[%s2124_s1 + $0x380] sm:$0xff]  ;;  %v314_v2 = vld [vmem:[%s2124_s1 + $0x3a8] sm:$0xff]  ;;  %v1495_v3 = vcombine.low %v301_v53, %v305_v54 }
  0x36   : > { %1004 = vmatprep.subr.bf16.mxu0 %v1448_v9  ;;  %1045 = vmatprep.subr.bf16.mxu1 %v1450_v10  ;;  %v313_v0 = vld [vmem:[%s2124_s1 + $0x3a0] sm:$0xff]  ;;  %v1506_v6 = vcombine.high %v310_v1, %v314_v2  ;;  %v318_v10 = vld [vmem:[%s2124_s1 + $0x3c8] sm:$0xff]  ;;  %v1505_v13 = vcombine.low %v310_v1, %v314_v2 }
  0x37   : > { %v1504_v5 = vcombine.high %v309_v62, %v313_v0  ;;  %v317_v8 = vld [vmem:[%s2124_s1 + $0x3c0] sm:$0xff]  ;;  %v322_v11 = vld [vmem:[%s2124_s1 + $0x3e8] sm:$0xff]  ;;  %v1503_v12 = vcombine.low %v309_v62, %v313_v0 }
  0x38   : > { %v321_v9 = vld [vmem:[%s2124_s1 + $0x3e0] sm:$0xff]  ;;  %v1513_v21 = vcombine.low %v318_v10, %v322_v11 }
  0x39   : > { %1005 = vmatpush1.bf16.msra.mxu0 %v1447_v15  ;;  %1046 = vmatpush1.bf16.msra.mxu1 %v1449_v16  ;;  %v1512_v14 = vcombine.high %v317_v8, %v321_v9  ;;  %v1514_v15 = vcombine.high %v318_v10, %v322_v11  ;;  %v199_v16 = vld [vmem:[%s2124_s1 + $0x10] sm:$0xff]  ;;  %v1511_v20 = vcombine.low %v317_v8, %v321_v9 }
  0x3a   : > { %1006 = vmatprep.subr.bf16.mxu0 %v1456_v17  ;;  %1047 = vmatprep.subr.bf16.mxu1 %v1458_v18  ;;  %v203_v17 = vld [vmem:[%s2124_s1 + $0x30] sm:$0xff]  ;;  %v200_v18 = vld [vmem:[%s2124_s1 + $0x18] sm:$0xff] }
  0x3b   : > { %v1396_v22 = vcombine.high %v199_v16, %v203_v17  ;;  %v1395_v29 = vcombine.low %v199_v16, %v203_v17  ;;  %v1397_v30 = vcombine.low %v200_v18, %v204_v19 }
  0x3d   : > { %1007 = vmatpush1.bf16.msra.mxu0 %v1455_v23  ;;  %1048 = vmatpush1.bf16.msra.mxu1 %v1457_v24  ;;  %v1398_v23 = vcombine.high %v200_v18, %v204_v19  ;;  %v207_v24 = vld [vmem:[%s2124_s1 + $0x50] sm:$0xff] }
  0x3e   : > { %1008 = vmatprep.subr.bf16.mxu0 %v1464_v25  ;;  %1049 = vmatprep.subr.bf16.mxu1 %v1466_v26  ;;  %v211_v25 = vld [vmem:[%s2124_s1 + $0x70] sm:$0xff]  ;;  %v1908_v26 = vrot.slane %v1771_v63, %v1769_v60 }
  0x3f   : > { %v215_v63 = vld [vmem:[%s2124_s1 + $0x90] sm:$0xff]  ;;  %v1403_v36 = vcombine.low %v207_v24, %v211_v25 }
  0x41   : > { %1009 = vmatpush1.bf16.msra.mxu0 %v1463_v31  ;;  %1050 = vmatpush1.bf16.msra.mxu1 %v1465_v32  ;;  %v1404_v31 = vcombine.high %v207_v24, %v211_v25  ;;  %v1406_v32 = vcombine.high %v208_v27, %v212_v28 }
  0x42   : > { %1010 = vmatprep.subr.bf16.mxu0 %v1472_v33  ;;  %1051 = vmatprep.subr.bf16.mxu1 %v1474_v34  ;;  %v219_v33 = vld [vmem:[%s2124_s1 + $0xb0] sm:$0xff]  ;;  %v216_v34 = vld [vmem:[%s2124_s1 + $0x98] sm:$0xff] }
  0x43   : > { %v1412_v38 = vcombine.high %v215_v63, %v219_v33  ;;  %v1411_v45 = vcombine.low %v215_v63, %v219_v33  ;;  %v1413_v46 = vcombine.low %v216_v34, %v220_v35 }
  0x45   : > { %1011 = vmatpush1.bf16.msra.mxu0 %v1471_v39  ;;  %1052 = vmatpush1.bf16.msra.mxu1 %v1473_v40  ;;  %v1414_v39 = vcombine.high %v216_v34, %v220_v35  ;;  %v223_v40 = vld [vmem:[%s2124_s1 + $0xd0] sm:$0xff] }
  0x46   : > { %1012 = vmatprep.subr.bf16.mxu0 %v1480_v42  ;;  %1053 = vmatprep.subr.bf16.mxu1 %v1482_v43  ;;  %v227_v42 = vld [vmem:[%s2124_s1 + $0xf0] sm:$0xff]  ;;  %v224_v43 = vld [vmem:[%s2124_s1 + $0xd8] sm:$0xff] }
  0x47   : > { %v1420_v47 = vcombine.high %v223_v40, %v227_v42  ;;  %v1419_v53 = vcombine.low %v223_v40, %v227_v42  ;;  %v1421_v54 = vcombine.low %v224_v43, %v228_v44 }
  0x49   : > { %1013 = vmatpush1.bf16.msra.mxu0 %v1479_v48  ;;  %1054 = vmatpush1.bf16.msra.mxu1 %v1481_v49  ;;  %v1422_v48 = vcombine.high %v224_v43, %v228_v44  ;;  %v231_v49 = vld [vmem:[%s2124_s1 + $0x110] sm:$0xff] }
  0x4a   : > { %1014 = vmatprep.subr.bf16.mxu0 %v1488_v50  ;;  %1055 = vmatprep.subr.bf16.mxu1 %v1490_v52  ;;  %v235_v50 = vld [vmem:[%s2124_s1 + $0x130] sm:$0xff]  ;;  %v236_v52 = vld [vmem:[%s2124_s1 + $0x138] sm:$0xff] }
  0x4b   : > { %v1428_v55 = vcombine.high %v231_v49, %v235_v50  ;;  %v1427_v62 = vcombine.low %v231_v49, %v235_v50 }
  0x4d   : > { %1015 = vmatpush1.bf16.msra.mxu0 %v1487_v57  ;;  %1056 = vmatpush1.bf16.msra.mxu1 %v1489_v58  ;;  %v239_v57 = vld [vmem:[%s2124_s1 + $0x150] sm:$0xff] }
  0x4e   : > { %1016 = vmatprep.subr.bf16.mxu0 %v1496_v59  ;;  %1057 = vmatprep.subr.bf16.mxu1 %v1498_v61  ;;  %v243_v58 = vld [vmem:[%s2124_s1 + $0x170] sm:$0xff]  ;;  %v240_v59 = vld [vmem:[%s2124_s1 + $0x158] sm:$0xff] }
  0x4f   : > { %v244_v61 = vld [vmem:[%s2124_s1 + $0x178] sm:$0xff]  ;;  %v1436_v1 = vcombine.high %v239_v57, %v243_v58  ;;  %v1435_v8 = vcombine.low %v239_v57, %v243_v58 }
  0x50   : > { %v1438_v2 = vcombine.high %v240_v59, %v244_v61  ;;  %v1437_v9 = vcombine.low %v240_v59, %v244_v61 }
  0x51   : > { %1017 = vmatpush1.bf16.msra.mxu0 %v1495_v3  ;;  %1058 = vmatpush1.bf16.msra.mxu1 %v1497_v4  ;;  %v247_v3 = vld [vmem:[%s2124_s1 + $0x190] sm:$0xff] }
  0x52   : > { %1018 = vmatprep.subr.bf16.mxu0 %v1504_v5  ;;  %1059 = vmatprep.subr.bf16.mxu1 %v1506_v6  ;;  %v251_v4 = vld [vmem:[%s2124_s1 + $0x1b0] sm:$0xff]  ;;  %v248_v5 = vld [vmem:[%s2124_s1 + $0x198] sm:$0xff] }
  0x53   : > { %v252_v6 = vld [vmem:[%s2124_s1 + $0x1b8] sm:$0xff]  ;;  %v1444_v10 = vcombine.high %v247_v3, %v251_v4  ;;  %v1443_v16 = vcombine.low %v247_v3, %v251_v4 }
  0x54   : > { %v1446_v11 = vcombine.high %v248_v5, %v252_v6  ;;  %v1445_v17 = vcombine.low %v248_v5, %v252_v6 }
  0x55   : > { %1019 = vmatpush1.bf16.msra.mxu0 %v1503_v12  ;;  %1060 = vmatpush1.bf16.msra.mxu1 %v1505_v13  ;;  %v255_v12 = vld [vmem:[%s2124_s1 + $0x1d0] sm:$0xff] }
  0x56   : > { %1020 = vmatprep.subr.bf16.mxu0 %v1512_v14  ;;  %1061 = vmatprep.subr.bf16.mxu1 %v1514_v15  ;;  %v259_v13 = vld [vmem:[%s2124_s1 + $0x1f0] sm:$0xff]  ;;  %v256_v14 = vld [vmem:[%s2124_s1 + $0x1d8] sm:$0xff] }
  0x57   : > { %v260_v15 = vld [vmem:[%s2124_s1 + $0x1f8] sm:$0xff]  ;;  %v1452_v18 = vcombine.high %v255_v12, %v259_v13  ;;  %v1451_v24 = vcombine.low %v255_v12, %v259_v13 }
  0x58   : > { %v1454_v19 = vcombine.high %v256_v14, %v260_v15  ;;  %v1453_v25 = vcombine.low %v256_v14, %v260_v15 }
  0x59   : > { %1021 = vmatpush1.bf16.msra.mxu0 %v1511_v20  ;;  %1062 = vmatpush1.bf16.msra.mxu1 %v1513_v21  ;;  %v263_v20 = vld [vmem:[%s2124_s1 + $0x210] sm:$0xff] }
  0x5a   : > { %1072 = vmatprep.subr.bf16.mxu0 %v1396_v22  ;;  %1113 = vmatprep.subr.bf16.mxu1 %v1398_v23  ;;  %v267_v21 = vld [vmem:[%s2124_s1 + $0x230] sm:$0xff]  ;;  %v264_v22 = vld [vmem:[%s2124_s1 + $0x218] sm:$0xff] }
  0x5b   : > { %v268_v23 = vld [vmem:[%s2124_s1 + $0x238] sm:$0xff]  ;;  %v1460_v27 = vcombine.high %v263_v20, %v267_v21  ;;  %v1459_v63 = vcombine.low %v263_v20, %v267_v21 }
  0x5c   : > { %1023 = vmatmul.mubr.bf16.vlgmr.msra.gmra.mrb[0].mxu0 %v1908_v26  ;;  %1064 = vmatmul.mubr.bf16.vlgmr.msra.gmra.mrb[0].mxu1 %v1908_v26  ;;  %v1462_v28 = vcombine.high %v264_v22, %v268_v23  ;;  %v1461_v33 = vcombine.low %v264_v22, %v268_v23 }
  0x5d   : > { %1073 = vmatpush1.bf16.msra.mxu0 %v1395_v29  ;;  %1114 = vmatpush1.bf16.msra.mxu1 %v1397_v30  ;;  %v271_v29 = vld [vmem:[%s2124_s1 + $0x250] sm:$0xff] }
  0x5e   : > { %1074 = vmatprep.subr.bf16.mxu0 %v1404_v31  ;;  %1115 = vmatprep.subr.bf16.mxu1 %v1406_v32  ;;  %v275_v30 = vld [vmem:[%s2124_s1 + $0x270] sm:$0xff]  ;;  %v272_v31 = vld [vmem:[%s2124_s1 + $0x258] sm:$0xff] }
  0x5f   : > { %1104 = vmatprep.mubr.bf16.mxu0 %v1788_v7  ;;  %1145 = vmatprep.mubr.bf16.mxu1 %v1788_v7  ;;  %v232_v7 = vld [vmem:[%s2124_s1 + $0x118] sm:$0xff]  ;;  %v1468_v34 = vcombine.high %v271_v29, %v275_v30  ;;  %v1467_v40 = vcombine.low %v271_v29, %v275_v30 }
  0x60   : > { %v1430_v56 = vcombine.high %v232_v7, %v236_v52  ;;  %v1429_v0 = vcombine.low %v232_v7, %v236_v52  ;;  %v276_v32 = vld [vmem:[%s2124_s1 + $0x278] sm:$0xff] }
  0x61   : > { %1075 = vmatpush1.bf16.msra.mxu0 %v1403_v36  ;;  %1116 = vmatpush1.bf16.msra.mxu1 %v1405_v37  ;;  %v1470_v35 = vcombine.high %v272_v31, %v276_v32  ;;  %v279_v36 = vld [vmem:[%s2124_s1 + $0x290] sm:$0xff]  ;;  %v1469_v42 = vcombine.low %v272_v31, %v276_v32 }
  0x62   : > { %1076 = vmatprep.subr.bf16.mxu0 %v1412_v38  ;;  %1117 = vmatprep.subr.bf16.mxu1 %v1414_v39  ;;  %v283_v37 = vld [vmem:[%s2124_s1 + $0x2b0] sm:$0xff]  ;;  %v280_v38 = vld [vmem:[%s2124_s1 + $0x298] sm:$0xff] }
  0x63   : > { %v284_v39 = vld [vmem:[%s2124_s1 + $0x2b8] sm:$0xff]  ;;  %v1476_v43 = vcombine.high %v279_v36, %v283_v37  ;;  %v1475_v49 = vcombine.low %v279_v36, %v283_v37 }
  0x64   : > { %v1478_v44 = vcombine.high %v280_v38, %v284_v39  ;;  %v1477_v50 = vcombine.low %v280_v38, %v284_v39 }
  0x65   : > { %1077 = vmatpush1.bf16.msra.mxu0 %v1411_v45  ;;  %1118 = vmatpush1.bf16.msra.mxu1 %v1413_v46  ;;  %v287_v45 = vld [vmem:[%s2124_s1 + $0x2d0] sm:$0xff] }
  0x66   : > { %1078 = vmatprep.subr.bf16.mxu0 %v1420_v47  ;;  %1119 = vmatprep.subr.bf16.mxu1 %v1422_v48  ;;  %v291_v46 = vld [vmem:[%s2124_s1 + $0x2f0] sm:$0xff]  ;;  %v288_v47 = vld [vmem:[%s2124_s1 + $0x2d8] sm:$0xff] }
  0x67   : > { %v292_v48 = vld [vmem:[%s2124_s1 + $0x2f8] sm:$0xff]  ;;  %v1484_v7 = vcombine.high %v287_v45, %v291_v46  ;;  %v1483_v57 = vcombine.low %v287_v45, %v291_v46 }
  0x68   : > { %v1486_v52 = vcombine.high %v288_v47, %v292_v48  ;;  %v1485_v58 = vcombine.low %v288_v47, %v292_v48 }
  0x69   : > { %1079 = vmatpush1.bf16.msra.mxu0 %v1419_v53  ;;  %1120 = vmatpush1.bf16.msra.mxu1 %v1421_v54  ;;  %v295_v53 = vld [vmem:[%s2124_s1 + $0x310] sm:$0xff] }
  0x6a   : > { %1080 = vmatprep.subr.bf16.mxu0 %v1428_v55  ;;  %1121 = vmatprep.subr.bf16.mxu1 %v1430_v56  ;;  %v299_v54 = vld [vmem:[%s2124_s1 + $0x330] sm:$0xff]  ;;  %v296_v55 = vld [vmem:[%s2124_s1 + $0x318] sm:$0xff] }
  0x6b   : > { %v300_v56 = vld [vmem:[%s2124_s1 + $0x338] sm:$0xff]  ;;  %v1492_v59 = vcombine.high %v295_v53, %v299_v54  ;;  %v1491_v3 = vcombine.low %v295_v53, %v299_v54  ;;  %v195_v54 = vld [vmem:[%s166_s25] sm:$0xff] }
  0x6c   : > { %v1494_v61 = vcombine.high %v296_v55, %v300_v56  ;;  %v1493_v4 = vcombine.low %v296_v55, %v300_v56 }
  0x6d   : > { %1081 = vmatpush1.bf16.msra.mxu0 %v1427_v62  ;;  %1122 = vmatpush1.bf16.msra.mxu1 %v1429_v0  ;;  %v303_v62 = vld [vmem:[%s2124_s1 + $0x350] sm:$0xff] }
  0x6e   : > { %1082 = vmatprep.subr.bf16.mxu0 %v1436_v1  ;;  %1123 = vmatprep.subr.bf16.mxu1 %v1438_v2  ;;  %v307_v0 = vld [vmem:[%s2124_s1 + $0x370] sm:$0xff]  ;;  %v304_v1 = vld [vmem:[%s2124_s1 + $0x358] sm:$0xff] }
  0x6f   : > { %v308_v2 = vld [vmem:[%s2124_s1 + $0x378] sm:$0xff]  ;;  %v1500_v5 = vcombine.high %v303_v62, %v307_v0  ;;  %v1499_v12 = vcombine.low %v303_v62, %v307_v0 }
  0x70   : > { %v1502_v6 = vcombine.high %v304_v1, %v308_v2  ;;  %v1501_v13 = vcombine.low %v304_v1, %v308_v2 }
  0x71   : > { %1083 = vmatpush1.bf16.msra.mxu0 %v1435_v8  ;;  %1124 = vmatpush1.bf16.msra.mxu1 %v1437_v9  ;;  %v311_v8 = vld [vmem:[%s2124_s1 + $0x390] sm:$0xff] }
  0x72   : > { %1084 = vmatprep.subr.bf16.mxu0 %v1444_v10  ;;  %1125 = vmatprep.subr.bf16.mxu1 %v1446_v11  ;;  %v315_v9 = vld [vmem:[%s2124_s1 + $0x3b0] sm:$0xff]  ;;  %v312_v10 = vld [vmem:[%s2124_s1 + $0x398] sm:$0xff] }
  0x73   : > { %v316_v11 = vld [vmem:[%s2124_s1 + $0x3b8] sm:$0xff]  ;;  %v1508_v14 = vcombine.high %v311_v8, %v315_v9  ;;  %v1507_v20 = vcombine.low %v311_v8, %v315_v9  ;;  %v1239_v8 = vld [vmem:[#allocation3] sm:$0x3] }
  0x74   : > { %v1510_v15 = vcombine.high %v312_v10, %v316_v11  ;;  %v1509_v21 = vcombine.low %v312_v10, %v316_v11 }
  0x75   : > { %1085 = vmatpush1.bf16.msra.mxu0 %v1443_v16  ;;  %1126 = vmatpush1.bf16.msra.mxu1 %v1445_v17  ;;  %v319_v16 = vld [vmem:[%s2124_s1 + $0x3d0] sm:$0xff] }
  0x76   : > { %1086 = vmatprep.subr.bf16.mxu0 %v1452_v18  ;;  %1127 = vmatprep.subr.bf16.mxu1 %v1454_v19  ;;  %v323_v17 = vld [vmem:[%s2124_s1 + $0x3f0] sm:$0xff]  ;;  %v320_v18 = vld [vmem:[%s2124_s1 + $0x3d8] sm:$0xff] }
  0x77   : > { %v324_v19 = vld [vmem:[%s2124_s1 + $0x3f8] sm:$0xff]  ;;  %v1516_v22 = vcombine.high %v319_v16, %v323_v17 }
  0x78   : > { %v1518_v23 = vcombine.high %v320_v18, %v324_v19 }
  0x79   : > { %1087 = vmatpush1.bf16.msra.mxu0 %v1451_v24  ;;  %1128 = vmatpush1.bf16.msra.mxu1 %v1453_v25  ;;  %v1515_v24 = vcombine.low %v319_v16, %v323_v17  ;;  %v1517_v25 = vcombine.low %v320_v18, %v324_v19  ;;  %v1253_v16 = vsub.s32 0, %v1754_v51  ;;  %v1257_v17 = vsub.s32 1, %v1754_v51 }
  0x7a   : > { %1088 = vmatprep.subr.bf16.mxu0 %v1460_v27  ;;  %1129 = vmatprep.subr.bf16.mxu1 %v1462_v28 }
  0x7d   : > { %1089 = vmatpush1.bf16.msra.mxu0 %v1459_v63  ;;  %1130 = vmatpush1.bf16.msra.mxu1 %v1461_v33 }
  0x7e   : > { %1090 = vmatprep.subr.bf16.mxu0 %v1468_v34  ;;  %1131 = vmatprep.subr.bf16.mxu1 %v1470_v35 }
  0x81   : > { %1091 = vmatpush1.bf16.msra.mxu0 %v1467_v40  ;;  %1132 = vmatpush1.bf16.msra.mxu1 %v1469_v42 }
  0x82   : > { %1092 = vmatprep.subr.bf16.mxu0 %v1476_v43  ;;  %1133 = vmatprep.subr.bf16.mxu1 %v1478_v44 }
  0x85   : > { %1093 = vmatpush1.bf16.msra.mxu0 %v1475_v49  ;;  %1134 = vmatpush1.bf16.msra.mxu1 %v1477_v50 }
  0x86   : > { %1094 = vmatprep.subr.bf16.mxu0 %v1484_v7  ;;  %1135 = vmatprep.subr.bf16.mxu1 %v1486_v52 }
  0x89   : > { %1095 = vmatpush1.bf16.msra.mxu0 %v1483_v57  ;;  %1136 = vmatpush1.bf16.msra.mxu1 %v1485_v58 }
  0x8a   : > { %1096 = vmatprep.subr.bf16.mxu0 %v1492_v59  ;;  %1137 = vmatprep.subr.bf16.mxu1 %v1494_v61 }
  0x8d   : > { %1097 = vmatpush1.bf16.msra.mxu0 %v1491_v3  ;;  %1138 = vmatpush1.bf16.msra.mxu1 %v1493_v4 }
  0x8e   : > { %1098 = vmatprep.subr.bf16.mxu0 %v1500_v5  ;;  %1139 = vmatprep.subr.bf16.mxu1 %v1502_v6 }
  0x91   : > { %1099 = vmatpush1.bf16.msra.mxu0 %v1499_v12  ;;  %1140 = vmatpush1.bf16.msra.mxu1 %v1501_v13 }
  0x92   : > { %1100 = vmatprep.subr.bf16.mxu0 %v1508_v14  ;;  %1141 = vmatprep.subr.bf16.mxu1 %v1510_v15 }
  0x95   : > { %1101 = vmatpush1.bf16.msra.mxu0 %v1507_v20  ;;  %1142 = vmatpush1.bf16.msra.mxu1 %v1509_v21 }
  0x96   : > { %1102 = vmatprep.subr.bf16.mxu0 %v1516_v22  ;;  %1143 = vmatprep.subr.bf16.mxu1 %v1518_v23  ;;  %v1288_v23 = vld [vmem:[#allocation2] sm:$0x3] }
  0x99   : > { %1103 = vmatpush1.bf16.msra.mxu0 %v1515_v24  ;;  %1144 = vmatpush1.bf16.msra.mxu1 %v1517_v25  ;;  %v1291_v24 = vld [vmem:[%s1679_s28] sm:$0x3] }
  0x9c   : > { %1105 = vmatmul.mubr.bf16.vlgmr.msra.gmra.mrb[4].mxu0 %v1908_v26  ;;  %1146 = vmatmul.mubr.bf16.vlgmr.msra.gmra.mrb[4].mxu1 %v1908_v26 }
 0x12f   : > { %v1024_v27 = vpop.f32.mrb[0].mxu0  ;;  %v1065_v28 = vpop.f32.mrb[0].mxu1 }
 0x130   : > { %v1026_v29 = vpop.f32.mrb[1].mxu0  ;;  %v1067_v31 = vpop.f32.mrb[1].mxu1 }
 0x131   : > { %v1162_v30 = vcombine.low %v1024_v27, %v1026_v29  ;;  %v1028_v32 = vpop.f32.mrb[2].mxu0  ;;  %v1163_v63 = vcombine.low %v1065_v28, %v1067_v31  ;;  %v1069_v33 = vpop.f32.mrb[2].mxu1 }
 0x132   : > { %v1029_v34 = vpop.f32.mrb[3].mxu0  ;;  %v1070_v36 = vpop.f32.mrb[3].mxu1 }
 0x133   : > { %v1172_v35 = vrot.slane %v1162_v30, %v1769_v60  ;;  %v1179_v37 = vrot.slane %v1163_v63, %v1769_v60 }
 0x135   : > { %v1194_v38 = vcombine.low %v1172_v35, %v1179_v37 }
 0x137   : > { %v1202_v52 = vrot.slane %v1194_v38, %v1769_v60 }
 0x16f   : > { %v1106_v39 = vpop.f32.mrb[4].mxu0  ;;  %v1147_v40 = vpop.f32.mrb[4].mxu1 }
 0x170   : > { %v1108_v42 = vpop.f32.mrb[5].mxu0  ;;  %v1149_v43 = vpop.f32.mrb[5].mxu1 }
 0x171   : > { %v1164_v26 = vcombine.low %v1106_v39, %v1108_v42  ;;  %v1110_v44 = vpop.f32.mrb[6].mxu0  ;;  %v1165_v45 = vcombine.low %v1147_v40, %v1149_v43  ;;  %v1151_v46 = vpop.f32.mrb[6].mxu1 }
 0x172   : > { %v1111_v47 = vpop.f32.mrb[7].mxu0  ;;  %v1152_v49 = vpop.f32.mrb[7].mxu1 }
 0x173   : > { %v1186_v48 = vrot.slane %v1164_v26, %v1769_v60  ;;  %v1193_v50 = vrot.slane %v1165_v45, %v1769_v60 }
 0x175   : > { %v1195_v7 = vcombine.low %v1186_v48, %v1193_v50 }
 0x177   : > { %v1209_v53 = vrot.slane %v1195_v7, %v1769_v60 }
 0x179   : > { %v1210_v55 = vcombine.low %v1202_v52, %v1209_v53 }
 0x17b   : > { %v1212_v56 = vadd.f32 %v1210_v55, %v195_v54 }
 0x17d   : > { %v1519_v57 = vmul.f32 -1.442695, %v1212_v56  ;;  %v1220_v58 = vrot.slane %v1212_v56, 2  ;;  %v1228_v61 = vrot.slane %v1212_v56, 4  ;;  %v1236_v1 = vrot.slane %v1212_v56, 6 }
 0x17f   : > { %1567 = vpow2.f32 %v1519_v57  ;;  %v1520_v59 = vmul.f32 -1.442695, %v1220_v58  ;;  %v1521_v62 = vmul.f32 -1.442695, %v1228_v61 }
 0x181   : > { %1569 = vpow2.f32 %v1520_v59 }
 0x182   : > { %1571 = vpow2.f32 %v1521_v62 }
 0x189   : > { %v1568_v0 = vpop.eup %1567 }
 0x18a   : > { %v1216_v2 = vadd.f32 1.0, %v1568_v0 }
 0x18b   : > { %v1570_v3 = vpop.eup %1569 }
 0x18c   : > { %1573 = vrcp.f32 %v1216_v2  ;;  %v1225_v4 = vadd.f32 1.0, %v1570_v3  ;;  %v1572_v5 = vpop.eup %1571 }
 0x18d   : > { %1575 = vtanh.f32 %v1236_v1  ;;  %v1233_v11 = vadd.f32 1.0, %v1572_v5 }
 0x18e   : > { %1577 = vrcp.f32 %v1225_v4 }
 0x18f   : > { %1579 = vrcp.f32 %v1233_v11 }
 0x196   : > { %v1574_v6 = vpop.eup %1573 }
 0x197   : > { %v1576_v9 = vpop.eup %1575 }
 0x198   : > { %v1578_v10 = vpop.eup %1577  ;;  %v1241_v13 = vmul.f32 %v1576_v9, %v1574_v6 }
 0x199   : > { %v1240_v12 = vmul.f32 %v1578_v10, %v1239_v8  ;;  %v1580_v15 = vpop.eup %1579 }
 0x19b   : > { %v1242_v14 = vadd.f32 %v1241_v13, %v1240_v12 }
 0x19d   : > { %1581 = vtanh.f32 %v1242_v14  ;;  %1249 = vst.msk [vmem:[#allocation3] sm:$0x3] %vm1247_vm8, %v1242_v14 }
 0x1a7   : > { %v1582_v18 = vpop.eup %1581 }
 0x1a8   : > { %v1244_v19 = vmul.f32 %v1582_v18, %v1580_v15 }
 0x1aa   : > { %v1254_v20 = vrot.slane %v1244_v19, %v1253_v16  ;;  %v1258_v21 = vrot.slane %v1244_v19, %v1257_v17 }
 0x1ac   : > { %v1522_v41 = vpack.c.bf16 %v1258_v21, %v1254_v20 }
 0x1ae   : > { %v1272_v22 = vrot.slane %v1522_v41, %v1769_v60 }
 0x1b0   : > { %v1279_v25 = vrot.slane %v1272_v22, %v1769_v60 }
 0x1b2   : > { %v1289_v51 = vsel %vm1287_vm15, %v1279_v25, %v1288_v23  ;;  %v1292_v27 = vsel %vm1287_vm15, %v1279_v25, %v1291_v24 }
 0x1b3   : > { %1290 = vst [vmem:[#allocation2] sm:$0x3] %v1289_v51  ;;  %1293 = vst [vmem:[%s1679_s28] sm:$0x3] %v1292_v27 }
 0x1b4 PF: > { %s12_s13 = sadd.s32 1, %s1621_s13   ;;  %s2126_s9 = smov %s1613_s11 }
 0x1b5   : > { %p9_p8 = scmp.ge.s32.totalorder %s12_s13, 6   ;;  %s2127_s10 = smov %s1617_s12 }
 0x1b6   : > { %s2128_s11 = smov %s2131_s14  ;;  %s2129_s12 = smov %s2135_s15 }
 0x1b7   :  { %11 = sbr.rel (!%p9_p8) target bundleno = 3 (0x3), region = 62 }

// kernel: deep_eye_forward.18
= control target key start
LH: loop header
LB: loop body
LE: loop exit
PB: predicated region body
PF: predicated region fallthrough
CT: control target
= control target key end

     0   :  { %s2040_s12 = smov 0   ;;  %s2042_s13 = smov 0   ;;  %s2452_s0 = inlined_call_operand.vmem [shape: bf16[64,576], index: 0, kind: input, shape index: {}]   ;;  %s2453_s1 = inlined_call_operand.vmem [shape: bf16[576,512], index: 1, kind: input, shape index: {}]   ;;  %s2454_s2 = inlined_call_operand.vmem [shape: f32[1,512], index: 2, kind: input, shape index: {}]   ;;  %s2455_s3 = inlined_call_operand.vmem [shape: bf16[64,512], index: 3, kind: output, shape index: {}]  }
   0x1   :  { %s2044_s14 = smov 0   ;;  %s2046_s15 = smov 0  }
   0x2   :  { %s2048_s16 = smov 0  }
   0x3 LB: > { %s22_s17 = sadd.s32 1, %s2013_s15  ;;  %s1583_s18 = sadd.s32 4294967295, %s2017_s16   ;;  %s2017_s16 = sphi %s2048_s16, %s13_s16   ;;  %s2013_s15 = sphi %s2046_s15, %s2460_s15   ;;  %s2009_s14 = sphi %s2044_s14, %s2459_s14   ;;  %s2005_s13 = sphi %s2042_s13, %s2458_s13   ;;  %s2001_s12 = sphi %s2040_s12, %s2457_s12  }
   0x4   : > { %p23_p0 = scmp.ge.s32.totalorder %s22_s17, 2  ;;  %p65_p1 = scmp.ne.s32.totalorder %s2005_s13, %s2001_s12 }
   0x5   : > { %p66_p2 = scmp.eq.s32.totalorder %s2017_s16, 0  ;;  %p123_p4 = scmp.eq.s32.totalorder %s1583_s18, 1 }
   0x6   : > { %s2462_s17 = smov (%p23_p0, %s22_s17), 0  ;;  %s58_s20 = sadd.s32 1, %s2005_s13 }
   0x7   : > { %p67_p3 = por %p66_p2, %p65_p1  ;;  %s55_s19 = ssub.s32 %s2013_s15, %s2462_s17 }
   0x8   : > { %p56_p5 = scmp.eq.s32.totalorder %s55_s19, 0  ;;  %p2075_p6 = por %p123_p4, %p65_p1 }
   0x9   : > { %p1587_p7 = scmp.ge.s32.totalorder %s2017_s16, 2 }
   0xa   : > { %s2080_s22 = scalar_select %p56_p5, %s2005_s13, %s58_s20  }
   0xb   : > { %155 = sbr.rel (%p1587_p7) target bundleno = 58 (0x3a), region = 20 }
  0x12   : > { %158 = sbr.rel (!%p67_p3) target bundleno = 58 (0x3a), region = 24  ;;  %s160_s23 = sand.u32 (%p67_p3), 1, %s2005_s13  }
  0x13   : > { %s1702_s24 = sshll.u32 (%p67_p3), %s2013_s15, 3  ;;  %s1768_s25 = smul.u32 (%p67_p3), 576, %s160_s23 }
  0x14   : > { %s2088_s28 = scalar_lea.vmem (%p67_p3), %s2453_s1, %s1702_s24 }
  0x15   : > { %v335_v0 = vld [vmem:[%s2088_s28] sm:$0xff] (%p67_p3)  ;;  %v337_v1 = vld [vmem:[%s2088_s28 + $0x10] sm:$0xff] (%p67_p3)  ;;  %s2096_s29 = scalar_lea.vmem (%p67_p3), [#allocation2], %s1768_s25 }
  0x16   : > { %v339_v2 = vld [vmem:[%s2088_s28 + $0x20] sm:$0xff] (%p67_p3)  ;;  %v341_v3 = vld [vmem:[%s2088_s28 + $0x30] sm:$0xff] (%p67_p3)  ;;  %336 = vst [vmem:[%s2096_s29] sm:$0xff] (%p67_p3), %v335_v0  ;;  %338 = vst [vmem:[%s2096_s29 + $0x8] sm:$0xff] (%p67_p3), %v337_v1 }
  0x17   : > { %v343_v4 = vld [vmem:[%s2088_s28 + $0x40] sm:$0xff] (%p67_p3)  ;;  %v345_v5 = vld [vmem:[%s2088_s28 + $0x50] sm:$0xff] (%p67_p3)  ;;  %340 = vst [vmem:[%s2096_s29 + $0x10] sm:$0xff] (%p67_p3), %v339_v2  ;;  %342 = vst [vmem:[%s2096_s29 + $0x18] sm:$0xff] (%p67_p3), %v341_v3 }
  0x18   : > { %344 = vst [vmem:[%s2096_s29 + $0x20] sm:$0xff] (%p67_p3), %v343_v4  ;;  %346 = vst [vmem:[%s2096_s29 + $0x28] sm:$0xff] (%p67_p3), %v345_v5  ;;  %v347_v6 = vld [vmem:[%s2088_s28 + $0x60] sm:$0xff] (%p67_p3)  ;;  %v349_v7 = vld [vmem:[%s2088_s28 + $0x70] sm:$0xff] (%p67_p3) }
  0x19   : > { %v351_v8 = vld [vmem:[%s2088_s28 + $0x80] sm:$0xff]  ;;  %348 = vst [vmem:[%s2096_s29 + $0x30] sm:$0xff] %v347_v6  ;;  %350 = vst [vmem:[%s2096_s29 + $0x38] sm:$0xff] %v349_v7  ;;  %v353_v9 = vld [vmem:[%s2088_s28 + $0x90] sm:$0xff] }
  0x1a   : > { %352 = vst [vmem:[%s2096_s29 + $0x40] sm:$0xff] %v351_v8  ;;  %v355_v10 = vld [vmem:[%s2088_s28 + $0xa0] sm:$0xff]  ;;  %v357_v11 = vld [vmem:[%s2088_s28 + $0xb0] sm:$0xff]  ;;  %354 = vst [vmem:[%s2096_s29 + $0x48] sm:$0xff] %v353_v9 }
  0x1b   : > { %356 = vst [vmem:[%s2096_s29 + $0x50] sm:$0xff] %v355_v10  ;;  %358 = vst [vmem:[%s2096_s29 + $0x58] sm:$0xff] %v357_v11  ;;  %v359_v12 = vld [vmem:[%s2088_s28 + $0xc0] sm:$0xff]  ;;  %v361_v13 = vld [vmem:[%s2088_s28 + $0xd0] sm:$0xff] }
  0x1c   : > { %v363_v14 = vld [vmem:[%s2088_s28 + $0xe0] sm:$0xff]  ;;  %360 = vst [vmem:[%s2096_s29 + $0x60] sm:$0xff] %v359_v12  ;;  %362 = vst [vmem:[%s2096_s29 + $0x68] sm:$0xff] %v361_v13  ;;  %v365_v15 = vld [vmem:[%s2088_s28 + $0xf0] sm:$0xff] }
  0x1d   : > { %364 = vst [vmem:[%s2096_s29 + $0x70] sm:$0xff] %v363_v14  ;;  %v367_v16 = vld [vmem:[%s2088_s28 + $0x100] sm:$0xff]  ;;  %v369_v17 = vld [vmem:[%s2088_s28 + $0x110] sm:$0xff]  ;;  %366 = vst [vmem:[%s2096_s29 + $0x78] sm:$0xff] %v365_v15 }
  0x1e   : > { %368 = vst [vmem:[%s2096_s29 + $0x80] sm:$0xff] %v367_v16  ;;  %370 = vst [vmem:[%s2096_s29 + $0x88] sm:$0xff] %v369_v17  ;;  %v371_v18 = vld [vmem:[%s2088_s28 + $0x120] sm:$0xff]  ;;  %v373_v19 = vld [vmem:[%s2088_s28 + $0x130] sm:$0xff] }
  0x1f   : > { %v375_v20 = vld [vmem:[%s2088_s28 + $0x140] sm:$0xff]  ;;  %372 = vst [vmem:[%s2096_s29 + $0x90] sm:$0xff] %v371_v18  ;;  %374 = vst [vmem:[%s2096_s29 + $0x98] sm:$0xff] %v373_v19  ;;  %v377_v21 = vld [vmem:[%s2088_s28 + $0x150] sm:$0xff] }
  0x20   : > { %376 = vst [vmem:[%s2096_s29 + $0xa0] sm:$0xff] %v375_v20  ;;  %v379_v22 = vld [vmem:[%s2088_s28 + $0x160] sm:$0xff]  ;;  %v381_v23 = vld [vmem:[%s2088_s28 + $0x170] sm:$0xff]  ;;  %378 = vst [vmem:[%s2096_s29 + $0xa8] sm:$0xff] %v377_v21 }
  0x21   : > { %380 = vst [vmem:[%s2096_s29 + $0xb0] sm:$0xff] %v379_v22  ;;  %382 = vst [vmem:[%s2096_s29 + $0xb8] sm:$0xff] %v381_v23  ;;  %v383_v24 = vld [vmem:[%s2088_s28 + $0x180] sm:$0xff]  ;;  %v385_v25 = vld [vmem:[%s2088_s28 + $0x190] sm:$0xff] }
  0x22   : > { %v387_v26 = vld [vmem:[%s2088_s28 + $0x1a0] sm:$0xff]  ;;  %384 = vst [vmem:[%s2096_s29 + $0xc0] sm:$0xff] %v383_v24  ;;  %386 = vst [vmem:[%s2096_s29 + $0xc8] sm:$0xff] %v385_v25  ;;  %v389_v27 = vld [vmem:[%s2088_s28 + $0x1b0] sm:$0xff] }
  0x23   : > { %388 = vst [vmem:[%s2096_s29 + $0xd0] sm:$0xff] %v387_v26  ;;  %v391_v28 = vld [vmem:[%s2088_s28 + $0x1c0] sm:$0xff]  ;;  %v393_v29 = vld [vmem:[%s2088_s28 + $0x1d0] sm:$0xff]  ;;  %390 = vst [vmem:[%s2096_s29 + $0xd8] sm:$0xff] %v389_v27 }
  0x24   : > { %392 = vst [vmem:[%s2096_s29 + $0xe0] sm:$0xff] %v391_v28  ;;  %394 = vst [vmem:[%s2096_s29 + $0xe8] sm:$0xff] %v393_v29  ;;  %v395_v30 = vld [vmem:[%s2088_s28 + $0x1e0] sm:$0xff]  ;;  %v397_v31 = vld [vmem:[%s2088_s28 + $0x1f0] sm:$0xff] }
  0x25   : > { %v399_v32 = vld [vmem:[%s2088_s28 + $0x200] sm:$0xff]  ;;  %396 = vst [vmem:[%s2096_s29 + $0xf0] sm:$0xff] %v395_v30  ;;  %398 = vst [vmem:[%s2096_s29 + $0xf8] sm:$0xff] %v397_v31  ;;  %v401_v33 = vld [vmem:[%s2088_s28 + $0x210] sm:$0xff] }
  0x26   : > { %400 = vst [vmem:[%s2096_s29 + $0x100] sm:$0xff] %v399_v32  ;;  %v403_v34 = vld [vmem:[%s2088_s28 + $0x220] sm:$0xff]  ;;  %v405_v35 = vld [vmem:[%s2088_s28 + $0x230] sm:$0xff]  ;;  %402 = vst [vmem:[%s2096_s29 + $0x108] sm:$0xff] %v401_v33 }
  0x27   : > { %404 = vst [vmem:[%s2096_s29 + $0x110] sm:$0xff] %v403_v34  ;;  %406 = vst [vmem:[%s2096_s29 + $0x118] sm:$0xff] %v405_v35  ;;  %v407_v36 = vld [vmem:[%s2088_s28 + $0x240] sm:$0xff]  ;;  %v409_v37 = vld [vmem:[%s2088_s28 + $0x250] sm:$0xff] }
  0x28   : > { %v411_v38 = vld [vmem:[%s2088_s28 + $0x260] sm:$0xff]  ;;  %408 = vst [vmem:[%s2096_s29 + $0x120] sm:$0xff] %v407_v36  ;;  %410 = vst [vmem:[%s2096_s29 + $0x128] sm:$0xff] %v409_v37  ;;  %v413_v39 = vld [vmem:[%s2088_s28 + $0x270] sm:$0xff] }
  0x29   : > { %412 = vst [vmem:[%s2096_s29 + $0x130] sm:$0xff] %v411_v38  ;;  %v415_v40 = vld [vmem:[%s2088_s28 + $0x280] sm:$0xff]  ;;  %v417_v41 = vld [vmem:[%s2088_s28 + $0x290] sm:$0xff]  ;;  %414 = vst [vmem:[%s2096_s29 + $0x138] sm:$0xff] %v413_v39 }
  0x2a   : > { %416 = vst [vmem:[%s2096_s29 + $0x140] sm:$0xff] %v415_v40  ;;  %418 = vst [vmem:[%s2096_s29 + $0x148] sm:$0xff] %v417_v41  ;;  %v419_v42 = vld [vmem:[%s2088_s28 + $0x2a0] sm:$0xff]  ;;  %v421_v43 = vld [vmem:[%s2088_s28 + $0x2b0] sm:$0xff] }
  0x2b   : > { %v423_v44 = vld [vmem:[%s2088_s28 + $0x2c0] sm:$0xff]  ;;  %420 = vst [vmem:[%s2096_s29 + $0x150] sm:$0xff] %v419_v42  ;;  %422 = vst [vmem:[%s2096_s29 + $0x158] sm:$0xff] %v421_v43  ;;  %v425_v45 = vld [vmem:[%s2088_s28 + $0x2d0] sm:$0xff] }
  0x2c   : > { %424 = vst [vmem:[%s2096_s29 + $0x160] sm:$0xff] %v423_v44  ;;  %v427_v46 = vld [vmem:[%s2088_s28 + $0x2e0] sm:$0xff]  ;;  %v429_v47 = vld [vmem:[%s2088_s28 + $0x2f0] sm:$0xff]  ;;  %426 = vst [vmem:[%s2096_s29 + $0x168] sm:$0xff] %v425_v45 }
  0x2d   : > { %428 = vst [vmem:[%s2096_s29 + $0x170] sm:$0xff] %v427_v46  ;;  %430 = vst [vmem:[%s2096_s29 + $0x178] sm:$0xff] %v429_v47  ;;  %v431_v48 = vld [vmem:[%s2088_s28 + $0x300] sm:$0xff]  ;;  %v433_v49 = vld [vmem:[%s2088_s28 + $0x310] sm:$0xff] }
  0x2e   : > { %v435_v50 = vld [vmem:[%s2088_s28 + $0x320] sm:$0xff]  ;;  %432 = vst [vmem:[%s2096_s29 + $0x180] sm:$0xff] %v431_v48  ;;  %434 = vst [vmem:[%s2096_s29 + $0x188] sm:$0xff] %v433_v49  ;;  %v437_v51 = vld [vmem:[%s2088_s28 + $0x330] sm:$0xff] }
  0x2f   : > { %436 = vst [vmem:[%s2096_s29 + $0x190] sm:$0xff] %v435_v50  ;;  %v439_v52 = vld [vmem:[%s2088_s28 + $0x340] sm:$0xff]  ;;  %v441_v53 = vld [vmem:[%s2088_s28 + $0x350] sm:$0xff]  ;;  %438 = vst [vmem:[%s2096_s29 + $0x198] sm:$0xff] %v437_v51 }
  0x30   : > { %440 = vst [vmem:[%s2096_s29 + $0x1a0] sm:$0xff] %v439_v52  ;;  %442 = vst [vmem:[%s2096_s29 + $0x1a8] sm:$0xff] %v441_v53  ;;  %v443_v54 = vld [vmem:[%s2088_s28 + $0x360] sm:$0xff]  ;;  %v445_v55 = vld [vmem:[%s2088_s28 + $0x370] sm:$0xff] }
  0x31   : > { %v447_v56 = vld [vmem:[%s2088_s28 + $0x380] sm:$0xff]  ;;  %444 = vst [vmem:[%s2096_s29 + $0x1b0] sm:$0xff] %v443_v54  ;;  %446 = vst [vmem:[%s2096_s29 + $0x1b8] sm:$0xff] %v445_v55  ;;  %v449_v57 = vld [vmem:[%s2088_s28 + $0x390] sm:$0xff] }
  0x32   : > { %448 = vst [vmem:[%s2096_s29 + $0x1c0] sm:$0xff] %v447_v56  ;;  %v451_v58 = vld [vmem:[%s2088_s28 + $0x3a0] sm:$0xff]  ;;  %v453_v59 = vld [vmem:[%s2088_s28 + $0x3b0] sm:$0xff]  ;;  %450 = vst [vmem:[%s2096_s29 + $0x1c8] sm:$0xff] %v449_v57 }
  0x33   : > { %452 = vst [vmem:[%s2096_s29 + $0x1d0] sm:$0xff] %v451_v58  ;;  %454 = vst [vmem:[%s2096_s29 + $0x1d8] sm:$0xff] %v453_v59  ;;  %v455_v60 = vld [vmem:[%s2088_s28 + $0x3c0] sm:$0xff]  ;;  %v457_v61 = vld [vmem:[%s2088_s28 + $0x3d0] sm:$0xff] }
  0x34   : > { %v459_v62 = vld [vmem:[%s2088_s28 + $0x3e0] sm:$0xff]  ;;  %456 = vst [vmem:[%s2096_s29 + $0x1e0] sm:$0xff] %v455_v60  ;;  %458 = vst [vmem:[%s2096_s29 + $0x1e8] sm:$0xff] %v457_v61  ;;  %v461_v63 = vld [vmem:[%s2088_s28 + $0x3f0] sm:$0xff] }
  0x35   : > { %460 = vst [vmem:[%s2096_s29 + $0x1f0] sm:$0xff] %v459_v62  ;;  %v463_v0 = vld [vmem:[%s2088_s28 + $0x400] sm:$0xff]  ;;  %v465_v1 = vld [vmem:[%s2088_s28 + $0x410] sm:$0xff]  ;;  %462 = vst [vmem:[%s2096_s29 + $0x1f8] sm:$0xff] %v461_v63 }
  0x36   : > { %464 = vst [vmem:[%s2096_s29 + $0x200] sm:$0xff] %v463_v0  ;;  %466 = vst [vmem:[%s2096_s29 + $0x208] sm:$0xff] %v465_v1  ;;  %v467_v2 = vld [vmem:[%s2088_s28 + $0x420] sm:$0xff]  ;;  %v469_v3 = vld [vmem:[%s2088_s28 + $0x430] sm:$0xff] }
  0x37   : > { %v471_v4 = vld [vmem:[%s2088_s28 + $0x440] sm:$0xff]  ;;  %468 = vst [vmem:[%s2096_s29 + $0x210] sm:$0xff] %v467_v2  ;;  %470 = vst [vmem:[%s2096_s29 + $0x218] sm:$0xff] %v469_v3  ;;  %v473_v5 = vld [vmem:[%s2088_s28 + $0x450] sm:$0xff] }
  0x38   : > { %472 = vst [vmem:[%s2096_s29 + $0x220] sm:$0xff] %v471_v4  ;;  %v475_v6 = vld [vmem:[%s2088_s28 + $0x460] sm:$0xff]  ;;  %v477_v7 = vld [vmem:[%s2088_s28 + $0x470] sm:$0xff]  ;;  %474 = vst [vmem:[%s2096_s29 + $0x228] sm:$0xff] %v473_v5 }
  0x39   : > { %476 = vst [vmem:[%s2096_s29 + $0x230] sm:$0xff] %v475_v6  ;;  %478 = vst [vmem:[%s2096_s29 + $0x238] sm:$0xff] %v477_v7 }
  0x3a PF: > { %p1590_p8 = scmp.ge.s32.totalorder %s2017_s16, 1  ;;  %p491_p9 = scmp.lt.s32.totalorder %s2017_s16, 3 }
  0x3c   : > { %p492_p10 = pnand %p1590_p8, %p491_p9 }
  0x3d   : > { %s498_s30 = sand.u32 (!%p492_p10), 1, %s2001_s12   ;;  %v1909_v8 = vld [vmem:[%s2452_s0 + $0x4] ss:$20 sps:$4 sm:$0xff] (!%p492_p10)   ;;  %v1912_v9 = vld [vmem:[%s2452_s0 + $0xc] ss:$20 sps:$4 sm:$0xff] (!%p492_p10)   ;;  %vm1114_vm0 = vcmask (!%p492_p10), 523264  }
  0x3e   : > { %495 = sbr.rel (%p492_p10) target bundleno = 415 (0x19f), region = 66  ;;  %1159 = vmatprep.mubr.bf16.mxu1 (!%p492_p10), %v1909_v8  ;;  %1232 = vmatprep.mubr.bf16.mxu0 (!%p492_p10), %v1912_v9  ;;  %s1592_s11 = sshll.u32 (!%p492_p10), %s2009_s14, 1 }
  0x3f   : > { %s1769_s4 = smul.u32 (!%p492_p10), 576, %s498_s30  ;;  %p539_p11 = scmp.lt.s32.totalorder (!%p492_p10), %s1592_s11, 3 }
  0x40   : > { %s1591_s23 = sshll.u32 (!%p492_p10), %s498_s30, 6 }
  0x41   : > { %s2247_s9 = scalar_lea.vmem (!%p492_p10), [#allocation2], %s1769_s4  ;;  %s2413_s24 = scalar_lea.vmem (!%p492_p10), [#allocation3], %s1591_s23 }
  0x42   : > { %v1811_v10 = vld [vmem:[%s2247_s9 + $0x4] ss:$8 sps:$4 sm:$0xff] (!%p492_p10)   ;;  %v1815_v12 = vld [vmem:[%s2247_s9] ss:$8 sps:$4 sm:$0xff] (!%p492_p10)   ;;  %v1817_v14 = vld [vmem:[%s2247_s9 + $0x14] ss:$8 sps:$4 sm:$0xff] (!%p492_p10)  }
  0x43   : > { %v1813_v11 = vld [vmem:[%s2247_s9 + $0x104] ss:$8 sps:$4 sm:$0xff] (!%p492_p10)   ;;  %1127 = vmatprep.subr.bf16.mxu1 (!%p492_p10), %v1811_v10  ;;  %v1816_v13 = vld [vmem:[%s2247_s9 + $0x100] ss:$8 sps:$4 sm:$0xff] (!%p492_p10)   ;;  %v1819_v15 = vld [vmem:[%s2247_s9 + $0x114] ss:$8 sps:$4 sm:$0xff] (!%p492_p10)  }
  0x44   : > { %1200 = vmatprep.subr.bf16.mxu0 (!%p492_p10), %v1813_v11  ;;  %1128 = vmatpush1.bf16.msra.mxu1 (!%p492_p10), %v1815_v12  ;;  %v1821_v16 = vld [vmem:[%s2247_s9 + $0x10] ss:$8 sps:$4 sm:$0xff] (!%p492_p10)   ;;  %v1823_v18 = vld [vmem:[%s2247_s9 + $0x24] ss:$8 sps:$4 sm:$0xff] (!%p492_p10)   ;;  %v1827_v20 = vld [vmem:[%s2247_s9 + $0x20] ss:$8 sps:$4 sm:$0xff] (!%p492_p10)  }
  0x45   : > { %1201 = vmatpush1.bf16.msra.mxu0 %v1816_v13  ;;  %1129 = vmatprep.subr.bf16.mxu1 %v1817_v14  ;;  %v1822_v17 = vld [vmem:[%s2247_s9 + $0x110] ss:$8 sps:$4 sm:$0xff]   ;;  %v1825_v19 = vld [vmem:[%s2247_s9 + $0x124] ss:$8 sps:$4 sm:$0xff]   ;;  %v1828_v21 = vld [vmem:[%s2247_s9 + $0x120] ss:$8 sps:$4 sm:$0xff]  }
  0x46   : > { %1202 = vmatprep.subr.bf16.mxu0 %v1819_v15  ;;  %v1829_v22 = vld [vmem:[%s2247_s9 + $0x34] ss:$8 sps:$4 sm:$0xff]   ;;  %v1833_v24 = vld [vmem:[%s2247_s9 + $0x30] ss:$8 sps:$4 sm:$0xff]   ;;  %v1835_v26 = vld [vmem:[%s2247_s9 + $0x44] ss:$8 sps:$4 sm:$0xff]  }
  0x47   : > { %v1831_v23 = vld [vmem:[%s2247_s9 + $0x134] ss:$8 sps:$4 sm:$0xff]   ;;  %v1834_v25 = vld [vmem:[%s2247_s9 + $0x130] ss:$8 sps:$4 sm:$0xff]   ;;  %v1837_v27 = vld [vmem:[%s2247_s9 + $0x144] ss:$8 sps:$4 sm:$0xff]  }
  0x48   : > { %1130 = vmatpush1.bf16.msra.mxu1 %v1821_v16  ;;  %v1839_v28 = vld [vmem:[%s2247_s9 + $0x40] ss:$8 sps:$4 sm:$0xff]   ;;  %v1841_v30 = vld [vmem:[%s2247_s9 + $0x54] ss:$8 sps:$4 sm:$0xff]   ;;  %v1845_v32 = vld [vmem:[%s2247_s9 + $0x50] ss:$8 sps:$4 sm:$0xff]  }
  0x49   : > { %1203 = vmatpush1.bf16.msra.mxu0 %v1822_v17  ;;  %1131 = vmatprep.subr.bf16.mxu1 %v1823_v18  ;;  %v1840_v29 = vld [vmem:[%s2247_s9 + $0x140] ss:$8 sps:$4 sm:$0xff]   ;;  %v1843_v31 = vld [vmem:[%s2247_s9 + $0x154] ss:$8 sps:$4 sm:$0xff]   ;;  %v1846_v33 = vld [vmem:[%s2247_s9 + $0x150] ss:$8 sps:$4 sm:$0xff]  }
  0x4a   : > { %1204 = vmatprep.subr.bf16.mxu0 %v1825_v19  ;;  %v1847_v34 = vld [vmem:[%s2247_s9 + $0x64] ss:$8 sps:$4 sm:$0xff]   ;;  %v1851_v36 = vld [vmem:[%s2247_s9 + $0x60] ss:$8 sps:$4 sm:$0xff]   ;;  %v1853_v38 = vld [vmem:[%s2247_s9 + $0x74] ss:$8 sps:$4 sm:$0xff]  }
  0x4b   : > { %v1849_v35 = vld [vmem:[%s2247_s9 + $0x164] ss:$8 sps:$4 sm:$0xff]   ;;  %v1852_v37 = vld [vmem:[%s2247_s9 + $0x160] ss:$8 sps:$4 sm:$0xff]   ;;  %v1855_v39 = vld [vmem:[%s2247_s9 + $0x174] ss:$8 sps:$4 sm:$0xff]  }
  0x4c   : > { %1132 = vmatpush1.bf16.msra.mxu1 %v1827_v20  ;;  %v1857_v40 = vld [vmem:[%s2247_s9 + $0x70] ss:$8 sps:$4 sm:$0xff]   ;;  %v1859_v42 = vld [vmem:[%s2247_s9 + $0x84] ss:$8 sps:$4 sm:$0xff]   ;;  %v1863_v44 = vld [vmem:[%s2247_s9 + $0x80] ss:$8 sps:$4 sm:$0xff]  }
  0x4d   : > { %1205 = vmatpush1.bf16.msra.mxu0 %v1828_v21  ;;  %1133 = vmatprep.subr.bf16.mxu1 %v1829_v22  ;;  %v1858_v41 = vld [vmem:[%s2247_s9 + $0x170] ss:$8 sps:$4 sm:$0xff]   ;;  %v1861_v43 = vld [vmem:[%s2247_s9 + $0x184] ss:$8 sps:$4 sm:$0xff]   ;;  %v1864_v45 = vld [vmem:[%s2247_s9 + $0x180] ss:$8 sps:$4 sm:$0xff]  }
  0x4e   : > { %1206 = vmatprep.subr.bf16.mxu0 %v1831_v23  ;;  %v1865_v46 = vld [vmem:[%s2247_s9 + $0x94] ss:$8 sps:$4 sm:$0xff]   ;;  %v1869_v48 = vld [vmem:[%s2247_s9 + $0x90] ss:$8 sps:$4 sm:$0xff]   ;;  %v1871_v50 = vld [vmem:[%s2247_s9 + $0xa4] ss:$8 sps:$4 sm:$0xff]  }
  0x4f   : > { %v1867_v47 = vld [vmem:[%s2247_s9 + $0x194] ss:$8 sps:$4 sm:$0xff]   ;;  %v1870_v49 = vld [vmem:[%s2247_s9 + $0x190] ss:$8 sps:$4 sm:$0xff]   ;;  %v1873_v51 = vld [vmem:[%s2247_s9 + $0x1a4] ss:$8 sps:$4 sm:$0xff]  }
  0x50   : > { %1134 = vmatpush1.bf16.msra.mxu1 %v1833_v24  ;;  %v1875_v52 = vld [vmem:[%s2247_s9 + $0xa0] ss:$8 sps:$4 sm:$0xff]   ;;  %v1877_v54 = vld [vmem:[%s2247_s9 + $0xb4] ss:$8 sps:$4 sm:$0xff]   ;;  %v1881_v56 = vld [vmem:[%s2247_s9 + $0xb0] ss:$8 sps:$4 sm:$0xff]  }
  0x51   : > { %1207 = vmatpush1.bf16.msra.mxu0 %v1834_v25  ;;  %1135 = vmatprep.subr.bf16.mxu1 %v1835_v26  ;;  %v1876_v53 = vld [vmem:[%s2247_s9 + $0x1a0] ss:$8 sps:$4 sm:$0xff]   ;;  %v1879_v55 = vld [vmem:[%s2247_s9 + $0x1b4] ss:$8 sps:$4 sm:$0xff]   ;;  %v1882_v57 = vld [vmem:[%s2247_s9 + $0x1b0] ss:$8 sps:$4 sm:$0xff]  }
  0x52   : > { %1208 = vmatprep.subr.bf16.mxu0 %v1837_v27  ;;  %v1883_v58 = vld [vmem:[%s2247_s9 + $0xc4] ss:$8 sps:$4 sm:$0xff]   ;;  %v1887_v60 = vld [vmem:[%s2247_s9 + $0xc0] ss:$8 sps:$4 sm:$0xff]   ;;  %v1889_v62 = vld [vmem:[%s2247_s9 + $0xd4] ss:$8 sps:$4 sm:$0xff]  }
  0x53   : > { %v1885_v59 = vld [vmem:[%s2247_s9 + $0x1c4] ss:$8 sps:$4 sm:$0xff]   ;;  %v1888_v61 = vld [vmem:[%s2247_s9 + $0x1c0] ss:$8 sps:$4 sm:$0xff]   ;;  %v1891_v63 = vld [vmem:[%s2247_s9 + $0x1d4] ss:$8 sps:$4 sm:$0xff]  }
  0x54   : > { %1136 = vmatpush1.bf16.msra.mxu1 %v1839_v28  ;;  %v1893_v0 = vld [vmem:[%s2247_s9 + $0xd0] ss:$8 sps:$4 sm:$0xff]   ;;  %v1895_v2 = vld [vmem:[%s2247_s9 + $0xe4] ss:$8 sps:$4 sm:$0xff]   ;;  %v1899_v4 = vld [vmem:[%s2247_s9 + $0xe0] ss:$8 sps:$4 sm:$0xff]  }
  0x55   : > { %1209 = vmatpush1.bf16.msra.mxu0 %v1840_v29  ;;  %1137 = vmatprep.subr.bf16.mxu1 %v1841_v30  ;;  %v1894_v1 = vld [vmem:[%s2247_s9 + $0x1d0] ss:$8 sps:$4 sm:$0xff]   ;;  %v1897_v3 = vld [vmem:[%s2247_s9 + $0x1e4] ss:$8 sps:$4 sm:$0xff]   ;;  %v1900_v5 = vld [vmem:[%s2247_s9 + $0x1e0] ss:$8 sps:$4 sm:$0xff]  }
  0x56   : > { %1210 = vmatprep.subr.bf16.mxu0 %v1843_v31  ;;  %v1901_v6 = vld [vmem:[%s2247_s9 + $0xf4] ss:$8 sps:$4 sm:$0xff]   ;;  %v1905_v8 = vld [vmem:[%s2247_s9 + $0xf0] ss:$8 sps:$4 sm:$0xff]   ;;  %v1915_v10 = vld [vmem:[%s2247_s9 + $0x204] ss:$8 sps:$4 sm:$0xff]  }
  0x57   : > { %v1903_v7 = vld [vmem:[%s2247_s9 + $0x1f4] ss:$8 sps:$4 sm:$0xff]   ;;  %v1906_v9 = vld [vmem:[%s2247_s9 + $0x1f0] ss:$8 sps:$4 sm:$0xff]   ;;  %v1913_v13 = vld [vmem:[%s2247_s9 + $0x200] ss:$8 sps:$4 sm:$0xff]  }
  0x58   : > { %1138 = vmatpush1.bf16.msra.mxu1 %v1845_v32  ;;  %v1907_v11 = vld [vmem:[%s2452_s0] ss:$20 sps:$4 sm:$0xff]   ;;  %v1910_v12 = vld [vmem:[%s2452_s0 + $0x8] ss:$20 sps:$4 sm:$0xff]   ;;  %v1922_v17 = vld [vmem:[%s2247_s9 + $0x210] ss:$8 sps:$4 sm:$0xff]  }
  0x59   : > { %1211 = vmatpush1.bf16.msra.mxu0 %v1846_v33  ;;  %1139 = vmatprep.subr.bf16.mxu1 %v1847_v34  ;;  %v1916_v14 = vld [vmem:[%s2452_s0 + $0x2c] ss:$20 sps:$4 sm:$0xff]   ;;  %v1918_v15 = vld [vmem:[%s2452_s0 + $0x34] ss:$20 sps:$4 sm:$0xff]   ;;  %v1921_v20 = vld [vmem:[%s2452_s0 + $0x30] ss:$20 sps:$4 sm:$0xff]  }
  0x5a   : > { %1212 = vmatprep.subr.bf16.mxu0 %v1849_v35  ;;  %v1924_v16 = vld [vmem:[%s2247_s9 + $0x214] ss:$8 sps:$4 sm:$0xff]   ;;  %v1933_v18 = vld [vmem:[%s2247_s9 + $0x224] ss:$8 sps:$4 sm:$0xff]   ;;  %v1931_v23 = vld [vmem:[%s2247_s9 + $0x220] ss:$8 sps:$4 sm:$0xff]  }
  0x5b   : > { %v1920_v19 = vld [vmem:[%s2452_s0 + $0x28] ss:$20 sps:$4 sm:$0xff]   ;;  %v1940_v25 = vld [vmem:[%s2247_s9 + $0x230] ss:$8 sps:$4 sm:$0xff]   ;;  %v1939_v31 = vld [vmem:[%s2452_s0 + $0x80] ss:$20 sps:$4 sm:$0xff]  }
  0x5c   : > { %1140 = vmatpush1.bf16.msra.mxu1 %v1851_v36  ;;  %v1925_v21 = vld [vmem:[%s2452_s0 + $0x54] ss:$20 sps:$4 sm:$0xff]   ;;  %v1927_v22 = vld [vmem:[%s2452_s0 + $0x5c] ss:$20 sps:$4 sm:$0xff]   ;;  %v1930_v27 = vld [vmem:[%s2452_s0 + $0x58] ss:$20 sps:$4 sm:$0xff]  }
  0x5d   : > { %1213 = vmatpush1.bf16.msra.mxu0 %v1852_v37  ;;  %1141 = vmatprep.subr.bf16.mxu1 %v1853_v38  ;;  %v1942_v24 = vld [vmem:[%s2247_s9 + $0x234] ss:$8 sps:$4 sm:$0xff]   ;;  %v1929_v26 = vld [vmem:[%s2452_s0 + $0x50] ss:$20 sps:$4 sm:$0xff]   ;;  %v1938_v30 = vld [vmem:[%s2452_s0 + $0x78] ss:$20 sps:$4 sm:$0xff]  }
  0x5e   : > { %1214 = vmatprep.subr.bf16.mxu0 %v1855_v39  ;;  %v1934_v28 = vld [vmem:[%s2452_s0 + $0x7c] ss:$20 sps:$4 sm:$0xff]   ;;  %v1936_v29 = vld [vmem:[%s2452_s0 + $0x84] ss:$20 sps:$4 sm:$0xff]   ;;  %v2019_v32 = vmov 0   ;;  %s2464_s11 = smov (!%p539_p11, %s1592_s11), 3 }
  0x5f   : > { %v1943_v33 = vld [vmem:[%s2452_s0 + $0x10] ss:$20 sps:$4 sm:$0xff]   ;;  %v1944_v34 = vld [vmem:[%s2452_s0 + $0x60] ss:$20 sps:$4 sm:$0xff]   ;;  %v1945_v35 = vld [vmem:[%s2452_s0 + $0x38] ss:$20 sps:$4 sm:$0xff]   ;;  %s541_s20 = scalar_lea.vmem %s2454_s2, %s2464_s11 }
  0x60   : > { %1142 = vmatpush1.bf16.msra.mxu1 %v1857_v40  ;;  %v1946_v36 = vld [vmem:[%s2452_s0 + $0x88] ss:$20 sps:$4 sm:$0xff]   ;;  %v644_v40 = vlaneseq  ;;  %s1711_s12 = sshll.u32 (%p2075_p6), %s2009_s14, 3 }
  0x61   : > { %1215 = vmatpush1.bf16.msra.mxu0 %v1858_v41  ;;  %1143 = vmatprep.subr.bf16.mxu1 %v1859_v42  ;;  %s1430_s25 = scalar_lea.vmem (%p2075_p6), %s2455_s3, %s1711_s12 }
  0x62   : > { %1216 = vmatprep.subr.bf16.mxu0 %v1861_v43  ;;  %v645_v42 = vshrl.u32 %v644_v40, 7 }
  0x64   : > { %1144 = vmatpush1.bf16.msra.mxu1 %v1863_v44 }
  0x65   : > { %1217 = vmatpush1.bf16.msra.mxu0 %v1864_v45  ;;  %1145 = vmatprep.subr.bf16.mxu1 %v1865_v46  ;;  %v646_v46 = vsub.s32 0, %v645_v42 }
  0x66   : > { %1218 = vmatprep.subr.bf16.mxu0 %v1867_v47 }
  0x68   : > { %1146 = vmatpush1.bf16.msra.mxu1 %v1869_v48  ;;  %v642_v48 = vld [vmem:[%s541_s20] sm:$0x3] }
  0x69   : > { %1219 = vmatpush1.bf16.msra.mxu0 %v1870_v49  ;;  %1147 = vmatprep.subr.bf16.mxu1 %v1871_v50  ;;  %v650_v49 = vsub.s32 1, %v645_v42  ;;  %v2387_v50 = vrot.slane %v642_v48, %v646_v46 }
  0x6a   : > { %1220 = vmatprep.subr.bf16.mxu0 %v1873_v51 }
  0x6b   : > { %v2389_v51 = vrot.slane %v642_v48, %v650_v49 }
  0x6c   : > { %1148 = vmatpush1.bf16.msra.mxu1 %v1875_v52 }
  0x6d   : > { %1221 = vmatpush1.bf16.msra.mxu0 %v1876_v53  ;;  %1149 = vmatprep.subr.bf16.mxu1 %v1877_v54 }
  0x6e   : > { %1222 = vmatprep.subr.bf16.mxu0 %v1879_v55 }
  0x70   : > { %1150 = vmatpush1.bf16.msra.mxu1 %v1881_v56 }
  0x71   : > { %1223 = vmatpush1.bf16.msra.mxu0 %v1882_v57  ;;  %1151 = vmatprep.subr.bf16.mxu1 %v1883_v58 }
  0x72   : > { %1224 = vmatprep.subr.bf16.mxu0 %v1885_v59 }
  0x74   : > { %1152 = vmatpush1.bf16.msra.mxu1 %v1887_v60 }
  0x75   : > { %1225 = vmatpush1.bf16.msra.mxu0 %v1888_v61  ;;  %1153 = vmatprep.subr.bf16.mxu1 %v1889_v62 }
  0x76   : > { %1226 = vmatprep.subr.bf16.mxu0 %v1891_v63 }
  0x78   : > { %1154 = vmatpush1.bf16.msra.mxu1 %v1893_v0 }
  0x79   : > { %1227 = vmatpush1.bf16.msra.mxu0 %v1894_v1  ;;  %1155 = vmatprep.subr.bf16.mxu1 %v1895_v2 }
  0x7a   : > { %1228 = vmatprep.subr.bf16.mxu0 %v1897_v3 }
  0x7c   : > { %1156 = vmatpush1.bf16.msra.mxu1 %v1899_v4 }
  0x7d   : > { %1229 = vmatpush1.bf16.msra.mxu0 %v1900_v5  ;;  %1157 = vmatprep.subr.bf16.mxu1 %v1901_v6 }
  0x7e   : > { %1230 = vmatprep.subr.bf16.mxu0 %v1903_v7 }
  0x80   : > { %1158 = vmatpush1.bf16.msra.mxu1 %v1905_v8 }
  0x81   : > { %1231 = vmatpush1.bf16.msra.mxu0 %v1906_v9  ;;  %1712 = vmatprep.subr.bf16.mxu1 %v1915_v10 }
  0x82   : > { %1273 = vmatprep.subr.bf16.mxu0 %v1915_v10 }
  0x83   : > { %1160 = vmatmul.mubr.bf16.vlgmr.msra.gmra.mrb[0].mxu1 %v1907_v11 }
  0x84   : > { %1233 = vmatmul.mubr.bf16.vlgmr.msra.gmra.mrb[0].mxu0 %v1910_v12  ;;  %1716 = vmatpush1.bf16.msra.mxu1 %v1913_v13 }
  0x85   : > { %1274 = vmatpush1.bf16.msra.mxu0 %v1913_v13  ;;  %1169 = vmatprep.mubr.bf16.mxu1 %v1916_v14 }
  0x86   : > { %1242 = vmatprep.mubr.bf16.mxu0 %v1918_v15  ;;  %1275 = vmatprep.subr.bf16.mxu0 %v1924_v16 }
  0x87   : > { %1713 = vmatprep.subr.bf16.mxu1 %v1924_v16 }
  0x88   : > { %1717 = vmatpush1.bf16.msra.mxu1 %v1922_v17 }
  0x89   : > { %1276 = vmatpush1.bf16.msra.mxu0 %v1922_v17  ;;  %1714 = vmatprep.subr.bf16.mxu1 %v1933_v18 }
  0x8a   : > { %1277 = vmatprep.subr.bf16.mxu0 %v1933_v18 }
  0x8b   : > { %1170 = vmatmul.mubr.bf16.gmra.mrb[4].mxu1 %v1920_v19 }
  0x8c   : > { %1243 = vmatmul.mubr.bf16.gmra.mrb[4].mxu0 %v1921_v20  ;;  %1179 = vmatprep.mubr.bf16.mxu1 %v1925_v21 }
  0x8d   : > { %1252 = vmatprep.mubr.bf16.mxu0 %v1927_v22  ;;  %1278 = vmatpush1.bf16.msra.mxu0 %v1931_v23 }
  0x8e   : > { %1718 = vmatpush1.bf16.msra.mxu1 %v1931_v23  ;;  %1279 = vmatprep.subr.bf16.mxu0 %v1942_v24 }
  0x8f   : > { %1715 = vmatprep.subr.bf16.mxu1 %v1942_v24 }
  0x91   : > { %1280 = vmatpush1.bf16.msra.mxu0 %v1940_v25 }
  0x92   : > { %1719 = vmatpush1.bf16.msra.mxu1 %v1940_v25 }
  0x93   : > { %1180 = vmatmul.mubr.bf16.gmra.mrb[8].mxu1 %v1929_v26 }
  0x94   : > { %1253 = vmatmul.mubr.bf16.gmra.mrb[8].mxu0 %v1930_v27  ;;  %1189 = vmatprep.mubr.bf16.mxu1 %v1934_v28 }
  0x95   : > { %1262 = vmatprep.mubr.bf16.mxu0 %v1936_v29 }
  0x9b   : > { %1190 = vmatmul.mubr.bf16.gmra.mrb[12].mxu1 %v1938_v30 }
  0x9c   : > { %1263 = vmatmul.mubr.bf16.gmra.mrb[12].mxu0 %v1939_v31  ;;  %1325 = vmatprep.mubr.bf16.mxu1 %v2019_v32 }
  0x9d   : > { %1305 = vmatprep.mubr.bf16.mxu0 %v2019_v32 }
  0xa3   : > { %1687 = vmatmul.mubr.msk.bf16.vlgmr.msra.gmra.mrb[16].mxu1 %vm1114_vm0, %v1944_v34 }
  0xa4   : > { %1685 = vmatmul.mubr.msk.bf16.vlgmr.msra.gmra.mrb[0].mxu0 %vm1114_vm0, %v1943_v33  ;;  %1335 = vmatprep.mubr.bf16.mxu1 %v2019_v32 }
  0xa5   : > { %1315 = vmatprep.mubr.bf16.mxu0 %v2019_v32 }
  0xab   : > { %1688 = vmatmul.mubr.msk.bf16.gmra.mrb[20].mxu1 %vm1114_vm0, %v1946_v36 }
  0xac   : > { %1686 = vmatmul.mubr.msk.bf16.gmra.mrb[4].mxu0 %vm1114_vm0, %v1945_v35 }
 0x156   : > { %v1161_v37 = vpop.f32.mrb[0].mxu1 }
 0x157   : > { %v1163_v38 = vpop.f32.mrb[1].mxu1  ;;  %v1162_v20 = vadd.f32 %v1161_v37, %v2387_v50 }
 0x158   : > { %v1165_v39 = vpop.f32.mrb[2].mxu1  ;;  %v1164_v21 = vadd.f32 %v1163_v38, %v2389_v51 }
 0x159   : > { %v1167_v41 = vpop.f32.mrb[3].mxu1  ;;  %v1166_v24 = vadd.f32 %v1165_v39, %v2387_v50 }
 0x15a   : > { %v1168_v29 = vadd.f32 %v1167_v41, %v2389_v51 }
 0x15e   : > { %v2376_v43 = vpop.f32.mrb[4].mxu1 }
 0x15f   : > { %v2381_v44 = vpop.f32.mrb[5].mxu1  ;;  %v1172_v39 = vadd.f32 %v2376_v43, %v2387_v50 }
 0x160   : > { %v2383_v45 = vpop.f32.mrb[6].mxu1  ;;  %v1174_v41 = vadd.f32 %v2381_v44, %v2389_v51 }
 0x161   : > { %v2385_v47 = vpop.f32.mrb[7].mxu1  ;;  %v1176_v48 = vadd.f32 %v2383_v45, %v2387_v50 }
 0x166   : > { %v1181_v52 = vpop.f32.mrb[8].mxu1 }
 0x167   : > { %v1254_v53 = vpop.f32.mrb[8].mxu0  ;;  %v1182_v54 = vadd.f32 %v1181_v52, %v2387_v50  ;;  %v1183_v55 = vpop.f32.mrb[9].mxu1 }
 0x168   : > { %v1256_v56 = vpop.f32.mrb[9].mxu0  ;;  %v1184_v57 = vadd.f32 %v1183_v55, %v2389_v51  ;;  %v1185_v58 = vpop.f32.mrb[10].mxu1  ;;  %v1178_v55 = vadd.f32 %v2385_v47, %v2389_v51 }
 0x169   : > { %v1258_v59 = vpop.f32.mrb[10].mxu0  ;;  %v1255_v60 = vadd.f32 %v1254_v53, %v1182_v54  ;;  %v1186_v61 = vadd.f32 %v1185_v58, %v2387_v50  ;;  %v1187_v62 = vpop.f32.mrb[11].mxu1 }
 0x16a   : > { %v1260_v63 = vpop.f32.mrb[11].mxu0  ;;  %v1257_v0 = vadd.f32 %v1256_v56, %v1184_v57  ;;  %v1188_v1 = vadd.f32 %v1187_v62, %v2389_v51 }
 0x16b   : > { %v1259_v2 = vadd.f32 %v1258_v59, %v1186_v61 }
 0x16c   : > { %v1261_v3 = vadd.f32 %v1260_v63, %v1188_v1 }
 0x16e   : > { %v1191_v4 = vpop.f32.mrb[12].mxu1 }
 0x16f   : > { %v1264_v5 = vpop.f32.mrb[12].mxu0  ;;  %v1192_v6 = vadd.f32 %v1191_v4, %v2387_v50  ;;  %v1193_v7 = vpop.f32.mrb[13].mxu1 }
 0x170   : > { %v1266_v8 = vpop.f32.mrb[13].mxu0  ;;  %v1194_v9 = vadd.f32 %v1193_v7, %v2389_v51  ;;  %v1195_v10 = vpop.f32.mrb[14].mxu1 }
 0x171   : > { %v1268_v11 = vpop.f32.mrb[14].mxu0  ;;  %v1265_v12 = vadd.f32 %v1264_v5, %v1192_v6  ;;  %v1196_v13 = vadd.f32 %v1195_v10, %v2387_v50  ;;  %v1197_v14 = vpop.f32.mrb[15].mxu1 }
 0x172   : > { %v1270_v15 = vpop.f32.mrb[15].mxu0  ;;  %v1267_v16 = vadd.f32 %v1266_v8, %v1194_v9  ;;  %v1198_v17 = vadd.f32 %v1197_v14, %v2389_v51 }
 0x173   : > { %v1269_v18 = vadd.f32 %v1268_v11, %v1196_v13 }
 0x174   : > { %v1271_v19 = vadd.f32 %v1270_v15, %v1198_v17 }
 0x176   : > { %v1327_v23 = vpop.f32.mrb[16].mxu1 }
 0x177   : > { %v1307_v22 = vpop.f32.mrb[0].mxu0  ;;  %v1328_v26 = vadd.f32 %v1327_v23, %v1255_v60  ;;  %v1329_v28 = vpop.f32.mrb[17].mxu1 }
 0x178   : > { %v1721_v25 = vadd.f32 %v1307_v22, %v1162_v20  ;;  %v1309_v27 = vpop.f32.mrb[1].mxu0  ;;  %v1330_v31 = vadd.f32 %v1329_v28, %v1257_v0  ;;  %v1331_v33 = vpop.f32.mrb[18].mxu1 }
 0x179   : > { %v1723_v30 = vadd.f32 %v1309_v27, %v1164_v21  ;;  %v1311_v32 = vpop.f32.mrb[2].mxu0  ;;  %v1332_v35 = vadd.f32 %v1331_v33, %v1259_v2  ;;  %v1333_v37 = vpop.f32.mrb[19].mxu1 }
 0x17a   : > { %1947 = vtanh.f32 %v1721_v25  ;;  %v1725_v34 = vadd.f32 %v1311_v32, %v1166_v24  ;;  %v1313_v36 = vpop.f32.mrb[3].mxu0  ;;  %v1334_v40 = vadd.f32 %v1333_v37, %v1261_v3 }
 0x17b   : > { %1949 = vtanh.f32 %v1328_v26  ;;  %v1727_v38 = vadd.f32 %v1313_v36, %v1168_v29 }
 0x17c   : > { %1951 = vtanh.f32 %v1723_v30 }
 0x17d   : > { %1953 = vtanh.f32 %v1330_v31 }
 0x17e   : > { %1955 = vtanh.f32 %v1725_v34  ;;  %v1337_v46 = vpop.f32.mrb[20].mxu1 }
 0x17f   : > { %1957 = vtanh.f32 %v1332_v35  ;;  %v1317_v42 = vpop.f32.mrb[4].mxu0  ;;  %v1338_v52 = vadd.f32 %v1337_v46, %v1265_v12  ;;  %v1339_v54 = vpop.f32.mrb[21].mxu1 }
 0x180   : > { %1959 = vtanh.f32 %v1727_v38  ;;  %v1729_v49 = vadd.f32 %v1317_v42, %v1172_v39  ;;  %v1319_v53 = vpop.f32.mrb[5].mxu0  ;;  %v1340_v56 = vadd.f32 %v1339_v54, %v1267_v16  ;;  %v1341_v44 = vpop.f32.mrb[22].mxu1 }
 0x181   : > { %1961 = vtanh.f32 %v1334_v40  ;;  %v1731_v43 = vadd.f32 %v1319_v53, %v1174_v41  ;;  %v1321_v57 = vpop.f32.mrb[6].mxu0  ;;  %v1342_v59 = vadd.f32 %v1341_v44, %v1269_v18  ;;  %v1343_v61 = vpop.f32.mrb[23].mxu1 }
 0x182   : > { %1963 = vtanh.f32 %v1729_v49  ;;  %v1733_v58 = vadd.f32 %v1321_v57, %v1176_v48  ;;  %v1323_v60 = vpop.f32.mrb[7].mxu0  ;;  %v1344_v50 = vadd.f32 %v1343_v61, %v1271_v19 }
 0x183   : > { %1965 = vtanh.f32 %v1338_v52  ;;  %v1735_v45 = vadd.f32 %v1323_v60, %v1178_v55 }
 0x184   : > { %v1948_v62 = vpop.eup %1947  ;;  %1967 = vtanh.f32 %v1731_v43 }
 0x185   : > { %v1950_v63 = vpop.eup %1949  ;;  %1969 = vtanh.f32 %v1340_v56 }
 0x186   : > { %v1952_v47 = vpop.eup %1951  ;;  %1971 = vtanh.f32 %v1733_v58 }
 0x187   : > { %v1954_v51 = vpop.eup %1953  ;;  %v1703_v0 = vpack.c.bf16 %v1952_v47, %v1948_v62  ;;  %1973 = vtanh.f32 %v1342_v59 }
 0x188   : > { %v1956_v1 = vpop.eup %1955  ;;  %v1707_v2 = vpack.c.bf16 %v1954_v51, %v1950_v63  ;;  %1975 = vtanh.f32 %v1735_v45 }
 0x189   : > { %v1958_v3 = vpop.eup %1957  ;;  %1410 = vst [vmem:[%s2413_s24] sm:$0xff] %v1703_v0  ;;  %1977 = vtanh.f32 %v1344_v50 }
 0x18a   : > { %v1960_v4 = vpop.eup %1959  ;;  %1414 = vst [vmem:[%s2413_s24 + $0x20] sm:$0xff] %v1707_v2 }
 0x18b   : > { %v1962_v5 = vpop.eup %1961  ;;  %v1704_v6 = vpack.c.bf16 %v1960_v4, %v1956_v1 }
 0x18c   : > { %v1964_v7 = vpop.eup %1963  ;;  %v1708_v8 = vpack.c.bf16 %v1962_v5, %v1958_v3 }
 0x18d   : > { %v1966_v9 = vpop.eup %1965  ;;  %1411 = vst [vmem:[%s2413_s24 + $0x8] sm:$0xff] %v1704_v6 }
 0x18e   : > { %v1968_v10 = vpop.eup %1967  ;;  %1415 = vst [vmem:[%s2413_s24 + $0x28] sm:$0xff] %v1708_v8 }
 0x18f   : > { %v1970_v11 = vpop.eup %1969  ;;  %v1705_v12 = vpack.c.bf16 %v1968_v10, %v1964_v7 }
 0x190   : > { %v1972_v13 = vpop.eup %1971  ;;  %v1709_v14 = vpack.c.bf16 %v1970_v11, %v1966_v9  ;;  %1424 = sbr.rel (!%p2075_p6) target bundleno = 415 (0x19f), region = 74  ;;  %v1472_v20 = vld [vmem:[%s2413_s24] sm:$0xff] (%p2075_p6) }
 0x191   : > { %v1974_v15 = vpop.eup %1973  ;;  %1412 = vst [vmem:[%s2413_s24 + $0x10] sm:$0xff] %v1705_v12  ;;  %v1480_v24 = vld [vmem:[%s2413_s24 + $0x20] sm:$0xff] (%p2075_p6)  ;;  %1473 = vst [vmem:[%s1430_s25] sm:$0xff] (%p2075_p6), %v1472_v20 }
 0x192   : > { %v1976_v16 = vpop.eup %1975  ;;  %1416 = vst [vmem:[%s2413_s24 + $0x30] sm:$0xff] %v1709_v14  ;;  %1481 = vst [vmem:[%s1430_s25 + $0x40] sm:$0xff] (%p2075_p6), %v1480_v24 }
 0x193   : > { %v1978_v17 = vpop.eup %1977  ;;  %v1706_v18 = vpack.c.bf16 %v1976_v16, %v1972_v13 }
 0x194   : > { %v1710_v19 = vpack.c.bf16 %v1978_v17, %v1974_v15  ;;  %v1474_v21 = vld [vmem:[%s2413_s24 + $0x8] sm:$0xff] (%p2075_p6) }
 0x195   : > { %1413 = vst [vmem:[%s2413_s24 + $0x18] sm:$0xff] %v1706_v18  ;;  %v1482_v25 = vld [vmem:[%s2413_s24 + $0x28] sm:$0xff] (%p2075_p6)  ;;  %1475 = vst [vmem:[%s1430_s25 + $0x10] sm:$0xff] (%p2075_p6), %v1474_v21 }
 0x196   : > { %1417 = vst [vmem:[%s2413_s24 + $0x38] sm:$0xff] %v1710_v19  ;;  %1483 = vst [vmem:[%s1430_s25 + $0x50] sm:$0xff] (%p2075_p6), %v1482_v25 }
 0x198   : > { %v1476_v22 = vld [vmem:[%s2413_s24 + $0x10] sm:$0xff] }
 0x199   : > { %1477 = vst [vmem:[%s1430_s25 + $0x20] sm:$0xff] %v1476_v22  ;;  %v1484_v26 = vld [vmem:[%s2413_s24 + $0x30] sm:$0xff] }
 0x19a   : > { %1485 = vst [vmem:[%s1430_s25 + $0x60] sm:$0xff] %v1484_v26 }
 0x19c   : > { %v1478_v23 = vld [vmem:[%s2413_s24 + $0x18] sm:$0xff] }
 0x19d   : > { %1479 = vst [vmem:[%s1430_s25 + $0x30] sm:$0xff] %v1478_v23  ;;  %v1486_v27 = vld [vmem:[%s2413_s24 + $0x38] sm:$0xff] }
 0x19e   : > { %1487 = vst [vmem:[%s1430_s25 + $0x70] sm:$0xff] %v1486_v27 }
 0x19f PF: > { %s13_s16 = sadd.s32 1, %s2017_s16   ;;  %s2457_s12 = smov %s2005_s13 }
 0x1a0   : > { %p10_p12 = scmp.ge.s32.totalorder %s13_s16, 4   ;;  %s2458_s13 = smov %s2080_s22 }
 0x1a1   : > { %s2459_s14 = smov %s2013_s15  ;;  %s2460_s15 = smov %s2462_s17 }
 0x1a2   :  { %12 = sbr.rel (!%p10_p12) target bundleno = 3 (0x3), region = 149 }

// kernel: deep_eye_forward.19
= control target key start
LH: loop header
LB: loop body
LE: loop exit
PB: predicated region body
PF: predicated region fallthrough
CT: control target
= control target key end

     0   :  { %v4042_v0 = vmov 0   ;;  %vm4044_vm0 = vmmov 0   ;;  %vm2796_vm1 = vcmask 130048   ;;  %vm2837_vm2 = vcmask 125952   ;;  %s5289_s1 = inlined_call_operand.vmem [shape: bf16[1152,16], index: 1, kind: input, shape index: {}]   ;;  %s5290_s0 = inlined_call_operand.vmem [shape: bf16[324,1152], index: 0, kind: input, shape index: {}]   ;;  %s5291_s2 = inlined_call_operand.vmem [shape: f32[1,16], index: 2, kind: input, shape index: {}]   ;;  %s5292_s3 = inlined_call_operand.vmem [shape: f32[324,16], index: 3, kind: output, shape index: {}]  }
   0x1   :  { %1755 = vmatprep.subr.bf16.mxu1 %v4042_v0  ;;  %2155 = vmatprep.subr.bf16.mxu0 %v4042_v0  ;;  %v3603_v1 = vld [vmem:[%s5289_s1] sm:$0xff]   ;;  %v3605_v3 = vld [vmem:[%s5289_s1 + $0x8] sm:$0xff]   ;;  %v3607_v5 = vld [vmem:[%s5289_s1 + $0x10] sm:$0xff]  }
   0x2   :  { %v3604_v2 = vld [vmem:[%s5289_s1 + $0x100] sm:$0xff]   ;;  %1756 = vmatpush1.bf16.msra.mxu1 %v3603_v1  ;;  %v3606_v4 = vld [vmem:[%s5289_s1 + $0x108] sm:$0xff]   ;;  %v3608_v6 = vld [vmem:[%s5289_s1 + $0x110] sm:$0xff]  }
   0x3   :  { %2156 = vmatpush1.bf16.msra.mxu0 %v3604_v2  ;;  %1757 = vmatprep.subr.bf16.mxu1 %v4042_v0  ;;  %v3609_v7 = vld [vmem:[%s5289_s1 + $0x18] sm:$0xff]   ;;  %v3611_v9 = vld [vmem:[%s5289_s1 + $0x20] sm:$0xff]   ;;  %v3613_v11 = vld [vmem:[%s5289_s1 + $0x28] sm:$0xff]  }
   0x4   :  { %2157 = vmatprep.subr.bf16.mxu0 %v4042_v0  ;;  %v3610_v8 = vld [vmem:[%s5289_s1 + $0x118] sm:$0xff]   ;;  %v3612_v10 = vld [vmem:[%s5289_s1 + $0x120] sm:$0xff]   ;;  %v3614_v12 = vld [vmem:[%s5289_s1 + $0x128] sm:$0xff]  }
   0x5   :  { %v3615_v13 = vld [vmem:[%s5289_s1 + $0x30] sm:$0xff]   ;;  %v3617_v15 = vld [vmem:[%s5289_s1 + $0x38] sm:$0xff]   ;;  %v3619_v17 = vld [vmem:[%s5289_s1 + $0x40] sm:$0xff]  }
   0x6   :  { %1758 = vmatpush1.bf16.msra.mxu1 %v3605_v3  ;;  %v3616_v14 = vld [vmem:[%s5289_s1 + $0x130] sm:$0xff]   ;;  %v3618_v16 = vld [vmem:[%s5289_s1 + $0x138] sm:$0xff]   ;;  %v3620_v18 = vld [vmem:[%s5289_s1 + $0x140] sm:$0xff]  }
   0x7   :  { %2158 = vmatpush1.bf16.msra.mxu0 %v3606_v4  ;;  %1759 = vmatprep.subr.bf16.mxu1 %v4042_v0  ;;  %v3637_v19 = vld [vmem:[%s5290_s0 + $0x4] ss:$36 sps:$4 sm:$0xff]   ;;  %v3640_v21 = vld [vmem:[%s5290_s0 + $0x14] ss:$36 sps:$4 sm:$0xff]   ;;  %v3642_v37 = vld [vmem:[%s5290_s0 + $0x4c] ss:$36 sps:$4 sm:$0xff]  }
   0x8   :  { %2159 = vmatprep.subr.bf16.mxu0 %v4042_v0  ;;  %v3621_v20 = vld [vmem:[%s5289_s1 + $0x48] sm:$0xff]   ;;  %1787 = vmatprep.mubr.bf16.mxu1 %v3637_v19  ;;  %v3623_v23 = vld [vmem:[%s5289_s1 + $0x50] sm:$0xff]   ;;  %v3625_v25 = vld [vmem:[%s5289_s1 + $0x58] sm:$0xff]  }
   0x9   :  { %v3622_v22 = vld [vmem:[%s5289_s1 + $0x148] sm:$0xff]   ;;  %2187 = vmatprep.mubr.bf16.mxu0 %v3640_v21  ;;  %v3624_v24 = vld [vmem:[%s5289_s1 + $0x150] sm:$0xff]   ;;  %v3626_v26 = vld [vmem:[%s5289_s1 + $0x158] sm:$0xff]  }
   0xa   :  { %1760 = vmatpush1.bf16.msra.mxu1 %v3607_v5  ;;  %v3627_v27 = vld [vmem:[%s5289_s1 + $0x60] sm:$0xff]   ;;  %v3629_v29 = vld [vmem:[%s5289_s1 + $0x68] sm:$0xff]   ;;  %v3631_v31 = vld [vmem:[%s5289_s1 + $0x70] sm:$0xff]  }
   0xb   :  { %2160 = vmatpush1.bf16.msra.mxu0 %v3608_v6  ;;  %1761 = vmatprep.subr.bf16.mxu1 %v4042_v0  ;;  %v3628_v28 = vld [vmem:[%s5289_s1 + $0x160] sm:$0xff]   ;;  %v3630_v30 = vld [vmem:[%s5289_s1 + $0x168] sm:$0xff]   ;;  %v3632_v32 = vld [vmem:[%s5289_s1 + $0x170] sm:$0xff]  }
   0xc   :  { %2161 = vmatprep.subr.bf16.mxu0 %v4042_v0  ;;  %v3633_v33 = vld [vmem:[%s5289_s1 + $0x78] sm:$0xff]   ;;  %v3635_v35 = vld [vmem:[%s5290_s0] ss:$36 sps:$4 sm:$0xff]   ;;  %v3638_v36 = vld [vmem:[%s5290_s0 + $0x10] ss:$36 sps:$4 sm:$0xff]  }
   0xd   :  { %v3634_v34 = vld [vmem:[%s5289_s1 + $0x178] sm:$0xff]   ;;  %v3641_v38 = vld [vmem:[%s5289_s1 + $0x180] sm:$0xff]   ;;  %v3647_v41 = vld [vmem:[%s5289_s1 + $0x188] sm:$0xff]  }
   0xe   :  { %1762 = vmatpush1.bf16.msra.mxu1 %v3609_v7  ;;  %v3644_v39 = vld [vmem:[%s5289_s1 + $0x80] sm:$0xff]   ;;  %v3648_v42 = vld [vmem:[%s5290_s0 + $0x48] ss:$36 sps:$4 sm:$0xff]   ;;  %v3649_v44 = vld [vmem:[%s5290_s0 + $0x58] ss:$36 sps:$4 sm:$0xff]  }
   0xf   :  { %2162 = vmatpush1.bf16.msra.mxu0 %v3610_v8  ;;  %1763 = vmatprep.subr.bf16.mxu1 %v4042_v0  ;;  %v3645_v40 = vld [vmem:[%s5290_s0 + $0x5c] ss:$36 sps:$4 sm:$0xff]   ;;  %v3657_v43 = vld [vmem:[%s5289_s1 + $0x88] sm:$0xff]   ;;  %v3650_v45 = vld [vmem:[%s5289_s1 + $0x190] sm:$0xff]  }
  0x10   :  { %2163 = vmatprep.subr.bf16.mxu0 %v4042_v0  ;;  %v3651_v46 = vld [vmem:[%s5290_s0 + $0x94] ss:$36 sps:$4 sm:$0xff]   ;;  %v3653_v47 = vld [vmem:[%s5290_s0 + $0xa4] ss:$36 sps:$4 sm:$0xff]   ;;  %v3659_v53 = vld [vmem:[%s5290_s0 + $0xdc] ss:$36 sps:$4 sm:$0xff]  }
  0x11   :  { %v3666_v48 = vld [vmem:[%s5289_s1 + $0x90] sm:$0xff]   ;;  %v3658_v50 = vld [vmem:[%s5289_s1 + $0x198] sm:$0xff]   ;;  %v3656_v52 = vld [vmem:[%s5290_s0 + $0xa0] ss:$36 sps:$4 sm:$0xff]  }
  0x12   :  { %1764 = vmatpush1.bf16.msra.mxu1 %v3611_v9  ;;  %v3655_v49 = vld [vmem:[%s5290_s0 + $0x90] ss:$36 sps:$4 sm:$0xff]   ;;  %v3677_v51 = vld [vmem:[%s5289_s1 + $0x98] sm:$0xff]   ;;  %v3663_v55 = vld [vmem:[%s5289_s1 + $0x1a0] sm:$0xff]  }
  0x13   :  { %2164 = vmatpush1.bf16.msra.mxu0 %v3612_v10  ;;  %1765 = vmatprep.subr.bf16.mxu1 %v4042_v0  ;;  %v3661_v54 = vld [vmem:[%s5290_s0 + $0xec] ss:$36 sps:$4 sm:$0xff]   ;;  %v3690_v56 = vld [vmem:[%s5289_s1 + $0xa0] sm:$0xff]   ;;  %v3664_v57 = vld [vmem:[%s5290_s0 + $0xd8] ss:$36 sps:$4 sm:$0xff]  }
  0x14   :  { %2165 = vmatprep.subr.bf16.mxu0 %v4042_v0  ;;  %v3667_v58 = vld [vmem:[%s5289_s1 + $0x1a8] sm:$0xff]   ;;  %v3670_v62 = vld [vmem:[%s5290_s0 + $0x134] ss:$36 sps:$4 sm:$0xff]   ;;  %v3672_v3 = vld [vmem:[%s5290_s0 + $0x120] ss:$36 sps:$4 sm:$0xff]  }
  0x15   :  { %v3699_v59 = vld [vmem:[%s5289_s1 + $0xa8] sm:$0xff]   ;;  %v3674_v63 = vld [vmem:[%s5289_s1 + $0x1b0] sm:$0xff]   ;;  %v3682_v2 = vld [vmem:[%s5289_s1 + $0x1b8] sm:$0xff]  }
  0x16   :  { %1766 = vmatpush1.bf16.msra.mxu1 %v3613_v11  ;;  %v3665_v60 = vld [vmem:[%s5290_s0 + $0xe8] ss:$36 sps:$4 sm:$0xff]   ;;  %v3708_v1 = vld [vmem:[%s5289_s1 + $0xb0] sm:$0xff]   ;;  %v3723_v4 = vld [vmem:[%s5289_s1 + $0xb8] sm:$0xff]  }
  0x17   :  { %2166 = vmatpush1.bf16.msra.mxu0 %v3614_v12  ;;  %1767 = vmatprep.subr.bf16.mxu1 %v4042_v0  ;;  %v3668_v61 = vld [vmem:[%s5290_s0 + $0x124] ss:$36 sps:$4 sm:$0xff]   ;;  %v3673_v5 = vld [vmem:[%s5290_s0 + $0x130] ss:$36 sps:$4 sm:$0xff]   ;;  %v3678_v7 = vld [vmem:[%s5290_s0 + $0x17c] ss:$36 sps:$4 sm:$0xff]  }
  0x18   :  { %2167 = vmatprep.subr.bf16.mxu0 %v4042_v0  ;;  %v3675_v6 = vld [vmem:[%s5290_s0 + $0x16c] ss:$36 sps:$4 sm:$0xff]   ;;  %v3683_v8 = vld [vmem:[%s5289_s1 + $0x1c0] sm:$0xff]   ;;  %v3700_v19 = vld [vmem:[%s5289_s1 + $0x1d8] sm:$0xff]  }
  0x19   :  { %v3732_v9 = vld [vmem:[%s5289_s1 + $0xc0] sm:$0xff]   ;;  %v3691_v10 = vld [vmem:[%s5289_s1 + $0x1c8] sm:$0xff]  }
  0x1a   :  { %1768 = vmatpush1.bf16.msra.mxu1 %v3615_v13  ;;  %v3680_v11 = vld [vmem:[%s5290_s0 + $0x168] ss:$36 sps:$4 sm:$0xff]   ;;  %v3681_v13 = vld [vmem:[%s5290_s0 + $0x178] ss:$36 sps:$4 sm:$0xff]   ;;  %v3689_v21 = vld [vmem:[%s5290_s0 + $0x1c0] ss:$36 sps:$4 sm:$0xff]  }
  0x1b   :  { %2168 = vmatpush1.bf16.msra.mxu0 %v3616_v14  ;;  %1769 = vmatprep.subr.bf16.mxu1 %v4042_v0  ;;  %v3739_v12 = vld [vmem:[%s5289_s1 + $0xc8] sm:$0xff]   ;;  %v3684_v14 = vld [vmem:[%s5290_s0 + $0x1b4] ss:$36 sps:$4 sm:$0xff]  }
  0x1c   :  { %2169 = vmatprep.subr.bf16.mxu0 %v4042_v0 }
  0x1e   :  { %1770 = vmatpush1.bf16.msra.mxu1 %v3617_v15  ;;  %v3686_v15 = vld [vmem:[%s5290_s0 + $0x1c4] ss:$36 sps:$4 sm:$0xff]  }
  0x1f   :  { %2170 = vmatpush1.bf16.msra.mxu0 %v3618_v16  ;;  %1771 = vmatprep.subr.bf16.mxu1 %v4042_v0  ;;  %v3698_v16 = vld [vmem:[%s5289_s1 + $0x1d0] sm:$0xff]  }
  0x20   :  { %2171 = vmatprep.subr.bf16.mxu0 %v4042_v0 }
  0x22   :  { %1772 = vmatpush1.bf16.msra.mxu1 %v3619_v17  ;;  %v3752_v17 = vld [vmem:[%s5289_s1 + $0xd0] sm:$0xff]  }
  0x23   :  { %2172 = vmatpush1.bf16.msra.mxu0 %v3620_v18  ;;  %1773 = vmatprep.subr.bf16.mxu1 %v4042_v0  ;;  %v3688_v18 = vld [vmem:[%s5290_s0 + $0x1b0] ss:$36 sps:$4 sm:$0xff]  }
  0x24   :  { %2173 = vmatprep.subr.bf16.mxu0 %v4042_v0 }
  0x26   :  { %1774 = vmatpush1.bf16.msra.mxu1 %v3621_v20  ;;  %v3760_v20 = vld [vmem:[%s5289_s1 + $0xd8] sm:$0xff]  }
  0x27   :  { %2174 = vmatpush1.bf16.msra.mxu0 %v3622_v22  ;;  %1775 = vmatprep.subr.bf16.mxu1 %v4042_v0  ;;  %v3692_v22 = vld [vmem:[%s5290_s0 + $0x1fc] ss:$36 sps:$4 sm:$0xff]  }
  0x28   :  { %2175 = vmatprep.subr.bf16.mxu0 %v4042_v0 }
  0x2a   :  { %1776 = vmatpush1.bf16.msra.mxu1 %v3623_v23  ;;  %v3694_v23 = vld [vmem:[%s5290_s0 + $0x20c] ss:$36 sps:$4 sm:$0xff]  }
  0x2b   :  { %2176 = vmatpush1.bf16.msra.mxu0 %v3624_v24  ;;  %1777 = vmatprep.subr.bf16.mxu1 %v4042_v0  ;;  %v3707_v24 = vld [vmem:[%s5289_s1 + $0x1e0] sm:$0xff]  }
  0x2c   :  { %2177 = vmatprep.subr.bf16.mxu0 %v4042_v0 }
  0x2e   :  { %1778 = vmatpush1.bf16.msra.mxu1 %v3625_v25  ;;  %v3768_v25 = vld [vmem:[%s5289_s1 + $0xe0] sm:$0xff]  }
  0x2f   :  { %2178 = vmatpush1.bf16.msra.mxu0 %v3626_v26  ;;  %1779 = vmatprep.subr.bf16.mxu1 %v4042_v0  ;;  %v3696_v26 = vld [vmem:[%s5290_s0 + $0x1f8] ss:$36 sps:$4 sm:$0xff]  }
  0x30   :  { %2179 = vmatprep.subr.bf16.mxu0 %v4042_v0 }
  0x32   :  { %1780 = vmatpush1.bf16.msra.mxu1 %v3627_v27  ;;  %v3715_v27 = vld [vmem:[%s5289_s1 + $0x1e8] sm:$0xff]  }
  0x33   :  { %2180 = vmatpush1.bf16.msra.mxu0 %v3628_v28  ;;  %1781 = vmatprep.subr.bf16.mxu1 %v4042_v0  ;;  %v3780_v28 = vld [vmem:[%s5289_s1 + $0xe8] sm:$0xff]  }
  0x34   :  { %2181 = vmatprep.subr.bf16.mxu0 %v4042_v0 }
  0x36   :  { %1782 = vmatpush1.bf16.msra.mxu1 %v3629_v29  ;;  %v3697_v29 = vld [vmem:[%s5290_s0 + $0x208] ss:$36 sps:$4 sm:$0xff]  }
  0x37   :  { %2182 = vmatpush1.bf16.msra.mxu0 %v3630_v30  ;;  %1783 = vmatprep.subr.bf16.mxu1 %v4042_v0  ;;  %v3701_v30 = vld [vmem:[%s5290_s0 + $0x244] ss:$36 sps:$4 sm:$0xff]  }
  0x38   :  { %2183 = vmatprep.subr.bf16.mxu0 %v4042_v0 }
  0x3a   :  { %1784 = vmatpush1.bf16.msra.mxu1 %v3631_v31  ;;  %v3703_v31 = vld [vmem:[%s5290_s0 + $0x254] ss:$36 sps:$4 sm:$0xff]  }
  0x3b   :  { %2184 = vmatpush1.bf16.msra.mxu0 %v3632_v32  ;;  %1785 = vmatprep.subr.bf16.mxu1 %v4042_v0  ;;  %v3716_v32 = vld [vmem:[%s5289_s1 + $0x1f0] sm:$0xff]  }
  0x3c   :  { %2185 = vmatprep.subr.bf16.mxu0 %v4042_v0 }
  0x3e   :  { %1786 = vmatpush1.bf16.msra.mxu1 %v3633_v33  ;;  %v3789_v33 = vld [vmem:[%s5289_s1 + $0xf0] sm:$0xff]  }
  0x3f   :  { %2186 = vmatpush1.bf16.msra.mxu0 %v3634_v34  ;;  %1955 = vmatprep.subr.bf16.mxu1 %v4042_v0  ;;  %v3724_v34 = vld [vmem:[%s5289_s1 + $0x1f8] sm:$0xff]  }
  0x40   :  { %2355 = vmatprep.subr.bf16.mxu0 %v4042_v0 }
  0x41   :  { %1788 = vmatmul.mubr.bf16.vlgmr.msra.gmra.mrb[0].mxu1 %v3635_v35  ;;  %v3795_v35 = vld [vmem:[%s5289_s1 + $0xf8] sm:$0xff]  }
  0x42   :  { %2188 = vmatmul.mubr.bf16.vlgmr.msra.gmra.mrb[0].mxu0 %v3638_v36  ;;  %1795 = vmatprep.mubr.bf16.mxu1 %v3642_v37  ;;  %v3705_v36 = vld [vmem:[%s5290_s0 + $0x240] ss:$36 sps:$4 sm:$0xff]   ;;  %v3706_v37 = vld [vmem:[%s5290_s0 + $0x250] ss:$36 sps:$4 sm:$0xff]  }
  0x43   :  { %2356 = vmatpush1.bf16.msra.mxu0 %v3641_v38  ;;  %1956 = vmatpush1.bf16.msra.mxu1 %v3644_v39  ;;  %v3709_v38 = vld [vmem:[%s5290_s0 + $0x28c] ss:$36 sps:$4 sm:$0xff]   ;;  %v3711_v39 = vld [vmem:[%s5290_s0 + $0x29c] ss:$36 sps:$4 sm:$0xff]  }
  0x44   :  { %2357 = vmatprep.subr.bf16.mxu0 %v4042_v0  ;;  %2195 = vmatprep.mubr.bf16.mxu0 %v3645_v40  ;;  %v4043_v40 = vmov 0.0  }
  0x45   :  { %1957 = vmatprep.subr.bf16.mxu1 %v4042_v0 }
  0x47   :  { %2358 = vmatpush1.bf16.msra.mxu0 %v3647_v41  ;;  %1958 = vmatpush1.bf16.msra.mxu1 %v3657_v43  ;;  %v3713_v41 = vld [vmem:[%s5290_s0 + $0x288] ss:$36 sps:$4 sm:$0xff]   ;;  %v3717_v43 = vld [vmem:[%s5290_s0 + $0x2d4] ss:$36 sps:$4 sm:$0xff]  }
  0x48   :  { %2359 = vmatprep.subr.bf16.mxu0 %v4042_v0  ;;  %1959 = vmatprep.subr.bf16.mxu1 %v4042_v0 }
  0x49   :  { %1796 = vmatmul.mubr.bf16.gmra.mrb[4].mxu1 %v3648_v42  ;;  %v3714_v42 = vld [vmem:[%s5290_s0 + $0x298] ss:$36 sps:$4 sm:$0xff]  }
  0x4a   :  { %2196 = vmatmul.mubr.bf16.gmra.mrb[4].mxu0 %v3649_v44  ;;  %1803 = vmatprep.mubr.bf16.mxu1 %v3651_v46  ;;  %v3719_v44 = vld [vmem:[%s5290_s0 + $0x2e4] ss:$36 sps:$4 sm:$0xff]  }
  0x4b   :  { %2360 = vmatpush1.bf16.msra.mxu0 %v3650_v45  ;;  %2203 = vmatprep.mubr.bf16.mxu0 %v3653_v47  ;;  %v3721_v45 = vld [vmem:[%s5290_s0 + $0x2d0] ss:$36 sps:$4 sm:$0xff]   ;;  %v3722_v46 = vld [vmem:[%s5290_s0 + $0x2e0] ss:$36 sps:$4 sm:$0xff]  }
  0x4c   :  { %2361 = vmatprep.subr.bf16.mxu0 %v4042_v0  ;;  %1960 = vmatpush1.bf16.msra.mxu1 %v3666_v48  ;;  %v3725_v47 = vld [vmem:[%s5290_s0 + $0x31c] ss:$36 sps:$4 sm:$0xff]  }
  0x4d   :  { %1961 = vmatprep.subr.bf16.mxu1 %v4042_v0  ;;  %v3729_v48 = vld [vmem:[%s5290_s0 + $0x1c] ss:$36 sps:$4 sm:$0xff]  }
  0x4f   :  { %2362 = vmatpush1.bf16.msra.mxu0 %v3658_v50  ;;  %v3727_v50 = vld [vmem:[%s5290_s0 + $0x18] ss:$36 sps:$4 sm:$0xff]  }
  0x50   :  { %2363 = vmatprep.subr.bf16.mxu0 %v4042_v0  ;;  %1962 = vmatpush1.bf16.msra.mxu1 %v3677_v51  ;;  %v3733_v51 = vld [vmem:[%s5290_s0 + $0x364] ss:$36 sps:$4 sm:$0xff]  }
  0x51   :  { %1804 = vmatmul.mubr.bf16.gmra.mrb[8].mxu1 %v3655_v49  ;;  %1963 = vmatprep.subr.bf16.mxu1 %v4042_v0  ;;  %v3730_v49 = vld [vmem:[%s5290_s0 + $0x318] ss:$36 sps:$4 sm:$0xff]  }
  0x52   :  { %2204 = vmatmul.mubr.bf16.gmra.mrb[8].mxu0 %v3656_v52  ;;  %1811 = vmatprep.mubr.bf16.mxu1 %v3659_v53  ;;  %v3731_v52 = vld [vmem:[%s5289_s1 + $0x200] sm:$0xff]  }
  0x53   :  { %2211 = vmatprep.mubr.bf16.mxu0 %v3661_v54  ;;  %2364 = vmatpush1.bf16.msra.mxu0 %v3663_v55  ;;  %v3735_v53 = vld [vmem:[%s5290_s0 + $0x64] ss:$36 sps:$4 sm:$0xff]  }
  0x54   :  { %2365 = vmatprep.subr.bf16.mxu0 %v4042_v0  ;;  %1964 = vmatpush1.bf16.msra.mxu1 %v3690_v56  ;;  %v3737_v54 = vld [vmem:[%s5290_s0 + $0x360] ss:$36 sps:$4 sm:$0xff]   ;;  %v3746_v55 = vld [vmem:[%s5289_s1 + $0x208] sm:$0xff]  }
  0x55   :  { %1965 = vmatprep.subr.bf16.mxu1 %v4042_v0  ;;  %v3738_v56 = vld [vmem:[%s5290_s0 + $0x60] ss:$36 sps:$4 sm:$0xff]  }
  0x57   :  { %2366 = vmatpush1.bf16.msra.mxu0 %v3667_v58  ;;  %v3742_v58 = vld [vmem:[%s5290_s0 + $0xac] ss:$36 sps:$4 sm:$0xff]  }
  0x58   :  { %2367 = vmatprep.subr.bf16.mxu0 %v4042_v0  ;;  %1966 = vmatpush1.bf16.msra.mxu1 %v3699_v59  ;;  %v3767_v59 = vld [vmem:[%s5289_s1 + $0x210] sm:$0xff]  }
  0x59   :  { %1812 = vmatmul.mubr.bf16.gmra.mrb[12].mxu1 %v3664_v57  ;;  %1967 = vmatprep.subr.bf16.mxu1 %v4042_v0  ;;  %v3740_v57 = vld [vmem:[%s5290_s0 + $0x3ac] ss:$36 sps:$4 sm:$0xff]  }
  0x5a   :  { %2212 = vmatmul.mubr.bf16.gmra.mrb[12].mxu0 %v3665_v60  ;;  %1819 = vmatprep.mubr.bf16.mxu1 %v3668_v61  ;;  %v3744_v60 = vld [vmem:[%s5290_s0 + $0x3a8] ss:$36 sps:$4 sm:$0xff]   ;;  %v3788_v61 = vld [vmem:[%s5289_s1 + $0x218] sm:$0xff]  }
  0x5b   :  { %2219 = vmatprep.mubr.bf16.mxu0 %v3670_v62  ;;  %2368 = vmatpush1.bf16.msra.mxu0 %v3674_v63  ;;  %v3745_v62 = vld [vmem:[%s5290_s0 + $0xa8] ss:$36 sps:$4 sm:$0xff]   ;;  %v3747_v63 = vld [vmem:[%s5290_s0 + $0x3f4] ss:$36 sps:$4 sm:$0xff]  }
  0x5c   :  { %2369 = vmatprep.subr.bf16.mxu0 %v4042_v0  ;;  %1968 = vmatpush1.bf16.msra.mxu1 %v3708_v1  ;;  %v3749_v1 = vld [vmem:[%s5290_s0 + $0xf4] ss:$36 sps:$4 sm:$0xff]  }
  0x5d   :  { %1969 = vmatprep.subr.bf16.mxu1 %v4042_v0 }
  0x5f   :  { %2370 = vmatpush1.bf16.msra.mxu0 %v3682_v2  ;;  %v3802_v2 = vld [vmem:[%s5289_s1 + $0x220] sm:$0xff]  }
  0x60   :  { %2371 = vmatprep.subr.bf16.mxu0 %v4042_v0  ;;  %1970 = vmatpush1.bf16.msra.mxu1 %v3723_v4  ;;  %v3821_v4 = vld [vmem:[%s5289_s1 + $0x228] sm:$0xff]  }
  0x61   :  { %1820 = vmatmul.mubr.bf16.gmra.mrb[16].mxu1 %v3672_v3  ;;  %1971 = vmatprep.subr.bf16.mxu1 %v4042_v0  ;;  %v3751_v3 = vld [vmem:[%s5290_s0 + $0x3f0] ss:$36 sps:$4 sm:$0xff]  }
  0x62   :  { %2220 = vmatmul.mubr.bf16.gmra.mrb[16].mxu0 %v3673_v5  ;;  %1827 = vmatprep.mubr.bf16.mxu1 %v3675_v6  ;;  %v3753_v5 = vld [vmem:[%s5290_s0 + $0xf0] ss:$36 sps:$4 sm:$0xff]   ;;  %v3754_v6 = vld [vmem:[%s5290_s0 + $0x43c] ss:$36 sps:$4 sm:$0xff]  }
  0x63   :  { %2227 = vmatprep.mubr.bf16.mxu0 %v3678_v7  ;;  %2372 = vmatpush1.bf16.msra.mxu0 %v3683_v8  ;;  %v3756_v7 = vld [vmem:[%s5290_s0 + $0x13c] ss:$36 sps:$4 sm:$0xff]   ;;  %v3838_v8 = vld [vmem:[%s5289_s1 + $0x230] sm:$0xff]  }
  0x64   :  { %2373 = vmatprep.subr.bf16.mxu0 %v4042_v0  ;;  %1972 = vmatpush1.bf16.msra.mxu1 %v3732_v9  ;;  %v3853_v9 = vld [vmem:[%s5289_s1 + $0x238] sm:$0xff]  }
  0x65   :  { %1973 = vmatprep.subr.bf16.mxu1 %v4042_v0 }
  0x67   :  { %2374 = vmatpush1.bf16.msra.mxu0 %v3691_v10  ;;  %v3758_v10 = vld [vmem:[%s5290_s0 + $0x438] ss:$36 sps:$4 sm:$0xff]  }
  0x68   :  { %2375 = vmatprep.subr.bf16.mxu0 %v4042_v0  ;;  %1974 = vmatpush1.bf16.msra.mxu1 %v3739_v12  ;;  %v3761_v12 = vld [vmem:[%s5290_s0 + $0x484] ss:$36 sps:$4 sm:$0xff]  }
  0x69   :  { %1828 = vmatmul.mubr.bf16.gmra.mrb[20].mxu1 %v3680_v11  ;;  %1975 = vmatprep.subr.bf16.mxu1 %v4042_v0  ;;  %v3759_v11 = vld [vmem:[%s5290_s0 + $0x138] ss:$36 sps:$4 sm:$0xff]  }
  0x6a   :  { %2228 = vmatmul.mubr.bf16.gmra.mrb[20].mxu0 %v3681_v13  ;;  %1835 = vmatprep.mubr.bf16.mxu1 %v3684_v14  ;;  %v3763_v13 = vld [vmem:[%s5290_s0 + $0x184] ss:$36 sps:$4 sm:$0xff]  }
  0x6b   :  { %2235 = vmatprep.mubr.bf16.mxu0 %v3686_v15  ;;  %2376 = vmatpush1.bf16.msra.mxu0 %v3698_v16  ;;  %v3765_v14 = vld [vmem:[%s5290_s0 + $0x480] ss:$36 sps:$4 sm:$0xff]   ;;  %v3769_v16 = vld [vmem:[%s5290_s0 + $0x4cc] ss:$36 sps:$4 sm:$0xff]  }
  0x6c   :  { %2377 = vmatprep.subr.bf16.mxu0 %v4042_v0  ;;  %1976 = vmatpush1.bf16.msra.mxu1 %v3752_v17  ;;  %v3766_v15 = vld [vmem:[%s5290_s0 + $0x180] ss:$36 sps:$4 sm:$0xff]   ;;  %v3771_v17 = vld [vmem:[%s5290_s0 + $0x1cc] ss:$36 sps:$4 sm:$0xff]  }
  0x6d   :  { %1977 = vmatprep.subr.bf16.mxu1 %v4042_v0 }
  0x6f   :  { %2378 = vmatpush1.bf16.msra.mxu0 %v3700_v19  ;;  %v3774_v19 = vld [vmem:[%s5290_s0 + $0x1c8] ss:$36 sps:$4 sm:$0xff]  }
  0x70   :  { %2379 = vmatprep.subr.bf16.mxu0 %v4042_v0  ;;  %1978 = vmatpush1.bf16.msra.mxu1 %v3760_v20  ;;  %v3775_v20 = vld [vmem:[%s5290_s0 + $0x514] ss:$36 sps:$4 sm:$0xff]  }
  0x71   :  { %1836 = vmatmul.mubr.bf16.gmra.mrb[24].mxu1 %v3688_v18  ;;  %1979 = vmatprep.subr.bf16.mxu1 %v4042_v0  ;;  %v3773_v18 = vld [vmem:[%s5290_s0 + $0x4c8] ss:$36 sps:$4 sm:$0xff]  }
  0x72   :  { %2236 = vmatmul.mubr.bf16.gmra.mrb[24].mxu0 %v3689_v21  ;;  %1843 = vmatprep.mubr.bf16.mxu1 %v3692_v22  ;;  %v3777_v21 = vld [vmem:[%s5290_s0 + $0x214] ss:$36 sps:$4 sm:$0xff]  }
  0x73   :  { %2243 = vmatprep.mubr.bf16.mxu0 %v3694_v23  ;;  %2380 = vmatpush1.bf16.msra.mxu0 %v3707_v24  ;;  %v3779_v22 = vld [vmem:[%s5290_s0 + $0x510] ss:$36 sps:$4 sm:$0xff]   ;;  %v3782_v24 = vld [vmem:[%s5290_s0 + $0x55c] ss:$36 sps:$4 sm:$0xff]  }
  0x74   :  { %2381 = vmatprep.subr.bf16.mxu0 %v4042_v0  ;;  %1980 = vmatpush1.bf16.msra.mxu1 %v3768_v25  ;;  %v3781_v23 = vld [vmem:[%s5290_s0 + $0x210] ss:$36 sps:$4 sm:$0xff]   ;;  %v3784_v25 = vld [vmem:[%s5290_s0 + $0x25c] ss:$36 sps:$4 sm:$0xff]  }
  0x75   :  { %1981 = vmatprep.subr.bf16.mxu1 %v4042_v0 }
  0x77   :  { %2382 = vmatpush1.bf16.msra.mxu0 %v3715_v27  ;;  %v3786_v27 = vld [vmem:[%s5290_s0 + $0x558] ss:$36 sps:$4 sm:$0xff]  }
  0x78   :  { %2383 = vmatprep.subr.bf16.mxu0 %v4042_v0  ;;  %1982 = vmatpush1.bf16.msra.mxu1 %v3780_v28  ;;  %v3787_v28 = vld [vmem:[%s5290_s0 + $0x258] ss:$36 sps:$4 sm:$0xff]  }
  0x79   :  { %1844 = vmatmul.mubr.bf16.gmra.mrb[28].mxu1 %v3696_v26  ;;  %1983 = vmatprep.subr.bf16.mxu1 %v4042_v0  ;;  %v215_v26 = vld [vmem:[%s5290_s0 + $0x5a0] sm:$0x33] }
  0x7a   :  { %2244 = vmatmul.mubr.bf16.gmra.mrb[28].mxu0 %v3697_v29  ;;  %1851 = vmatprep.mubr.bf16.mxu1 %v3701_v30  ;;  %v3025_v29 = vcombine.high %v215_v26, %v215_v26  ;;  %v3791_v30 = vld [vmem:[%s5290_s0 + $0x2a4] ss:$36 sps:$4 sm:$0xff]  }
  0x7b   :  { %2251 = vmatprep.mubr.bf16.mxu0 %v3703_v31  ;;  %2384 = vmatpush1.bf16.msra.mxu0 %v3716_v32  ;;  %v3024_v31 = vcombine.low %v215_v26, %v215_v26  ;;  %v3794_v32 = vld [vmem:[%s5290_s0 + $0x2a0] ss:$36 sps:$4 sm:$0xff]   ;;  %v3859_v26 = vld [vmem:[%s5290_s0 + $0x570] ss:$36 sps:$4 sm:$0xff]  }
  0x7c   :  { %2385 = vmatprep.subr.bf16.mxu0 %v4042_v0  ;;  %1984 = vmatpush1.bf16.msra.mxu1 %v3789_v33  ;;  %v3798_v33 = vld [vmem:[%s5290_s0 + $0xc] ss:$36 sps:$4 sm:$0xff]  }
  0x7d   :  { %1985 = vmatprep.subr.bf16.mxu1 %v4042_v0 }
  0x7f   :  { %2386 = vmatpush1.bf16.msra.mxu0 %v3724_v34  ;;  %v3799_v34 = vld [vmem:[%s5290_s0 + $0x2ec] ss:$36 sps:$4 sm:$0xff]  }
  0x80   :  { %3134 = vmatprep.subr.bf16.mxu0 %v4043_v40  ;;  %1986 = vmatpush1.bf16.msra.mxu1 %v3795_v35  ;;  %v3796_v35 = vld [vmem:[%s5290_s0 + $0x8] ss:$36 sps:$4 sm:$0xff]  }
  0x81   :  { %1852 = vmatmul.mubr.bf16.gmra.mrb[32].mxu1 %v3705_v36  ;;  %3234 = vmatprep.subr.bf16.mxu1 %v4042_v0  ;;  %v3801_v36 = vld [vmem:[%s5290_s0 + $0x2e8] ss:$36 sps:$4 sm:$0xff]  }
  0x82   :  { %2252 = vmatmul.mubr.bf16.gmra.mrb[32].mxu0 %v3706_v37  ;;  %1859 = vmatprep.mubr.bf16.mxu1 %v3709_v38  ;;  %v3803_v37 = vld [vmem:[%s5290_s0 + $0x54] ss:$36 sps:$4 sm:$0xff]  }
  0x83   :  { %2259 = vmatprep.mubr.bf16.mxu0 %v3711_v39  ;;  %v3805_v38 = vld [vmem:[%s5290_s0 + $0x334] ss:$36 sps:$4 sm:$0xff]   ;;  %v4026_v39 = vld [vmem:[%s5289_s1 + $0x100] sm:$0xff]  }
  0x89   :  { %1860 = vmatmul.mubr.bf16.gmra.mrb[36].mxu1 %v3713_v41  ;;  %v3807_v41 = vld [vmem:[%s5290_s0 + $0x50] ss:$36 sps:$4 sm:$0xff]  }
  0x8a   :  { %2260 = vmatmul.mubr.bf16.gmra.mrb[36].mxu0 %v3714_v42  ;;  %1867 = vmatprep.mubr.bf16.mxu1 %v3717_v43  ;;  %v3808_v42 = vld [vmem:[%s5290_s0 + $0x330] ss:$36 sps:$4 sm:$0xff]   ;;  %v3809_v43 = vld [vmem:[%s5290_s0 + $0x9c] ss:$36 sps:$4 sm:$0xff]  }
  0x8b   :  { %2267 = vmatprep.mubr.bf16.mxu0 %v3719_v44  ;;  %v3811_v44 = vld [vmem:[%s5290_s0 + $0x37c] ss:$36 sps:$4 sm:$0xff]  }
  0x91   :  { %1868 = vmatmul.mubr.bf16.gmra.mrb[40].mxu1 %v3721_v45  ;;  %v4027_v45 = vld [vmem:[%s5289_s1 + $0x108] sm:$0xff]  }
  0x92   :  { %2268 = vmatmul.mubr.bf16.gmra.mrb[40].mxu0 %v3722_v46  ;;  %1875 = vmatprep.mubr.bf16.mxu1 %v3725_v47  ;;  %v4028_v46 = vld [vmem:[%s5289_s1 + $0x110] sm:$0xff]   ;;  %v3813_v47 = vld [vmem:[%s5290_s0 + $0x98] ss:$36 sps:$4 sm:$0xff]  }
  0x93   :  { %2387 = vmatprep.mubr.bf16.mxu0 %v3729_v48  ;;  %v3814_v48 = vld [vmem:[%s5290_s0 + $0x378] ss:$36 sps:$4 sm:$0xff]  }
  0x99   :  { %1876 = vmatmul.mubr.bf16.gmra.mrb[44].mxu1 %v3730_v49  ;;  %v3815_v49 = vld [vmem:[%s5290_s0 + $0xe4] ss:$36 sps:$4 sm:$0xff]  }
  0x9a   :  { %2388 = vmatmul.mubr.bf16.vlgmr.msra.gmra.mrb[0].mxu0 %v3727_v50  ;;  %1883 = vmatprep.mubr.bf16.mxu1 %v3733_v51  ;;  %v3817_v50 = vld [vmem:[%s5290_s0 + $0x3c4] ss:$36 sps:$4 sm:$0xff]   ;;  %v4029_v51 = vld [vmem:[%s5289_s1 + $0x118] sm:$0xff]  }
  0x9b   :  { %3135 = vmatpush3.bf16.msra.mxu0 %v3731_v52  ;;  %2395 = vmatprep.mubr.bf16.mxu0 %v3735_v53  ;;  %v4030_v52 = vld [vmem:[%s5289_s1 + $0x120] sm:$0xff]  }
  0x9c   :  { %3136 = vmatprep.subr.bf16.mxu0 %v4043_v40  ;;  %v3819_v53 = vld [vmem:[%s5290_s0 + $0xe0] ss:$36 sps:$4 sm:$0xff]  }
  0x9f   :  { %3137 = vmatpush3.bf16.msra.mxu0 %v3746_v55  ;;  %v3822_v55 = vld [vmem:[%s5290_s0 + $0x12c] ss:$36 sps:$4 sm:$0xff]  }
  0xa0   :  { %3138 = vmatprep.subr.bf16.mxu0 %v4043_v40 }
  0xa1   :  { %1884 = vmatmul.mubr.bf16.gmra.mrb[48].mxu1 %v3737_v54  ;;  %v3820_v54 = vld [vmem:[%s5290_s0 + $0x3c0] ss:$36 sps:$4 sm:$0xff]  }
  0xa2   :  { %2396 = vmatmul.mubr.bf16.gmra.mrb[4].mxu0 %v3738_v56  ;;  %1891 = vmatprep.mubr.bf16.mxu1 %v3740_v57  ;;  %v3824_v56 = vld [vmem:[%s5290_s0 + $0x40c] ss:$36 sps:$4 sm:$0xff]  }
  0xa3   :  { %2403 = vmatprep.mubr.bf16.mxu0 %v3742_v58  ;;  %3139 = vmatpush3.bf16.msra.mxu0 %v3767_v59  ;;  %v4031_v57 = vld [vmem:[%s5289_s1 + $0x128] sm:$0xff]   ;;  %v4032_v58 = vld [vmem:[%s5289_s1 + $0x130] sm:$0xff]  }
  0xa4   :  { %3140 = vmatprep.subr.bf16.mxu0 %v4043_v40  ;;  %v3826_v59 = vld [vmem:[%s5290_s0 + $0x128] ss:$36 sps:$4 sm:$0xff]  }
  0xa7   :  { %3141 = vmatpush3.bf16.msra.mxu0 %v3788_v61  ;;  %v3828_v61 = vld [vmem:[%s5290_s0 + $0x174] ss:$36 sps:$4 sm:$0xff]  }
  0xa8   :  { %3142 = vmatprep.subr.bf16.mxu0 %v4043_v40 }
  0xa9   :  { %1892 = vmatmul.mubr.bf16.gmra.mrb[52].mxu1 %v3744_v60  ;;  %v3827_v60 = vld [vmem:[%s5290_s0 + $0x408] ss:$36 sps:$4 sm:$0xff]  }
  0xaa   :  { %2404 = vmatmul.mubr.bf16.gmra.mrb[8].mxu0 %v3745_v62  ;;  %1899 = vmatprep.mubr.bf16.mxu1 %v3747_v63  ;;  %v3830_v62 = vld [vmem:[%s5290_s0 + $0x454] ss:$36 sps:$4 sm:$0xff]  }
  0xab   :  { %2411 = vmatprep.mubr.bf16.mxu0 %v3749_v1  ;;  %3143 = vmatpush3.bf16.msra.mxu0 %v3802_v2  ;;  %v4033_v63 = vld [vmem:[%s5289_s1 + $0x138] sm:$0xff]   ;;  %v4034_v1 = vld [vmem:[%s5289_s1 + $0x140] sm:$0xff]   ;;  %v3832_v2 = vld [vmem:[%s5290_s0 + $0x170] ss:$36 sps:$4 sm:$0xff]  }
  0xac   :  { %3144 = vmatprep.subr.bf16.mxu0 %v4043_v40 }
  0xaf   :  { %3145 = vmatpush3.bf16.msra.mxu0 %v3821_v4  ;;  %v3834_v4 = vld [vmem:[%s5290_s0 + $0x1bc] ss:$36 sps:$4 sm:$0xff]  }
  0xb0   :  { %3146 = vmatprep.subr.bf16.mxu0 %v4043_v40 }
  0xb1   :  { %1900 = vmatmul.mubr.bf16.gmra.mrb[56].mxu1 %v3751_v3  ;;  %v3833_v3 = vld [vmem:[%s5290_s0 + $0x450] ss:$36 sps:$4 sm:$0xff]  }
  0xb2   :  { %2412 = vmatmul.mubr.bf16.gmra.mrb[12].mxu0 %v3753_v5  ;;  %1907 = vmatprep.mubr.bf16.mxu1 %v3754_v6  ;;  %v3836_v5 = vld [vmem:[%s5290_s0 + $0x49c] ss:$36 sps:$4 sm:$0xff]   ;;  %v4035_v6 = vld [vmem:[%s5289_s1 + $0x148] sm:$0xff]  }
  0xb3   :  { %2419 = vmatprep.mubr.bf16.mxu0 %v3756_v7  ;;  %3147 = vmatpush3.bf16.msra.mxu0 %v3838_v8  ;;  %v4036_v7 = vld [vmem:[%s5289_s1 + $0x150] sm:$0xff]   ;;  %v3839_v8 = vld [vmem:[%s5290_s0 + $0x1b8] ss:$36 sps:$4 sm:$0xff]  }
  0xb4   :  { %3148 = vmatprep.subr.bf16.mxu0 %v4043_v40 }
  0xb7   :  { %3149 = vmatpush3.bf16.msra.mxu0 %v3853_v9  ;;  %v3840_v9 = vld [vmem:[%s5290_s0 + $0x498] ss:$36 sps:$4 sm:$0xff]  }
  0xb9   :  { %1908 = vmatmul.mubr.bf16.gmra.mrb[60].mxu1 %v3758_v10  ;;  %v3841_v10 = vld [vmem:[%s5290_s0 + $0x204] ss:$36 sps:$4 sm:$0xff]  }
  0xba   :  { %2420 = vmatmul.mubr.bf16.gmra.mrb[16].mxu0 %v3759_v11  ;;  %1915 = vmatprep.mubr.bf16.mxu1 %v3761_v12  ;;  %v3843_v11 = vld [vmem:[%s5290_s0 + $0x4e4] ss:$36 sps:$4 sm:$0xff]   ;;  %v4037_v12 = vld [vmem:[%s5289_s1 + $0x158] sm:$0xff]  }
  0xbb   :  { %2427 = vmatprep.mubr.bf16.mxu0 %v3763_v13  ;;  %v4038_v13 = vld [vmem:[%s5289_s1 + $0x160] sm:$0xff]  }
  0xc1   :  { %1916 = vmatmul.mubr.bf16.gmra.mrb[64].mxu1 %v3765_v14  ;;  %v3845_v14 = vld [vmem:[%s5290_s0 + $0x200] ss:$36 sps:$4 sm:$0xff]  }
  0xc2   :  { %2428 = vmatmul.mubr.bf16.gmra.mrb[20].mxu0 %v3766_v15  ;;  %1923 = vmatprep.mubr.bf16.mxu1 %v3769_v16  ;;  %v3846_v15 = vld [vmem:[%s5290_s0 + $0x4e0] ss:$36 sps:$4 sm:$0xff]   ;;  %v3847_v16 = vld [vmem:[%s5290_s0 + $0x24c] ss:$36 sps:$4 sm:$0xff]  }
  0xc3   :  { %2435 = vmatprep.mubr.bf16.mxu0 %v3771_v17  ;;  %v3849_v17 = vld [vmem:[%s5290_s0 + $0x52c] ss:$36 sps:$4 sm:$0xff]  }
  0xc9   :  { %1924 = vmatmul.mubr.bf16.gmra.mrb[68].mxu1 %v3773_v18  ;;  %v4039_v18 = vld [vmem:[%s5289_s1 + $0x168] sm:$0xff]  }
  0xca   :  { %2436 = vmatmul.mubr.bf16.gmra.mrb[24].mxu0 %v3774_v19  ;;  %1931 = vmatprep.mubr.bf16.mxu1 %v3775_v20  ;;  %v4040_v19 = vld [vmem:[%s5289_s1 + $0x170] sm:$0xff]   ;;  %v3851_v20 = vld [vmem:[%s5290_s0 + $0x248] ss:$36 sps:$4 sm:$0xff]  }
  0xcb   :  { %2443 = vmatprep.mubr.bf16.mxu0 %v3777_v21  ;;  %v3852_v21 = vld [vmem:[%s5290_s0 + $0x528] ss:$36 sps:$4 sm:$0xff]  }
  0xd1   :  { %1932 = vmatmul.mubr.bf16.gmra.mrb[72].mxu1 %v3779_v22  ;;  %v3854_v22 = vld [vmem:[%s5290_s0 + $0x294] ss:$36 sps:$4 sm:$0xff]  }
  0xd2   :  { %2444 = vmatmul.mubr.bf16.gmra.mrb[28].mxu0 %v3781_v23  ;;  %1939 = vmatprep.mubr.bf16.mxu1 %v3782_v24  ;;  %v3856_v23 = vld [vmem:[%s5290_s0 + $0x574] ss:$36 sps:$4 sm:$0xff]  }
  0xd3   :  { %2451 = vmatprep.mubr.bf16.mxu0 %v3784_v25  ;;  %v218_v24 = vld [vmem:[%s5290_s0 + $0x5b8] sm:$0x33]  ;;  %v3858_v25 = vld [vmem:[%s5290_s0 + $0x290] ss:$36 sps:$4 sm:$0xff]  }
  0xd9   :  { %1940 = vmatmul.mubr.bf16.gmra.mrb[76].mxu1 %v3786_v27  ;;  %v3860_v27 = vld [vmem:[%s5290_s0 + $0x2dc] ss:$36 sps:$4 sm:$0xff]  }
  0xda   :  { %2452 = vmatmul.mubr.bf16.gmra.mrb[32].mxu0 %v3787_v28  ;;  %1947 = vmatprep.mubr.bf16.mxu1 %v3025_v29  ;;  %v3031_v28 = vcombine.high %v218_v24, %v218_v24  ;;  %v3863_v29 = vld [vmem:[%s5290_s0 + $0x2d8] ss:$36 sps:$4 sm:$0xff]  }
  0xdb   :  { %2459 = vmatprep.mubr.bf16.mxu0 %v3791_v30  ;;  %v3030_v30 = vcombine.low %v218_v24, %v218_v24 }
  0xe1   :  { %1948 = vmatmul.mubr.bf16.gmra.mrb[80].mxu1 %v3024_v31  ;;  %v3865_v31 = vld [vmem:[%s5290_s0 + $0x324] ss:$36 sps:$4 sm:$0xff]  }
  0xe2   :  { %2460 = vmatmul.mubr.bf16.gmra.mrb[36].mxu0 %v3794_v32  ;;  %1987 = vmatprep.mubr.bf16.mxu1 %v3798_v33  ;;  %v3867_v32 = vld [vmem:[%s5290_s0 + $0x320] ss:$36 sps:$4 sm:$0xff]  }
  0xe3   :  { %2467 = vmatprep.mubr.bf16.mxu0 %v3799_v34  ;;  %v3868_v33 = vld [vmem:[%s5290_s0 + $0x20] ss:$36 sps:$4 sm:$0xff]   ;;  %v3869_v34 = vld [vmem:[%s5290_s0 + $0x36c] ss:$36 sps:$4 sm:$0xff]  }
  0xe9   :  { %1988 = vmatmul.mubr.bf16.vlgmr.msra.gmra.mrb[0].mxu1 %v3796_v35  ;;  %v3871_v35 = vld [vmem:[%s5290_s0 + $0x368] ss:$36 sps:$4 sm:$0xff]  }
  0xea   :  { %2468 = vmatmul.mubr.bf16.gmra.mrb[40].mxu0 %v3801_v36  ;;  %1995 = vmatprep.mubr.bf16.mxu1 %v3803_v37  ;;  %v3872_v36 = vld [vmem:[%s5290_s0 + $0x68] ss:$36 sps:$4 sm:$0xff]   ;;  %v3873_v37 = vld [vmem:[%s5290_s0 + $0x3b4] ss:$36 sps:$4 sm:$0xff]  }
  0xeb   :  { %3250 = vmatpush1.bf16.msra.mxu1 %v4026_v39  ;;  %2475 = vmatprep.mubr.bf16.mxu0 %v3805_v38  ;;  %v3875_v38 = vld [vmem:[%s5290_s0 + $0x3b0] ss:$36 sps:$4 sm:$0xff]  }
  0xec   :  { %3235 = vmatprep.subr.bf16.mxu1 %v4042_v0  ;;  %v3876_v39 = vld [vmem:[%s5290_s0 + $0xb0] ss:$36 sps:$4 sm:$0xff]  }
  0xef   :  { %3251 = vmatpush1.bf16.msra.mxu1 %v4027_v45  ;;  %v3883_v45 = vld [vmem:[%s5290_s0 + $0x440] ss:$36 sps:$4 sm:$0xff]  }
  0xf0   :  { %3236 = vmatprep.subr.bf16.mxu1 %v4042_v0 }
  0xf1   :  { %1996 = vmatmul.mubr.bf16.gmra.mrb[4].mxu1 %v3807_v41  ;;  %v3877_v41 = vld [vmem:[%s5290_s0 + $0x3fc] ss:$36 sps:$4 sm:$0xff]  }
  0xf2   :  { %2476 = vmatmul.mubr.bf16.gmra.mrb[44].mxu0 %v3808_v42  ;;  %2003 = vmatprep.mubr.bf16.mxu1 %v3809_v43  ;;  %v3879_v42 = vld [vmem:[%s5290_s0 + $0x3f8] ss:$36 sps:$4 sm:$0xff]  }
  0xf3   :  { %2483 = vmatprep.mubr.bf16.mxu0 %v3811_v44  ;;  %3252 = vmatpush1.bf16.msra.mxu1 %v4028_v46  ;;  %v3880_v43 = vld [vmem:[%s5290_s0 + $0xf8] ss:$36 sps:$4 sm:$0xff]   ;;  %v3881_v44 = vld [vmem:[%s5290_s0 + $0x444] ss:$36 sps:$4 sm:$0xff]  }
  0xf4   :  { %3237 = vmatprep.subr.bf16.mxu1 %v4042_v0  ;;  %v3884_v46 = vld [vmem:[%s5290_s0 + $0x140] ss:$36 sps:$4 sm:$0xff]  }
  0xf7   :  { %3253 = vmatpush1.bf16.msra.mxu1 %v4029_v51  ;;  %v3891_v51 = vld [vmem:[%s5290_s0 + $0x4d0] ss:$36 sps:$4 sm:$0xff]  }
  0xf8   :  { %3238 = vmatprep.subr.bf16.mxu1 %v4042_v0 }
  0xf9   :  { %2004 = vmatmul.mubr.bf16.gmra.mrb[8].mxu1 %v3813_v47  ;;  %v3885_v47 = vld [vmem:[%s5290_s0 + $0x48c] ss:$36 sps:$4 sm:$0xff]  }
  0xfa   :  { %2484 = vmatmul.mubr.bf16.gmra.mrb[48].mxu0 %v3814_v48  ;;  %2011 = vmatprep.mubr.bf16.mxu1 %v3815_v49  ;;  %v3887_v48 = vld [vmem:[%s5290_s0 + $0x488] ss:$36 sps:$4 sm:$0xff]  }
  0xfb   :  { %2491 = vmatprep.mubr.bf16.mxu0 %v3817_v50  ;;  %3254 = vmatpush1.bf16.msra.mxu1 %v4030_v52  ;;  %v3888_v49 = vld [vmem:[%s5290_s0 + $0x188] ss:$36 sps:$4 sm:$0xff]   ;;  %v3889_v50 = vld [vmem:[%s5290_s0 + $0x4d4] ss:$36 sps:$4 sm:$0xff]  }
  0xfc   :  { %3239 = vmatprep.subr.bf16.mxu1 %v4042_v0  ;;  %v3892_v52 = vld [vmem:[%s5290_s0 + $0x1d0] ss:$36 sps:$4 sm:$0xff]  }
  0xff   :  { %3255 = vmatpush1.bf16.msra.mxu1 %v4031_v57  ;;  %v216_v57 = vld [vmem:[%s5290_s0 + $0x5a8] sm:$0x33] }
 0x100   :  { %3240 = vmatprep.subr.bf16.mxu1 %v4042_v0 }
 0x101   :  { %2012 = vmatmul.mubr.bf16.gmra.mrb[12].mxu1 %v3819_v53  ;;  %v3893_v53 = vld [vmem:[%s5290_s0 + $0x51c] ss:$36 sps:$4 sm:$0xff]  }
 0x102   :  { %2492 = vmatmul.mubr.bf16.gmra.mrb[52].mxu0 %v3820_v54  ;;  %2019 = vmatprep.mubr.bf16.mxu1 %v3822_v55  ;;  %v3895_v54 = vld [vmem:[%s5290_s0 + $0x518] ss:$36 sps:$4 sm:$0xff]  }
 0x103   :  { %2499 = vmatprep.mubr.bf16.mxu0 %v3824_v56  ;;  %3256 = vmatpush1.bf16.msra.mxu1 %v4032_v58  ;;  %v3896_v55 = vld [vmem:[%s5290_s0 + $0x218] ss:$36 sps:$4 sm:$0xff]   ;;  %v3897_v56 = vld [vmem:[%s5290_s0 + $0x564] ss:$36 sps:$4 sm:$0xff]  }
 0x104   :  { %3241 = vmatprep.subr.bf16.mxu1 %v4042_v0  ;;  %v3899_v58 = vld [vmem:[%s5290_s0 + $0x560] ss:$36 sps:$4 sm:$0xff]  }
 0x107   :  { %3257 = vmatpush1.bf16.msra.mxu1 %v4033_v63  ;;  %v3906_v63 = vld [vmem:[%s5290_s0 + $0x32c] ss:$36 sps:$4 sm:$0xff]  }
 0x108   :  { %3242 = vmatprep.subr.bf16.mxu1 %v4042_v0 }
 0x109   :  { %2020 = vmatmul.mubr.bf16.gmra.mrb[16].mxu1 %v3826_v59  ;;  %v3900_v59 = vld [vmem:[%s5290_s0 + $0x260] ss:$36 sps:$4 sm:$0xff]  }
 0x10a   :  { %2500 = vmatmul.mubr.bf16.gmra.mrb[56].mxu0 %v3827_v60  ;;  %2027 = vmatprep.mubr.bf16.mxu1 %v3828_v61  ;;  %v3027_v60 = vcombine.high %v216_v57, %v216_v57  ;;  %v3026_v61 = vcombine.low %v216_v57, %v216_v57 }
 0x10b   :  { %2507 = vmatprep.mubr.bf16.mxu0 %v3830_v62  ;;  %3258 = vmatpush1.bf16.msra.mxu1 %v4034_v1  ;;  %v3903_v62 = vld [vmem:[%s5290_s0 + $0x2a8] ss:$36 sps:$4 sm:$0xff]  }
 0x10c   :  { %3243 = vmatprep.subr.bf16.mxu1 %v4042_v0  ;;  %v3904_v1 = vld [vmem:[%s5290_s0 + $0x328] ss:$36 sps:$4 sm:$0xff]  }
 0x10f   :  { %3259 = vmatpush1.bf16.msra.mxu1 %v4035_v6  ;;  %v3912_v6 = vld [vmem:[%s5290_s0 + $0x3bc] ss:$36 sps:$4 sm:$0xff]  }
 0x110   :  { %3244 = vmatprep.subr.bf16.mxu1 %v4042_v0 }
 0x111   :  { %2028 = vmatmul.mubr.bf16.gmra.mrb[20].mxu1 %v3832_v2  ;;  %v3907_v2 = vld [vmem:[%s5290_s0 + $0x2f0] ss:$36 sps:$4 sm:$0xff]  }
 0x112   :  { %2508 = vmatmul.mubr.bf16.gmra.mrb[60].mxu0 %v3833_v3  ;;  %2035 = vmatprep.mubr.bf16.mxu1 %v3834_v4  ;;  %v3908_v3 = vld [vmem:[%s5290_s0 + $0x374] ss:$36 sps:$4 sm:$0xff]  }
 0x113   :  { %2515 = vmatprep.mubr.bf16.mxu0 %v3836_v5  ;;  %3260 = vmatpush1.bf16.msra.mxu1 %v4036_v7  ;;  %v3910_v4 = vld [vmem:[%s5290_s0 + $0x370] ss:$36 sps:$4 sm:$0xff]   ;;  %v3911_v5 = vld [vmem:[%s5290_s0 + $0x338] ss:$36 sps:$4 sm:$0xff]  }
 0x114   :  { %3245 = vmatprep.subr.bf16.mxu1 %v4042_v0  ;;  %v3914_v7 = vld [vmem:[%s5290_s0 + $0x3b8] ss:$36 sps:$4 sm:$0xff]  }
 0x117   :  { %3261 = vmatpush1.bf16.msra.mxu1 %v4037_v12  ;;  %v3920_v12 = vld [vmem:[%s5290_s0 + $0x44c] ss:$36 sps:$4 sm:$0xff]  }
 0x118   :  { %3246 = vmatprep.subr.bf16.mxu1 %v4042_v0 }
 0x119   :  { %2036 = vmatmul.mubr.bf16.gmra.mrb[24].mxu1 %v3839_v8  ;;  %v3915_v8 = vld [vmem:[%s5290_s0 + $0x380] ss:$36 sps:$4 sm:$0xff]  }
 0x11a   :  { %2516 = vmatmul.mubr.bf16.gmra.mrb[64].mxu0 %v3840_v9  ;;  %2043 = vmatprep.mubr.bf16.mxu1 %v3841_v10  ;;  %v3916_v9 = vld [vmem:[%s5290_s0 + $0x404] ss:$36 sps:$4 sm:$0xff]  }
 0x11b   :  { %2523 = vmatprep.mubr.bf16.mxu0 %v3843_v11  ;;  %3262 = vmatpush1.bf16.msra.mxu1 %v4038_v13  ;;  %v3918_v10 = vld [vmem:[%s5290_s0 + $0x400] ss:$36 sps:$4 sm:$0xff]   ;;  %v3919_v11 = vld [vmem:[%s5290_s0 + $0x3c8] ss:$36 sps:$4 sm:$0xff]  }
 0x11c   :  { %3247 = vmatprep.subr.bf16.mxu1 %v4042_v0  ;;  %v3922_v13 = vld [vmem:[%s5290_s0 + $0x448] ss:$36 sps:$4 sm:$0xff]  }
 0x11f   :  { %3263 = vmatpush1.bf16.msra.mxu1 %v4039_v18  ;;  %v3928_v18 = vld [vmem:[%s5290_s0 + $0x4dc] ss:$36 sps:$4 sm:$0xff]  }
 0x120   :  { %3248 = vmatprep.subr.bf16.mxu1 %v4042_v0 }
 0x121   :  { %2044 = vmatmul.mubr.bf16.gmra.mrb[28].mxu1 %v3845_v14  ;;  %v3923_v14 = vld [vmem:[%s5290_s0 + $0x410] ss:$36 sps:$4 sm:$0xff]  }
 0x122   :  { %2524 = vmatmul.mubr.bf16.gmra.mrb[68].mxu0 %v3846_v15  ;;  %2051 = vmatprep.mubr.bf16.mxu1 %v3847_v16  ;;  %v3924_v15 = vld [vmem:[%s5290_s0 + $0x494] ss:$36 sps:$4 sm:$0xff]  }
 0x123   :  { %2531 = vmatprep.mubr.bf16.mxu0 %v3849_v17  ;;  %3264 = vmatpush1.bf16.msra.mxu1 %v4040_v19  ;;  %v3926_v16 = vld [vmem:[%s5290_s0 + $0x490] ss:$36 sps:$4 sm:$0xff]   ;;  %v3927_v17 = vld [vmem:[%s5290_s0 + $0x458] ss:$36 sps:$4 sm:$0xff]  }
 0x124   :  { %3249 = vmatprep.subr.bf16.mxu1 %v4042_v0  ;;  %v4041_v0 = vld [vmem:[%s5289_s1 + $0x178] sm:$0xff]  }
 0x127   :  { %3265 = vmatpush1.bf16.msra.mxu1 %v4041_v0  ;;  %v3932_v0 = vld [vmem:[%s5290_s0 + $0x524] ss:$36 sps:$4 sm:$0xff]  }
 0x129   :  { %2052 = vmatmul.mubr.bf16.gmra.mrb[32].mxu1 %v3851_v20 }
 0x12a   :  { %2532 = vmatmul.mubr.bf16.gmra.mrb[72].mxu0 %v3852_v21  ;;  %2059 = vmatprep.mubr.bf16.mxu1 %v3854_v22  ;;  %v3930_v21 = vld [vmem:[%s5290_s0 + $0x4d8] ss:$36 sps:$4 sm:$0xff]  }
 0x12b   :  { %2539 = vmatprep.mubr.bf16.mxu0 %v3856_v23  ;;  %v3931_v23 = vld [vmem:[%s5290_s0 + $0x4a0] ss:$36 sps:$4 sm:$0xff]  }
 0x131   :  { %2060 = vmatmul.mubr.bf16.gmra.mrb[36].mxu1 %v3858_v25 }
 0x132   :  { %2540 = vmatmul.mubr.bf16.gmra.mrb[76].mxu0 %v3859_v26  ;;  %2067 = vmatprep.mubr.bf16.mxu1 %v3860_v27  ;;  %v3934_v27 = vld [vmem:[%s5290_s0 + $0x520] ss:$36 sps:$4 sm:$0xff]  }
 0x133   :  { %2547 = vmatprep.mubr.bf16.mxu0 %v3031_v28 }
 0x139   :  { %2068 = vmatmul.mubr.bf16.gmra.mrb[40].mxu1 %v3863_v29  ;;  %v3935_v29 = vld [vmem:[%s5290_s0 + $0x4e8] ss:$36 sps:$4 sm:$0xff]  }
 0x13a   :  { %2548 = vmatmul.mubr.bf16.gmra.mrb[80].mxu0 %v3030_v30  ;;  %2075 = vmatprep.mubr.bf16.mxu1 %v3865_v31  ;;  %v3936_v30 = vld [vmem:[%s5290_s0 + $0x56c] ss:$36 sps:$4 sm:$0xff]  }
 0x13b   :  { %3150 = vmatprep.mubr.msk.bf16.mxu0 %vm4044_vm0, %v4043_v40 }
 0x141   :  { %2076 = vmatmul.mubr.bf16.gmra.mrb[44].mxu1 %v3867_v32  ;;  %v217_v32 = vld [vmem:[%s5290_s0 + $0x5b0] sm:$0x33] }
 0x142   :  { %3151 = vmatmul.mubr.bf16.vlgmr.msra.gmra.mrb[0].mxu0 %v3868_v33  ;;  %2083 = vmatprep.mubr.bf16.mxu1 %v3869_v34 }
 0x143   :  { %3154 = vmatprep.mubr.msk.bf16.mxu0 %vm4044_vm0, %v4043_v40 }
 0x149   :  { %2084 = vmatmul.mubr.bf16.gmra.mrb[48].mxu1 %v3871_v35  ;;  %v3938_v35 = vld [vmem:[%s5290_s0 + $0x568] ss:$36 sps:$4 sm:$0xff]  }
 0x14a   :  { %3155 = vmatmul.mubr.bf16.gmra.mrb[4].mxu0 %v3872_v36  ;;  %2091 = vmatprep.mubr.bf16.mxu1 %v3873_v37  ;;  %v3939_v37 = vld [vmem:[%s5290_s0 + $0x530] ss:$36 sps:$4 sm:$0xff]  }
 0x14b   :  { %3158 = vmatprep.mubr.msk.bf16.mxu0 %vm4044_vm0, %v4043_v40 }
 0x151   :  { %2092 = vmatmul.mubr.bf16.gmra.mrb[52].mxu1 %v3875_v38  ;;  %v3029_v38 = vcombine.high %v217_v32, %v217_v32 }
 0x152   :  { %3159 = vmatmul.mubr.bf16.gmra.mrb[8].mxu0 %v3876_v39  ;;  %2099 = vmatprep.mubr.bf16.mxu1 %v3877_v41 }
 0x153   :  { %3162 = vmatprep.mubr.msk.bf16.mxu0 %vm4044_vm0, %v4043_v40 }
 0x159   :  { %2100 = vmatmul.mubr.bf16.gmra.mrb[56].mxu1 %v3879_v42 }
 0x15a   :  { %3163 = vmatmul.mubr.bf16.gmra.mrb[12].mxu0 %v3880_v43  ;;  %2107 = vmatprep.mubr.bf16.mxu1 %v3881_v44  ;;  %v3028_v43 = vcombine.low %v217_v32, %v217_v32 }
 0x15b   :  { %3166 = vmatprep.mubr.msk.bf16.mxu0 %vm4044_vm0, %v4043_v40 }
 0x161   :  { %2108 = vmatmul.mubr.bf16.gmra.mrb[60].mxu1 %v3883_v45  ;;  %v3942_v45 = vld [vmem:[%s5290_s0 + $0x578] ss:$36 sps:$4 sm:$0xff]  }
 0x162   :  { %3167 = vmatmul.mubr.bf16.gmra.mrb[16].mxu0 %v3884_v46  ;;  %2115 = vmatprep.mubr.bf16.mxu1 %v3885_v47 }
 0x163   :  { %3170 = vmatprep.mubr.msk.bf16.mxu0 %vm4044_vm0, %v4043_v40 }
 0x169   :  { %2116 = vmatmul.mubr.bf16.gmra.mrb[64].mxu1 %v3887_v48 }
 0x16a   :  { %3171 = vmatmul.mubr.bf16.gmra.mrb[20].mxu0 %v3888_v49  ;;  %2123 = vmatprep.mubr.bf16.mxu1 %v3889_v50  ;;  %v3943_v50 = vld [vmem:[%s5290_s0 + $0x5c0] ss:$0 sps:$4 sm:$0x33]  }
 0x16b   :  { %3174 = vmatprep.mubr.msk.bf16.mxu0 %vm4044_vm0, %v4043_v40 }
 0x171   :  { %2124 = vmatmul.mubr.bf16.gmra.mrb[68].mxu1 %v3891_v51 }
 0x172   :  { %3175 = vmatmul.mubr.bf16.gmra.mrb[24].mxu0 %v3892_v52  ;;  %2131 = vmatprep.mubr.bf16.mxu1 %v3893_v53 }
 0x173   :  { %3178 = vmatprep.mubr.msk.bf16.mxu0 %vm4044_vm0, %v4043_v40 }
 0x179   :  { %2132 = vmatmul.mubr.bf16.gmra.mrb[72].mxu1 %v3895_v54 }
 0x17a   :  { %3179 = vmatmul.mubr.bf16.gmra.mrb[28].mxu0 %v3896_v55  ;;  %2139 = vmatprep.mubr.bf16.mxu1 %v3897_v56 }
 0x17b   :  { %3182 = vmatprep.mubr.msk.bf16.mxu0 %vm4044_vm0, %v4043_v40 }
 0x181   :  { %2140 = vmatmul.mubr.bf16.gmra.mrb[76].mxu1 %v3899_v58 }
 0x182   :  { %3183 = vmatmul.mubr.bf16.gmra.mrb[32].mxu0 %v3900_v59  ;;  %2147 = vmatprep.mubr.bf16.mxu1 %v3027_v60 }
 0x183   :  { %3186 = vmatprep.mubr.msk.bf16.mxu0 %vm4044_vm0, %v4043_v40 }
 0x189   :  { %2148 = vmatmul.mubr.bf16.gmra.mrb[80].mxu1 %v3026_v61 }
 0x18a   :  { %3187 = vmatmul.mubr.bf16.gmra.mrb[36].mxu0 %v3903_v62  ;;  %2275 = vmatprep.mubr.bf16.mxu1 %v3906_v63 }
 0x18b   :  { %3190 = vmatprep.mubr.msk.bf16.mxu0 %vm4044_vm0, %v4043_v40 }
 0x191   :  { %2276 = vmatmul.mubr.bf16.vlgmr.msra.gmra.mrb[44].mxu1 %v3904_v1 }
 0x192   :  { %3191 = vmatmul.mubr.bf16.gmra.mrb[40].mxu0 %v3907_v2  ;;  %2283 = vmatprep.mubr.bf16.mxu1 %v3908_v3 }
 0x193   :  { %3194 = vmatprep.mubr.msk.bf16.mxu0 %vm4044_vm0, %v4043_v40 }
 0x199   :  { %2284 = vmatmul.mubr.bf16.gmra.mrb[48].mxu1 %v3910_v4 }
 0x19a   :  { %3195 = vmatmul.mubr.bf16.gmra.mrb[44].mxu0 %v3911_v5  ;;  %2291 = vmatprep.mubr.bf16.mxu1 %v3912_v6 }
 0x19b   :  { %3198 = vmatprep.mubr.msk.bf16.mxu0 %vm4044_vm0, %v4043_v40 }
 0x1a1   :  { %2292 = vmatmul.mubr.bf16.gmra.mrb[52].mxu1 %v3914_v7 }
 0x1a2   :  { %3199 = vmatmul.mubr.bf16.gmra.mrb[48].mxu0 %v3915_v8  ;;  %2299 = vmatprep.mubr.bf16.mxu1 %v3916_v9 }
 0x1a3   :  { %3202 = vmatprep.mubr.msk.bf16.mxu0 %vm4044_vm0, %v4043_v40 }
 0x1a9   :  { %2300 = vmatmul.mubr.bf16.gmra.mrb[56].mxu1 %v3918_v10 }
 0x1aa   :  { %3203 = vmatmul.mubr.bf16.gmra.mrb[52].mxu0 %v3919_v11  ;;  %2307 = vmatprep.mubr.bf16.mxu1 %v3920_v12  ;;  %v5061_v12 = vld [vmem:[%s5291_s2] ss:$0 sm:$0xff] }
 0x1ab   :  { %3206 = vmatprep.mubr.msk.bf16.mxu0 %vm4044_vm0, %v4043_v40 }
 0x1b1   :  { %2308 = vmatmul.mubr.bf16.gmra.mrb[60].mxu1 %v3922_v13 }
 0x1b2   :  { %3207 = vmatmul.mubr.bf16.gmra.mrb[56].mxu0 %v3923_v14  ;;  %2315 = vmatprep.mubr.bf16.mxu1 %v3924_v15 }
 0x1b3   :  { %3210 = vmatprep.mubr.msk.bf16.mxu0 %vm4044_vm0, %v4043_v40 }
 0x1b9   :  { %2316 = vmatmul.mubr.bf16.gmra.mrb[64].mxu1 %v3926_v16 }
 0x1ba   :  { %3211 = vmatmul.mubr.bf16.gmra.mrb[60].mxu0 %v3927_v17  ;;  %2323 = vmatprep.mubr.bf16.mxu1 %v3928_v18 }
 0x1bb   :  { %3214 = vmatprep.mubr.msk.bf16.mxu0 %vm4044_vm0, %v4043_v40 }
 0x1bc   :  { %v4973_v19 = vpop.f32.mrb[0].mxu1 }
 0x1bd   :  { %v1991_v20 = vpop.f32.mrb[1].mxu1  ;;  %v3266_v13 = vadd.f32 %v5061_v12, %v4973_v19 }
 0x1be   :  { %v4978_v22 = vpop.f32.mrb[2].mxu1 }
 0x1bf   :  { %v1994_v24 = vpop.f32.mrb[3].mxu1  ;;  %v3268_v15 = vadd.f32 %v5061_v12, %v4978_v22 }
 0x1c1   :  { %2324 = vmatmul.mubr.bf16.gmra.mrb[68].mxu1 %v3930_v21 }
 0x1c2   :  { %3215 = vmatmul.mubr.bf16.gmra.mrb[64].mxu0 %v3931_v23  ;;  %2331 = vmatprep.mubr.bf16.mxu1 %v3932_v0 }
 0x1c3   :  { %3218 = vmatprep.mubr.msk.bf16.mxu0 %vm4044_vm0, %v4043_v40 }
 0x1c4   :  { %v4988_v25 = vpop.f32.mrb[4].mxu1 }
 0x1c5   :  { %v1999_v26 = vpop.f32.mrb[5].mxu1  ;;  %v3270_v23 = vadd.f32 %v5061_v12, %v4988_v25 }
 0x1c6   :  { %v4993_v28 = vpop.f32.mrb[6].mxu1 }
 0x1c7   :  { %v2002_v31 = vpop.f32.mrb[7].mxu1  ;;  %v3272_v24 = vadd.f32 %v5061_v12, %v4993_v28 }
 0x1c9   :  { %2332 = vmatmul.mubr.bf16.gmra.mrb[72].mxu1 %v3934_v27 }
 0x1ca   :  { %3219 = vmatmul.mubr.bf16.gmra.mrb[68].mxu0 %v3935_v29  ;;  %2339 = vmatprep.mubr.bf16.mxu1 %v3936_v30 }
 0x1cb   :  { %3222 = vmatprep.mubr.msk.bf16.mxu0 %vm4044_vm0, %v4043_v40 }
 0x1cc   :  { %v5006_v33 = vpop.f32.mrb[8].mxu1 }
 0x1cd   :  { %v2007_v34 = vpop.f32.mrb[9].mxu1  ;;  %v3274_v25 = vadd.f32 %v5061_v12, %v5006_v33 }
 0x1ce   :  { %v5011_v36 = vpop.f32.mrb[10].mxu1 }
 0x1cf   :  { %v2010_v39 = vpop.f32.mrb[11].mxu1  ;;  %v3276_v32 = vadd.f32 %v5061_v12, %v5011_v36 }
 0x1d1   :  { %2340 = vmatmul.mubr.bf16.gmra.mrb[76].mxu1 %v3938_v35 }
 0x1d2   :  { %3223 = vmatmul.mubr.bf16.gmra.mrb[72].mxu0 %v3939_v37  ;;  %2347 = vmatprep.mubr.bf16.mxu1 %v3029_v38 }
 0x1d3   :  { %3226 = vmatprep.mubr.msk.bf16.mxu0 %vm4044_vm0, %v4043_v40 }
 0x1d4   :  { %v5018_v41 = vpop.f32.mrb[12].mxu1 }
 0x1d5   :  { %v2015_v42 = vpop.f32.mrb[13].mxu1 }
 0x1d6   :  { %v5020_v44 = vpop.f32.mrb[14].mxu1 }
 0x1d7   :  { %v2018_v46 = vpop.f32.mrb[15].mxu1 }
 0x1d9   :  { %2348 = vmatmul.mubr.bf16.gmra.mrb[80].mxu1 %v3028_v43  ;;  %v3278_v43 = vadd.f32 %v5061_v12, %v5018_v41 }
 0x1da   :  { %3227 = vmatmul.mubr.bf16.gmra.mrb[76].mxu0 %v3942_v45  ;;  %v3280_v45 = vadd.f32 %v5061_v12, %v5020_v44 }
 0x1db   :  { %3230 = vmatprep.mubr.msk.bf16.mxu0 %vm4044_vm0, %v4043_v40 }
 0x1dc   :  { %v5027_v47 = vpop.f32.mrb[16].mxu1 }
 0x1dd   :  { %v2023_v48 = vpop.f32.mrb[17].mxu1 }
 0x1de   :  { %v5029_v49 = vpop.f32.mrb[18].mxu1 }
 0x1df   :  { %v2026_v51 = vpop.f32.mrb[19].mxu1 }
 0x1e2   :  { %3231 = vmatmul.mubr.bf16.gmra.mrb[80].mxu0 %v3943_v50 }
 0x1e4   :  { %v5034_v52 = vpop.f32.mrb[20].mxu1 }
 0x1e5   :  { %v2031_v53 = vpop.f32.mrb[21].mxu1 }
 0x1e6   :  { %v5036_v54 = vpop.f32.mrb[22].mxu1 }
 0x1e7   :  { %v2034_v55 = vpop.f32.mrb[23].mxu1 }
 0x1ec   :  { %v5038_v56 = vpop.f32.mrb[24].mxu1 }
 0x1ed   :  { %v2039_v40 = vpop.f32.mrb[25].mxu1 }
 0x1ee   :  { %v5040_v57 = vpop.f32.mrb[26].mxu1  ;;  %v3282_v40 = vadd.f32 %v5061_v12, %v5027_v47 }
 0x1ef   :  { %v2042_v58 = vpop.f32.mrb[27].mxu1 }
 0x1f0   :  { %v3284_v58 = vadd.f32 %v5061_v12, %v5029_v49 }
 0x1f4   :  { %v5042_v59 = vpop.f32.mrb[28].mxu1 }
 0x1f5   :  { %v2047_v60 = vpop.f32.mrb[29].mxu1 }
 0x1f6   :  { %v5044_v61 = vpop.f32.mrb[30].mxu1 }
 0x1f7   :  { %v2050_v62 = vpop.f32.mrb[31].mxu1 }
 0x1fc   :  { %v5046_v63 = vpop.f32.mrb[32].mxu1 }
 0x1fd   :  { %v2055_v1 = vpop.f32.mrb[33].mxu1 }
 0x1fe   :  { %v5048_v2 = vpop.f32.mrb[34].mxu1 }
 0x1ff   :  { %v2058_v3 = vpop.f32.mrb[35].mxu1 }
 0x204   :  { %v5050_v4 = vpop.f32.mrb[36].mxu1 }
 0x205   :  { %v2063_v5 = vpop.f32.mrb[37].mxu1 }
 0x206   :  { %v5052_v6 = vpop.f32.mrb[38].mxu1 }
 0x207   :  { %v2066_v7 = vpop.f32.mrb[39].mxu1 }
 0x20c   :  { %v5054_v8 = vpop.f32.mrb[40].mxu1 }
 0x20d   :  { %v2071_v9 = vpop.f32.mrb[41].mxu1 }
 0x20e   :  { %v5056_v10 = vpop.f32.mrb[42].mxu1  ;;  %v3286_v9 = vadd.f32 %v5061_v12, %v5034_v52 }
 0x20f   :  { %v2074_v11 = vpop.f32.mrb[43].mxu1 }
 0x210   :  { %v3288_v11 = vadd.f32 %v5061_v12, %v5036_v54 }
 0x215   :  { %v2589_v14 = vpop.f32.mrb[0].mxu0 }
 0x216   :  { %v3267_v16 = vadd.f32 %v3266_v13, %v2589_v14  ;;  %v3152_v17 = vpop.f32.mrb[1].mxu0 }
 0x217   :  { %v2592_v18 = vpop.f32.mrb[2].mxu0 }
 0x218   :  { %3944 = vtanh.f32 %v3267_v16  ;;  %v3269_v20 = vadd.f32 %v3268_v15, %v2592_v18  ;;  %v3153_v21 = vpop.f32.mrb[3].mxu0 }
 0x219   :  { %v3292_v21 = vadd.f32 %v5061_v12, %v5040_v57 }
 0x21a   :  { %3946 = vtanh.f32 %v3269_v20  ;;  %v3290_v20 = vadd.f32 %v5061_v12, %v5038_v56 }
 0x21d   :  { %v2597_v0 = vpop.f32.mrb[4].mxu0 }
 0x21e   :  { %v3271_v26 = vadd.f32 %v3270_v23, %v2597_v0  ;;  %v3156_v19 = vpop.f32.mrb[5].mxu0 }
 0x21f   :  { %v2600_v27 = vpop.f32.mrb[6].mxu0 }
 0x220   :  { %3948 = vtanh.f32 %v3271_v26  ;;  %v3273_v22 = vadd.f32 %v3272_v24, %v2600_v27  ;;  %v3157_v29 = vpop.f32.mrb[7].mxu0 }
 0x221   :  { %v3296_v29 = vadd.f32 %v5061_v12, %v5044_v61 }
 0x222   :  { %v3945_v30 = vpop.eup %3944  ;;  %3950 = vtanh.f32 %v3273_v22  ;;  %v3294_v22 = vadd.f32 %v5061_v12, %v5042_v59 }
 0x223   :  { %2797 = vst.msk [vmem:[%s5292_s3] sm:$0xff] %vm2796_vm1, %v3945_v30 }
 0x224   :  { %v3947_v31 = vpop.eup %3946 }
 0x225   :  { %2798 = vst.msk [vmem:[%s5292_s3 + $0x8] sm:$0xff] %vm2796_vm1, %v3947_v31  ;;  %v2605_v28 = vpop.f32.mrb[8].mxu0 }
 0x226   :  { %v3275_v34 = vadd.f32 %v3274_v25, %v2605_v28  ;;  %v3160_v35 = vpop.f32.mrb[9].mxu0 }
 0x227   :  { %v2608_v37 = vpop.f32.mrb[10].mxu0  ;;  %v3298_v35 = vadd.f32 %v5061_v12, %v5046_v63 }
 0x228   :  { %3952 = vtanh.f32 %v3275_v34  ;;  %v3277_v38 = vadd.f32 %v3276_v32, %v2608_v37  ;;  %v3161_v39 = vpop.f32.mrb[11].mxu0  ;;  %v3300_v37 = vadd.f32 %v5061_v12, %v5048_v2 }
 0x22a   :  { %v3949_v42 = vpop.eup %3948  ;;  %3954 = vtanh.f32 %v3277_v38 }
 0x22b   :  { %2799 = vst.msk [vmem:[%s5292_s3 + $0x10] sm:$0xff] %vm2796_vm1, %v3949_v42 }
 0x22c   :  { %v3951_v33 = vpop.eup %3950 }
 0x22d   :  { %2800 = vst.msk [vmem:[%s5292_s3 + $0x18] sm:$0xff] %vm2796_vm1, %v3951_v33  ;;  %v2613_v36 = vpop.f32.mrb[12].mxu0 }
 0x22e   :  { %v3279_v46 = vadd.f32 %v3278_v43, %v2613_v36  ;;  %v3164_v48 = vpop.f32.mrb[13].mxu0 }
 0x22f   :  { %v2616_v50 = vpop.f32.mrb[14].mxu0 }
 0x230   :  { %3956 = vtanh.f32 %v3279_v46  ;;  %v3281_v51 = vadd.f32 %v3280_v45, %v2616_v50  ;;  %v3165_v53 = vpop.f32.mrb[15].mxu0  ;;  %v3302_v45 = vadd.f32 %v5061_v12, %v5050_v4  ;;  %v3304_v46 = vadd.f32 %v5061_v12, %v5052_v6 }
 0x232   :  { %v3953_v55 = vpop.eup %3952  ;;  %3958 = vtanh.f32 %v3281_v51 }
 0x233   :  { %2801 = vst.msk [vmem:[%s5292_s3 + $0x20] sm:$0xff] %vm2796_vm1, %v3953_v55 }
 0x234   :  { %v3955_v41 = vpop.eup %3954 }
 0x235   :  { %2802 = vst.msk [vmem:[%s5292_s3 + $0x28] sm:$0xff] %vm2796_vm1, %v3955_v41  ;;  %v2621_v44 = vpop.f32.mrb[16].mxu0 }
 0x236   :  { %v3283_v60 = vadd.f32 %v3282_v40, %v2621_v44  ;;  %v3168_v62 = vpop.f32.mrb[17].mxu0  ;;  %v3306_v40 = vadd.f32 %v5061_v12, %v5054_v8 }
 0x237   :  { %v2624_v1 = vpop.f32.mrb[18].mxu0 }
 0x238   :  { %3960 = vtanh.f32 %v3283_v60  ;;  %v3285_v3 = vadd.f32 %v3284_v58, %v2624_v1  ;;  %v3169_v5 = vpop.f32.mrb[19].mxu0  ;;  %v3308_v60 = vadd.f32 %v5061_v12, %v5056_v10 }
 0x23a   :  { %v3957_v7 = vpop.eup %3956  ;;  %3962 = vtanh.f32 %v3285_v3 }
 0x23b   :  { %2803 = vst.msk [vmem:[%s5292_s3 + $0x30] sm:$0xff] %vm2796_vm1, %v3957_v7 }
 0x23c   :  { %v3959_v47 = vpop.eup %3958 }
 0x23d   :  { %2804 = vst.msk [vmem:[%s5292_s3 + $0x38] sm:$0xff] %vm2796_vm1, %v3959_v47  ;;  %v2629_v49 = vpop.f32.mrb[20].mxu0 }
 0x23e   :  { %v3287_v13 = vadd.f32 %v3286_v9, %v2629_v49  ;;  %v3172_v14 = vpop.f32.mrb[21].mxu0 }
 0x23f   :  { %v2632_v15 = vpop.f32.mrb[22].mxu0 }
 0x240   :  { %3964 = vtanh.f32 %v3287_v13  ;;  %v3289_v16 = vadd.f32 %v3288_v11, %v2632_v15  ;;  %v3173_v17 = vpop.f32.mrb[23].mxu0 }
 0x242   :  { %v3961_v18 = vpop.eup %3960  ;;  %3966 = vtanh.f32 %v3289_v16 }
 0x243   :  { %2805 = vst.msk [vmem:[%s5292_s3 + $0x40] sm:$0xff] %vm2796_vm1, %v3961_v18 }
 0x244   :  { %v3963_v52 = vpop.eup %3962 }
 0x245   :  { %2806 = vst.msk [vmem:[%s5292_s3 + $0x48] sm:$0xff] %vm2796_vm1, %v3963_v52  ;;  %v2637_v54 = vpop.f32.mrb[24].mxu0 }
 0x246   :  { %v3291_v23 = vadd.f32 %v3290_v20, %v2637_v54  ;;  %v3176_v0 = vpop.f32.mrb[25].mxu0 }
 0x247   :  { %v2640_v24 = vpop.f32.mrb[26].mxu0 }
 0x248   :  { %3968 = vtanh.f32 %v3291_v23  ;;  %v3293_v26 = vadd.f32 %v3292_v21, %v2640_v24  ;;  %v3177_v19 = vpop.f32.mrb[27].mxu0 }
 0x24a   :  { %v3965_v27 = vpop.eup %3964  ;;  %3970 = vtanh.f32 %v3293_v26 }
 0x24b   :  { %2807 = vst.msk [vmem:[%s5292_s3 + $0x50] sm:$0xff] %vm2796_vm1, %v3965_v27 }
 0x24c   :  { %v3967_v56 = vpop.eup %3966 }
 0x24d   :  { %2808 = vst.msk [vmem:[%s5292_s3 + $0x58] sm:$0xff] %vm2796_vm1, %v3967_v56  ;;  %v2645_v57 = vpop.f32.mrb[28].mxu0 }
 0x24e   :  { %v3295_v30 = vadd.f32 %v3294_v22, %v2645_v57  ;;  %v3180_v31 = vpop.f32.mrb[29].mxu0 }
 0x24f   :  { %v2648_v25 = vpop.f32.mrb[30].mxu0 }
 0x250   :  { %3972 = vtanh.f32 %v3295_v30  ;;  %v3297_v28 = vadd.f32 %v3296_v29, %v2648_v25  ;;  %v3181_v32 = vpop.f32.mrb[31].mxu0 }
 0x252   :  { %v3969_v34 = vpop.eup %3968  ;;  %3974 = vtanh.f32 %v3297_v28 }
 0x253   :  { %2809 = vst.msk [vmem:[%s5292_s3 + $0x60] sm:$0xff] %vm2796_vm1, %v3969_v34 }
 0x254   :  { %v3971_v59 = vpop.eup %3970 }
 0x255   :  { %2810 = vst.msk [vmem:[%s5292_s3 + $0x68] sm:$0xff] %vm2796_vm1, %v3971_v59  ;;  %v2653_v61 = vpop.f32.mrb[32].mxu0 }
 0x256   :  { %v3299_v38 = vadd.f32 %v3298_v35, %v2653_v61  ;;  %v3184_v39 = vpop.f32.mrb[33].mxu0 }
 0x257   :  { %v2656_v42 = vpop.f32.mrb[34].mxu0 }
 0x258   :  { %3976 = vtanh.f32 %v3299_v38  ;;  %v3301_v33 = vadd.f32 %v3300_v37, %v2656_v42  ;;  %v3185_v43 = vpop.f32.mrb[35].mxu0 }
 0x25a   :  { %v3973_v36 = vpop.eup %3972  ;;  %3978 = vtanh.f32 %v3301_v33 }
 0x25b   :  { %2811 = vst.msk [vmem:[%s5292_s3 + $0x70] sm:$0xff] %vm2796_vm1, %v3973_v36 }
 0x25c   :  { %v3975_v63 = vpop.eup %3974 }
 0x25d   :  { %2812 = vst.msk [vmem:[%s5292_s3 + $0x78] sm:$0xff] %vm2796_vm1, %v3975_v63  ;;  %v2661_v2 = vpop.f32.mrb[36].mxu0 }
 0x25e   :  { %v3303_v48 = vadd.f32 %v3302_v45, %v2661_v2  ;;  %v3188_v50 = vpop.f32.mrb[37].mxu0 }
 0x25f   :  { %v2664_v51 = vpop.f32.mrb[38].mxu0 }
 0x260   :  { %3980 = vtanh.f32 %v3303_v48  ;;  %v3305_v53 = vadd.f32 %v3304_v46, %v2664_v51  ;;  %v3189_v55 = vpop.f32.mrb[39].mxu0 }
 0x262   :  { %v3977_v41 = vpop.eup %3976  ;;  %3982 = vtanh.f32 %v3305_v53 }
 0x263   :  { %2813 = vst.msk [vmem:[%s5292_s3 + $0x80] sm:$0xff] %vm2796_vm1, %v3977_v41 }
 0x264   :  { %v3979_v4 = vpop.eup %3978  ;;  %v2277_v44 = vpop.f32.mrb[44].mxu1 }
 0x265   :  { %2814 = vst.msk [vmem:[%s5292_s3 + $0x88] sm:$0xff] %vm2796_vm1, %v3979_v4  ;;  %v2669_v6 = vpop.f32.mrb[40].mxu0  ;;  %v2279_v58 = vpop.f32.mrb[45].mxu1  ;;  %v3310_v11 = vadd.f32 %v5061_v12, %v2277_v44 }
 0x266   :  { %v3307_v62 = vadd.f32 %v3306_v40, %v2669_v6  ;;  %v3192_v1 = vpop.f32.mrb[41].mxu0  ;;  %v2280_v3 = vpop.f32.mrb[46].mxu1 }
 0x267   :  { %v2672_v5 = vpop.f32.mrb[42].mxu0  ;;  %v2282_v7 = vpop.f32.mrb[47].mxu1  ;;  %v3312_v15 = vadd.f32 %v5061_v12, %v2280_v3 }
 0x268   :  { %3984 = vtanh.f32 %v3307_v62  ;;  %v3309_v47 = vadd.f32 %v3308_v60, %v2672_v5  ;;  %v3193_v9 = vpop.f32.mrb[43].mxu0 }
 0x26a   :  { %v3981_v8 = vpop.eup %3980  ;;  %3986 = vtanh.f32 %v3309_v47 }
 0x26b   :  { %2815 = vst.msk [vmem:[%s5292_s3 + $0x90] sm:$0xff] %vm2796_vm1, %v3981_v8 }
 0x26c   :  { %v3983_v49 = vpop.eup %3982  ;;  %v2285_v13 = vpop.f32.mrb[48].mxu1 }
 0x26d   :  { %2816 = vst.msk [vmem:[%s5292_s3 + $0x98] sm:$0xff] %vm2796_vm1, %v3983_v49  ;;  %v2677_v10 = vpop.f32.mrb[44].mxu0  ;;  %v2287_v14 = vpop.f32.mrb[49].mxu1  ;;  %v3314_v24 = vadd.f32 %v5061_v12, %v2285_v13 }
 0x26e   :  { %v3311_v16 = vadd.f32 %v3310_v11, %v2677_v10  ;;  %v3196_v17 = vpop.f32.mrb[45].mxu0  ;;  %v2288_v18 = vpop.f32.mrb[50].mxu1 }
 0x26f   :  { %v2680_v52 = vpop.f32.mrb[46].mxu0  ;;  %v2290_v20 = vpop.f32.mrb[51].mxu1  ;;  %v3316_v56 = vadd.f32 %v5061_v12, %v2288_v18 }
 0x270   :  { %3988 = vtanh.f32 %v3311_v16  ;;  %v3313_v54 = vadd.f32 %v3312_v15, %v2680_v52  ;;  %v3197_v21 = vpop.f32.mrb[47].mxu0 }
 0x272   :  { %v3985_v23 = vpop.eup %3984  ;;  %3990 = vtanh.f32 %v3313_v54 }
 0x273   :  { %2817 = vst.msk [vmem:[%s5292_s3 + $0xa0] sm:$0xff] %vm2796_vm1, %v3985_v23 }
 0x274   :  { %v3987_v0 = vpop.eup %3986  ;;  %v2293_v26 = vpop.f32.mrb[52].mxu1 }
 0x275   :  { %2818 = vst.msk [vmem:[%s5292_s3 + $0xa8] sm:$0xff] %vm2796_vm1, %v3987_v0  ;;  %v2685_v19 = vpop.f32.mrb[48].mxu0  ;;  %v2295_v27 = vpop.f32.mrb[53].mxu1  ;;  %v3318_v59 = vadd.f32 %v5061_v12, %v2293_v26 }
 0x276   :  { %v3315_v22 = vadd.f32 %v3314_v24, %v2685_v19  ;;  %v3200_v57 = vpop.f32.mrb[49].mxu0  ;;  %v2296_v29 = vpop.f32.mrb[54].mxu1 }
 0x277   :  { %v2688_v30 = vpop.f32.mrb[50].mxu0  ;;  %v2298_v31 = vpop.f32.mrb[55].mxu1  ;;  %v3320_v38 = vadd.f32 %v5061_v12, %v2296_v29 }
 0x278   :  { %3992 = vtanh.f32 %v3315_v22  ;;  %v3317_v25 = vadd.f32 %v3316_v56, %v2688_v30  ;;  %v3201_v28 = vpop.f32.mrb[51].mxu0 }
 0x27a   :  { %v3989_v32 = vpop.eup %3988  ;;  %3994 = vtanh.f32 %v3317_v25 }
 0x27b   :  { %2819 = vst.msk [vmem:[%s5292_s3 + $0xb0] sm:$0xff] %vm2796_vm1, %v3989_v32 }
 0x27c   :  { %v3991_v34 = vpop.eup %3990  ;;  %v2301_v35 = vpop.f32.mrb[56].mxu1 }
 0x27d   :  { %2820 = vst.msk [vmem:[%s5292_s3 + $0xb8] sm:$0xff] %vm2796_vm1, %v3991_v34  ;;  %v2693_v61 = vpop.f32.mrb[52].mxu0  ;;  %v2303_v37 = vpop.f32.mrb[57].mxu1  ;;  %v3322_v48 = vadd.f32 %v5061_v12, %v2301_v35 }
 0x27e   :  { %v3319_v39 = vadd.f32 %v3318_v59, %v2693_v61  ;;  %v3204_v42 = vpop.f32.mrb[53].mxu0  ;;  %v2304_v33 = vpop.f32.mrb[58].mxu1 }
 0x27f   :  { %v2696_v43 = vpop.f32.mrb[54].mxu0  ;;  %v2306_v36 = vpop.f32.mrb[59].mxu1  ;;  %v3324_v55 = vadd.f32 %v5061_v12, %v2304_v33 }
 0x280   :  { %3996 = vtanh.f32 %v3319_v39  ;;  %v3321_v63 = vadd.f32 %v3320_v38, %v2696_v43  ;;  %v3205_v45 = vpop.f32.mrb[55].mxu0 }
 0x282   :  { %v3993_v2 = vpop.eup %3992  ;;  %3998 = vtanh.f32 %v3321_v63 }
 0x283   :  { %2821 = vst.msk [vmem:[%s5292_s3 + $0xc0] sm:$0xff] %vm2796_vm1, %v3993_v2 }
 0x284   :  { %v3995_v46 = vpop.eup %3994  ;;  %v2309_v50 = vpop.f32.mrb[60].mxu1 }
 0x285   :  { %2822 = vst.msk [vmem:[%s5292_s3 + $0xc8] sm:$0xff] %vm2796_vm1, %v3995_v46  ;;  %v2701_v51 = vpop.f32.mrb[56].mxu0  ;;  %v2311_v53 = vpop.f32.mrb[61].mxu1  ;;  %v3326_v3 = vadd.f32 %v5061_v12, %v2309_v50 }
 0x286   :  { %v3323_v41 = vadd.f32 %v3322_v48, %v2701_v51  ;;  %v3208_v4 = vpop.f32.mrb[57].mxu0  ;;  %v2312_v40 = vpop.f32.mrb[62].mxu1 }
 0x287   :  { %v2704_v44 = vpop.f32.mrb[58].mxu0  ;;  %v2314_v6 = vpop.f32.mrb[63].mxu1  ;;  %v3328_v9 = vadd.f32 %v5061_v12, %v2312_v40 }
 0x288   :  { %4000 = vtanh.f32 %v3323_v41  ;;  %v3325_v58 = vadd.f32 %v3324_v55, %v2704_v44  ;;  %v3209_v60 = vpop.f32.mrb[59].mxu0 }
 0x28a   :  { %v3997_v62 = vpop.eup %3996  ;;  %4002 = vtanh.f32 %v3325_v58 }
 0x28b   :  { %2823 = vst.msk [vmem:[%s5292_s3 + $0xd0] sm:$0xff] %vm2796_vm1, %v3997_v62 }
 0x28c   :  { %v3999_v1 = vpop.eup %3998  ;;  %v2317_v5 = vpop.f32.mrb[64].mxu1 }
 0x28d   :  { %2824 = vst.msk [vmem:[%s5292_s3 + $0xd8] sm:$0xff] %vm2796_vm1, %v3999_v1  ;;  %v2709_v7 = vpop.f32.mrb[60].mxu0  ;;  %v2319_v47 = vpop.f32.mrb[65].mxu1  ;;  %v3330_v18 = vadd.f32 %v5061_v12, %v2317_v5 }
 0x28e   :  { %v3327_v8 = vadd.f32 %v3326_v3, %v2709_v7  ;;  %v3212_v49 = vpop.f32.mrb[61].mxu0  ;;  %v2320_v11 = vpop.f32.mrb[66].mxu1 }
 0x28f   :  { %v2712_v13 = vpop.f32.mrb[62].mxu0  ;;  %v2322_v10 = vpop.f32.mrb[67].mxu1  ;;  %v3332_v21 = vadd.f32 %v5061_v12, %v2320_v11 }
 0x290   :  { %4004 = vtanh.f32 %v3327_v8  ;;  %v3329_v14 = vadd.f32 %v3328_v9, %v2712_v13  ;;  %v3213_v15 = vpop.f32.mrb[63].mxu0 }
 0x292   :  { %v4001_v16 = vpop.eup %4000  ;;  %4006 = vtanh.f32 %v3329_v14 }
 0x293   :  { %2825 = vst.msk [vmem:[%s5292_s3 + $0xe0] sm:$0xff] %vm2796_vm1, %v4001_v16 }
 0x294   :  { %v4003_v17 = vpop.eup %4002  ;;  %v2325_v52 = vpop.f32.mrb[68].mxu1 }
 0x295   :  { %2826 = vst.msk [vmem:[%s5292_s3 + $0xe8] sm:$0xff] %vm2796_vm1, %v4003_v17  ;;  %v2717_v20 = vpop.f32.mrb[64].mxu0  ;;  %v2327_v54 = vpop.f32.mrb[69].mxu1  ;;  %v3334_v29 = vadd.f32 %v5061_v12, %v2325_v52 }
 0x296   :  { %v3331_v23 = vadd.f32 %v3330_v18, %v2717_v20  ;;  %v3216_v0 = vpop.f32.mrb[65].mxu0  ;;  %v2328_v24 = vpop.f32.mrb[70].mxu1 }
 0x297   :  { %v2720_v26 = vpop.f32.mrb[66].mxu0  ;;  %v2330_v19 = vpop.f32.mrb[71].mxu1  ;;  %v3336_v28 = vadd.f32 %v5061_v12, %v2328_v24 }
 0x298   :  { %4008 = vtanh.f32 %v3331_v23  ;;  %v3333_v27 = vadd.f32 %v3332_v21, %v2720_v26  ;;  %v3217_v56 = vpop.f32.mrb[67].mxu0 }
 0x29a   :  { %v4005_v22 = vpop.eup %4004  ;;  %4010 = vtanh.f32 %v3333_v27 }
 0x29b   :  { %2827 = vst.msk [vmem:[%s5292_s3 + $0xf0] sm:$0xff] %vm2796_vm1, %v4005_v22 }
 0x29c   :  { %v4007_v57 = vpop.eup %4006  ;;  %v2333_v30 = vpop.f32.mrb[72].mxu1 }
 0x29d   :  { %2828 = vst.msk [vmem:[%s5292_s3 + $0xf8] sm:$0xff] %vm2796_vm1, %v4007_v57  ;;  %v2725_v31 = vpop.f32.mrb[68].mxu0  ;;  %v2335_v25 = vpop.f32.mrb[73].mxu1  ;;  %v3338_v33 = vadd.f32 %v5061_v12, %v2333_v30 }
 0x29e   :  { %v3335_v32 = vadd.f32 %v3334_v29, %v2725_v31  ;;  %v3220_v34 = vpop.f32.mrb[69].mxu0  ;;  %v2336_v59 = vpop.f32.mrb[74].mxu1 }
 0x29f   :  { %v2728_v35 = vpop.f32.mrb[70].mxu0  ;;  %v2338_v61 = vpop.f32.mrb[75].mxu1  ;;  %v3340_v45 = vadd.f32 %v5061_v12, %v2336_v59 }
 0x2a0   :  { %4012 = vtanh.f32 %v3335_v32  ;;  %v3337_v37 = vadd.f32 %v3336_v28, %v2728_v35  ;;  %v3221_v38 = vpop.f32.mrb[71].mxu0 }
 0x2a2   :  { %v4009_v39 = vpop.eup %4008  ;;  %4014 = vtanh.f32 %v3337_v37 }
 0x2a3   :  { %2829 = vst.msk [vmem:[%s5292_s3 + $0x100] sm:$0xff] %vm2796_vm1, %v4009_v39 }
 0x2a4   :  { %v4011_v42 = vpop.eup %4010  ;;  %v2341_v43 = vpop.f32.mrb[76].mxu1 }
 0x2a5   :  { %2830 = vst.msk [vmem:[%s5292_s3 + $0x108] sm:$0xff] %vm2796_vm1, %v4011_v42  ;;  %v2733_v36 = vpop.f32.mrb[72].mxu0  ;;  %v2343_v63 = vpop.f32.mrb[77].mxu1  ;;  %v3342_v40 = vadd.f32 %v5061_v12, %v2341_v43 }
 0x2a6   :  { %v3339_v2 = vadd.f32 %v3338_v33, %v2733_v36  ;;  %v3224_v46 = vpop.f32.mrb[73].mxu0  ;;  %v2344_v48 = vpop.f32.mrb[78].mxu1 }
 0x2a7   :  { %v2736_v50 = vpop.f32.mrb[74].mxu0  ;;  %v2346_v51 = vpop.f32.mrb[79].mxu1  ;;  %v3344_v60 = vadd.f32 %v5061_v12, %v2344_v48 }
 0x2a8   :  { %4016 = vtanh.f32 %v3339_v2  ;;  %v3341_v53 = vadd.f32 %v3340_v45, %v2736_v50  ;;  %v3225_v55 = vpop.f32.mrb[75].mxu0 }
 0x2aa   :  { %v4013_v41 = vpop.eup %4012  ;;  %4018 = vtanh.f32 %v3341_v53 }
 0x2ab   :  { %2831 = vst.msk [vmem:[%s5292_s3 + $0x110] sm:$0xff] %vm2796_vm1, %v4013_v41 }
 0x2ac   :  { %v4015_v4 = vpop.eup %4014  ;;  %v2349_v44 = vpop.f32.mrb[80].mxu1 }
 0x2ad   :  { %2832 = vst.msk [vmem:[%s5292_s3 + $0x118] sm:$0xff] %vm2796_vm1, %v4015_v4  ;;  %v2741_v6 = vpop.f32.mrb[76].mxu0  ;;  %v2351_v58 = vpop.f32.mrb[81].mxu1  ;;  %v3346_v11 = vadd.f32 %v5061_v12, %v2349_v44 }
 0x2ae   :  { %v3343_v62 = vadd.f32 %v3342_v40, %v2741_v6  ;;  %v3228_v1 = vpop.f32.mrb[77].mxu0  ;;  %v2352_v3 = vpop.f32.mrb[82].mxu1 }
 0x2af   :  { %v2744_v5 = vpop.f32.mrb[78].mxu0  ;;  %v2353_v7 = vpop.f32.mrb[83].mxu1 }
 0x2b0   :  { %4020 = vtanh.f32 %v3343_v62  ;;  %v3345_v47 = vadd.f32 %v3344_v60, %v2744_v5  ;;  %v3229_v9 = vpop.f32.mrb[79].mxu0 }
 0x2b2   :  { %v4017_v8 = vpop.eup %4016  ;;  %4022 = vtanh.f32 %v3345_v47 }
 0x2b3   :  { %2833 = vst.msk [vmem:[%s5292_s3 + $0x120] sm:$0xff] %vm2796_vm1, %v4017_v8 }
 0x2b4   :  { %v4019_v49 = vpop.eup %4018 }
 0x2b5   :  { %2834 = vst.msk [vmem:[%s5292_s3 + $0x128] sm:$0xff] %vm2796_vm1, %v4019_v49  ;;  %v2749_v13 = vpop.f32.mrb[80].mxu0 }
 0x2b6   :  { %v3347_v10 = vadd.f32 %v3346_v11, %v2749_v13  ;;  %v3232_v14 = vpop.f32.mrb[81].mxu0 }
 0x2b7   :  { %v2752_v15 = vpop.f32.mrb[82].mxu0 }
 0x2b8   :  { %4024 = vtanh.f32 %v3347_v10  ;;  %v3233_v16 = vpop.f32.mrb[83].mxu0 }
 0x2ba   :  { %v4021_v17 = vpop.eup %4020 }
 0x2bb   :  { %2835 = vst.msk [vmem:[%s5292_s3 + $0x130] sm:$0xff] %vm2796_vm1, %v4021_v17 }
 0x2bc   :  { %v4023_v18 = vpop.eup %4022 }
 0x2bd   :  { %2836 = vst.msk [vmem:[%s5292_s3 + $0x138] sm:$0xff] %vm2796_vm1, %v4023_v18 }
 0x2c2   :  { %v4025_v12 = vpop.eup %4024 }
 0x2c3   :  { %2838 = vst.msk [vmem:[%s5292_s3 + $0x140] sm:$0xf] %vm2837_vm2, %v4025_v12 }

</bundles_post_ra>
